<compile_context>
chip_gen: v7x
topology: tpu7x:2x2x1
jax: 0.10.0
libtpu: 0.0.40
codegen_flags: <defaults>
</compile_context>

<pallas_src>
import functools
import math

import jax
import jax.numpy as jnp
import numpy as np
from jax.experimental import pallas as pl
from jax.experimental.pallas import tpu as pltpu


# ----------------------------- model config ---------------------------------
INPUT_DIM = 2
OUTPUT_DIM = 3
HIDDEN_DIM = 32
POSITIONAL_DIM = 10
SKIP_LAYERS = (4, 6)
NUM_LAYERS = 8
USE_TANH = True
APPLY_SOFTMAX = False                       # default in IMLP
ENC_DIM = 2 * INPUT_DIM * POSITIONAL_DIM    # 40
OUT_PAD = 8                                 # last-layer matmul padded 3 -> 8 rows
DOT_DTYPE = jnp.bfloat16                    # MXU input dtype on all generations


def _pe_constants():
    """Per-row scale/phase constants for positionalEncoding_vec's flat layout.

    enc row c = 4*k + j (k = frequency index, b_k = 2^k * pi):
      j == 0 -> sin(x0*b_k)            j == 1 -> sin(x1*b_k)
      j == 2 -> cos(x0*b_k)            j == 3 -> cos(x1*b_k)
    cos(t) = sin(t + pi/2), so a single sin with a phase constant suffices.
    """
    s0 = np.zeros((ENC_DIM, 1), np.float32)
    s1 = np.zeros((ENC_DIM, 1), np.float32)
    ph = np.zeros((ENC_DIM, 1), np.float32)
    for k in range(POSITIONAL_DIM):
        bk = (2.0 ** k) * math.pi
        s0[4 * k + 0, 0] = bk
        s1[4 * k + 1, 0] = bk
        s0[4 * k + 2, 0] = bk
        ph[4 * k + 2, 0] = math.pi / 2.0
        s1[4 * k + 3, 0] = bk
        ph[4 * k + 3, 0] = math.pi / 2.0
    return jnp.asarray(s0), jnp.asarray(s1), jnp.asarray(ph)


def _default_compute_dtype():
    """Activation-residency dtype: bf16 where the VPU/EUP handle bf16 natively
    (v6e/v7x and friends); f32 elementwise on v5e (dot inputs still bf16)."""
    try:
        kind = jax.devices()[0].device_kind.lower()
    except Exception:
        return jnp.bfloat16
    if "v5e" in kind or ("v5" in kind and "lite" in kind):
        return jnp.float32
    return jnp.bfloat16


def _choose_tile_n(n):
    """>=4 roughly equal tiles (keeps both v7x TCs fed, low padding waste),
    128-aligned so loads/stores stay lane-dense, clamped to [512, 8192]."""
    target = max(512, min(8192, -(-n // 4)))
    return -(-target // 128) * 128


# ------------------------------- kernel --------------------------------------
def imlp_kernel(xt_ref, s0_ref, s1_ref, ph_ref, *refs, compute_dtype):
    """One token tile.  refs = (18 param refs..., o_ref).

    Activations are feature-major (features, tile_n): lane axis = tokens.
    Weights arrive in bf16, biases in f32; matmuls accumulate in f32.
    """
    param_refs = refs[:-1]
    o_ref = refs[-1]

    # ---- fused positional encoding (single-sin form) -----------------------
    x0 = xt_ref[0:1, :]                                   # (1, tile_n) f32
    x1 = xt_ref[1:2, :]                                   # (1, tile_n) f32
    arg = s0_ref[...] * x0 + s1_ref[...] * x1 + ph_ref[...]   # f32, (ENC_DIM, tile_n)
    enc = jnp.sin(arg)                                    # f32 (range reduction!)
    enc_d = enc.astype(DOT_DTYPE)                         # skip-input dot operand

    h = enc.astype(compute_dtype)
    idx = 0
    for i in range(NUM_LAYERS):
        if i > 0:
            h = jnp.maximum(h, 0.0)                       # F.relu (residency dtype)
        hd = h.astype(DOT_DTYPE)
        if i in SKIP_LAYERS:
            # cat([h, enc]) @ W.T  ==  W_h @ h + W_e @ enc  (split weights)
            w_h = param_refs[idx][...]                    # (HIDDEN, HIDDEN) bf16
            w_e = param_refs[idx + 1][...]                # (HIDDEN, ENC_DIM) bf16
            b = param_refs[idx + 2][...]                  # (HIDDEN, 1) f32
            idx += 3
            acc = (jnp.dot(w_h, hd, preferred_element_type=jnp.float32)
                   + jnp.dot(w_e, enc_d, preferred_element_type=jnp.float32))
        else:
            w = param_refs[idx][...]                      # (out, in) bf16
            b = param_refs[idx + 1][...]                  # (out, 1) f32
            idx += 2
            acc = jnp.dot(w, hd, preferred_element_type=jnp.float32)
        h = (acc + b).astype(compute_dtype)

    if USE_TANH:
        h = jnp.tanh(h)
    # Store only the 3 real output rows (lane-dense, sublane-masked store);
    # the 8-row padding exists only so the last matmul operand is aligned.
    o_ref[...] = h[:OUTPUT_DIM].astype(o_ref.dtype)


# ------------------------------ params ----------------------------------------
def make_params(key):
    """Deterministic synthetic weights in torch.nn.Linear layout: W (out,in), b (out,1)."""
    layer_dims = []
    for i in range(NUM_LAYERS):
        if i == 0:
            in_d = ENC_DIM
        elif i in SKIP_LAYERS:
            in_d = HIDDEN_DIM + ENC_DIM
        else:
            in_d = HIDDEN_DIM
        out_d = OUTPUT_DIM if i == NUM_LAYERS - 1 else HIDDEN_DIM
        layer_dims.append((in_d, out_d))

    params = []
    keys = jax.random.split(key, 2 * NUM_LAYERS)
    for i, (in_d, out_d) in enumerate(layer_dims):
        scale = 1.0 / math.sqrt(in_d)
        w = jax.random.uniform(keys[2 * i], (out_d, in_d), jnp.float32,
                               minval=-scale, maxval=scale)
        b = jax.random.uniform(keys[2 * i + 1], (out_d, 1), jnp.float32,
                               minval=-scale, maxval=scale)
        params.append((w, b))
    return params


def pack_params_for_kernel(params):
    """Split skip-layer weights (h-part / enc-part), pad the last layer 3->OUT_PAD
    rows, and cast weights to bf16 once.  Biases stay f32 (f32 accumulate)."""
    flat = []
    for i, (w, b) in enumerate(params):
        if i in SKIP_LAYERS:
            flat.append(w[:, :HIDDEN_DIM].astype(DOT_DTYPE))   # acts on h
            flat.append(w[:, HIDDEN_DIM:].astype(DOT_DTYPE))   # acts on enc (skip input)
            flat.append(b)
        elif i == NUM_LAYERS - 1:
            w_pad = jnp.zeros((OUT_PAD, w.shape[1]), w.dtype).at[:OUTPUT_DIM].set(w)
            b_pad = jnp.zeros((OUT_PAD, 1), b.dtype).at[:OUTPUT_DIM].set(b)
            flat.append(w_pad.astype(DOT_DTYPE))
            flat.append(b_pad)
        else:
            flat.append(w.astype(DOT_DTYPE))
            flat.append(b)
    return tuple(flat)


# ------------------------------ wrapper ----------------------------------------
@functools.partial(jax.jit, static_argnames=("tile_n", "compute_dtype"))
def imlp_forward(x, params_flat, tile_n, compute_dtype):
    """x: (N, INPUT_DIM) float32 -> (N, OUTPUT_DIM) float32."""
    if APPLY_SOFTMAX:
        # TODO(synk): apply_softmax branch (nn.Softmax over OUTPUT_DIM) not implemented.
        raise NotImplementedError("apply_softmax=True is not supported by this kernel")

    n = x.shape[0]
    n_pad = -(-n // tile_n) * tile_n
    xt = x.T                                              # (2, N), feature-major
    if n_pad != n:
        xt = jnp.pad(xt, ((0, 0), (0, n_pad - n)))

    pe_s0, pe_s1, pe_ph = _pe_constants()

    in_specs = [pl.BlockSpec((INPUT_DIM, tile_n), lambda i: (0, i))]
    for c in (pe_s0, pe_s1, pe_ph):
        in_specs.append(pl.BlockSpec(c.shape, lambda i: (0, 0)))
    for p in params_flat:
        in_specs.append(pl.BlockSpec(p.shape, lambda i: (0, 0)))

    kernel = functools.partial(imlp_kernel, compute_dtype=compute_dtype)

    out_t = pl.pallas_call(
        kernel,
        out_shape=jax.ShapeDtypeStruct((OUTPUT_DIM, n_pad), jnp.float32),
        grid_spec=pltpu.PrefetchScalarGridSpec(
            num_scalar_prefetch=0,
            grid=(n_pad // tile_n,),
            in_specs=in_specs,
            out_specs=pl.BlockSpec((OUTPUT_DIM, tile_n), lambda i: (0, i)),
        ),
        compiler_params=pltpu.CompilerParams(
            dimension_semantics=("parallel",)),
    )(xt, pe_s0, pe_s1, pe_ph, *params_flat)

    return out_t[:, :n].T                                 # back to token-major (N, 3)


# ----------------------------- reference ----------------------------------------
def positional_encoding_vec(x, b):
    proj = x[:, :, None] * b[None, None, :]                       # (N, D, P)
    mapped = jnp.concatenate([jnp.sin(proj), jnp.cos(proj)], 1)   # (N, 2D, P)
    return jnp.transpose(mapped, (0, 2, 1)).reshape(x.shape[0], -1)


def imlp_reference(x, params, compute_dtype, dot_dtype):
    """Pure-JAX mirror of the PyTorch IMLP forward (token-major), reproducing the
    kernel's precision policy (bf16 dot inputs, f32 accumulate, `compute_dtype`
    activation residency) so the comparison tolerance stays tight."""
    b_vec = jnp.array([2.0 ** j * math.pi for j in range(POSITIONAL_DIM)],
                      dtype=jnp.float32)
    enc = positional_encoding_vec(x, b_vec)               # f32 (N, 40)
    enc_d = enc.astype(dot_dtype)
    h = enc.astype(compute_dtype)
    for i, (w, b) in enumerate(params):                   # w: (out, in), b: (out, 1)
        if i > 0:
            h = jax.nn.relu(h)
        hd = h.astype(dot_dtype)
        if i in SKIP_LAYERS:
            hd = jnp.concatenate([hd, enc_d], axis=1)
        acc = jnp.dot(hd, w.astype(dot_dtype).T,
                      preferred_element_type=jnp.float32) + b[:, 0]
        h = acc.astype(compute_dtype)
    out = jnp.tanh(h) if USE_TANH else h
    return out.astype(jnp.float32)


# -------------------------------- main ------------------------------------------
if __name__ == "__main__":
    key = jax.random.PRNGKey(0)
    k_x, k_p = jax.random.split(key)

    # N deliberately NOT a multiple of the tile so the padding path is exercised;
    # _choose_tile_n picks 1280 -> 4 balanced grid steps, 2.4% padding waste.
    N = 5000
    x = jax.random.uniform(k_x, (N, INPUT_DIM), jnp.float32)  # (y, t) coordinates

    params = make_params(k_p)
    params_flat = pack_params_for_kernel(params)

    compute_dtype = _default_compute_dtype()
    tile_n = _choose_tile_n(N)

    out = imlp_forward(x, params_flat, tile_n=tile_n, compute_dtype=compute_dtype)
    out = jax.block_until_ready(out)

    ref = imlp_reference(x, params, compute_dtype=compute_dtype, dot_dtype=DOT_DTYPE)
    assert out.shape == (N, OUTPUT_DIM)

    diff = jnp.abs(out - ref)
    max_err = float(jnp.max(diff))
    mean_err = float(jnp.mean(diff))
    # Residual error sources: Mosaic-vs-XLA sin range reduction for phases up to
    # 2^9*pi (few e-4) cascading through bf16 rounding steps.  Structural /
    # layout bugs produce O(0.1..1) errors, far above both thresholds.
    assert mean_err < 4e-3, (mean_err, max_err)
    assert max_err < 5e-2, (mean_err, max_err)

    print("KERNEL_OK")
</pallas_src>

<mosaic_0001>
module attributes {stable_mosaic.version = 11 : i64} {
  func.func @imlp_kernel(%arg0: i32, %arg1: memref<2x1280xf32, #tpu.memory_space<vmem>>, %arg2: memref<40x1xf32, #tpu.memory_space<vmem>>, %arg3: memref<40x1xf32, #tpu.memory_space<vmem>>, %arg4: memref<40x1xf32, #tpu.memory_space<vmem>>, %arg5: memref<32x40xbf16, #tpu.memory_space<vmem>>, %arg6: memref<32x1xf32, #tpu.memory_space<vmem>>, %arg7: memref<32x32xbf16, #tpu.memory_space<vmem>>, %arg8: memref<32x1xf32, #tpu.memory_space<vmem>>, %arg9: memref<32x32xbf16, #tpu.memory_space<vmem>>, %arg10: memref<32x1xf32, #tpu.memory_space<vmem>>, %arg11: memref<32x32xbf16, #tpu.memory_space<vmem>>, %arg12: memref<32x1xf32, #tpu.memory_space<vmem>>, %arg13: memref<32x32xbf16, #tpu.memory_space<vmem>>, %arg14: memref<32x40xbf16, #tpu.memory_space<vmem>>, %arg15: memref<32x1xf32, #tpu.memory_space<vmem>>, %arg16: memref<32x32xbf16, #tpu.memory_space<vmem>>, %arg17: memref<32x1xf32, #tpu.memory_space<vmem>>, %arg18: memref<32x32xbf16, #tpu.memory_space<vmem>>, %arg19: memref<32x40xbf16, #tpu.memory_space<vmem>>, %arg20: memref<32x1xf32, #tpu.memory_space<vmem>>, %arg21: memref<8x32xbf16, #tpu.memory_space<vmem>>, %arg22: memref<8x1xf32, #tpu.memory_space<vmem>>, %arg23: memref<3x1280xf32, #tpu.memory_space<vmem>>) attributes {dimension_semantics = [#tpu.dimension_semantics<parallel>], iteration_bounds = array<i64: 4>, scalar_prefetch = 0 : i64, scratch_operands = 0 : i64, tpu.core_type = #tpu.core_type<tc>, window_params = [{transform_indices = @transform_0, window_bounds = array<i64: 2, 1280>}, {pipeline_mode = #tpu.pipeline_mode<synchronous>, transform_indices = @transform_1, window_bounds = array<i64: 40, 1>}, {pipeline_mode = #tpu.pipeline_mode<synchronous>, transform_indices = @transform_2, window_bounds = array<i64: 40, 1>}, {pipeline_mode = #tpu.pipeline_mode<synchronous>, transform_indices = @transform_3, window_bounds = array<i64: 40, 1>}, {pipeline_mode = #tpu.pipeline_mode<synchronous>, transform_indices = @transform_4, window_bounds = array<i64: 32, 40>}, {pipeline_mode = #tpu.pipeline_mode<synchronous>, transform_indices = @transform_5, window_bounds = array<i64: 32, 1>}, {pipeline_mode = #tpu.pipeline_mode<synchronous>, transform_indices = @transform_6, window_bounds = array<i64: 32, 32>}, {pipeline_mode = #tpu.pipeline_mode<synchronous>, transform_indices = @transform_7, window_bounds = array<i64: 32, 1>}, {pipeline_mode = #tpu.pipeline_mode<synchronous>, transform_indices = @transform_8, window_bounds = array<i64: 32, 32>}, {pipeline_mode = #tpu.pipeline_mode<synchronous>, transform_indices = @transform_9, window_bounds = array<i64: 32, 1>}, {pipeline_mode = #tpu.pipeline_mode<synchronous>, transform_indices = @transform_10, window_bounds = array<i64: 32, 32>}, {pipeline_mode = #tpu.pipeline_mode<synchronous>, transform_indices = @transform_11, window_bounds = array<i64: 32, 1>}, {pipeline_mode = #tpu.pipeline_mode<synchronous>, transform_indices = @transform_12, window_bounds = array<i64: 32, 32>}, {pipeline_mode = #tpu.pipeline_mode<synchronous>, transform_indices = @transform_13, window_bounds = array<i64: 32, 40>}, {pipeline_mode = #tpu.pipeline_mode<synchronous>, transform_indices = @transform_14, window_bounds = array<i64: 32, 1>}, {pipeline_mode = #tpu.pipeline_mode<synchronous>, transform_indices = @transform_15, window_bounds = array<i64: 32, 32>}, {pipeline_mode = #tpu.pipeline_mode<synchronous>, transform_indices = @transform_16, window_bounds = array<i64: 32, 1>}, {pipeline_mode = #tpu.pipeline_mode<synchronous>, transform_indices = @transform_17, window_bounds = array<i64: 32, 32>}, {pipeline_mode = #tpu.pipeline_mode<synchronous>, transform_indices = @transform_18, window_bounds = array<i64: 32, 40>}, {pipeline_mode = #tpu.pipeline_mode<synchronous>, transform_indices = @transform_19, window_bounds = array<i64: 32, 1>}, {pipeline_mode = #tpu.pipeline_mode<synchronous>, transform_indices = @transform_20, window_bounds = array<i64: 8, 32>}, {pipeline_mode = #tpu.pipeline_mode<synchronous>, transform_indices = @transform_21, window_bounds = array<i64: 8, 1>}, {transform_indices = @transform_22, window_bounds = array<i64: 3, 1280>}]} {
    %c0 = arith.constant 0 : index
    %c0_0 = arith.constant 0 : index
    %0 = vector.load %arg1[%c0, %c0_0] : memref<2x1280xf32, #tpu.memory_space<vmem>>, vector<1x1280xf32>
    %c1 = arith.constant 1 : index
    %c0_1 = arith.constant 0 : index
    %1 = vector.load %arg1[%c1, %c0_1] : memref<2x1280xf32, #tpu.memory_space<vmem>>, vector<1x1280xf32>
    %c0_2 = arith.constant 0 : index
    %c0_3 = arith.constant 0 : index
    %2 = vector.load %arg2[%c0_2, %c0_3] : memref<40x1xf32, #tpu.memory_space<vmem>>, vector<40x1xf32>
    %3 = vector.broadcast %2 : vector<40x1xf32> to vector<40x1280xf32>
    %4 = vector.broadcast %0 : vector<1x1280xf32> to vector<40x1280xf32>
    %5 = arith.mulf %3, %4 : vector<40x1280xf32>
    %c0_4 = arith.constant 0 : index
    %c0_5 = arith.constant 0 : index
    %6 = vector.load %arg3[%c0_4, %c0_5] : memref<40x1xf32, #tpu.memory_space<vmem>>, vector<40x1xf32>
    %7 = vector.broadcast %6 : vector<40x1xf32> to vector<40x1280xf32>
    %8 = vector.broadcast %1 : vector<1x1280xf32> to vector<40x1280xf32>
    %9 = arith.mulf %7, %8 : vector<40x1280xf32>
    %10 = arith.addf %5, %9 : vector<40x1280xf32>
    %c0_6 = arith.constant 0 : index
    %c0_7 = arith.constant 0 : index
    %11 = vector.load %arg4[%c0_6, %c0_7] : memref<40x1xf32, #tpu.memory_space<vmem>>, vector<40x1xf32>
    %12 = vector.broadcast %11 : vector<40x1xf32> to vector<40x1280xf32>
    %13 = arith.addf %10, %12 : vector<40x1280xf32>
    %14 = math.sin %13 : vector<40x1280xf32>
    %15 = arith.truncf %14 : vector<40x1280xf32> to vector<40x1280xbf16>
    %16 = arith.truncf %14 : vector<40x1280xf32> to vector<40x1280xbf16>
    %c0_8 = arith.constant 0 : index
    %c0_9 = arith.constant 0 : index
    %17 = vector.load %arg5[%c0_8, %c0_9] : memref<32x40xbf16, #tpu.memory_space<vmem>>, vector<32x40xbf16>
    %c0_10 = arith.constant 0 : index
    %c0_11 = arith.constant 0 : index
    %18 = vector.load %arg6[%c0_10, %c0_11] : memref<32x1xf32, #tpu.memory_space<vmem>>, vector<32x1xf32>
    %cst = arith.constant dense<0.000000e+00> : vector<32x1280xf32>
    %19 = tpu.matmul %17, %16, %cst {dimension_numbers = #tpu.dot_dimension_numbers<[1], [0], [0], [1], [0, 0, 1, 1], [], []>} : vector<32x40xbf16>, vector<40x1280xbf16>, vector<32x1280xf32> -> vector<32x1280xf32>
    %20 = vector.broadcast %18 : vector<32x1xf32> to vector<32x1280xf32>
    %21 = arith.addf %19, %20 : vector<32x1280xf32>
    %22 = arith.truncf %21 : vector<32x1280xf32> to vector<32x1280xbf16>
    %cst_12 = arith.constant 0.000000e+00 : bf16
    %23 = vector.broadcast %cst_12 : bf16 to vector<32x1280xbf16>
    %24 = arith.maximumf %22, %23 : vector<32x1280xbf16>
    %c0_13 = arith.constant 0 : index
    %c0_14 = arith.constant 0 : index
    %25 = vector.load %arg7[%c0_13, %c0_14] : memref<32x32xbf16, #tpu.memory_space<vmem>>, vector<32x32xbf16>
    %c0_15 = arith.constant 0 : index
    %c0_16 = arith.constant 0 : index
    %26 = vector.load %arg8[%c0_15, %c0_16] : memref<32x1xf32, #tpu.memory_space<vmem>>, vector<32x1xf32>
    %cst_17 = arith.constant dense<0.000000e+00> : vector<32x1280xf32>
    %27 = tpu.matmul %25, %24, %cst_17 {dimension_numbers = #tpu.dot_dimension_numbers<[1], [0], [0], [1], [0, 0, 1, 1], [], []>} : vector<32x32xbf16>, vector<32x1280xbf16>, vector<32x1280xf32> -> vector<32x1280xf32>
    %28 = vector.broadcast %26 : vector<32x1xf32> to vector<32x1280xf32>
    %29 = arith.addf %27, %28 : vector<32x1280xf32>
    %30 = arith.truncf %29 : vector<32x1280xf32> to vector<32x1280xbf16>
    %cst_18 = arith.constant 0.000000e+00 : bf16
    %31 = vector.broadcast %cst_18 : bf16 to vector<32x1280xbf16>
    %32 = arith.maximumf %30, %31 : vector<32x1280xbf16>
    %c0_19 = arith.constant 0 : index
    %c0_20 = arith.constant 0 : index
    %33 = vector.load %arg9[%c0_19, %c0_20] : memref<32x32xbf16, #tpu.memory_space<vmem>>, vector<32x32xbf16>
    %c0_21 = arith.constant 0 : index
    %c0_22 = arith.constant 0 : index
    %34 = vector.load %arg10[%c0_21, %c0_22] : memref<32x1xf32, #tpu.memory_space<vmem>>, vector<32x1xf32>
    %cst_23 = arith.constant dense<0.000000e+00> : vector<32x1280xf32>
    %35 = tpu.matmul %33, %32, %cst_23 {dimension_numbers = #tpu.dot_dimension_numbers<[1], [0], [0], [1], [0, 0, 1, 1], [], []>} : vector<32x32xbf16>, vector<32x1280xbf16>, vector<32x1280xf32> -> vector<32x1280xf32>
    %36 = vector.broadcast %34 : vector<32x1xf32> to vector<32x1280xf32>
    %37 = arith.addf %35, %36 : vector<32x1280xf32>
    %38 = arith.truncf %37 : vector<32x1280xf32> to vector<32x1280xbf16>
    %cst_24 = arith.constant 0.000000e+00 : bf16
    %39 = vector.broadcast %cst_24 : bf16 to vector<32x1280xbf16>
    %40 = arith.maximumf %38, %39 : vector<32x1280xbf16>
    %c0_25 = arith.constant 0 : index
    %c0_26 = arith.constant 0 : index
    %41 = vector.load %arg11[%c0_25, %c0_26] : memref<32x32xbf16, #tpu.memory_space<vmem>>, vector<32x32xbf16>
    %c0_27 = arith.constant 0 : index
    %c0_28 = arith.constant 0 : index
    %42 = vector.load %arg12[%c0_27, %c0_28] : memref<32x1xf32, #tpu.memory_space<vmem>>, vector<32x1xf32>
    %cst_29 = arith.constant dense<0.000000e+00> : vector<32x1280xf32>
    %43 = tpu.matmul %41, %40, %cst_29 {dimension_numbers = #tpu.dot_dimension_numbers<[1], [0], [0], [1], [0, 0, 1, 1], [], []>} : vector<32x32xbf16>, vector<32x1280xbf16>, vector<32x1280xf32> -> vector<32x1280xf32>
    %44 = vector.broadcast %42 : vector<32x1xf32> to vector<32x1280xf32>
    %45 = arith.addf %43, %44 : vector<32x1280xf32>
    %46 = arith.truncf %45 : vector<32x1280xf32> to vector<32x1280xbf16>
    %cst_30 = arith.constant 0.000000e+00 : bf16
    %47 = vector.broadcast %cst_30 : bf16 to vector<32x1280xbf16>
    %48 = arith.maximumf %46, %47 : vector<32x1280xbf16>
    %c0_31 = arith.constant 0 : index
    %c0_32 = arith.constant 0 : index
    %49 = vector.load %arg13[%c0_31, %c0_32] : memref<32x32xbf16, #tpu.memory_space<vmem>>, vector<32x32xbf16>
    %c0_33 = arith.constant 0 : index
    %c0_34 = arith.constant 0 : index
    %50 = vector.load %arg14[%c0_33, %c0_34] : memref<32x40xbf16, #tpu.memory_space<vmem>>, vector<32x40xbf16>
    %c0_35 = arith.constant 0 : index
    %c0_36 = arith.constant 0 : index
    %51 = vector.load %arg15[%c0_35, %c0_36] : memref<32x1xf32, #tpu.memory_space<vmem>>, vector<32x1xf32>
    %cst_37 = arith.constant dense<0.000000e+00> : vector<32x1280xf32>
    %52 = tpu.matmul %49, %48, %cst_37 {dimension_numbers = #tpu.dot_dimension_numbers<[1], [0], [0], [1], [0, 0, 1, 1], [], []>} : vector<32x32xbf16>, vector<32x1280xbf16>, vector<32x1280xf32> -> vector<32x1280xf32>
    %cst_38 = arith.constant dense<0.000000e+00> : vector<32x1280xf32>
    %53 = tpu.matmul %50, %15, %cst_38 {dimension_numbers = #tpu.dot_dimension_numbers<[1], [0], [0], [1], [0, 0, 1, 1], [], []>} : vector<32x40xbf16>, vector<40x1280xbf16>, vector<32x1280xf32> -> vector<32x1280xf32>
    %54 = arith.addf %52, %53 : vector<32x1280xf32>
    %55 = vector.broadcast %51 : vector<32x1xf32> to vector<32x1280xf32>
    %56 = arith.addf %54, %55 : vector<32x1280xf32>
    %57 = arith.truncf %56 : vector<32x1280xf32> to vector<32x1280xbf16>
    %cst_39 = arith.constant 0.000000e+00 : bf16
    %58 = vector.broadcast %cst_39 : bf16 to vector<32x1280xbf16>
    %59 = arith.maximumf %57, %58 : vector<32x1280xbf16>
    %c0_40 = arith.constant 0 : index
    %c0_41 = arith.constant 0 : index
    %60 = vector.load %arg16[%c0_40, %c0_41] : memref<32x32xbf16, #tpu.memory_space<vmem>>, vector<32x32xbf16>
    %c0_42 = arith.constant 0 : index
    %c0_43 = arith.constant 0 : index
    %61 = vector.load %arg17[%c0_42, %c0_43] : memref<32x1xf32, #tpu.memory_space<vmem>>, vector<32x1xf32>
    %cst_44 = arith.constant dense<0.000000e+00> : vector<32x1280xf32>
    %62 = tpu.matmul %60, %59, %cst_44 {dimension_numbers = #tpu.dot_dimension_numbers<[1], [0], [0], [1], [0, 0, 1, 1], [], []>} : vector<32x32xbf16>, vector<32x1280xbf16>, vector<32x1280xf32> -> vector<32x1280xf32>
    %63 = vector.broadcast %61 : vector<32x1xf32> to vector<32x1280xf32>
    %64 = arith.addf %62, %63 : vector<32x1280xf32>
    %65 = arith.truncf %64 : vector<32x1280xf32> to vector<32x1280xbf16>
    %cst_45 = arith.constant 0.000000e+00 : bf16
    %66 = vector.broadcast %cst_45 : bf16 to vector<32x1280xbf16>
    %67 = arith.maximumf %65, %66 : vector<32x1280xbf16>
    %c0_46 = arith.constant 0 : index
    %c0_47 = arith.constant 0 : index
    %68 = vector.load %arg18[%c0_46, %c0_47] : memref<32x32xbf16, #tpu.memory_space<vmem>>, vector<32x32xbf16>
    %c0_48 = arith.constant 0 : index
    %c0_49 = arith.constant 0 : index
    %69 = vector.load %arg19[%c0_48, %c0_49] : memref<32x40xbf16, #tpu.memory_space<vmem>>, vector<32x40xbf16>
    %c0_50 = arith.constant 0 : index
    %c0_51 = arith.constant 0 : index
    %70 = vector.load %arg20[%c0_50, %c0_51] : memref<32x1xf32, #tpu.memory_space<vmem>>, vector<32x1xf32>
    %cst_52 = arith.constant dense<0.000000e+00> : vector<32x1280xf32>
    %71 = tpu.matmul %68, %67, %cst_52 {dimension_numbers = #tpu.dot_dimension_numbers<[1], [0], [0], [1], [0, 0, 1, 1], [], []>} : vector<32x32xbf16>, vector<32x1280xbf16>, vector<32x1280xf32> -> vector<32x1280xf32>
    %cst_53 = arith.constant dense<0.000000e+00> : vector<32x1280xf32>
    %72 = tpu.matmul %69, %15, %cst_53 {dimension_numbers = #tpu.dot_dimension_numbers<[1], [0], [0], [1], [0, 0, 1, 1], [], []>} : vector<32x40xbf16>, vector<40x1280xbf16>, vector<32x1280xf32> -> vector<32x1280xf32>
    %73 = arith.addf %71, %72 : vector<32x1280xf32>
    %74 = vector.broadcast %70 : vector<32x1xf32> to vector<32x1280xf32>
    %75 = arith.addf %73, %74 : vector<32x1280xf32>
    %76 = arith.truncf %75 : vector<32x1280xf32> to vector<32x1280xbf16>
    %cst_54 = arith.constant 0.000000e+00 : bf16
    %77 = vector.broadcast %cst_54 : bf16 to vector<32x1280xbf16>
    %78 = arith.maximumf %76, %77 : vector<32x1280xbf16>
    %c0_55 = arith.constant 0 : index
    %c0_56 = arith.constant 0 : index
    %79 = vector.load %arg21[%c0_55, %c0_56] : memref<8x32xbf16, #tpu.memory_space<vmem>>, vector<8x32xbf16>
    %c0_57 = arith.constant 0 : index
    %c0_58 = arith.constant 0 : index
    %80 = vector.load %arg22[%c0_57, %c0_58] : memref<8x1xf32, #tpu.memory_space<vmem>>, vector<8x1xf32>
    %cst_59 = arith.constant dense<0.000000e+00> : vector<8x1280xf32>
    %81 = tpu.matmul %79, %78, %cst_59 {dimension_numbers = #tpu.dot_dimension_numbers<[1], [0], [0], [1], [0, 0, 1, 1], [], []>} : vector<8x32xbf16>, vector<32x1280xbf16>, vector<8x1280xf32> -> vector<8x1280xf32>
    %82 = vector.broadcast %80 : vector<8x1xf32> to vector<8x1280xf32>
    %83 = arith.addf %81, %82 : vector<8x1280xf32>
    %84 = arith.truncf %83 : vector<8x1280xf32> to vector<8x1280xbf16>
    %85 = math.tanh %84 : vector<8x1280xbf16>
    %86 = vector.extract_strided_slice %85 {offsets = [0, 0], sizes = [3, 1280], strides = [1, 1]} : vector<8x1280xbf16> to vector<3x1280xbf16>
    %87 = arith.extf %86 : vector<3x1280xbf16> to vector<3x1280xf32>
    %c0_60 = arith.constant 0 : index
    %c0_61 = arith.constant 0 : index
    %88 = vector.load %arg23[%c0_60, %c0_61] : memref<3x1280xf32, #tpu.memory_space<vmem>>, vector<3x1280xf32>
    tpu.vector_store %arg23[%c0_60, %c0_61], %87 {strides = array<i32>} : memref<3x1280xf32, #tpu.memory_space<vmem>>, vector<3x1280xf32>,
    return
  }
  func.func @transform_0(%arg0: i32) -> (i32, i32) {
    %c0_i32 = arith.constant 0 : i32
    %c0_i32_0 = arith.constant 0 : i32
    return %c0_i32, %arg0 : i32, i32
  }
  func.func @transform_1(%arg0: i32) -> (i32, i32) {
    %c0_i32 = arith.constant 0 : i32
    %c0_i32_0 = arith.constant 0 : i32
    %c0_i32_1 = arith.constant 0 : i32
    return %c0_i32, %c0_i32_0 : i32, i32
  }
  func.func @transform_2(%arg0: i32) -> (i32, i32) {
    %c0_i32 = arith.constant 0 : i32
    %c0_i32_0 = arith.constant 0 : i32
    %c0_i32_1 = arith.constant 0 : i32
    return %c0_i32, %c0_i32_0 : i32, i32
  }
  func.func @transform_3(%arg0: i32) -> (i32, i32) {
    %c0_i32 = arith.constant 0 : i32
    %c0_i32_0 = arith.constant 0 : i32
    %c0_i32_1 = arith.constant 0 : i32
    return %c0_i32, %c0_i32_0 : i32, i32
  }
  func.func @transform_4(%arg0: i32) -> (i32, i32) {
    %c0_i32 = arith.constant 0 : i32
    %c0_i32_0 = arith.constant 0 : i32
    %c0_i32_1 = arith.constant 0 : i32
    return %c0_i32, %c0_i32_0 : i32, i32
  }
  func.func @transform_5(%arg0: i32) -> (i32, i32) {
    %c0_i32 = arith.constant 0 : i32
    %c0_i32_0 = arith.constant 0 : i32
    %c0_i32_1 = arith.constant 0 : i32
    return %c0_i32, %c0_i32_0 : i32, i32
  }
  func.func @transform_6(%arg0: i32) -> (i32, i32) {
    %c0_i32 = arith.constant 0 : i32
    %c0_i32_0 = arith.constant 0 : i32
    %c0_i32_1 = arith.constant 0 : i32
    return %c0_i32, %c0_i32_0 : i32, i32
  }
  func.func @transform_7(%arg0: i32) -> (i32, i32) {
    %c0_i32 = arith.constant 0 : i32
    %c0_i32_0 = arith.constant 0 : i32
    %c0_i32_1 = arith.constant 0 : i32
    return %c0_i32, %c0_i32_0 : i32, i32
  }
  func.func @transform_8(%arg0: i32) -> (i32, i32) {
    %c0_i32 = arith.constant 0 : i32
    %c0_i32_0 = arith.constant 0 : i32
    %c0_i32_1 = arith.constant 0 : i32
    return %c0_i32, %c0_i32_0 : i32, i32
  }
  func.func @transform_9(%arg0: i32) -> (i32, i32) {
    %c0_i32 = arith.constant 0 : i32
    %c0_i32_0 = arith.constant 0 : i32
    %c0_i32_1 = arith.constant 0 : i32
    return %c0_i32, %c0_i32_0 : i32, i32
  }
  func.func @transform_10(%arg0: i32) -> (i32, i32) {
    %c0_i32 = arith.constant 0 : i32
    %c0_i32_0 = arith.constant 0 : i32
    %c0_i32_1 = arith.constant 0 : i32
    return %c0_i32, %c0_i32_0 : i32, i32
  }
  func.func @transform_11(%arg0: i32) -> (i32, i32) {
    %c0_i32 = arith.constant 0 : i32
    %c0_i32_0 = arith.constant 0 : i32
    %c0_i32_1 = arith.constant 0 : i32
    return %c0_i32, %c0_i32_0 : i32, i32
  }
  func.func @transform_12(%arg0: i32) -> (i32, i32) {
    %c0_i32 = arith.constant 0 : i32
    %c0_i32_0 = arith.constant 0 : i32
    %c0_i32_1 = arith.constant 0 : i32
    return %c0_i32, %c0_i32_0 : i32, i32
  }
  func.func @transform_13(%arg0: i32) -> (i32, i32) {
    %c0_i32 = arith.constant 0 : i32
    %c0_i32_0 = arith.constant 0 : i32
    %c0_i32_1 = arith.constant 0 : i32
    return %c0_i32, %c0_i32_0 : i32, i32
  }
  func.func @transform_14(%arg0: i32) -> (i32, i32) {
    %c0_i32 = arith.constant 0 : i32
    %c0_i32_0 = arith.constant 0 : i32
    %c0_i32_1 = arith.constant 0 : i32
    return %c0_i32, %c0_i32_0 : i32, i32
  }
  func.func @transform_15(%arg0: i32) -> (i32, i32) {
    %c0_i32 = arith.constant 0 : i32
    %c0_i32_0 = arith.constant 0 : i32
    %c0_i32_1 = arith.constant 0 : i32
    return %c0_i32, %c0_i32_0 : i32, i32
  }
  func.func @transform_16(%arg0: i32) -> (i32, i32) {
    %c0_i32 = arith.constant 0 : i32
    %c0_i32_0 = arith.constant 0 : i32
    %c0_i32_1 = arith.constant 0 : i32
    return %c0_i32, %c0_i32_0 : i32, i32
  }
  func.func @transform_17(%arg0: i32) -> (i32, i32) {
    %c0_i32 = arith.constant 0 : i32
    %c0_i32_0 = arith.constant 0 : i32
    %c0_i32_1 = arith.constant 0 : i32
    return %c0_i32, %c0_i32_0 : i32, i32
  }
  func.func @transform_18(%arg0: i32) -> (i32, i32) {
    %c0_i32 = arith.constant 0 : i32
    %c0_i32_0 = arith.constant 0 : i32
    %c0_i32_1 = arith.constant 0 : i32
    return %c0_i32, %c0_i32_0 : i32, i32
  }
  func.func @transform_19(%arg0: i32) -> (i32, i32) {
    %c0_i32 = arith.constant 0 : i32
    %c0_i32_0 = arith.constant 0 : i32
    %c0_i32_1 = arith.constant 0 : i32
    return %c0_i32, %c0_i32_0 : i32, i32
  }
  func.func @transform_20(%arg0: i32) -> (i32, i32) {
    %c0_i32 = arith.constant 0 : i32
    %c0_i32_0 = arith.constant 0 : i32
    %c0_i32_1 = arith.constant 0 : i32
    return %c0_i32, %c0_i32_0 : i32, i32
  }
  func.func @transform_21(%arg0: i32) -> (i32, i32) {
    %c0_i32 = arith.constant 0 : i32
    %c0_i32_0 = arith.constant 0 : i32
    %c0_i32_1 = arith.constant 0 : i32
    return %c0_i32, %c0_i32_0 : i32, i32
  }
  func.func @transform_22(%arg0: i32) -> (i32, i32) {
    %c0_i32 = arith.constant 0 : i32
    %c0_i32_0 = arith.constant 0 : i32
    return %c0_i32, %arg0 : i32, i32
  }
}

</mosaic_0001>

<bundles_post_ra>
// kernel: imlp_forward.1
= control target key start
LH: loop header
LB: loop body
LE: loop exit
PB: predicated region body
PF: predicated region fallthrough
CT: control target
= control target key end

     0   :  { %s16785_s0 = inlined_call_operand.vmem [shape: f32[2,5120], index: 0, kind: input, shape index: {}]   ;;  %s16786_s1 = inlined_call_operand.vmem [shape: f32[40,1], index: 1, kind: input, shape index: {}]   ;;  %s16787_s2 = inlined_call_operand.vmem [shape: f32[40,1], index: 2, kind: input, shape index: {}]   ;;  %s16788_s3 = inlined_call_operand.vmem [shape: f32[40,1], index: 3, kind: input, shape index: {}]   ;;  %s16789_s4 = inlined_call_operand.vmem [shape: bf16[32,40], index: 4, kind: input, shape index: {}]   ;;  %s16790_s5 = inlined_call_operand.vmem [shape: f32[32,1], index: 5, kind: input, shape index: {}]   ;;  %s16791_s6 = inlined_call_operand.vmem [shape: bf16[32,32], index: 6, kind: input, shape index: {}]   ;;  %s16792_s7 = inlined_call_operand.vmem [shape: f32[32,1], index: 7, kind: input, shape index: {}]   ;;  %s16793_s8 = inlined_call_operand.vmem [shape: bf16[32,32], index: 8, kind: input, shape index: {}]   ;;  %s16794_s9 = inlined_call_operand.vmem [shape: f32[32,1], index: 9, kind: input, shape index: {}]   ;;  %s16795_s10 = inlined_call_operand.vmem [shape: bf16[32,32], index: 10, kind: input, shape index: {}]   ;;  %s16796_s11 = inlined_call_operand.vmem [shape: f32[32,1], index: 11, kind: input, shape index: {}]   ;;  %s16797_s12 = inlined_call_operand.vmem [shape: bf16[32,32], index: 12, kind: input, shape index: {}]   ;;  %s16798_s13 = inlined_call_operand.vmem [shape: bf16[32,40], index: 13, kind: input, shape index: {}]   ;;  %s16799_s14 = inlined_call_operand.vmem [shape: f32[32,1], index: 14, kind: input, shape index: {}]   ;;  %s16800_s15 = inlined_call_operand.vmem [shape: bf16[32,32], index: 15, kind: input, shape index: {}]   ;;  %s16801_s16 = inlined_call_operand.vmem [shape: f32[32,1], index: 16, kind: input, shape index: {}]   ;;  %s16802_s17 = inlined_call_operand.vmem [shape: bf16[32,32], index: 17, kind: input, shape index: {}]   ;;  %s16803_s18 = inlined_call_operand.vmem [shape: bf16[32,40], index: 18, kind: input, shape index: {}]   ;;  %s16804_s19 = inlined_call_operand.vmem [shape: f32[32,1], index: 19, kind: input, shape index: {}]   ;;  %s16805_s20 = inlined_call_operand.vmem [shape: bf16[8,32], index: 20, kind: input, shape index: {}]   ;;  %s16806_s21 = inlined_call_operand.vmem [shape: f32[8,1], index: 21, kind: input, shape index: {}]   ;;  %s16807_s22 = inlined_call_operand.vmem [shape: f32[3,5120], index: 22, kind: output, shape index: {}]  }
   0x1   :  { %16946 = sst [smem:[#allocation31_spill]] %s16785_s0 }
   0x2   :  { %16947 = sst [smem:[#allocation32_spill]] %s16786_s1 }
   0x3   :  { %16948 = sst [smem:[#allocation33_spill]] %s16787_s2 }
   0x4   :  { %16949 = sst [smem:[#allocation34_spill]] %s16788_s3  ;;  %s10784_s3 = smov 0  }
   0x5   :  { %16950 = sst [smem:[#allocation35_spill]] %s16789_s4 }
   0x6   :  { %16951 = sst [smem:[#allocation36_spill]] %s16790_s5 }
   0x7   :  { %16952 = sst [smem:[#allocation37_spill]] %s16791_s6 }
   0x8 LB: > { %p9775_p0 = scmp.ge.s32.totalorder %s10660_s3, 1  ;;  %p613_p1 = scmp.lt.s32.totalorder %s10660_s3, 5  ;;  %s10660_s3 = sphi %s10784_s3, %s32_s3  }
   0xa   : > { %p614_p2 = pnand %p9775_p0, %p613_p1 }
   0xc   : > { %617 = sbr.rel (%p614_p2) target bundleno = 3375 (0xd2f), region = 108 }
  0x13   : > { %s16953_s4 = sld [smem:[#allocation33_spill]]  ;;  %s16954_s1 = sld [smem:[#allocation32_spill]]  ;;  %v16814_v2 = vmov 0   ;;  %v6704_v19 = vld [vmem:[%s16792_s7] sm:$0xff]  ;;  %v6706_v21 = vld [vmem:[%s16792_s7 + $0x10] sm:$0xff]  ;;  %v6705_v22 = vld [vmem:[%s16792_s7 + $0x8] sm:$0xff]  ;;  %v727_v45 = vlaneseq }
  0x14   : > { %10407 = vset.pattern.permute.xlu1 %v16814_v2  ;;  %10406 = vset.pattern.permute.xlu0 %v16814_v2  ;;  %s16955_s25 = sld [smem:[#allocation34_spill]]  ;;  %s16956_s27 = sld [smem:[#allocation36_spill]]  ;;  %v7054_v23 = vld [vmem:[%s16794_s9] sm:$0xff]  ;;  %v6707_v24 = vld [vmem:[%s16792_s7 + $0x18] sm:$0xff]  ;;  %v7056_v25 = vld [vmem:[%s16794_s9 + $0x10] sm:$0xff] }
  0x15   : > { %6427 = vmatprep.mubr.bf16.mxu0 %v16814_v2  ;;  %6480 = vmatprep.mubr.bf16.mxu1 %v16814_v2  ;;  %v7055_v26 = vld [vmem:[%s16794_s9 + $0x8] sm:$0xff]  ;;  %v7403_v27 = vld [vmem:[%s16796_s11] sm:$0xff]  ;;  %v7057_v28 = vld [vmem:[%s16794_s9 + $0x18] sm:$0xff]  ;;  %s16957_s26 = sadd.s32 4294967295, %s10660_s3   ;;  %v10933_v46 = vshrl.u32 %v727_v45, 7  ;;  %s16961_s23 = sld [smem:[#allocation31_spill]] }
  0x16   : > { %v7405_v29 = vld [vmem:[%s16796_s11 + $0x10] sm:$0xff]  ;;  %v7404_v30 = vld [vmem:[%s16796_s11 + $0x8] sm:$0xff]  ;;  %v7756_v31 = vld [vmem:[%s16799_s14] sm:$0xff]  ;;  %s675_s2 = smul.u32 10, %s16957_s26  ;;  %s17050_s6 = sld [smem:[#allocation35_spill]] }
  0x17   : > { %v7406_v32 = vld [vmem:[%s16796_s11 + $0x18] sm:$0xff]  ;;  %v7758_v33 = vld [vmem:[%s16799_s14 + $0x10] sm:$0xff]  ;;  %v7757_v34 = vld [vmem:[%s16799_s14 + $0x8] sm:$0xff]  ;;  %16958 = vst [vmem:[#allocation2_spill] sm:$0xff] %v10933_v46  ;;  %v10945_v49 = vsub.s32 1, %v10933_v46  ;;  %v741_v54 = vsub.s32 3, %v10933_v46 }
  0x18   : > { %v8426_v35 = vld [vmem:[%s16801_s16] sm:$0xff]  ;;  %v7759_v36 = vld [vmem:[%s16799_s14 + $0x18] sm:$0xff]  ;;  %v8428_v37 = vld [vmem:[%s16801_s16 + $0x10] sm:$0xff]  ;;  %p676_p3 = scmp.lt.s32.totalorder %s675_s2, 39  ;;  %s17163_s26 = sld [smem:[#allocation37_spill]] }
  0x19   : > { %v827_v0 = vld [vmem:[%s16953_s4] sm:$0xff]  ;;  %v828_v3 = vld [vmem:[%s16953_s4 + $0x8] sm:$0xff]  ;;  %v698_v5 = vld [vmem:[%s16954_s1 + $0x18] sm:$0xff]  ;;  %16962 = vst [vmem:[#allocation5_spill] sm:$0xff] %v10945_v49 }
  0x1a   : > { %v695_v1 = vld [vmem:[%s16954_s1] sm:$0xff]  ;;  %834 = vperm.xlu1 %10407, %v827_v0   ;;  %v696_v4 = vld [vmem:[%s16954_s1 + $0x8] sm:$0xff]  ;;  %v697_v6 = vld [vmem:[%s16954_s1 + $0x10] sm:$0xff]  ;;  %s17196_s2 = smov (!%p676_p3, %s675_s2), 39 }
  0x1b   : > { %702 = vperm.xlu0 %10406, %v695_v1   ;;  %v830_v7 = vld [vmem:[%s16953_s4 + $0x18] sm:$0xff]  ;;  %v829_v8 = vld [vmem:[%s16953_s4 + $0x10] sm:$0xff]  ;;  %v1010_v9 = vld [vmem:[%s16955_s25 + $0x8] sm:$0xff]  ;;  %s9776_s29 = sshll.u32 %s17196_s2, 1  ;;  %s9777_s30 = sshll.u32 %s17196_s2, 2 }
  0x1c   : > { %v1009_v10 = vld [vmem:[%s16955_s25] sm:$0xff]  ;;  %v1012_v13 = vld [vmem:[%s16955_s25 + $0x18] sm:$0xff]  ;;  %v1011_v14 = vld [vmem:[%s16955_s25 + $0x10] sm:$0xff]  ;;  %s10942_s5 = scalar_lea.vmem %s16961_s23, %s9776_s29 }
  0x1d   : > { %v831_v11 = vld [vmem:[%s16953_s4 + $0x20] sm:$0xff]  ;;  %v6325_v17 = vld [vmem:[%s16956_s27 + $0x10] sm:$0xff]  ;;  %v6324_v18 = vld [vmem:[%s16956_s27 + $0x8] sm:$0xff] }
  0x1e   : > { %839 = vperm.xlu1 %10407, %v828_v3   ;;  %v699_v12 = vld [vmem:[%s16954_s1 + $0x20] sm:$0xff]  ;;  %v6326_v20 = vld [vmem:[%s16956_s27 + $0x18] sm:$0xff]  ;;  %v8427_v38 = vld [vmem:[%s16801_s16 + $0x8] sm:$0xff] }
  0x1f   : > { %707 = vperm.xlu0 %10406, %v696_v4   ;;  %v6323_v15 = vld [vmem:[%s16956_s27] sm:$0xff]  ;;  %v8429_v40 = vld [vmem:[%s16801_s16 + $0x18] sm:$0xff]  ;;  %v8781_v41 = vld [vmem:[%s16804_s19 + $0x10] sm:$0xff] }
  0x20   : > { %v1013_v16 = vld [vmem:[%s16955_s25 + $0x20] sm:$0xff]  ;;  %v8780_v42 = vld [vmem:[%s16804_s19 + $0x8] sm:$0xff]  ;;  %v8782_v44 = vld [vmem:[%s16804_s19 + $0x18] sm:$0xff] }
  0x21   : > { %v8779_v39 = vld [vmem:[%s16804_s19] sm:$0xff] }
  0x22   : > { %717 = vperm.xlu1 %10407, %v698_v5   ;;  %v9446_v43 = vld [vmem:[%s16806_s21] sm:$0xff] }
  0x23   : > { %712 = vperm.xlu0 %10406, %v697_v6   ;;  %v688_v52 = vld [vmem:[%s10942_s5] ss:$2 sm:$0xff]  ;;  %v9779_v53 = vld [vmem:[%s10942_s5 + $0x1] ss:$2 sm:$0xff] }
  0x24   : > { %v10955_v55 = vrot.slane %v688_v52, %v10945_v49  ;;  %v10958_v56 = vrot.slane %v9779_v53, %v10945_v49  ;;  %v10964_v59 = vrot.slane %v688_v52, %v741_v54  ;;  %v10966_v60 = vrot.slane %v9779_v53, %v741_v54 }
  0x26   : > { %849 = vperm.xlu1 %10407, %v830_v7  }
  0x27   : > { %844 = vperm.xlu0 %10406, %v829_v8  }
  0x2a   : > { %1021 = vperm.xlu1 %10407, %v1010_v9  }
  0x2b   : > { %1016 = vperm.xlu0 %10406, %v1009_v10  }
  0x2e   : > { %854 = vperm.xlu1 %10407, %v831_v11  }
  0x2f   : > { %722 = vperm.xlu0 %10406, %v699_v12  }
  0x32   : > { %1031 = vperm.xlu1 %10407, %v1012_v13   ;;  %v10995_v13 = vsub.s32 0, %v10933_v46 }
  0x33   : > { %1026 = vperm.xlu0 %10406, %v1011_v14  }
  0x34   : > { %16969 = vst [vmem:[#allocation12_spill] sm:$0xff] %v10995_v13 }
  0x36   : > { %6329 = vperm.xlu1 %10407, %v6323_v15  }
  0x37   : > { %1036 = vperm.xlu0 %10406, %v1013_v16  }
  0x3a   : > { %6339 = vperm.xlu1 %10407, %v6325_v17   ;;  %v737_v17 = vsub.s32 2, %v10933_v46 }
  0x3b   : > { %6334 = vperm.xlu0 %10406, %v6324_v18  }
  0x3e   : > { %6710 = vperm.xlu1 %10407, %v6704_v19  }
  0x3f   : > { %6344 = vperm.xlu0 %10406, %v6326_v20  }
  0x42   : > { %6720 = vperm.xlu1 %10407, %v6706_v21  }
  0x43   : > { %6715 = vperm.xlu0 %10406, %v6705_v22   ;;  %v11008_v22 = vrot.slane %v688_v52, %v10995_v13 }
  0x46   : > { %7060 = vperm.xlu1 %10407, %v7054_v23  }
  0x47   : > { %6725 = vperm.xlu0 %10406, %v6707_v24  }
  0x4a   : > { %7070 = vperm.xlu1 %10407, %v7056_v25  }
  0x4b   : > { %7065 = vperm.xlu0 %10406, %v7055_v26   ;;  %v11014_v26 = vrot.slane %v9779_v53, %v10995_v13 }
  0x4e   : > { %7409 = vperm.xlu1 %10407, %v7403_v27  }
  0x4f   : > { %7075 = vperm.xlu0 %10406, %v7057_v28  }
  0x52   : > { %7419 = vperm.xlu1 %10407, %v7405_v29  }
  0x53   : > { %7414 = vperm.xlu0 %10406, %v7404_v30   ;;  %v11020_v30 = vrot.slane %v688_v52, %v737_v17 }
  0x55   : > { %16970 = vst [vmem:[#allocation13_spill] sm:$0xff] %v11020_v30 }
  0x56   : > { %8324 = vperm.xlu1 %10407, %v7756_v31  }
  0x57   : > { %7424 = vperm.xlu0 %10406, %v7406_v32  }
  0x5a   : > { %8334 = vperm.xlu1 %10407, %v7758_v33   ;;  %v11022_v33 = vrot.slane %v9779_v53, %v737_v17 }
  0x5b   : > { %8329 = vperm.xlu0 %10406, %v7757_v34  }
  0x5c   : > { %16971 = vst [vmem:[#allocation14_spill] sm:$0xff] %v11022_v33 }
  0x5e   : > { %8432 = vperm.xlu1 %10407, %v8426_v35  }
  0x5f   : > { %8339 = vperm.xlu0 %10406, %v7759_v36  }
  0x62   : > { %8442 = vperm.xlu1 %10407, %v8428_v37  }
  0x63   : > { %8437 = vperm.xlu0 %10406, %v8427_v38  }
  0x66   : > { %9347 = vperm.xlu1 %10407, %v8779_v39  }
  0x67   : > { %8447 = vperm.xlu0 %10406, %v8429_v40  }
  0x6a   : > { %9357 = vperm.xlu1 %10407, %v8781_v41  }
  0x6b   : > { %9352 = vperm.xlu0 %10406, %v8780_v42  }
  0x6e   : > { %9449 = vperm.xlu1 %10407, %v9446_v43  }
  0x6f   : > { %9362 = vperm.xlu0 %10406, %v8782_v44  }
  0x99   : > { %v10935_v47 = vpop.permute.xlu1 %834 }
  0x9a   : > { %16959 = vst [vmem:[#allocation3_spill] sm:$0xff] %v10935_v47  ;;  %v10937_v48 = vpop.permute.xlu0 %702  ;;  %v910_v63 = vmul.f32 %v10958_v56, %v10935_v47  ;;  %v912_v5 = vmul.f32 %v10966_v60, %v10935_v47  ;;  %v11031_v42 = vmul.f32 %v11014_v26, %v10935_v47  ;;  %v11043_v52 = vmul.f32 %v11022_v33, %v10935_v47 }
  0x9b   : > { %16960 = vst [vmem:[#allocation4_spill] sm:$0xff] %v10937_v48  ;;  %v778_v61 = vmul.f32 %v10955_v55, %v10937_v48  ;;  %v780_v4 = vmul.f32 %v10964_v59, %v10937_v48  ;;  %v11026_v36 = vmul.f32 %v11008_v22, %v10937_v48  ;;  %v11035_v43 = vmul.f32 %v11020_v30, %v10937_v48 }
  0x9d   : > { %v10947_v50 = vpop.permute.xlu1 %839  ;;  %v960_v6 = vadd.f32 %v910_v63, %v778_v61  ;;  %v962_v10 = vadd.f32 %v912_v5, %v780_v4 }
  0x9e   : > { %16963 = vst [vmem:[#allocation6_spill] sm:$0xff] %v10947_v50  ;;  %v10949_v51 = vpop.permute.xlu0 %707  ;;  %v920_v0 = vmul.f32 %v10958_v56, %v10947_v50  ;;  %v922_v29 = vmul.f32 %v10966_v60, %v10947_v50 }
  0x9f   : > { %16964 = vst [vmem:[#allocation7_spill] sm:$0xff] %v10949_v51  ;;  %v788_v62 = vmul.f32 %v10955_v55, %v10949_v51  ;;  %v790_v28 = vmul.f32 %v10964_v59, %v10949_v51  ;;  %v11039_v45 = vmul.f32 %v11008_v22, %v10949_v51 }
  0xa1   : > { %v10960_v57 = vpop.permute.xlu1 %717  ;;  %v970_v7 = vadd.f32 %v920_v0, %v788_v62  ;;  %v972_v41 = vadd.f32 %v922_v29, %v790_v28 }
  0xa2   : > { %16965 = vst [vmem:[#allocation8_spill] sm:$0xff] %v10960_v57  ;;  %v10962_v58 = vpop.permute.xlu0 %712 }
  0xa3   : > { %16966 = vst [vmem:[#allocation9_spill] sm:$0xff] %v10962_v58 }
  0xa5   : > { %v10976_v1 = vpop.permute.xlu1 %849 }
  0xa6   : > { %v10978_v3 = vpop.permute.xlu0 %844 }
  0xa9   : > { %v10984_v8 = vpop.permute.xlu1 %1021 }
  0xaa   : > { %16967 = vst [vmem:[#allocation10_spill] sm:$0xff] %v10984_v8  ;;  %v10986_v9 = vpop.permute.xlu0 %1016  ;;  %v10992_v12 = vadd.f32 %v10984_v8, %v970_v7  ;;  %v11046_v62 = vadd.f32 %v10984_v8, %v972_v41  ;;  %v16829_v7 = vmov 683565275  }
  0xab   : > { %16968 = vst [vmem:[#allocation11_spill] sm:$0xff] %v10986_v9  ;;  %v10989_v11 = vadd.f32 %v10986_v9, %v960_v6  ;;  %v10998_v14 = vadd.f32 %v10986_v9, %v962_v10 }
  0xac   : > { %v16817_v18 = vand.u32 2147483647, %v10992_v12  ;;  %v2236_v19 = vand.u32 2139095040, %v10992_v12 }
  0xad   : > { %v16818_v15 = vand.u32 2147483647, %v10989_v11  ;;  %v1196_v16 = vand.u32 2139095040, %v10989_v11  ;;  %v1404_v25 = vand.u32 2139095040, %v10998_v14  ;;  %v16816_v39 = vand.u32 2147483647, %v10998_v14 }
  0xae   : > { %v2237_v23 = vshrl.u32 %v2236_v19, 23  ;;  %v2240_v24 = vand.u32 8388607, %v16817_v18  ;;  %v16825_v19 = vmov 2475754826   ;;  %vm1195_vm13 = vcmp.lt.s32.totalorder %v10989_v11, 0 }
  0xaf   : > { %v1197_v20 = vshrl.u32 %v1196_v16, 23  ;;  %v1200_v21 = vand.u32 8388607, %v16818_v15  ;;  %v1405_v32 = vshrl.u32 %v1404_v25, 23  ;;  %v11054_v4 = vand.u32 8388607, %v16816_v39 }
  0xb0   : > { %v9825_v31 = vadd.s32 4294967169, %v2237_v23  ;;  %v2241_v37 = vor.u32 8388608, %v2240_v24  ;;  %v16819_v24 = vmov 2102212464   ;;  %v16978_v13 = vand.u32 2147483647, %v10989_v11 }
  0xb1   : > { %v9785_v27 = vadd.s32 4294967169, %v1197_v20  ;;  %v1201_v34 = vor.u32 8388608, %v1200_v21  ;;  %v9793_v40 = vadd.s32 4294967169, %v1405_v32  ;;  %v16823_v21 = vmov 2131351028  }
  0xb2   : > { %v2243_v38 = vadd.s32 1, %v9825_v31  ;;  %v11050_v0 = vshll.u32 %v2241_v37, 8  ;;  %v16827_v37 = vmov 1326507024   ;;  %vm11180_vm14 = vcmp.le.f32.partialorder %v16978_v13, 0.7853982 }
  0xb3   : > { %v1203_v35 = vadd.s32 1, %v9785_v27  ;;  %v11048_v63 = vshll.u32 %v1201_v34, 8  ;;  %v11056_v5 = vadd.s32 1, %v9793_v40  ;;  %v16821_v27 = vmov 920167782  }
  0xb4   : > { %vm2244_vm1 = vcmp.gt.s32.totalorder %v2243_v38, 0 }
  0xb5   : > { %vm1204_vm0 = vcmp.gt.s32.totalorder %v1203_v35, 0  ;;  %v2245_v61 = vsel %vm2244_vm1, %v2243_v38, 0  ;;  %vm1412_vm6 = vcmp.gt.s32.totalorder %v11056_v5, 0 }
  0xb6   : > { %v1205_v44 = vsel %vm1204_vm0, %v1203_v35, 0  ;;  %v11059_v16 = vshrl.u32 %v2245_v61, 5  ;;  %v2247_v17 = vand.u32 31, %v2245_v61 }
  0xb7   : > { %v1206_v53 = vshrl.u32 %v1205_v44, 5  ;;  %v1207_v54 = vand.u32 31, %v1205_v44 }
  0xb8   : > { %v2248_v61 = vsub.s32 32, %v2247_v17  ;;  %vm2265_vm7 = vcmp.lt.s32.totalorder %v11059_v16, 1  ;;  %vm2266_vm9 = vcmp.lt.s32.totalorder %v11059_v16, 2  ;;  %vm2267_vm10 = vcmp.lt.s32.totalorder %v11059_v16, 3 }
  0xb9   : > { %v1208_v6 = vsub.s32 32, %v1207_v54  ;;  %v1210_v10 = vshll.u32 %v16829_v7, %v1207_v54  ;;  %v1213_v20 = vshll.u32 %v16825_v19, %v1207_v54  ;;  %v1216_v23 = vshll.u32 %v16823_v21, %v1207_v54 }
  0xba   : > { %v1219_v25 = vshll.u32 %v16819_v24, %v1207_v54  ;;  %v1222_v28 = vshll.u32 %v16821_v27, %v1207_v54  ;;  %vm1225_vm2 = vcmp.lt.s32.totalorder %v1206_v53, 1  ;;  %vm1226_vm3 = vcmp.lt.s32.totalorder %v1206_v53, 2 }
  0xbb   : > { %v1211_v29 = vshrl.u32 %v16825_v19, %v1208_v6  ;;  %v1214_v31 = vshrl.u32 %v16823_v21, %v1208_v6  ;;  %v1217_v32 = vshrl.u32 %v16819_v24, %v1208_v6  ;;  %v1209_v34 = vshrl.u32 %v16829_v7, %v1208_v6 }
  0xbc   : > { %v1220_v35 = vshrl.u32 %v16821_v27, %v1208_v6  ;;  %v1223_v38 = vshrl.u32 %v16827_v37, %v1208_v6  ;;  %vm1227_vm4 = vcmp.lt.s32.totalorder %v1206_v53, 3  ;;  %vm1228_vm5 = vcmp.lt.s32.totalorder %v1206_v53, 4 }
  0xbd   : > { %v1212_v40 = vor.u32 %v1211_v29, %v1210_v10  ;;  %v1215_v41 = vor.u32 %v1214_v31, %v1213_v20  ;;  %v1218_v44 = vor.u32 %v1217_v32, %v1216_v23  ;;  %v2250_v6 = vshll.u32 %v16829_v7, %v2247_v17 }
  0xbe   : > { %v1221_v54 = vor.u32 %v1220_v35, %v1219_v25  ;;  %v1224_v2 = vor.u32 %v1223_v38, %v1222_v28  ;;  %v16972_v23 = vmov 2475754826   ;;  %vm2268_vm11 = vcmp.lt.s32.totalorder %v11059_v16, 4 }
  0xbf   : > { %v1229_v39 = vsel %vm1225_vm2, %v1209_v34, %v1212_v40  ;;  %v1230_v18 = vsel %vm1228_vm5, %v1218_v44, 2102212464  ;;  %v1233_v15 = vsel %vm1225_vm2, %v1212_v40, %v1215_v41  ;;  %v1237_v24 = vsel %vm1225_vm2, %v1215_v41, %v1218_v44 }
  0xc0   : > { %v1231_v27 = vsel %vm1227_vm4, %v1215_v41, %v1230_v18  ;;  %v1234_v21 = vsel %vm1228_vm5, %v1221_v54, 920167782  ;;  %v1238_v19 = vsel %vm1228_vm5, %v1224_v2, 1326507024  ;;  %v2251_v25 = vshrl.u32 %v16972_v23, %v2248_v61 }
  0xc1   : > { %v1235_v10 = vsel %vm1227_vm4, %v1218_v44, %v1234_v21  ;;  %v1239_v20 = vsel %vm1227_vm4, %v1221_v54, %v1238_v19  ;;  %v2253_v28 = vshll.u32 %v16972_v23, %v2247_v17  ;;  %v1232_v29 = vsel %vm1226_vm3, %v1229_v39, %v1231_v27 }
  0xc2   : > { %v1236_v31 = vsel %vm1226_vm3, %v1233_v15, %v1235_v10  ;;  %v1240_v32 = vsel %vm1226_vm3, %v1237_v24, %v1239_v20  ;;  %v16973_v34 = vmov 2131351028   ;;  %v2252_v19 = vor.u32 %v2251_v25, %v2250_v6 }
  0xc3   : > { %v2254_v18 = vshrl.u32 %v16973_v34, %v2248_v61  ;;  %v11083_v2 = vmul.u32.u64.low %v11048_v63, %v1240_v32  ;;  %v11084_v35 = vmul.u32.u64.high %v11048_v63, %v1240_v32, %v11083_v2  ;;  %v2256_v41 = vshll.u32 %v16973_v34, %v2247_v17 }
  0xc4   : > { %v11087_v38 = vmul.u32.u64.low %v11048_v63, %v1236_v31  ;;  %v11088_v21 = vmul.u32.u64.high %v11048_v63, %v1236_v31, %v11087_v38  ;;  %v16974_v39 = vmov 2102212464   ;;  %v2249_v15 = vshrl.u32 %v16829_v7, %v2248_v61 }
  0xc5   : > { %v2255_v40 = vor.u32 %v2254_v18, %v2253_v28  ;;  %v2257_v27 = vshrl.u32 %v16974_v39, %v2248_v61  ;;  %v2259_v53 = vshll.u32 %v16974_v39, %v2247_v17  ;;  %v16975_v24 = vmov 920167782  }
  0xc6   : > { %v2260_v44 = vshrl.u32 %v16975_v24, %v2248_v61  ;;  %v2263_v54 = vshrl.u32 %v16827_v37, %v2248_v61  ;;  %v1248_v10 = vmul.u32 %v11048_v63, %v1232_v29  ;;  %v2262_v31 = vshll.u32 %v16975_v24, %v2247_v17 }
  0xc7   : > { %v2258_v20 = vor.u32 %v2257_v27, %v2256_v41  ;;  %vm1250_vm8 = vc.u32 %v11084_v35, %v11087_v38  ;;  %v1251_v6 = vadd.s32 1, %v11088_v21  ;;  %v2273_v61 = vsel %vm2265_vm7, %v2252_v19, %v2255_v40 }
  0xc8   : > { %v2261_v25 = vor.u32 %v2260_v44, %v2259_v53  ;;  %v2264_v28 = vor.u32 %v2263_v54, %v2262_v31  ;;  %v2269_v2 = vsel %vm2265_vm7, %v2249_v15, %v2252_v19  ;;  %v1413_v54 = vsel %vm1412_vm6, %v11056_v5, 0 }
  0xc9   : > { %v1252_v63 = vsel %vm1250_vm8, %v1251_v6, %v11088_v21  ;;  %v2270_v29 = vsel %vm2268_vm11, %v2258_v20, 2102212464  ;;  %v2277_v32 = vsel %vm2265_vm7, %v2255_v40, %v2258_v20  ;;  %v2444_v15 = vand.u32 2139095040, %v11046_v62 }
  0xca   : > { %v2274_v17 = vsel %vm2268_vm11, %v2261_v25, 920167782  ;;  %v1253_v18 = vadd.s32 %v1252_v63, %v1248_v10  ;;  %v2278_v27 = vsel %vm2268_vm11, %v2264_v28, 1326507024  ;;  %v2271_v37 = vsel %vm2267_vm10, %v2255_v40, %v2270_v29 }
  0xcb   : > { %v2275_v41 = vsel %vm2267_vm10, %v2258_v20, %v2274_v17  ;;  %v2279_v44 = vsel %vm2267_vm10, %v2261_v25, %v2278_v27  ;;  %v919_v10 = vmul.f32 %v11014_v26, %v10947_v50  ;;  %v2272_v5 = vsel %vm2266_vm9, %v2269_v2, %v2271_v37 }
  0xcc   : > { %v2276_v53 = vsel %vm2266_vm9, %v2273_v61, %v2275_v41  ;;  %v1254_v31 = vadd.s32 536870912, %v1253_v18  ;;  %v2280_v21 = vsel %vm2266_vm9, %v2277_v32, %v2279_v44  ;;  %v1415_v25 = vand.u32 31, %v1413_v54 }
  0xcd   : > { %v11115_v6 = vmul.u32.u64.low %v11050_v0, %v2276_v53  ;;  %v11116_v7 = vmul.u32.u64.high %v11050_v0, %v2276_v53, %v11115_v6  ;;  %v11120_v19 = vmul.u32.u64.low %v11050_v0, %v2280_v21  ;;  %v11121_v40 = vmul.u32.u64.high %v11050_v0, %v2280_v21, %v11120_v19 }
  0xce   : > { %v1255_v20 = vshrl.u32 %v1254_v31, 30  ;;  %v16831_v28 = vand.u32 2147483647, %v11046_v62  ;;  %v1409_v61 = vor.u32 8388608, %v11054_v4  ;;  %v11132_v63 = vadd.f32 %v11031_v42, %v11026_v36 }
  0xcf   : > { %v11136_v29 = vmul.f32 %v11020_v30, %v10949_v51  ;;  %v11140_v17 = vadd.f32 %v11043_v52, %v11035_v43  ;;  %v2291_v16 = vadd.s32 1, %v11116_v7  ;;  %v1416_v37 = vsub.s32 32, %v1415_v25 }
  0xd0   : > { %v1256_v32 = vshll.u32 %v1255_v20, 30  ;;  %v11145_v2 = vmul.f32 %v11022_v33, %v10947_v50  ;;  %v2288_v4 = vmul.u32 %v11050_v0, %v2272_v5  ;;  %vm2290_vm12 = vc.u32 %v11121_v40, %v11115_v6 }
  0xd1   : > { %v2445_v36 = vshrl.u32 %v2444_v15, 23  ;;  %v11151_v42 = vadd.f32 %v919_v10, %v11039_v45  ;;  %v2292_v52 = vsel %vm2290_vm12, %v2291_v16, %v11116_v7  ;;  %v11159_v41 = vand.u32 8388607, %v16831_v28 }
  0xd2   : > { %v11154_v43 = vsub.s32 %v1253_v18, %v1256_v32  ;;  %v1249_v0 = vadd.s32 %v11087_v38, %v11084_v35  ;;  %v2293_v27 = vadd.s32 %v2292_v52, %v2288_v4  ;;  %v1419_v53 = vshrl.u32 %v16972_v23, %v1416_v37 }
  0xd3   : > { %v11164_v44 = vshll.u32 %v1409_v61, 8  ;;  %v11167_v31 = vshrl.u32 %v1413_v54, 5  ;;  %v1422_v18 = vshrl.u32 %v16973_v34, %v1416_v37  ;;  %v1425_v7 = vshrl.u32 %v16974_v39, %v1416_v37 }
  0xd4   : > { %v1259_v45 = vsub.s32 0, %v11154_v43  ;;  %v1279_v21 = vsub.s32 4, %v1255_v20  ;;  %v2294_v19 = vadd.s32 536870912, %v2293_v27  ;;  %v16976_v15 = vmov 683565275  }
  0xd5   : > { %v1418_v10 = vshll.u32 %v16976_v15, %v1415_v25  ;;  %v9833_v5 = vadd.s32 4294967169, %v2445_v36  ;;  %v1421_v38 = vshll.u32 %v16972_v23, %v1415_v25  ;;  %v1424_v61 = vshll.u32 %v16973_v34, %v1415_v25 }
  0xd6   : > { %v9786_v35 = vmin.u32 %v1259_v45, %v11154_v43  ;;  %v1428_v32 = vshrl.u32 %v16975_v24, %v1416_v37  ;;  %v2295_v16 = vshrl.u32 %v2294_v19, 30  ;;  %v1427_v4 = vshll.u32 %v16974_v39, %v1415_v25 }
  0xd7   : > { %v1420_v54 = vor.u32 %v1419_v53, %v1418_v10  ;;  %v16977_v52 = vmov 1326507024   ;;  %v1423_v45 = vor.u32 %v1422_v18, %v1421_v38  ;;  %v1426_v50 = vor.u32 %v1425_v7, %v1424_v61 }
  0xd8   : > { %v1431_v28 = vshrl.u32 %v16977_v52, %v1416_v37  ;;  %v1261_v36 = vclz %v9786_v35  ;;  %v1430_v51 = vshll.u32 %v16975_v24, %v1415_v25  ;;  %v2296_v47 = vshll.u32 %v2295_v16, 30 }
  0xd9   : > { %v1429_v48 = vor.u32 %v1428_v32, %v1427_v4  ;;  %vm1433_vm15 = vcmp.lt.s32.totalorder %v11167_v31, 1  ;;  %vm1434_vm0 = vcmp.lt.s32.totalorder %v11167_v31, 2  ;;  %vm1436_vm1 = vcmp.lt.s32.totalorder %v11167_v31, 4 }
  0xda   : > { %v9787_v19 = vadd.s32 4294967294, %v1261_v36  ;;  %v1432_v10 = vor.u32 %v1431_v28, %v1430_v51  ;;  %v1280_v13 = vsel %vm1195_vm13, %v1279_v21, %v1255_v20  ;;  %vm2235_vm2 = vcmp.lt.s32.totalorder %v10992_v12, 0 }
  0xdb   : > { %v11192_v18 = vsub.s32 %v2293_v27, %v2296_v47  ;;  %vm1435_vm3 = vcmp.lt.s32.totalorder %v11167_v31, 3  ;;  %v1442_v25 = vsel %vm1436_vm1, %v1429_v48, 920167782  ;;  %v1417_v7 = vshrl.u32 %v16976_v15, %v1416_v37 }
  0xdc   : > { %vm9788_vm4 = vcmp.lt.s32.totalorder %v9787_v19, 0  ;;  %v1441_v51 = vsel %vm1433_vm15, %v1420_v54, %v1423_v45  ;;  %v1443_v28 = vsel %vm1435_vm3, %v1426_v50, %v1442_v25  ;;  %v2319_v21 = vsub.s32 4, %v2295_v16 }
  0xdd   : > { %v1264_v35 = vsel %vm9788_vm4, 0, %v9787_v19  ;;  %v2299_v20 = vsub.s32 0, %v11192_v18  ;;  %v1445_v47 = vsel %vm1433_vm15, %v1423_v45, %v1426_v50  ;;  %v16981_v61 = vand.u32 2147483647, %v10992_v12 }
  0xde   : > { %v1265_v27 = vsub.s32 32, %v1264_v35  ;;  %v1269_v38 = vsub.s32 4294967266, %v1264_v35  ;;  %v1438_v37 = vsel %vm1436_vm1, %v1426_v50, 2102212464  ;;  %v1446_v4 = vsel %vm1436_vm1, %v1432_v10, 1326507024 }
  0xdf   : > { %vm11207_vm5 = vcmp.le.f32.partialorder %v16981_v61, 0.7853982  ;;  %v1266_v36 = vshll.u32 %v11154_v43, %v1264_v35  ;;  %v9826_v19 = vmin.u32 %v2299_v20, %v11192_v18  ;;  %v1444_v25 = vsel %vm1434_vm0, %v1441_v51, %v1443_v28 }
  0xe0   : > { %v1447_v53 = vsel %vm1435_vm3, %v1429_v48, %v1446_v4  ;;  %v1267_v61 = vshrl.u32 %v1249_v0, %v1265_v27  ;;  %v1270_v46 = vadd.s32 127, %v1269_v38  ;;  %v2451_v30 = vadd.s32 1, %v9833_v5 }
  0xe1   : > { %v1448_v33 = vsel %vm1434_vm0, %v1445_v47, %v1447_v53  ;;  %v1282_v50 = vsel %vm11180_vm14, 0, %v1280_v13  ;;  %v2301_v10 = vclz %v9826_v19  ;;  %v1437_v43 = vsel %vm1433_vm15, %v1417_v7, %v1420_v54 }
  0xe2   : > { %v1439_v35 = vsel %vm1435_vm3, %v1423_v45, %v1438_v37  ;;  %v1268_v51 = vor.u32 %v1267_v61, %v1266_v36  ;;  %v1271_v28 = vshll.u32 %v1270_v46, 23  ;;  %vm2452_vm6 = vcmp.gt.s32.totalorder %v2451_v30, 0 }
  0xe3   : > { %v11230_v48 = vmul.u32.u64.low %v11164_v44, %v1448_v33  ;;  %v11231_v0 = vmul.u32.u64.high %v11164_v44, %v1448_v33, %v11230_v48  ;;  %v9827_v20 = vadd.s32 4294967294, %v2301_v10  ;;  %v2289_v54 = vadd.s32 %v11115_v6, %v11121_v40 }
  0xe4   : > { %v11234_v53 = vmul.u32.u64.low %v11164_v44, %v1444_v25  ;;  %v11235_v5 = vmul.u32.u64.high %v11164_v44, %v1444_v25, %v11234_v53  ;;  %v1272_v13 = vor.u32 4788187, %v1271_v28  ;;  %v2320_v45 = vsel %vm2235_vm2, %v2319_v21, %v2295_v16 }
  0xe5   : > { %v2453_v7 = vsel %vm2452_vm6, %v2451_v30, 0  ;;  %v1286_v46 = vadd.s32 3, %v1282_v50  ;;  %vm9828_vm7 = vcmp.lt.s32.totalorder %v9827_v20, 0  ;;  %v1440_v33 = vsel %vm1434_vm0, %v1437_v43, %v1439_v35 }
  0xe6   : > { %v2455_v47 = vand.u32 31, %v2453_v7  ;;  %v1273_v27 = vand.u32 2147483647, %v1272_v13  ;;  %v1275_v38 = vcvt.s32.f32 %v1268_v51  ;;  %v2304_v37 = vsel %vm9828_vm7, 0, %v9827_v20 }
  0xe7   : > { %vm1458_vm8 = vc.u32 %v11231_v0, %v11234_v53  ;;  %v2305_v4 = vsub.s32 32, %v2304_v37  ;;  %v2309_v36 = vsub.s32 4294967266, %v2304_v37  ;;  %v2322_v6 = vsel %vm11207_vm5, 0, %v2320_v45 }
  0xe8   : > { %v1459_v40 = vadd.s32 1, %v11235_v5  ;;  %v1276_v30 = vmul.f32 %v1275_v38, %v1273_v27  ;;  %v1456_v16 = vmul.u32 %v11164_v44, %v1440_v33  ;;  %v11250_v21 = vshrl.u32 %v2453_v7, 5 }
  0xe9   : > { %v2456_v31 = vsub.s32 32, %v2455_v47  ;;  %v2306_v19 = vshll.u32 %v11192_v18, %v2304_v37  ;;  %v2307_v25 = vshrl.u32 %v2289_v54, %v2305_v4  ;;  %v2310_v61 = vadd.s32 127, %v2309_v36 }
  0xea   : > { %v1460_v50 = vsel %vm1458_vm8, %v1459_v40, %v11235_v5  ;;  %v1277_v10 = vxor.u32 2147483648, %v1276_v30  ;;  %v2458_v35 = vshll.u32 %v16976_v15, %v2455_v47  ;;  %v2461_v20 = vshll.u32 %v16972_v23, %v2455_v47 }
  0xeb   : > { %v1461_v43 = vadd.s32 %v1460_v50, %v1456_v16  ;;  %v2459_v51 = vshrl.u32 %v16972_v23, %v2456_v31  ;;  %v2308_v28 = vor.u32 %v2307_v25, %v2306_v19  ;;  %v2311_v48 = vshll.u32 %v2310_v61, 23 }
  0xec   : > { %v2462_v44 = vshrl.u32 %v16973_v34, %v2456_v31  ;;  %v1278_v13 = vsel %vm1195_vm13, %v1277_v10, %v1276_v30  ;;  %v2464_v54 = vshll.u32 %v16973_v34, %v2455_v47  ;;  %v2465_v5 = vshrl.u32 %v16974_v39, %v2456_v31 }
  0xed   : > { %v1462_v18 = vadd.s32 536870912, %v1461_v43  ;;  %v1281_v45 = vsel %vm11180_vm14, %v10989_v11, %v1278_v13  ;;  %v2312_v7 = vor.u32 4788187, %v2311_v48  ;;  %v2460_v33 = vor.u32 %v2459_v51, %v2458_v35 }
  0xee   : > { %v2467_v27 = vshll.u32 %v16974_v39, %v2455_v47  ;;  %10426 = vcosq.f32 %v1281_v45  ;;  %v2315_v38 = vcvt.s32.f32 %v2308_v28  ;;  %v2468_v4 = vshrl.u32 %v16975_v24, %v2456_v31 }
  0xef   : > { %v11266_v37 = vshrl.u32 %v1462_v18, 30  ;;  %10428 = vsinq.f32 %v1281_v45  ;;  %v2313_v36 = vand.u32 2147483647, %v2312_v7  ;;  %v2463_v40 = vor.u32 %v2462_v44, %v2461_v20 }
  0xf0   : > { %v2471_v30 = vshrl.u32 %v16977_v52, %v2456_v31  ;;  %v2469_v19 = vor.u32 %v2468_v4, %v2467_v27  ;;  %v11273_v49 = vadd.f32 %v10986_v9, %v11132_v63  ;;  %v11277_v25 = vadd.f32 %v10984_v8, %v11151_v42 }
  0xf1   : > { %v1464_v16 = vshll.u32 %v11266_v37, 30  ;;  %v11279_v61 = vand.u32 3, %v1286_v46  ;;  %v2316_v50 = vmul.f32 %v2315_v38, %v2313_v36  ;;  %v2466_v10 = vor.u32 %v2465_v5, %v2464_v54 }
  0xf2   : > { %v2470_v35 = vshll.u32 %v16975_v24, %v2455_v47  ;;  %v2326_v51 = vadd.s32 3, %v2322_v6  ;;  %vm2473_vm9 = vcmp.lt.s32.totalorder %v11250_v21, 1  ;;  %v16984_v48 = vor.u32 8388608, %v11159_v41 }
  0xf3   : > { %v11282_v28 = vsub.s32 %v1461_v43, %v1464_v16  ;;  %v2317_v63 = vxor.u32 2147483648, %v2316_v50  ;;  %vm2476_vm10 = vcmp.lt.s32.totalorder %v11250_v21, 4  ;;  %v2481_v42 = vsel %vm2473_vm9, %v2460_v33, %v2463_v40 }
  0xf4   : > { %v11287_v20 = vshll.u32 %v16984_v48, 8  ;;  %v2472_v44 = vor.u32 %v2471_v30, %v2470_v35  ;;  %vm1403_vm11 = vcmp.lt.s32.totalorder %v10998_v14, 0  ;;  %v2457_v47 = vshrl.u32 %v16976_v15, %v2456_v31 }
  0xf5   : > { %v1467_v46 = vsub.s32 0, %v11282_v28  ;;  %vm2475_vm12 = vcmp.lt.s32.totalorder %v11250_v21, 3  ;;  %v2482_v41 = vsel %vm2476_vm10, %v2469_v19, 920167782  ;;  %v2318_v6 = vsel %vm2235_vm2, %v2317_v63, %v2316_v50 }
  0xf6   : > { %vm2474_vm13 = vcmp.lt.s32.totalorder %v11250_v21, 2  ;;  %v2478_v43 = vsel %vm2476_vm10, %v2466_v10, 2102212464  ;;  %v2483_v13 = vsel %vm2475_vm12, %v2466_v10, %v2482_v41  ;;  %v2321_v31 = vsel %vm11207_vm5, %v10992_v12, %v2318_v6 }
  0xf7   : > { %v9794_v18 = vmin.u32 %v1467_v46, %v11282_v28  ;;  %v2484_v54 = vsel %vm2474_vm13, %v2481_v42, %v2483_v13  ;;  %v2485_v5 = vsel %vm2473_vm9, %v2463_v40, %v2466_v10  ;;  %10430 = vcosq.f32 %v2321_v31 }
  0xf8   : > { %v2486_v45 = vsel %vm2476_vm10, %v2472_v44, 1326507024  ;;  %v11316_v7 = vmul.u32.u64.low %v11287_v20, %v2484_v54  ;;  %v11317_v27 = vmul.u32.u64.high %v11287_v20, %v2484_v54, %v11316_v7  ;;  %v10427_v38 = vpop.eup %10426  ;;  %vm1288_vm14 = vcmp.lt.s32.totalorder %v11279_v61, 2 }
  0xf9   : > { %10432 = vsinq.f32 %v2321_v31  ;;  %v11321_v32 = vand.u32 3, %v2326_v51  ;;  %v1469_v4 = vclz %v9794_v18  ;;  %v10429_v36 = vpop.eup %10428  ;;  %v1487_v30 = vsub.s32 4, %v11266_v37 }
  0xfa   : > { %v2477_v16 = vsel %vm2473_vm9, %v2457_v47, %v2460_v33  ;;  %v2479_v50 = vsel %vm2475_vm12, %v2463_v40, %v2478_v43  ;;  %v2487_v10 = vsel %vm2475_vm12, %v2469_v19, %v2486_v45  ;;  %v1290_v35 = vxor.u32 2147483648, %v10429_v36 }
  0xfb   : > { %v1293_v48 = vxor.u32 2147483648, %v10427_v38  ;;  %v16985_v63 = vand.u32 2147483647, %v10998_v14  ;;  %v9795_v44 = vadd.s32 4294967294, %v1469_v4  ;;  %v2488_v42 = vsel %vm2474_vm13, %v2485_v5, %v2487_v10 }
  0xfc   : > { %vm1285_vm0 = vweird.f32 %v10989_v11  ;;  %vm1289_vm1 = vcmp.eq.s32.totalorder %v11279_v61, 0  ;;  %v11341_v33 = vmul.u32.u64.low %v11287_v20, %v2488_v42  ;;  %v11342_v40 = vmul.u32.u64.high %v11287_v20, %v2488_v42, %v11341_v33 }
  0xfd   : > { %vm11332_vm15 = vcmp.le.f32.partialorder %v16985_v63, 0.7853982  ;;  %v1089_v19 = vand.u32 2147483647, %v11273_v49  ;;  %vm1292_vm2 = vcmp.eq.s32.totalorder %v11279_v61, 2  ;;  %vm9796_vm3 = vcmp.lt.s32.totalorder %v9795_v44, 0 }
  0xfe   : > { %v2480_v46 = vsel %vm2474_vm13, %v2477_v16, %v2479_v50  ;;  %v2499_v47 = vadd.s32 1, %v11317_v27  ;;  %vm2328_vm4 = vcmp.lt.s32.totalorder %v11321_v32, 2  ;;  %v1457_v41 = vadd.s32 %v11234_v53, %v11231_v0 }
  0xff   : > { %v1472_v6 = vsel %vm9796_vm3, 0, %v9795_v44  ;;  %v1488_v43 = vsel %vm1403_vm11, %v1487_v30, %v11266_v37  ;;  %v1092_v13 = vand.u32 2139095040, %v11273_v49  ;;  %v1291_v31 = vsel %vm1289_vm1, %v10427_v38, %v1290_v35 }
 0x100   : > { %v1294_v18 = vsel %vm1292_vm2, %v1293_v48, %v10429_v36  ;;  %vm2325_vm5 = vweird.f32 %v10992_v12  ;;  %v1473_v21 = vsub.s32 32, %v1472_v6  ;;  %v1477_v54 = vsub.s32 4294967266, %v1472_v6 }
 0x101   : > { %v2496_v5 = vmul.u32 %v11287_v20, %v2480_v46  ;;  %vm2498_vm6 = vc.u32 %v11342_v40, %v11316_v7  ;;  %v1093_v45 = vshrl.u32 %v1092_v13, 23  ;;  %v1096_v0 = vand.u32 8388607, %v1089_v19  ;;  %v10431_v36 = vpop.eup %10430 }
 0x102   : > { %v1474_v53 = vshll.u32 %v11282_v28, %v1472_v6  ;;  %v1475_v37 = vshrl.u32 %v1457_v41, %v1473_v21  ;;  %v1478_v4 = vadd.s32 127, %v1477_v54  ;;  %v2500_v38 = vsel %vm2498_vm6, %v2499_v47, %v11317_v27 }
 0x103   : > { %v1295_v30 = vsel %vm1288_vm14, %v1291_v31, %v1294_v18  ;;  %vm2329_vm7 = vcmp.eq.s32.totalorder %v11321_v32, 0  ;;  %v2501_v20 = vadd.s32 %v2500_v38, %v2496_v5  ;;  %v9781_v16 = vadd.s32 4294967169, %v1093_v45  ;;  %v10433_v50 = vpop.eup %10432 }
 0x104   : > { %vm2332_vm8 = vcmp.eq.s32.totalorder %v11321_v32, 2  ;;  %v2333_v10 = vxor.u32 2147483648, %v10431_v36  ;;  %v1476_v35 = vor.u32 %v1475_v37, %v1474_v53  ;;  %v1479_v48 = vshll.u32 %v1478_v4, 23 }
 0x105   : > { %v2330_v63 = vxor.u32 2147483648, %v10433_v50  ;;  %v1490_v28 = vsel %vm11332_vm15, 0, %v1488_v43  ;;  %v2502_v44 = vadd.s32 536870912, %v2501_v20  ;;  %v1099_v27 = vadd.s32 1, %v9781_v16 }
 0x106   : > { %v1296_v61 = vsel %vm1285_vm0, nan, %v1295_v30  ;;  %v2334_v42 = vsel %vm2332_vm8, %v2333_v10, %v10433_v50  ;;  %v1480_v33 = vor.u32 4788187, %v1479_v48  ;;  %v1097_v46 = vor.u32 8388608, %v1096_v0 }
 0x107   : > { %v2331_v47 = vsel %vm2329_vm7, %v10431_v36, %v2330_v63  ;;  %v1483_v41 = vcvt.s32.f32 %v1476_v35  ;;  %v2503_v6 = vshrl.u32 %v2502_v44, 30  ;;  %vm1100_vm9 = vcmp.gt.s32.totalorder %v1099_v27, 0 }
 0x108   : > { %v2335_v13 = vsel %vm2328_vm4, %v2331_v47, %v2334_v42  ;;  %v1481_v31 = vand.u32 2147483647, %v1480_v33  ;;  %v1101_v18 = vsel %vm1100_vm9, %v1099_v27, 0  ;;  %v2132_v43 = vand.u32 2139095040, %v11277_v25 }
 0x109   : > { %v2336_v11 = vsel %vm2325_vm5, nan, %v2335_v13  ;;  %v2504_v21 = vshll.u32 %v2503_v6, 30  ;;  %v2527_v54 = vsub.s32 4, %v2503_v6  ;;  %v2129_v5 = vand.u32 2147483647, %v11277_v25 }
 0x10a   : > { %v11380_v45 = vpack.c.bf16 %v2336_v11, %v1296_v61  ;;  %v1484_v0 = vmul.f32 %v1483_v41, %v1481_v31  ;;  %vm2443_vm10 = vcmp.lt.s32.totalorder %v11046_v62, 0  ;;  %v1103_v53 = vand.u32 31, %v1101_v18 }
 0x10b   : > { %v11383_v37 = vadd.s32 3, %v1490_v28  ;;  %v16989_v32 = vand.u32 2147483647, %v11046_v62  ;;  %v11391_v12 = vsub.s32 %v2501_v20, %v2504_v21  ;;  %v2528_v38 = vsel %vm2443_vm10, %v2527_v54, %v2503_v6 }
 0x10c   : > { %16988 = vst [vmem:[#allocation15_spill] sm:$0xff] %v11380_v45  ;;  %6395 = vmatprep.subr.bf16.mxu0 %v11380_v45  ;;  %v1485_v36 = vxor.u32 2147483648, %v1484_v0  ;;  %v11396_v30 = vshrl.u32 %v1101_v18, 5  ;;  %v1104_v16 = vsub.s32 32, %v1103_v53  ;;  %v2133_v50 = vshrl.u32 %v2132_v43, 23 }
 0x10d   : > { %vm11387_vm12 = vcmp.le.f32.partialorder %v16989_v32, 0.7853982  ;;  %v2497_v10 = vadd.s32 %v11316_v7, %v11342_v40  ;;  %v2507_v35 = vsub.s32 0, %v11391_v12  ;;  %v11401_v48 = vshll.u32 %v1097_v46, 8 }
 0x10e   : > { %v11405_v20 = vand.u32 8388607, %v2129_v5  ;;  %v1486_v63 = vsel %vm1403_vm11, %v1485_v36, %v1484_v0  ;;  %v2530_v28 = vsel %vm11387_vm12, 0, %v2528_v38  ;;  %v1107_v44 = vshrl.u32 %v16972_v23, %v1104_v16 }
 0x10f   : > { %v1110_v27 = vshrl.u32 %v16973_v34, %v1104_v16  ;;  %v9834_v7 = vmin.u32 %v2507_v35, %v11391_v12  ;;  %v1106_v40 = vshll.u32 %v16976_v15, %v1103_v53  ;;  %v1109_v61 = vshll.u32 %v16972_v23, %v1103_v53 }
 0x110   : > { %v1113_v42 = vshrl.u32 %v16974_v39, %v1104_v16  ;;  %v1489_v33 = vsel %vm11332_vm15, %v10998_v14, %v1486_v63  ;;  %v1112_v46 = vshll.u32 %v16973_v34, %v1103_v53  ;;  %vm1121_vm11 = vcmp.lt.s32.totalorder %v11396_v30, 1 }
 0x111   : > { %v9821_v47 = vadd.s32 4294967169, %v2133_v50  ;;  %v2509_v41 = vclz %v9834_v7  ;;  %v1108_v6 = vor.u32 %v1107_v44, %v1106_v40  ;;  %v1111_v13 = vor.u32 %v1110_v27, %v1109_v61 }
 0x112   : > { %vm1122_vm13 = vcmp.lt.s32.totalorder %v11396_v30, 2  ;;  %v2534_v31 = vadd.s32 3, %v2530_v28  ;;  %v1114_v18 = vor.u32 %v1113_v42, %v1112_v46  ;;  %v1115_v43 = vshll.u32 %v16974_v39, %v1103_v53 }
 0x113   : > { %v1116_v11 = vshrl.u32 %v16975_v24, %v1104_v16  ;;  %10434 = vcosq.f32 %v1489_v33  ;;  %v9835_v21 = vadd.s32 4294967294, %v2509_v41  ;;  %v1118_v51 = vshll.u32 %v16975_v24, %v1103_v53 }
 0x114   : > { %v1119_v54 = vshrl.u32 %v16977_v52, %v1104_v16  ;;  %10436 = vsinq.f32 %v1489_v33  ;;  %v1105_v0 = vshrl.u32 %v16976_v15, %v1104_v16  ;;  %vm1124_vm14 = vcmp.lt.s32.totalorder %v11396_v30, 4 }
 0x115   : > { %v1117_v32 = vor.u32 %v1116_v11, %v1115_v43  ;;  %vm9836_vm15 = vcmp.lt.s32.totalorder %v9835_v21, 0  ;;  %v1126_v36 = vsel %vm1124_vm14, %v1114_v18, 2102212464  ;;  %v1129_v50 = vsel %vm1121_vm11, %v1108_v6, %v1111_v13 }
 0x116   : > { %v1120_v38 = vor.u32 %v1119_v54, %v1118_v51  ;;  %v2512_v35 = vsel %vm9836_vm15, 0, %v9835_v21  ;;  %vm1123_vm0 = vcmp.lt.s32.totalorder %v11396_v30, 3  ;;  %v1125_v53 = vsel %vm1121_vm11, %v1105_v0, %v1108_v6 }
 0x117   : > { %v1130_v63 = vsel %vm1124_vm14, %v1117_v32, 920167782  ;;  %v2513_v28 = vsub.s32 32, %v2512_v35  ;;  %v2517_v44 = vsub.s32 4294967266, %v2512_v35  ;;  %v1133_v16 = vsel %vm1121_vm11, %v1111_v13, %v1114_v18 }
 0x118   : > { %v1131_v27 = vsel %vm1123_vm0, %v1114_v18, %v1130_v63  ;;  %v1127_v7 = vsel %vm1123_vm0, %v1111_v13, %v1126_v36  ;;  %v1134_v61 = vsel %vm1124_vm14, %v1120_v38, 1326507024  ;;  %v2139_v42 = vadd.s32 1, %v9821_v47 }
 0x119   : > { %v1132_v40 = vsel %vm1122_vm13, %v1129_v50, %v1131_v27  ;;  %v2514_v33 = vshll.u32 %v11391_v12, %v2512_v35  ;;  %v2515_v46 = vshrl.u32 %v2497_v10, %v2513_v28  ;;  %v2518_v41 = vadd.s32 127, %v2517_v44 }
 0x11a   : > { %v1135_v43 = vsel %vm1123_vm0, %v1117_v32, %v1134_v61  ;;  %v11442_v11 = vmul.u32.u64.low %v11401_v48, %v1132_v40  ;;  %v11443_v21 = vmul.u32.u64.high %v11401_v48, %v1132_v40, %v11442_v11  ;;  %vm2140_vm1 = vcmp.gt.s32.totalorder %v2139_v42, 0 }
 0x11b   : > { %v1136_v6 = vsel %vm1122_vm13, %v1133_v16, %v1135_v43  ;;  %v2516_v13 = vor.u32 %v2515_v46, %v2514_v33  ;;  %v2519_v18 = vshll.u32 %v2518_v41, 23  ;;  %v2141_v51 = vsel %vm2140_vm1, %v2139_v42, 0 }
 0x11c   : > { %v971_v47 = vadd.f32 %v11145_v2, %v11136_v29  ;;  %v1128_v12 = vsel %vm1122_vm13, %v1125_v53, %v1127_v7  ;;  %v11451_v10 = vmul.u32.u64.low %v11401_v48, %v1136_v6  ;;  %v11452_v54 = vmul.u32.u64.high %v11401_v48, %v1136_v6, %v11451_v10 }
 0x11d   : > { %v2137_v0 = vor.u32 8388608, %v11405_v20  ;;  %v11455_v32 = vpop.eup %10434  ;;  %v2520_v38 = vor.u32 4788187, %v2519_v18  ;;  %v2143_v36 = vand.u32 31, %v2141_v51  ;;  %v11459_v50 = vadd.f32 %v10986_v9, %v11140_v17 }
 0x11e   : > { %v11461_v35 = vpop.eup %10436  ;;  %v11464_v29 = vand.u32 3, %v11383_v37  ;;  %v11466_v2 = vand.u32 3, %v2534_v31  ;;  %v1147_v30 = vadd.s32 1, %v11443_v21  ;;  %v11470_v53 = vadd.f32 %v10984_v8, %v971_v47 }
 0x11f   : > { %v2521_v20 = vand.u32 2147483647, %v2520_v38  ;;  %v2523_v63 = vcvt.s32.f32 %v2516_v13  ;;  %v1144_v28 = vmul.u32 %v11401_v48, %v1128_v12  ;;  %v2144_v44 = vsub.s32 32, %v2143_v36 }
 0x120   : > { %vm1146_vm2 = vc.u32 %v11452_v54, %v11442_v11  ;;  %v11475_v17 = vshrl.u32 %v2141_v51, 5  ;;  %v2146_v37 = vshll.u32 %v16976_v15, %v2143_v36  ;;  %v11478_v27 = vshll.u32 %v2137_v0, 8 }
 0x121   : > { %v2524_v31 = vmul.f32 %v2523_v63, %v2521_v20  ;;  %v1148_v16 = vsel %vm1146_vm2, %v1147_v30, %v11443_v21  ;;  %v2147_v7 = vshrl.u32 %v16972_v23, %v2144_v44  ;;  %v2149_v40 = vshll.u32 %v16972_v23, %v2143_v36 }
 0x122   : > { %vm1500_vm3 = vcmp.eq.s32.totalorder %v11464_v29, 2  ;;  %v1149_v48 = vadd.s32 %v1148_v16, %v1144_v28  ;;  %v2150_v61 = vshrl.u32 %v16973_v34, %v2144_v44  ;;  %v2152_v42 = vshll.u32 %v16973_v34, %v2143_v36 }
 0x123   : > { %v2153_v33 = vshrl.u32 %v16974_v39, %v2144_v44  ;;  %v1501_v46 = vxor.u32 2147483648, %v11455_v32  ;;  %v2525_v41 = vxor.u32 2147483648, %v2524_v31  ;;  %v2155_v43 = vshll.u32 %v16974_v39, %v2143_v36 }
 0x124   : > { %v2156_v6 = vshrl.u32 %v16975_v24, %v2144_v44  ;;  %vm1497_vm4 = vcmp.eq.s32.totalorder %v11464_v29, 0  ;;  %v1150_v21 = vadd.s32 536870912, %v1149_v48  ;;  %v2148_v13 = vor.u32 %v2147_v7, %v2146_v37 }
 0x125   : > { %v2151_v18 = vor.u32 %v2150_v61, %v2149_v40  ;;  %v2154_v51 = vor.u32 %v2153_v33, %v2152_v42  ;;  %v2526_v47 = vsel %vm2443_vm10, %v2525_v41, %v2524_v31  ;;  %v2158_v10 = vshll.u32 %v16975_v24, %v2143_v36 }
 0x126   : > { %v2157_v12 = vor.u32 %v2156_v6, %v2155_v43  ;;  %v2159_v0 = vshrl.u32 %v16977_v52, %v2144_v44  ;;  %v1498_v38 = vxor.u32 2147483648, %v11461_v35  ;;  %v2529_v30 = vsel %vm11387_vm12, %v11046_v62, %v2526_v47 }
 0x127   : > { %v1151_v20 = vshrl.u32 %v1150_v21, 30  ;;  %vm2161_vm5 = vcmp.lt.s32.totalorder %v11475_v17, 1  ;;  %10438 = vcosq.f32 %v2529_v30  ;;  %v2145_v63 = vshrl.u32 %v16976_v15, %v2144_v44 }
 0x128   : > { %v2160_v28 = vor.u32 %v2159_v0, %v2158_v10  ;;  %vm2163_vm6 = vcmp.lt.s32.totalorder %v11475_v17, 3  ;;  %10440 = vsinq.f32 %v2529_v30  ;;  %vm2164_vm7 = vcmp.lt.s32.totalorder %v11475_v17, 4 }
 0x129   : > { %v1152_v37 = vshll.u32 %v1151_v20, 30  ;;  %v2169_v36 = vsel %vm2161_vm5, %v2148_v13, %v2151_v18  ;;  %v2166_v31 = vsel %vm2164_vm7, %v2154_v51, 2102212464  ;;  %v2170_v16 = vsel %vm2164_vm7, %v2157_v12, 920167782 }
 0x12a   : > { %v2173_v4 = vsel %vm2161_vm5, %v2151_v18, %v2154_v51  ;;  %v2174_v7 = vsel %vm2164_vm7, %v2160_v28, 1326507024  ;;  %vm1493_vm8 = vweird.f32 %v10998_v14  ;;  %vm2162_vm9 = vcmp.lt.s32.totalorder %v11475_v17, 2 }
 0x12b   : > { %v11508_v40 = vsub.s32 %v1149_v48, %v1152_v37  ;;  %v2171_v44 = vsel %vm2163_vm6, %v2154_v51, %v2170_v16  ;;  %v2175_v61 = vsel %vm2163_vm6, %v2157_v12, %v2174_v7  ;;  %v1502_v42 = vsel %vm1500_vm3, %v1501_v46, %v11461_v35 }
 0x12c   : > { %v2165_v33 = vsel %vm2161_vm5, %v2145_v63, %v2148_v13  ;;  %v2172_v41 = vsel %vm2162_vm9, %v2169_v36, %v2171_v44  ;;  %v2176_v48 = vsel %vm2162_vm9, %v2173_v4, %v2175_v61  ;;  %v2167_v6 = vsel %vm2163_vm6, %v2151_v18, %v2166_v31 }
 0x12d   : > { %v1155_v43 = vsub.s32 0, %v11508_v40  ;;  %v11528_v21 = vmul.u32.u64.low %v11478_v27, %v2176_v48  ;;  %v11529_v51 = vmul.u32.u64.high %v11478_v27, %v2176_v48, %v11528_v21  ;;  %v1499_v35 = vsel %vm1497_vm4, %v11455_v32, %v1498_v38 }
 0x12e   : > { %v1175_v46 = vsub.s32 4, %v1151_v20  ;;  %v11535_v13 = vmul.u32.u64.low %v11478_v27, %v2172_v41  ;;  %v11536_v47 = vmul.u32.u64.high %v11478_v27, %v2172_v41, %v11535_v13  ;;  %vm1496_vm10 = vcmp.lt.s32.totalorder %v11464_v29, 2 }
 0x12f   : > { %vm2533_vm12 = vweird.f32 %v11046_v62  ;;  %v9782_v12 = vmin.u32 %v1155_v43, %v11508_v40  ;;  %v1297_v18 = vand.u32 2147483647, %v11459_v50  ;;  %v1300_v10 = vand.u32 2139095040, %v11459_v50 }
 0x130   : > { %vm2536_vm11 = vcmp.lt.s32.totalorder %v11466_v2, 2  ;;  %vm11546_vm13 = vcmp.le.f32.partialorder %v1089_v19, 0.7853982  ;;  %vm1091_vm14 = vcmp.lt.s32.totalorder %v11273_v49, 0  ;;  %v2168_v29 = vsel %vm2162_vm9, %v2165_v33, %v2167_v6 }
 0x131   : > { %v1503_v0 = vsel %vm1496_vm10, %v1499_v35, %v1502_v42  ;;  %vm2537_vm15 = vcmp.eq.s32.totalorder %v11466_v2, 0  ;;  %vm2540_vm0 = vcmp.eq.s32.totalorder %v11466_v2, 2  ;;  %v1157_v38 = vclz %v9782_v12  ;;  %v10439_v30 = vpop.eup %10438 }
 0x132   : > { %v1176_v63 = vsel %vm1091_vm14, %v1175_v46, %v1151_v20  ;;  %vm2186_vm1 = vc.u32 %v11529_v51, %v11535_v13  ;;  %v2187_v19 = vadd.s32 1, %v11536_v47  ;;  %v1301_v28 = vshrl.u32 %v1300_v10, 23  ;;  %v10441_v37 = vpop.eup %10440 }
 0x133   : > { %v2541_v36 = vxor.u32 2147483648, %v10439_v30  ;;  %v9783_v31 = vadd.s32 4294967294, %v1157_v38  ;;  %v2184_v17 = vmul.u32 %v11478_v27, %v2168_v29  ;;  %v1304_v16 = vand.u32 8388607, %v1297_v18 }
 0x134   : > { %v1504_v4 = vsel %vm1493_vm8, nan, %v1503_v0  ;;  %v2538_v7 = vxor.u32 2147483648, %v10441_v37  ;;  %v2188_v44 = vsel %vm2186_vm1, %v2187_v19, %v11536_v47  ;;  %v9789_v20 = vadd.s32 4294967169, %v1301_v28 }
 0x135   : > { %v2542_v61 = vsel %vm2540_vm0, %v2541_v36, %v10441_v37  ;;  %v1145_v42 = vadd.s32 %v11442_v11, %v11452_v54  ;;  %vm9784_vm2 = vcmp.lt.s32.totalorder %v9783_v31, 0  ;;  %v2189_v33 = vadd.s32 %v2188_v44, %v2184_v17 }
 0x136   : > { %v2539_v27 = vsel %vm2537_vm15, %v10439_v30, %v2538_v7  ;;  %v1160_v41 = vsel %vm9784_vm2, 0, %v9783_v31  ;;  %v1178_v14 = vsel %vm11546_vm13, 0, %v1176_v63  ;;  %v1307_v48 = vadd.s32 1, %v9789_v20 }
 0x137   : > { %v2543_v43 = vsel %vm2536_vm11, %v2539_v27, %v2542_v61  ;;  %v1161_v6 = vsub.s32 32, %v1160_v41  ;;  %v1165_v21 = vsub.s32 4294967266, %v1160_v41  ;;  %v1305_v35 = vor.u32 8388608, %v1304_v16 }
 0x138   : > { %v2544_v46 = vsel %vm2533_vm12, nan, %v2543_v43  ;;  %v1162_v11 = vshll.u32 %v11508_v40, %v1160_v41  ;;  %v2190_v54 = vadd.s32 536870912, %v2189_v33  ;;  %vm1308_vm3 = vcmp.gt.s32.totalorder %v1307_v48, 0 }
 0x139   : > { %v11578_v47 = vpack.c.bf16 %v2544_v46, %v1504_v4  ;;  %v1163_v12 = vshrl.u32 %v1145_v42, %v1161_v6  ;;  %v1166_v10 = vadd.s32 127, %v1165_v21  ;;  %v1309_v29 = vsel %vm1308_vm3, %v1307_v48, 0 }
 0x13a   : > { %v2191_v0 = vshrl.u32 %v2190_v54, 30  ;;  %v1311_v38 = vand.u32 31, %v1309_v29  ;;  %v2340_v2 = vand.u32 2139095040, %v11470_v53  ;;  %v11582_v19 = vadd.s32 3, %v1178_v14 }
 0x13b   : > { %16994 = vst [vmem:[#allocation16_spill] sm:$0xff] %v11578_v47  ;;  %6448 = vmatprep.subr.bf16.mxu1 %v11578_v47  ;;  %v1164_v30 = vor.u32 %v1163_v12, %v1162_v11  ;;  %v1167_v63 = vshll.u32 %v1166_v10, 23  ;;  %vm2131_vm4 = vcmp.lt.s32.totalorder %v11277_v25, 0  ;;  %v2185_v37 = vadd.s32 %v11535_v13, %v11529_v51 }
 0x13c   : > { %v2192_v62 = vshll.u32 %v2191_v0, 30  ;;  %v1312_v40 = vsub.s32 32, %v1311_v38  ;;  %v11586_v36 = vshll.u32 %v1305_v35, 8  ;;  %v2337_v31 = vand.u32 2147483647, %v11470_v53 }
 0x13d   : > { %v1168_v28 = vor.u32 4788187, %v1167_v63  ;;  %v1310_v16 = vshrl.u32 %v1309_v29, 5  ;;  %v2341_v7 = vshrl.u32 %v2340_v2, 23  ;;  %v1171_v20 = vcvt.s32.f32 %v1164_v30 }
 0x13e   : > { %v11589_v17 = vsub.s32 %v2189_v33, %v2192_v62  ;;  %v1315_v4 = vshrl.u32 %v16972_v23, %v1312_v40  ;;  %v1318_v61 = vshrl.u32 %v16973_v34, %v1312_v40  ;;  %v1321_v42 = vshrl.u32 %v16974_v39, %v1312_v40 }
 0x13f   : > { %v1169_v44 = vand.u32 2147483647, %v1168_v28  ;;  %v2215_v41 = vsub.s32 4, %v2191_v0  ;;  %v1314_v51 = vshll.u32 %v16976_v15, %v1311_v38  ;;  %v1320_v13 = vshll.u32 %v16973_v34, %v1311_v38 }
 0x140   : > { %v2195_v27 = vsub.s32 0, %v11589_v17  ;;  %v1317_v33 = vshll.u32 %v16972_v23, %v1311_v38  ;;  %v1323_v48 = vshll.u32 %v16974_v39, %v1311_v38  ;;  %v1324_v43 = vshrl.u32 %v16975_v24, %v1312_v40 }
 0x141   : > { %v1172_v14 = vmul.f32 %v1171_v20, %v1169_v44  ;;  %v1316_v21 = vor.u32 %v1315_v4, %v1314_v51  ;;  %v1322_v35 = vor.u32 %v1321_v42, %v1320_v13  ;;  %v1327_v46 = vshrl.u32 %v16977_v52, %v1312_v40 }
 0x142   : > { %v9822_v6 = vmin.u32 %v2195_v27, %v11589_v17  ;;  %v1319_v54 = vor.u32 %v1318_v61, %v1317_v33  ;;  %v1325_v12 = vor.u32 %v1324_v43, %v1323_v48  ;;  %v1326_v10 = vshll.u32 %v16975_v24, %v1311_v38 }
 0x143   : > { %v1173_v11 = vxor.u32 2147483648, %v1172_v14  ;;  %vm11605_vm5 = vcmp.le.f32.partialorder %v2129_v5, 0.7853982  ;;  %v2216_v30 = vsel %vm2131_vm4, %v2215_v41, %v2191_v0  ;;  %v1313_v63 = vshrl.u32 %v16976_v15, %v1312_v40 }
 0x144   : > { %v2197_v2 = vclz %v9822_v6  ;;  %v9829_v62 = vadd.s32 4294967169, %v2341_v7  ;;  %v1328_v4 = vor.u32 %v1327_v46, %v1326_v10  ;;  %vm1329_vm6 = vcmp.lt.s32.totalorder %v1310_v16, 1 }
 0x145   : > { %v1174_v28 = vsel %vm1091_vm14, %v1173_v11, %v1172_v14  ;;  %vm1332_vm7 = vcmp.lt.s32.totalorder %v1310_v16, 4  ;;  %vm1330_vm8 = vcmp.lt.s32.totalorder %v1310_v16, 2  ;;  %vm1331_vm9 = vcmp.lt.s32.totalorder %v1310_v16, 3 }
 0x146   : > { %v1177_v5 = vsel %vm11546_vm13, %v11273_v49, %v1174_v28  ;;  %v9823_v38 = vadd.s32 4294967294, %v2197_v2  ;;  %v1334_v44 = vsel %vm1332_vm7, %v1322_v35, 2102212464  ;;  %v1333_v0 = vsel %vm1329_vm6, %v1313_v63, %v1316_v21 }
 0x147   : > { %v1337_v40 = vsel %vm1329_vm6, %v1316_v21, %v1319_v54  ;;  %v1338_v7 = vsel %vm1332_vm7, %v1325_v12, 920167782  ;;  %10442 = vcosq.f32 %v1177_v5  ;;  %v1335_v20 = vsel %vm1331_vm9, %v1319_v54, %v1334_v44 }
 0x148   : > { %vm9824_vm10 = vcmp.lt.s32.totalorder %v9823_v38, 0  ;;  %v1339_v61 = vsel %vm1331_vm9, %v1322_v35, %v1338_v7  ;;  %v1341_v32 = vsel %vm1329_vm6, %v1319_v54, %v1322_v35  ;;  %v1342_v41 = vsel %vm1332_vm7, %v1328_v4, 1326507024 }
 0x149   : > { %v2200_v42 = vsel %vm9824_vm10, 0, %v9823_v38  ;;  %v1340_v27 = vsel %vm1330_vm8, %v1337_v40, %v1339_v61  ;;  %10444 = vsinq.f32 %v1177_v5  ;;  %v1343_v14 = vsel %vm1331_vm9, %v1325_v12, %v1342_v41  ;;  %v11652_v61 = vpop.permute.xlu0 %722 }
 0x14a   : > { %v2201_v51 = vsub.s32 32, %v2200_v42  ;;  %v2205_v13 = vsub.s32 4294967266, %v2200_v42  ;;  %v2202_v33 = vshll.u32 %v11589_v17, %v2200_v42  ;;  %v1344_v48 = vsel %vm1330_vm8, %v1341_v32, %v1343_v14 }
 0x14b   : > { %v11627_v43 = vmul.u32.u64.low %v11586_v36, %v1340_v27  ;;  %v11628_v6 = vmul.u32.u64.high %v11586_v36, %v1340_v27, %v11627_v43  ;;  %v11632_v11 = vmul.u32.u64.low %v11586_v36, %v1344_v48  ;;  %v11633_v35 = vmul.u32.u64.high %v11586_v36, %v1344_v48, %v11632_v11 }
 0x14c   : > { %v2203_v21 = vshrl.u32 %v2185_v37, %v2201_v51  ;;  %v2206_v46 = vadd.s32 127, %v2205_v13  ;;  %v2218_v54 = vsel %vm11605_vm5, 0, %v2216_v30  ;;  %v1336_v12 = vsel %vm1330_vm8, %v1333_v0, %v1335_v20 }
 0x14d   : > { %v2344_v17 = vand.u32 8388607, %v2337_v31  ;;  %v2347_v10 = vadd.s32 1, %v9829_v62  ;;  %v11641_v28 = vand.u32 3, %v11582_v19  ;;  %v1355_v37 = vadd.s32 1, %v11628_v6 }
 0x14e   : > { %v2204_v2 = vor.u32 %v2203_v21, %v2202_v33  ;;  %v2207_v63 = vshll.u32 %v2206_v46, 23  ;;  %v2222_v5 = vadd.s32 3, %v2218_v54  ;;  %v1352_v38 = vmul.u32 %v11586_v36, %v1336_v12 }
 0x14f   : > { %vm2348_vm12 = vcmp.gt.s32.totalorder %v2347_v10, 0  ;;  %vm1354_vm11 = vc.u32 %v11633_v35, %v11627_v43  ;;  %v2345_v30 = vor.u32 8388608, %v2344_v17  ;;  %v930_v19 = vmul.f32 %v10958_v56, %v10978_v3 }
 0x150   : > { %v2208_v4 = vor.u32 4788187, %v2207_v63  ;;  %v1356_v16 = vsel %vm1354_vm11, %v1355_v37, %v11628_v6  ;;  %v2349_v44 = vsel %vm2348_vm12, %v2347_v10, 0  ;;  %v2211_v40 = vcvt.s32.f32 %v2204_v2 }
 0x151   : > { %v10443_v62 = vpop.eup %10442  ;;  %v1357_v7 = vadd.s32 %v1356_v16, %v1352_v38  ;;  %vm1185_vm13 = vcmp.eq.s32.totalorder %v11641_v28, 0  ;;  %vm1188_vm14 = vcmp.eq.s32.totalorder %v11641_v28, 2  ;;  %v2351_v20 = vand.u32 31, %v2349_v44 }
 0x152   : > { %v2209_v0 = vand.u32 2147483647, %v2208_v4  ;;  %v11654_v27 = vand.u32 3, %v2222_v5  ;;  %v798_v41 = vmul.f32 %v10955_v55, %v10962_v58  ;;  %v1189_v51 = vxor.u32 2147483648, %v10443_v62 }
 0x153   : > { %v10445_v36 = vpop.eup %10444  ;;  %v1358_v32 = vadd.s32 536870912, %v1357_v7  ;;  %v2352_v13 = vsub.s32 32, %v2351_v20  ;;  %v11660_v14 = vmul.f32 %v10955_v55, %v10960_v57  ;;  %v11664_v33 = vmul.f32 %v10958_v56, %v10976_v1 }
 0x154   : > { %v2212_v42 = vmul.f32 %v2211_v40, %v2209_v0  ;;  %vm1184_vm15 = vcmp.lt.s32.totalorder %v11641_v28, 2  ;;  %v11669_v21 = vshll.u32 %v2345_v30, 8  ;;  %v980_v46 = vadd.f32 %v930_v19, %v798_v41  ;;  %v11685_v30 = vpop.permute.xlu0 %1026 }
 0x155   : > { %v11667_v6 = vshrl.u32 %v1358_v32, 30  ;;  %v1186_v11 = vxor.u32 2147483648, %v10445_v36  ;;  %v2354_v54 = vshll.u32 %v16976_v15, %v2351_v20  ;;  %v2355_v12 = vshrl.u32 %v16972_v23, %v2352_v13 }
 0x156   : > { %v2213_v48 = vxor.u32 2147483648, %v2212_v42  ;;  %v2358_v17 = vshrl.u32 %v16973_v34, %v2352_v13  ;;  %v2360_v63 = vshll.u32 %v16973_v34, %v2351_v20  ;;  %v2361_v37 = vshrl.u32 %v16974_v39, %v2352_v13 }
 0x157   : > { %v1360_v2 = vshll.u32 %v11667_v6, 30  ;;  %v1190_v4 = vsel %vm1188_vm14, %v1189_v51, %v10445_v36  ;;  %v2350_v38 = vshrl.u32 %v2349_v44, 5  ;;  %v2357_v16 = vshll.u32 %v16972_v23, %v2351_v20 }
 0x158   : > { %v2214_v10 = vsel %vm2131_vm4, %v2213_v48, %v2212_v42  ;;  %vm1181_vm0 = vweird.f32 %v11273_v49  ;;  %v2356_v40 = vor.u32 %v2355_v12, %v2354_v54  ;;  %v2362_v19 = vor.u32 %v2361_v37, %v2360_v63 }
 0x159   : > { %v2217_v5 = vsel %vm11605_vm5, %v11277_v25, %v2214_v10  ;;  %v11688_v0 = vsub.s32 %v1357_v7, %v1360_v2  ;;  %v2359_v42 = vor.u32 %v2358_v17, %v2357_v16  ;;  %v2363_v36 = vshll.u32 %v16974_v39, %v2351_v20 }
 0x15a   : > { %10446 = vcosq.f32 %v2217_v5  ;;  %v2364_v32 = vshrl.u32 %v16975_v24, %v2352_v13  ;;  %v1187_v29 = vsel %vm1185_vm13, %v10443_v62, %v1186_v11  ;;  %v2366_v41 = vshll.u32 %v16975_v24, %v2351_v20 }
 0x15b   : > { %10448 = vsinq.f32 %v2217_v5  ;;  %v1363_v44 = vsub.s32 0, %v11688_v0  ;;  %v2367_v51 = vshrl.u32 %v16977_v52, %v2352_v13  ;;  %vm1299_vm1 = vcmp.lt.s32.totalorder %v11459_v50, 0 }
 0x15c   : > { %v1353_v7 = vadd.s32 %v11627_v43, %v11633_v35  ;;  %v2365_v48 = vor.u32 %v2364_v32, %v2363_v36  ;;  %vm2372_vm2 = vcmp.lt.s32.totalorder %v2350_v38, 4  ;;  %v11701_v54 = vadd.f32 %v11685_v30, %v980_v46 }
 0x15d   : > { %vm2228_vm3 = vcmp.eq.s32.totalorder %v11654_v27, 2  ;;  %v9790_v62 = vmin.u32 %v1363_v44, %v11688_v0  ;;  %v2368_v11 = vor.u32 %v2367_v51, %v2366_v41  ;;  %vm2369_vm4 = vcmp.lt.s32.totalorder %v2350_v38, 1 }
 0x15e   : > { %v2374_v20 = vsel %vm2372_vm2, %v2362_v19, 2102212464  ;;  %v1191_v12 = vsel %vm1184_vm15, %v1187_v29, %v1190_v4  ;;  %vm2225_vm5 = vcmp.eq.s32.totalorder %v11654_v27, 0  ;;  %v2353_v43 = vshrl.u32 %v16976_v15, %v2352_v13 }
 0x15f   : > { %v2377_v35 = vsel %vm2369_vm4, %v2356_v40, %v2359_v42  ;;  %v2378_v17 = vsel %vm2372_vm2, %v2365_v48, 920167782  ;;  %vm2224_vm6 = vcmp.lt.s32.totalorder %v11654_v27, 2  ;;  %v1365_v46 = vclz %v9790_v62 }
 0x160   : > { %vm2370_vm7 = vcmp.lt.s32.totalorder %v2350_v38, 2  ;;  %vm2371_vm8 = vcmp.lt.s32.totalorder %v2350_v38, 3  ;;  %v2381_v10 = vsel %vm2369_vm4, %v2359_v42, %v2362_v19  ;;  %vm2221_vm9 = vweird.f32 %v11277_v25 }
 0x161   : > { %v2373_v2 = vsel %vm2369_vm4, %v2353_v43, %v2356_v40  ;;  %v2375_v63 = vsel %vm2371_vm8, %v2359_v42, %v2374_v20  ;;  %v2379_v37 = vsel %vm2371_vm8, %v2362_v19, %v2378_v17  ;;  %v2382_v28 = vsel %vm2372_vm2, %v2368_v11, 1326507024  ;;  %v11724_v19 = vpop.permute.xlu1 %854 }
 0x162   : > { %v9791_v4 = vadd.s32 4294967294, %v1365_v46  ;;  %v1383_v5 = vsub.s32 4, %v11667_v6  ;;  %v2380_v13 = vsel %vm2370_vm7, %v2377_v35, %v2379_v37  ;;  %v2383_v16 = vsel %vm2371_vm8, %v2365_v48, %v2382_v28 }
 0x163   : > { %v1192_v36 = vsel %vm1181_vm0, nan, %v1191_v12  ;;  %v2384_v32 = vsel %vm2370_vm7, %v2381_v10, %v2383_v16  ;;  %v11720_v29 = vmul.u32.u64.low %v11669_v21, %v2380_v13  ;;  %v11721_v44 = vmul.u32.u64.high %v11669_v21, %v2380_v13, %v11720_v29 }
 0x164   : > { %v10447_v40 = vpop.eup %10446  ;;  %vm9792_vm10 = vcmp.lt.s32.totalorder %v9791_v4, 0  ;;  %v2376_v42 = vsel %vm2370_vm7, %v2373_v2, %v2375_v63  ;;  %v11728_v41 = vmul.u32.u64.low %v11669_v21, %v2384_v32  ;;  %v11729_v51 = vmul.u32.u64.high %v11669_v21, %v2384_v32, %v11728_v41 }
 0x165   : > { %v10449_v48 = vpop.eup %10448  ;;  %v2229_v49 = vxor.u32 2147483648, %v10447_v40  ;;  %v1368_v62 = vsel %vm9792_vm10, 0, %v9791_v4  ;;  %v16851_v11 = vand.u32 2147483647, %v11701_v54  ;;  %v3276_v20 = vand.u32 2139095040, %v11701_v54 }
 0x166   : > { %v2226_v12 = vxor.u32 2147483648, %v10449_v48  ;;  %v1369_v43 = vsub.s32 32, %v1368_v62  ;;  %v1373_v35 = vsub.s32 4294967266, %v1368_v62  ;;  %v1384_v17 = vsel %vm1299_vm1, %v1383_v5, %v11667_v6  ;;  %v11749_v5 = vpop.permute.xlu1 %1031 }
 0x167   : > { %v2230_v38 = vsel %vm2228_vm3, %v2229_v49, %v10449_v48  ;;  %v2392_v46 = vmul.u32 %v11669_v21, %v2376_v42  ;;  %v2395_v10 = vadd.s32 1, %v11721_v44  ;;  %v3277_v2 = vshrl.u32 %v3276_v20, 23 }
 0x168   : > { %v2227_v63 = vsel %vm2225_vm5, %v10447_v40, %v2226_v12  ;;  %v1370_v37 = vshll.u32 %v11688_v0, %v1368_v62  ;;  %v1371_v28 = vshrl.u32 %v1353_v7, %v1369_v43  ;;  %v1374_v4 = vadd.s32 127, %v1373_v35 }
 0x169   : > { %v2231_v13 = vsel %vm2224_vm6, %v2227_v63, %v2230_v38  ;;  %vm2394_vm12 = vc.u32 %v11729_v51, %v11720_v29  ;;  %v9865_v6 = vadd.s32 4294967169, %v3277_v2  ;;  %v3280_v21 = vand.u32 8388607, %v16851_v11 }
 0x16a   : > { %v2232_v16 = vsel %vm2221_vm9, nan, %v2231_v13  ;;  %v1372_v32 = vor.u32 %v1371_v28, %v1370_v37  ;;  %v1375_v40 = vshll.u32 %v1374_v4, 23  ;;  %v2396_v0 = vsel %vm2394_vm12, %v2395_v10, %v11721_v44 }
 0x16b   : > { %v11754_v7 = vpack.c.bf16 %v2232_v16, %v1192_v36  ;;  %v2397_v27 = vadd.s32 %v2396_v0, %v2392_v46  ;;  %v990_v42 = vadd.f32 %v11664_v33, %v11660_v14  ;;  %v3283_v41 = vadd.s32 1, %v9865_v6 }
 0x16c   : > { %vm11760_vm11 = vcmp.le.f32.partialorder %v1297_v18, 0.7853982  ;;  %v1376_v49 = vor.u32 4788187, %v1375_v40  ;;  %v1379_v14 = vcvt.s32.f32 %v1372_v32  ;;  %v3281_v33 = vor.u32 8388608, %v3280_v21 }
 0x16d   : > { %16997 = vst [vmem:[#allocation17_spill] sm:$0xff] %v11754_v7  ;;  %6396 = vmatpush1.bf16.msra.mxu0 %v11754_v7  ;;  %v1386_v25 = vsel %vm11760_vm11, 0, %v1384_v17  ;;  %v2398_v44 = vadd.s32 536870912, %v2397_v27  ;;  %v11768_v36 = vadd.f32 %v11749_v5, %v990_v42  ;;  %vm3284_vm13 = vcmp.gt.s32.totalorder %v3283_v41, 0 }
 0x16e   : > { %v1377_v62 = vand.u32 2147483647, %v1376_v49  ;;  %v3285_v20 = vsel %vm3284_vm13, %v3283_v41, 0  ;;  %v11770_v35 = vadd.s32 3, %v1386_v25  ;;  %vm2339_vm14 = vcmp.lt.s32.totalorder %v11470_v53, 0 }
 0x16f   : > { %v2399_v12 = vshrl.u32 %v2398_v44, 30  ;;  %v3287_v18 = vand.u32 31, %v3285_v20  ;;  %v11773_v2 = vshll.u32 %v3281_v33, 8  ;;  %v4316_v63 = vand.u32 2139095040, %v11768_v36 }
 0x170   : > { %v1380_v43 = vmul.f32 %v1379_v14, %v1377_v62  ;;  %v3286_v28 = vshrl.u32 %v3285_v20, 5  ;;  %v16850_v13 = vand.u32 2147483647, %v11768_v36  ;;  %vm11797_vm15 = vcmp.le.f32.partialorder %v2337_v31, 0.7853982 }
 0x171   : > { %v2400_v38 = vshll.u32 %v2399_v12, 30  ;;  %v3288_v46 = vsub.s32 32, %v3287_v18  ;;  %v2423_v17 = vsub.s32 4, %v2399_v12  ;;  %v3290_v21 = vshll.u32 %v16976_v15, %v3287_v18 }
 0x172   : > { %v1381_v10 = vxor.u32 2147483648, %v1380_v43  ;;  %v3296_v42 = vshll.u32 %v16973_v34, %v3287_v18  ;;  %v3299_v49 = vshll.u32 %v16974_v39, %v3287_v18  ;;  %v4317_v44 = vshrl.u32 %v4316_v63, 23 }
 0x173   : > { %v11776_v37 = vsub.s32 %v2397_v27, %v2400_v38  ;;  %v3291_v4 = vshrl.u32 %v16972_v23, %v3288_v46  ;;  %v3294_v16 = vshrl.u32 %v16973_v34, %v3288_v46  ;;  %v3297_v32 = vshrl.u32 %v16974_v39, %v3288_v46 }
 0x174   : > { %v1382_v6 = vsel %vm1299_vm1, %v1381_v10, %v1380_v43  ;;  %v3293_v27 = vshll.u32 %v16972_v23, %v3287_v18  ;;  %v2424_v41 = vsel %vm2339_vm14, %v2423_v17, %v2399_v12  ;;  %v3300_v25 = vshrl.u32 %v16975_v24, %v3288_v46 }
 0x175   : > { %v1385_v40 = vsel %vm11760_vm11, %v11459_v50, %v1382_v6  ;;  %v2403_v0 = vsub.s32 0, %v11776_v37  ;;  %v3292_v14 = vor.u32 %v3291_v4, %v3290_v21  ;;  %v3298_v20 = vor.u32 %v3297_v32, %v3296_v42 }
 0x176   : > { %v3295_v33 = vor.u32 %v3294_v16, %v3293_v27  ;;  %10450 = vcosq.f32 %v1385_v40  ;;  %v3301_v43 = vor.u32 %v3300_v25, %v3299_v49  ;;  %v3302_v12 = vshll.u32 %v16975_v24, %v3287_v18 }
 0x177   : > { %v9830_v48 = vmin.u32 %v2403_v0, %v11776_v37  ;;  %v3303_v38 = vshrl.u32 %v16977_v52, %v3288_v46  ;;  %10452 = vsinq.f32 %v1385_v40  ;;  %v3289_v17 = vshrl.u32 %v16976_v15, %v3288_v46 }
 0x178   : > { %vm3305_vm0 = vcmp.lt.s32.totalorder %v3286_v28, 1  ;;  %vm3306_vm1 = vcmp.lt.s32.totalorder %v3286_v28, 2  ;;  %vm3307_vm2 = vcmp.lt.s32.totalorder %v3286_v28, 3  ;;  %vm3308_vm3 = vcmp.lt.s32.totalorder %v3286_v28, 4 }
 0x179   : > { %v2405_v10 = vclz %v9830_v48  ;;  %v3304_v31 = vor.u32 %v3303_v38, %v3302_v12  ;;  %v3310_v6 = vsel %vm3308_vm3, %v3298_v20, 2102212464  ;;  %v3313_v4 = vsel %vm3305_vm0, %v3292_v14, %v3295_v33 }
 0x17a   : > { %v3314_v21 = vsel %vm3308_vm3, %v3301_v43, 920167782  ;;  %v3309_v16 = vsel %vm3305_vm0, %v3289_v17, %v3292_v14  ;;  %v3317_v0 = vsel %vm3305_vm0, %v3295_v33, %v3298_v20  ;;  %v3311_v18 = vsel %vm3307_vm2, %v3295_v33, %v3310_v6 }
 0x17b   : > { %v9831_v63 = vadd.s32 4294967294, %v2405_v10  ;;  %v3315_v32 = vsel %vm3307_vm2, %v3298_v20, %v3314_v21  ;;  %v3318_v27 = vsel %vm3308_vm3, %v3304_v31, 1326507024  ;;  %v2393_v12 = vadd.s32 %v11720_v29, %v11729_v51 }
 0x17c   : > { %v3316_v40 = vsel %vm3306_vm1, %v3313_v4, %v3315_v32  ;;  %v3319_v42 = vsel %vm3307_vm2, %v3301_v43, %v3318_v27  ;;  %v4320_v20 = vand.u32 8388607, %v16850_v13  ;;  %v2426_v33 = vsel %vm11797_vm15, 0, %v2424_v41 }
 0x17d   : > { %vm9832_vm4 = vcmp.lt.s32.totalorder %v9831_v63, 0  ;;  %v3320_v46 = vsel %vm3306_vm1, %v3317_v0, %v3319_v42  ;;  %v11808_v25 = vmul.u32.u64.low %v11773_v2, %v3316_v40  ;;  %v11809_v48 = vmul.u32.u64.high %v11773_v2, %v3316_v40, %v11808_v25 }
 0x17e   : > { %v2408_v49 = vsel %vm9832_vm4, 0, %v9831_v63  ;;  %v11819_v43 = vmul.u32.u64.low %v11773_v2, %v3320_v46  ;;  %v11820_v10 = vmul.u32.u64.high %v11773_v2, %v3320_v46, %v11819_v43  ;;  %v9905_v17 = vadd.s32 4294967169, %v4317_v44 }
 0x17f   : > { %v2409_v14 = vsub.s32 32, %v2408_v49  ;;  %v2413_v38 = vsub.s32 4294967266, %v2408_v49  ;;  %v2410_v31 = vshll.u32 %v11776_v37, %v2408_v49  ;;  %v3312_v4 = vsel %vm3306_vm1, %v3309_v16, %v3311_v18 }
 0x180   : > { %v10451_v29 = vpop.eup %10450  ;;  %v11825_v51 = vand.u32 3, %v11770_v35  ;;  %v3331_v21 = vadd.s32 1, %v11809_v48  ;;  %v4323_v32 = vadd.s32 1, %v9905_v17  ;;  %v800_v40 = vmul.f32 %v10964_v59, %v10962_v58 }
 0x181   : > { %v2411_v63 = vshrl.u32 %v2393_v12, %v2409_v14  ;;  %v2414_v6 = vadd.s32 127, %v2413_v38  ;;  %v10453_v0 = vpop.eup %10452  ;;  %v932_v37 = vmul.f32 %v10966_v60, %v10978_v3  ;;  %v2430_v44 = vadd.s32 3, %v2426_v33 }
 0x182   : > { %v3328_v28 = vmul.u32 %v11773_v2, %v3312_v4  ;;  %vm3330_vm5 = vc.u32 %v11820_v10, %v11808_v25  ;;  %vm4324_vm6 = vcmp.gt.s32.totalorder %v4323_v32, 0  ;;  %v1397_v35 = vxor.u32 2147483648, %v10451_v29 }
 0x183   : > { %v2412_v41 = vor.u32 %v2411_v63, %v2410_v31  ;;  %v2415_v27 = vshll.u32 %v2414_v6, 23  ;;  %v3332_v18 = vsel %vm3330_vm5, %v3331_v21, %v11809_v48  ;;  %v4321_v42 = vor.u32 8388608, %v4320_v20 }
 0x184   : > { %vm1393_vm7 = vcmp.eq.s32.totalorder %v11825_v51, 0  ;;  %vm1396_vm8 = vcmp.eq.s32.totalorder %v11825_v51, 2  ;;  %v3333_v49 = vadd.s32 %v3332_v18, %v3328_v28  ;;  %v4325_v46 = vsel %vm4324_vm6, %v4323_v32, 0 }
 0x185   : > { %v2416_v16 = vor.u32 4788187, %v2415_v27  ;;  %v810_v12 = vmul.f32 %v10964_v59, %v10960_v57  ;;  %v2419_v2 = vcvt.s32.f32 %v2412_v41  ;;  %v4327_v38 = vand.u32 31, %v4325_v46 }
 0x186   : > { %v942_v33 = vmul.f32 %v10966_v60, %v10976_v1  ;;  %v1394_v43 = vxor.u32 2147483648, %v10453_v0  ;;  %v11842_v17 = vand.u32 3, %v2430_v44  ;;  %v3334_v48 = vadd.s32 536870912, %v3333_v49 }
 0x187   : > { %v2417_v14 = vand.u32 2147483647, %v2416_v16  ;;  %v982_v20 = vadd.f32 %v932_v37, %v800_v40  ;;  %v1398_v31 = vsel %vm1396_vm8, %v1397_v35, %v10453_v0  ;;  %v4328_v6 = vsub.s32 32, %v4327_v38 }
 0x188   : > { %v11844_v4 = vshll.u32 %v4321_v42, 8  ;;  %v3335_v21 = vshrl.u32 %v3334_v48, 30  ;;  %v4326_v32 = vshrl.u32 %v4325_v46, 5  ;;  %v4330_v27 = vshll.u32 %v16976_v15, %v4327_v38 }
 0x189   : > { %v2420_v63 = vmul.f32 %v2419_v2, %v2417_v14  ;;  %v4333_v41 = vshll.u32 %v16972_v23, %v4327_v38  ;;  %vm1392_vm9 = vcmp.lt.s32.totalorder %v11825_v51, 2  ;;  %v4331_v16 = vshrl.u32 %v16972_v23, %v4328_v6 }
 0x18a   : > { %v4334_v44 = vshrl.u32 %v16973_v34, %v4328_v6  ;;  %v4336_v40 = vshll.u32 %v16973_v34, %v4327_v38  ;;  %vm3275_vm10 = vcmp.lt.s32.totalorder %v11701_v54, 0  ;;  %v3336_v0 = vshll.u32 %v3335_v21, 30 }
 0x18b   : > { %v2421_v28 = vxor.u32 2147483648, %v2420_v63  ;;  %v4337_v37 = vshrl.u32 %v16974_v39, %v4328_v6  ;;  %v4339_v35 = vshll.u32 %v16974_v39, %v4327_v38  ;;  %v4340_v18 = vshrl.u32 %v16975_v24, %v4328_v6 }
 0x18c   : > { %v4332_v46 = vor.u32 %v4331_v16, %v4330_v27  ;;  %v4342_v14 = vshll.u32 %v16975_v24, %v4327_v38  ;;  %v4343_v2 = vshrl.u32 %v16977_v52, %v4328_v6  ;;  %v11863_v13 = vsub.s32 %v3333_v49, %v3336_v0 }
 0x18d   : > { %v2422_v42 = vsel %vm2339_vm14, %v2421_v28, %v2420_v63  ;;  %v4335_v11 = vor.u32 %v4334_v44, %v4333_v41  ;;  %v4338_v47 = vor.u32 %v4337_v37, %v4336_v40  ;;  %vm1389_vm12 = vweird.f32 %v11459_v50 }
 0x18e   : > { %v2425_v48 = vsel %vm11797_vm15, %v11470_v53, %v2422_v42  ;;  %v1395_v7 = vsel %vm1393_vm7, %v10451_v29, %v1394_v43  ;;  %v4341_v63 = vor.u32 %v4340_v18, %v4339_v35  ;;  %v4344_v27 = vor.u32 %v4343_v2, %v4342_v14 }
 0x18f   : > { %10454 = vcosq.f32 %v2425_v48  ;;  %v17002_v38 = vand.u32 2147483647, %v11701_v54  ;;  %v3339_v62 = vsub.s32 0, %v11863_v13  ;;  %v4329_v49 = vshrl.u32 %v16976_v15, %v4328_v6 }
 0x190   : > { %10456 = vsinq.f32 %v2425_v48  ;;  %v11877_v41 = vadd.f32 %v11685_v30, %v982_v20  ;;  %v3359_v16 = vsub.s32 4, %v3335_v21  ;;  %vm4345_vm13 = vcmp.lt.s32.totalorder %v4326_v32, 1 }
 0x191   : > { %vm11870_vm11 = vcmp.le.f32.partialorder %v17002_v38, 0.7853982  ;;  %vm4347_vm14 = vcmp.lt.s32.totalorder %v4326_v32, 3  ;;  %vm4348_vm15 = vcmp.lt.s32.totalorder %v4326_v32, 4  ;;  %v9866_v29 = vmin.u32 %v3339_v62, %v11863_v13 }
 0x192   : > { %v4349_v43 = vsel %vm4345_vm13, %v4329_v49, %v4332_v46  ;;  %v4350_v44 = vsel %vm4348_vm15, %v4338_v47, 2102212464  ;;  %v4353_v40 = vsel %vm4345_vm13, %v4332_v46, %v4335_v11  ;;  %vm2436_vm0 = vcmp.eq.s32.totalorder %v11842_v17, 2 }
 0x193   : > { %v4351_v0 = vsel %vm4347_vm14, %v4335_v11, %v4350_v44  ;;  %v4354_v37 = vsel %vm4348_vm15, %v4341_v63, 920167782  ;;  %v4357_v35 = vsel %vm4345_vm13, %v4335_v11, %v4338_v47  ;;  %v4358_v18 = vsel %vm4348_vm15, %v4344_v27, 1326507024 }
 0x194   : > { %v1399_v20 = vsel %vm1392_vm9, %v1395_v7, %v1398_v31  ;;  %vm2433_vm1 = vcmp.eq.s32.totalorder %v11842_v17, 0  ;;  %v3341_v6 = vclz %v9866_v29  ;;  %v992_v42 = vadd.f32 %v942_v33, %v810_v12 }
 0x195   : > { %v3484_v14 = vand.u32 2139095040, %v11877_v41  ;;  %vm2432_vm2 = vcmp.lt.s32.totalorder %v11842_v17, 2  ;;  %v3360_v46 = vsel %vm3275_vm10, %v3359_v16, %v3335_v21  ;;  %vm4346_vm3 = vcmp.lt.s32.totalorder %v4326_v32, 2 }
 0x196   : > { %v4355_v2 = vsel %vm4347_vm14, %v4338_v47, %v4354_v37  ;;  %v4359_v11 = vsel %vm4347_vm14, %v4341_v63, %v4358_v18  ;;  %vm2429_vm4 = vweird.f32 %v11470_v53  ;;  %v9867_v51 = vadd.s32 4294967294, %v3341_v6 }
 0x197   : > { %v4352_v7 = vsel %vm4346_vm3, %v4349_v43, %v4351_v0  ;;  %v4356_v31 = vsel %vm4346_vm3, %v4353_v40, %v4355_v2  ;;  %v4360_v48 = vsel %vm4346_vm3, %v4357_v35, %v4359_v11  ;;  %v1400_v21 = vsel %vm1389_vm12, nan, %v1399_v20 }
 0x198   : > { %v11893_v12 = vmul.u32.u64.low %v11844_v4, %v4360_v48  ;;  %v11894_v33 = vmul.u32.u64.high %v11844_v4, %v4360_v48, %v11893_v12  ;;  %v11897_v27 = vmul.u32.u64.low %v11844_v4, %v4356_v31  ;;  %v11898_v38 = vmul.u32.u64.high %v11844_v4, %v4356_v31, %v11897_v27 }
 0x199   : > { %v3329_v47 = vadd.s32 %v11808_v25, %v11820_v10  ;;  %vm9868_vm5 = vcmp.lt.s32.totalorder %v9867_v51, 0  ;;  %v3485_v32 = vshrl.u32 %v3484_v14, 23  ;;  %v10455_v63 = vpop.eup %10454  ;;  %v3362_v49 = vsel %vm11870_vm11, 0, %v3360_v46 }
 0x19a   : > { %v3344_v62 = vsel %vm9868_vm5, 0, %v9867_v51  ;;  %v11907_v16 = vadd.f32 %v11749_v5, %v992_v42  ;;  %v3481_v29 = vand.u32 2147483647, %v11877_v41  ;;  %v10457_v43 = vpop.eup %10456  ;;  %v2437_v44 = vxor.u32 2147483648, %v10455_v63 }
 0x19b   : > { %v3345_v40 = vsub.s32 32, %v3344_v62  ;;  %v3349_v50 = vsub.s32 4294967266, %v3344_v62  ;;  %v4368_v0 = vmul.u32 %v11844_v4, %v4352_v7  ;;  %v2434_v37 = vxor.u32 2147483648, %v10457_v43 }
 0x19c   : > { %v3346_v25 = vshll.u32 %v11863_v13, %v3344_v62  ;;  %vm4370_vm6 = vc.u32 %v11894_v33, %v11897_v27  ;;  %v4371_v10 = vadd.s32 1, %v11898_v38  ;;  %v2438_v35 = vsel %vm2436_vm0, %v2437_v44, %v10457_v43 }
 0x19d   : > { %v3347_v18 = vshrl.u32 %v3329_v47, %v3345_v40  ;;  %v3350_v20 = vadd.s32 127, %v3349_v50  ;;  %v9873_v6 = vadd.s32 4294967169, %v3485_v32  ;;  %v2435_v42 = vsel %vm2433_vm1, %v10455_v63, %v2434_v37 }
 0x19e   : > { %v4372_v14 = vsel %vm4370_vm6, %v4371_v10, %v11898_v38  ;;  %v3488_v4 = vand.u32 8388607, %v3481_v29  ;;  %v4524_v13 = vand.u32 2139095040, %v11907_v16  ;;  %v2439_v46 = vsel %vm2432_vm2, %v2435_v42, %v2438_v35 }
 0x19f   : > { %v3348_v2 = vor.u32 %v3347_v18, %v3346_v25  ;;  %v3351_v11 = vshll.u32 %v3350_v20, 23  ;;  %v4373_v51 = vadd.s32 %v4372_v14, %v4368_v0  ;;  %v2440_v7 = vsel %vm2429_vm4, nan, %v2439_v46 }
 0x1a0   : > { %v3491_v31 = vadd.s32 1, %v9873_v6  ;;  %v11926_v48 = vpack.c.bf16 %v2440_v7, %v1400_v21  ;;  %v3366_v47 = vadd.s32 3, %v3362_v49  ;;  %v3489_v32 = vor.u32 8388608, %v3488_v4 }
 0x1a1   : > { %v3352_v12 = vor.u32 4788187, %v3351_v11  ;;  %v4374_v38 = vadd.s32 536870912, %v4373_v51  ;;  %v4525_v63 = vshrl.u32 %v4524_v13, 23  ;;  %v3355_v17 = vcvt.s32.f32 %v3348_v2 }
 0x1a2   : > { %17005 = vst [vmem:[#allocation18_spill] sm:$0xff] %v11926_v48  ;;  %vm3492_vm7 = vcmp.gt.s32.totalorder %v3491_v31, 0  ;;  %6449 = vmatpush1.bf16.msra.mxu1 %v11926_v48  ;;  %vm4315_vm8 = vcmp.lt.s32.totalorder %v11768_v36, 0  ;;  %v11930_v50 = vand.u32 3, %v3366_v47  ;;  %v17006_v21 = vand.u32 2147483647, %v11768_v36 }
 0x1a3   : > { %v3353_v62 = vand.u32 2147483647, %v3352_v12  ;;  %v4375_v43 = vshrl.u32 %v4374_v38, 30  ;;  %v3493_v44 = vsel %vm3492_vm7, %v3491_v31, 0  ;;  %v4369_v37 = vadd.s32 %v11897_v27, %v11894_v33 }
 0x1a4   : > { %v3495_v40 = vand.u32 31, %v3493_v44  ;;  %vm11934_vm9 = vcmp.le.f32.partialorder %v17006_v21, 0.7853982  ;;  %v16856_v35 = vand.u32 2147483647, %v11907_v16  ;;  %v11942_v6 = vshll.u32 %v3489_v32, 8 }
 0x1a5   : > { %v3356_v53 = vmul.f32 %v3355_v17, %v3353_v62  ;;  %v4376_v0 = vshll.u32 %v4375_v43, 30  ;;  %v4399_v25 = vsub.s32 4, %v4375_v43  ;;  %v9913_v42 = vadd.s32 4294967169, %v4525_v63 }
 0x1a6   : > { %v3496_v10 = vsub.s32 32, %v3495_v40  ;;  %v3494_v14 = vshrl.u32 %v3493_v44, 5  ;;  %v3498_v4 = vshll.u32 %v16976_v15, %v3495_v40  ;;  %v3501_v2 = vshll.u32 %v16972_v23, %v3495_v40 }
 0x1a7   : > { %v3357_v18 = vxor.u32 2147483648, %v3356_v53  ;;  %v11940_v20 = vsub.s32 %v4373_v51, %v4376_v0  ;;  %v4400_v51 = vsel %vm4315_vm8, %v4399_v25, %v4375_v43  ;;  %v3504_v7 = vshll.u32 %v16973_v34, %v3495_v40 }
 0x1a8   : > { %v3499_v13 = vshrl.u32 %v16972_v23, %v3496_v10  ;;  %v3502_v46 = vshrl.u32 %v16973_v34, %v3496_v10  ;;  %v3505_v11 = vshrl.u32 %v16974_v39, %v3496_v10  ;;  %v3507_v31 = vshll.u32 %v16974_v39, %v3495_v40 }
 0x1a9   : > { %v3358_v33 = vsel %vm3275_vm10, %v3357_v18, %v3356_v53  ;;  %v4379_v27 = vsub.s32 0, %v11940_v20  ;;  %v3508_v12 = vshrl.u32 %v16975_v24, %v3496_v10  ;;  %v3510_v44 = vshll.u32 %v16975_v24, %v3495_v40 }
 0x1aa   : > { %v3361_v47 = vsel %vm11870_vm11, %v11701_v54, %v3358_v33  ;;  %v3500_v32 = vor.u32 %v3499_v13, %v3498_v4  ;;  %v3503_v63 = vor.u32 %v3502_v46, %v3501_v2  ;;  %v3506_v62 = vor.u32 %v3505_v11, %v3504_v7 }
 0x1ab   : > { %v9906_v38 = vmin.u32 %v4379_v27, %v11940_v20  ;;  %v3509_v17 = vor.u32 %v3508_v12, %v3507_v31  ;;  %v3511_v43 = vshrl.u32 %v16977_v52, %v3496_v10  ;;  %v4402_v21 = vsel %vm11934_vm9, 0, %v4400_v51 }
 0x1ac   : > { %v4528_v0 = vand.u32 8388607, %v16856_v35  ;;  %v4531_v25 = vadd.s32 1, %v9913_v42  ;;  %10458 = vcosq.f32 %v3361_v47  ;;  %v3497_v28 = vshrl.u32 %v16976_v15, %v3496_v10 }
 0x1ad   : > { %v4381_v53 = vclz %v9906_v38  ;;  %v3512_v18 = vor.u32 %v3511_v43, %v3510_v44  ;;  %vm3513_vm10 = vcmp.lt.s32.totalorder %v3494_v14, 1  ;;  %vm3515_vm12 = vcmp.lt.s32.totalorder %v3494_v14, 3 }
 0x1ae   : > { %vm3516_vm11 = vcmp.lt.s32.totalorder %v3494_v14, 4  ;;  %v3521_v40 = vsel %vm3513_vm10, %v3500_v32, %v3503_v63  ;;  %v3525_v33 = vsel %vm3513_vm10, %v3503_v63, %v3506_v62  ;;  %vm3514_vm14 = vcmp.lt.s32.totalorder %v3494_v14, 2 }
 0x1af   : > { %v9907_v4 = vadd.s32 4294967294, %v4381_v53  ;;  %v3518_v13 = vsel %vm3516_vm11, %v3506_v62, 2102212464  ;;  %v3522_v46 = vsel %vm3516_vm11, %v3509_v17, 920167782  ;;  %10460 = vsinq.f32 %v3361_v47 }
 0x1b0   : > { %v3526_v27 = vsel %vm3516_vm11, %v3512_v18, 1326507024  ;;  %v3523_v2 = vsel %vm3515_vm12, %v3506_v62, %v3522_v46  ;;  %v3517_v12 = vsel %vm3513_vm10, %v3497_v28, %v3500_v32  ;;  %v3519_v38 = vsel %vm3515_vm12, %v3503_v63, %v3518_v13 }
 0x1b1   : > { %vm9908_vm13 = vcmp.lt.s32.totalorder %v9907_v4, 0  ;;  %v3527_v42 = vsel %vm3515_vm12, %v3509_v17, %v3526_v27  ;;  %v3524_v11 = vsel %vm3514_vm14, %v3521_v40, %v3523_v2  ;;  %vm4532_vm15 = vcmp.gt.s32.totalorder %v4531_v25, 0 }
 0x1b2   : > { %v4384_v10 = vsel %vm9908_vm13, 0, %v9907_v4  ;;  %v3528_v51 = vsel %vm3514_vm14, %v3525_v33, %v3527_v42  ;;  %v11981_v62 = vmul.u32.u64.low %v11942_v6, %v3524_v11  ;;  %v11982_v53 = vmul.u32.u64.high %v11942_v6, %v3524_v11, %v11981_v62 }
 0x1b3   : > { %v4385_v7 = vsub.s32 32, %v4384_v10  ;;  %v4389_v31 = vsub.s32 4294967266, %v4384_v10  ;;  %v11977_v44 = vmul.u32.u64.low %v11942_v6, %v3528_v51  ;;  %v11978_v43 = vmul.u32.u64.high %v11942_v6, %v3528_v51, %v11977_v44 }
 0x1b4   : > { %v4386_v47 = vshll.u32 %v11940_v20, %v4384_v10  ;;  %v4406_v4 = vadd.s32 3, %v4402_v21  ;;  %v3520_v40 = vsel %vm3514_vm14, %v3517_v12, %v3519_v38  ;;  %v4529_v32 = vor.u32 8388608, %v4528_v0 }
 0x1b5   : > { %v4387_v17 = vshrl.u32 %v4369_v37, %v4385_v7  ;;  %v4390_v18 = vadd.s32 127, %v4389_v31  ;;  %v4533_v28 = vsel %vm4532_vm15, %v4531_v25, 0  ;;  %vm3538_vm0 = vc.u32 %v11978_v43, %v11981_v62 }
 0x1b6   : > { %v10459_v46 = vpop.eup %10458  ;;  %v3539_v33 = vadd.s32 1, %v11982_v53  ;;  %vm3372_vm1 = vcmp.eq.s32.totalorder %v11930_v50, 2  ;;  %v3536_v37 = vmul.u32 %v11942_v6, %v3520_v40  ;;  %v4535_v20 = vand.u32 31, %v4533_v28 }
 0x1b7   : > { %v4388_v63 = vor.u32 %v4387_v17, %v4386_v47  ;;  %v4391_v13 = vshll.u32 %v4390_v18, 23  ;;  %v11992_v2 = vand.u32 3, %v4406_v4  ;;  %v11995_v21 = vshll.u32 %v4529_v32, 8 }
 0x1b8   : > { %v3540_v14 = vsel %vm3538_vm0, %v3539_v33, %v11982_v53  ;;  %v797_v0 = vmul.f32 %v11008_v22, %v10962_v58  ;;  %v4536_v11 = vsub.s32 32, %v4535_v20  ;;  %v3373_v7 = vxor.u32 2147483648, %v10459_v46 }
 0x1b9   : > { %v4392_v27 = vor.u32 4788187, %v4391_v13  ;;  %v4395_v42 = vcvt.s32.f32 %v4388_v63  ;;  %v3541_v10 = vadd.s32 %v3540_v14, %v3536_v37  ;;  %v10461_v51 = vpop.eup %10460  ;;  %v4534_v31 = vshrl.u32 %v4533_v28, 5 }
 0x1ba   : > { %v4538_v12 = vshll.u32 %v16976_v15, %v4535_v20  ;;  %v4541_v6 = vshll.u32 %v16972_v23, %v4535_v20  ;;  %vm3369_vm2 = vcmp.eq.s32.totalorder %v11930_v50, 0  ;;  %v4539_v53 = vshrl.u32 %v16972_v23, %v4536_v11 }
 0x1bb   : > { %v4393_v25 = vand.u32 2147483647, %v4392_v27  ;;  %v3542_v44 = vadd.s32 536870912, %v3541_v10  ;;  %v4544_v47 = vshll.u32 %v16973_v34, %v4535_v20  ;;  %v4542_v17 = vshrl.u32 %v16973_v34, %v4536_v11 }
 0x1bc   : > { %v4545_v18 = vshrl.u32 %v16974_v39, %v4536_v11  ;;  %v4547_v4 = vshll.u32 %v16974_v39, %v4535_v20  ;;  %v4548_v40 = vshrl.u32 %v16975_v24, %v4536_v11  ;;  %v4540_v63 = vor.u32 %v4539_v53, %v4538_v12 }
 0x1bd   : > { %v4396_v38 = vmul.f32 %v4395_v42, %v4393_v25  ;;  %v12008_v28 = vshrl.u32 %v3542_v44, 30  ;;  %v4551_v13 = vshrl.u32 %v16977_v52, %v4536_v11  ;;  %vm3368_vm3 = vcmp.lt.s32.totalorder %v11930_v50, 2 }
 0x1be   : > { %v4543_v33 = vor.u32 %v4542_v17, %v4541_v6  ;;  %v4546_v27 = vor.u32 %v4545_v18, %v4544_v47  ;;  %v4549_v37 = vor.u32 %v4548_v40, %v4547_v4  ;;  %v4550_v14 = vshll.u32 %v16975_v24, %v4535_v20 }
 0x1bf   : > { %v4397_v32 = vxor.u32 2147483648, %v4396_v38  ;;  %v3370_v25 = vxor.u32 2147483648, %v10461_v51  ;;  %v3544_v35 = vshll.u32 %v12008_v28, 30  ;;  %v929_v44 = vmul.f32 %v11014_v26, %v10978_v3 }
 0x1c0   : > { %v3374_v12 = vsel %vm3372_vm1, %v3373_v7, %v10461_v51  ;;  %v4552_v53 = vor.u32 %v4551_v13, %v4550_v14  ;;  %vm4553_vm4 = vcmp.lt.s32.totalorder %v4534_v31, 1  ;;  %vm3365_vm5 = vweird.f32 %v11701_v54 }
 0x1c1   : > { %v4398_v42 = vsel %vm4315_vm8, %v4397_v32, %v4396_v38  ;;  %v12024_v20 = vsub.s32 %v3541_v10, %v3544_v35  ;;  %vm4556_vm6 = vcmp.lt.s32.totalorder %v4534_v31, 4  ;;  %v4561_v38 = vsel %vm4553_vm4, %v4540_v63, %v4543_v33 }
 0x1c2   : > { %v4401_v6 = vsel %vm11934_vm9, %v11768_v36, %v4398_v42  ;;  %vm4555_vm7 = vcmp.lt.s32.totalorder %v4534_v31, 3  ;;  %v4558_v47 = vsel %vm4556_vm6, %v4546_v27, 2102212464  ;;  %v4562_v17 = vsel %vm4556_vm6, %v4549_v37, 920167782 }
 0x1c3   : > { %10462 = vcosq.f32 %v4401_v6  ;;  %v3547_v51 = vsub.s32 0, %v12024_v20  ;;  %v4537_v7 = vshrl.u32 %v16976_v15, %v4536_v11  ;;  %vm4554_vm8 = vcmp.lt.s32.totalorder %v4534_v31, 2 }
 0x1c4   : > { %10464 = vsinq.f32 %v4401_v6  ;;  %v4563_v49 = vsel %vm4555_vm7, %v4546_v27, %v4562_v17  ;;  %v3371_v18 = vsel %vm3369_vm2, %v10459_v46, %v3370_v25  ;;  %v4565_v35 = vsel %vm4553_vm4, %v4543_v33, %v4546_v27 }
 0x1c5   : > { %v4564_v4 = vsel %vm4554_vm8, %v4561_v38, %v4563_v49  ;;  %v4566_v10 = vsel %vm4556_vm6, %v4552_v53, 1326507024  ;;  %v9874_v40 = vmin.u32 %v3547_v51, %v12024_v20  ;;  %v4557_v32 = vsel %vm4553_vm4, %v4537_v7, %v4540_v63 }
 0x1c6   : > { %v4559_v13 = vsel %vm4555_vm7, %v4543_v33, %v4558_v47  ;;  %v4567_v14 = vsel %vm4555_vm7, %v4549_v37, %v4566_v10  ;;  %v12037_v11 = vmul.u32.u64.low %v11995_v21, %v4564_v4  ;;  %v12038_v6 = vmul.u32.u64.high %v11995_v21, %v4564_v4, %v12037_v11 }
 0x1c7   : > { %v4568_v42 = vsel %vm4554_vm8, %v4565_v35, %v4567_v14  ;;  %v979_v17 = vadd.f32 %v929_v44, %v797_v0  ;;  %v3375_v46 = vsel %vm3368_vm3, %v3371_v18, %v3374_v12  ;;  %vm3483_vm9 = vcmp.lt.s32.totalorder %v11877_v41, 0 }
 0x1c8   : > { %v3549_v27 = vclz %v9874_v40  ;;  %v807_v25 = vmul.f32 %v11008_v22, %v10960_v57  ;;  %v939_v63 = vmul.f32 %v11014_v26, %v10976_v1  ;;  %vm4405_vm10 = vweird.f32 %v11768_v36 }
 0x1c9   : > { %v4560_v33 = vsel %vm4554_vm8, %v4557_v32, %v4559_v13  ;;  %v12051_v37 = vmul.u32.u64.low %v11995_v21, %v4568_v42  ;;  %v12052_v53 = vmul.u32.u64.high %v11995_v21, %v4568_v42, %v12051_v37  ;;  %v12055_v50 = vadd.f32 %v11685_v30, %v979_v17 }
 0x1ca   : > { %vm4408_vm12 = vcmp.lt.s32.totalorder %v11992_v2, 2  ;;  %vm4409_vm11 = vcmp.eq.s32.totalorder %v11992_v2, 0  ;;  %vm4412_vm13 = vcmp.eq.s32.totalorder %v11992_v2, 2  ;;  %v9875_v0 = vadd.s32 4294967294, %v3549_v27 }
 0x1cb   : > { %v3376_v44 = vsel %vm3365_vm5, nan, %v3375_v46  ;;  %v3537_v31 = vadd.s32 %v11981_v62, %v11978_v43  ;;  %v4579_v12 = vadd.s32 1, %v12038_v6  ;;  %v3172_v38 = vand.u32 2139095040, %v12055_v50 }
 0x1cc   : > { %vm9876_vm14 = vcmp.lt.s32.totalorder %v9875_v0, 0  ;;  %v3567_v51 = vsub.s32 4, %v12008_v28  ;;  %v4576_v7 = vmul.u32 %v11995_v21, %v4560_v33  ;;  %v989_v49 = vadd.f32 %v939_v63, %v807_v25 }
 0x1cd   : > { %v10463_v47 = vpop.eup %10462  ;;  %v3552_v35 = vsel %vm9876_vm14, 0, %v9875_v0  ;;  %vm4578_vm15 = vc.u32 %v12052_v53, %v12037_v11  ;;  %v16858_v54 = vand.u32 2147483647, %v12055_v50  ;;  %v3173_v14 = vshrl.u32 %v3172_v38, 23 }
 0x1ce   : > { %v10465_v18 = vpop.eup %10464  ;;  %v4413_v4 = vxor.u32 2147483648, %v10463_v47  ;;  %v3553_v62 = vsub.s32 32, %v3552_v35  ;;  %v3557_v10 = vsub.s32 4294967266, %v3552_v35  ;;  %v12072_v40 = vadd.f32 %v11749_v5, %v989_v49 }
 0x1cf   : > { %v4410_v43 = vxor.u32 2147483648, %v10465_v18  ;;  %v3554_v21 = vshll.u32 %v12024_v20, %v3552_v35  ;;  %v4580_v13 = vsel %vm4578_vm15, %v4579_v12, %v12038_v6  ;;  %v3568_v63 = vsel %vm3483_vm9, %v3567_v51, %v12008_v28 }
 0x1d0   : > { %v4414_v32 = vsel %vm4412_vm13, %v4413_v4, %v10465_v18  ;;  %v3555_v17 = vshrl.u32 %v3537_v31, %v3553_v62  ;;  %v3558_v46 = vadd.s32 127, %v3557_v10  ;;  %v4581_v27 = vadd.s32 %v4580_v13, %v4576_v7 }
 0x1d1   : > { %v4411_v42 = vsel %vm4409_vm11, %v10463_v47, %v4410_v43  ;;  %v9861_v33 = vadd.s32 4294967169, %v3173_v14  ;;  %v3176_v20 = vand.u32 8388607, %v16858_v54  ;;  %vm12093_vm0 = vcmp.le.f32.partialorder %v3481_v29, 0.7853982 }
 0x1d2   : > { %v4415_v25 = vsel %vm4408_vm12, %v4411_v42, %v4414_v32  ;;  %v3556_v37 = vor.u32 %v3555_v17, %v3554_v21  ;;  %v3559_v0 = vshll.u32 %v3558_v46, 23  ;;  %v4582_v12 = vadd.s32 536870912, %v4581_v27 }
 0x1d3   : > { %v4416_v6 = vsel %vm4405_vm10, nan, %v4415_v25  ;;  %v3179_v38 = vadd.s32 1, %v9861_v33  ;;  %v4212_v51 = vand.u32 2139095040, %v12072_v40  ;;  %v3570_v7 = vsel %vm12093_vm0, 0, %v3568_v63 }
 0x1d4   : > { %v12089_v31 = vpack.c.bf16 %v4416_v6, %v3376_v44  ;;  %v3560_v28 = vor.u32 4788187, %v3559_v0  ;;  %v4583_v47 = vshrl.u32 %v4582_v12, 30  ;;  %v3563_v36 = vcvt.s32.f32 %v3556_v37 }
 0x1d5   : > { %v3177_v49 = vor.u32 8388608, %v3176_v20  ;;  %vm3180_vm1 = vcmp.gt.s32.totalorder %v3179_v38, 0  ;;  %vm4523_vm2 = vcmp.lt.s32.totalorder %v11907_v16, 0  ;;  %v17012_v62 = vand.u32 2147483647, %v11907_v16 }
 0x1d6   : > { %17009 = vst [vmem:[#allocation19_spill] sm:$0xff] %v12089_v31  ;;  %6397 = vmatprep.subr.bf16.mxu0 %v12089_v31  ;;  %v3561_v44 = vand.u32 2147483647, %v3560_v28  ;;  %v4584_v18 = vshll.u32 %v4583_v47, 30  ;;  %v4607_v4 = vsub.s32 4, %v4583_v47  ;;  %v3181_v35 = vsel %vm3180_vm1, %v3179_v38, 0 }
 0x1d7   : > { %v3183_v29 = vand.u32 31, %v3181_v35  ;;  %vm12104_vm3 = vcmp.le.f32.partialorder %v17012_v62, 0.7853982  ;;  %v4213_v21 = vshrl.u32 %v4212_v51, 23  ;;  %v3574_v13 = vadd.s32 3, %v3570_v7 }
 0x1d8   : > { %v3564_v43 = vmul.f32 %v3563_v36, %v3561_v44  ;;  %v4585_v32 = vsub.s32 %v4581_v27, %v4584_v18  ;;  %v4577_v14 = vadd.s32 %v12037_v11, %v12052_v53  ;;  %v16857_v17 = vand.u32 2147483647, %v12072_v40 }
 0x1d9   : > { %v3184_v42 = vsub.s32 32, %v3183_v29  ;;  %v12113_v63 = vsel %vm4523_vm2, %v4607_v4, %v4583_v47  ;;  %v12115_v33 = vshll.u32 %v3177_v49, 8  ;;  %v3182_v20 = vshrl.u32 %v3181_v35, 5 }
 0x1da   : > { %v3565_v46 = vxor.u32 2147483648, %v3564_v43  ;;  %v4587_v25 = vsub.s32 0, %v4585_v32  ;;  %v3192_v0 = vshll.u32 %v16973_v34, %v3183_v29  ;;  %v9901_v12 = vadd.s32 4294967169, %v4213_v21 }
 0x1db   : > { %v3187_v6 = vshrl.u32 %v16972_v23, %v3184_v42  ;;  %v3190_v27 = vshrl.u32 %v16973_v34, %v3184_v42  ;;  %v3193_v37 = vshrl.u32 %v16974_v39, %v3184_v42  ;;  %v4610_v28 = vsel %vm12104_vm3, 0, %v12113_v63 }
 0x1dc   : > { %v3566_v11 = vsel %vm3483_vm9, %v3565_v46, %v3564_v43  ;;  %v9914_v53 = vmin.u32 %v4587_v25, %v4585_v32  ;;  %v3186_v47 = vshll.u32 %v16976_v15, %v3183_v29  ;;  %v3189_v51 = vshll.u32 %v16972_v23, %v3183_v29 }
 0x1dd   : > { %v3569_v38 = vsel %vm12093_vm0, %v11877_v41, %v3566_v11  ;;  %v3185_v7 = vshrl.u32 %v16976_v15, %v3184_v42  ;;  %v3194_v49 = vor.u32 %v3193_v37, %v3192_v0  ;;  %v3195_v44 = vshll.u32 %v16974_v39, %v3183_v29 }
 0x1de   : > { %v4589_v36 = vclz %v9914_v53  ;;  %10466 = vcosq.f32 %v3569_v38  ;;  %v3188_v18 = vor.u32 %v3187_v6, %v3186_v47  ;;  %v3191_v4 = vor.u32 %v3190_v27, %v3189_v51 }
 0x1df   : > { %v3196_v2 = vshrl.u32 %v16975_v24, %v3184_v42  ;;  %10468 = vsinq.f32 %v3569_v38  ;;  %v3198_v43 = vshll.u32 %v16975_v24, %v3183_v29  ;;  %v3199_v62 = vshrl.u32 %v16977_v52, %v3184_v42 }
 0x1e0   : > { %v9915_v35 = vadd.s32 4294967294, %v4589_v36  ;;  %vm3201_vm4 = vcmp.lt.s32.totalorder %v3182_v20, 1  ;;  %vm3202_vm5 = vcmp.lt.s32.totalorder %v3182_v20, 2  ;;  %vm3204_vm6 = vcmp.lt.s32.totalorder %v3182_v20, 4 }
 0x1e1   : > { %v3197_v21 = vor.u32 %v3196_v2, %v3195_v44  ;;  %v3200_v46 = vor.u32 %v3199_v62, %v3198_v43  ;;  %vm3203_vm8 = vcmp.lt.s32.totalorder %v3182_v20, 3  ;;  %v3206_v25 = vsel %vm3204_vm6, %v3194_v49, 2102212464  ;;  %v17016_v20 = vld [vmem:[#allocation14_spill] sm:$0xff] }
 0x1e2   : > { %vm9916_vm7 = vcmp.lt.s32.totalorder %v9915_v35, 0  ;;  %v3205_v37 = vsel %vm3201_vm4, %v3185_v7, %v3188_v18  ;;  %v3209_v6 = vsel %vm3201_vm4, %v3188_v18, %v3191_v4  ;;  %v3207_v0 = vsel %vm3203_vm8, %v3191_v4, %v3206_v25 }
 0x1e3   : > { %v4592_v63 = vsel %vm9916_vm7, 0, %v9915_v35  ;;  %v3210_v27 = vsel %vm3204_vm6, %v3197_v21, 920167782  ;;  %v3213_v38 = vsel %vm3201_vm4, %v3191_v4, %v3194_v49  ;;  %v3214_v47 = vsel %vm3204_vm6, %v3200_v46, 1326507024 }
 0x1e4   : > { %v4593_v11 = vsub.s32 32, %v4592_v63  ;;  %v4597_v53 = vsub.s32 4294967266, %v4592_v63  ;;  %v4594_v29 = vshll.u32 %v4585_v32, %v4592_v63  ;;  %v3211_v42 = vsel %vm3203_vm8, %v3194_v49, %v3210_v27 }
 0x1e5   : > { %v4219_v51 = vadd.s32 1, %v9901_v12  ;;  %v3212_v2 = vsel %vm3202_vm5, %v3209_v6, %v3211_v42  ;;  %v3215_v43 = vsel %vm3203_vm8, %v3197_v21, %v3214_v47  ;;  %v12152_v12 = vand.u32 3, %v3574_v13 }
 0x1e6   : > { %v4595_v36 = vshrl.u32 %v4577_v14, %v4593_v11  ;;  %v4598_v44 = vadd.s32 127, %v4597_v53  ;;  %v3216_v7 = vsel %vm3202_vm5, %v3213_v38, %v3215_v43  ;;  %v3208_v21 = vsel %vm3202_vm5, %v3205_v37, %v3207_v0  ;;  %v17015_v11 = vld [vmem:[#allocation13_spill] sm:$0xff] }
 0x1e7   : > { %v12142_v18 = vmul.u32.u64.low %v12115_v33, %v3212_v2  ;;  %v12143_v35 = vmul.u32.u64.high %v12115_v33, %v3212_v2, %v12142_v18  ;;  %vm4220_vm9 = vcmp.gt.s32.totalorder %v4219_v51, 0  ;;  %v4216_v46 = vand.u32 8388607, %v16857_v17 }
 0x1e8   : > { %v4596_v4 = vor.u32 %v4595_v36, %v4594_v29  ;;  %v4599_v32 = vshll.u32 %v4598_v44, 23  ;;  %v12147_v49 = vmul.u32.u64.low %v12115_v33, %v3216_v7  ;;  %v12148_v62 = vmul.u32.u64.high %v12115_v33, %v3216_v7, %v12147_v49  ;;  %v12150_v14 = vpop.eup %10466 }
 0x1e9   : > { %v4221_v25 = vsel %vm4220_vm9, %v4219_v51, 0  ;;  %v12157_v63 = vpop.eup %10468  ;;  %v4614_v27 = vadd.s32 3, %v4610_v28  ;;  %v799_v53 = vmul.f32 %v17015_v11, %v10962_v58  ;;  %v3227_v38 = vadd.s32 1, %v12143_v35 }
 0x1ea   : > { %v4600_v6 = vor.u32 4788187, %v4599_v32  ;;  %v4223_v29 = vand.u32 31, %v4221_v25  ;;  %v12164_v13 = vmul.f32 %v17015_v11, %v10960_v57  ;;  %v931_v37 = vmul.f32 %v17016_v20, %v10978_v3 }
 0x1eb   : > { %v4603_v42 = vcvt.s32.f32 %v4596_v4  ;;  %v3224_v47 = vmul.u32 %v12115_v33, %v3208_v21  ;;  %vm3226_vm10 = vc.u32 %v12148_v62, %v12142_v18  ;;  %vm3580_vm12 = vcmp.eq.s32.totalorder %v12152_v12, 2 }
 0x1ec   : > { %v4601_v0 = vand.u32 2147483647, %v4600_v6  ;;  %v3228_v28 = vsel %vm3226_vm10, %v3227_v38, %v12143_v35  ;;  %v4217_v51 = vor.u32 8388608, %v4216_v46  ;;  %v4224_v36 = vsub.s32 32, %v4223_v29 }
 0x1ed   : > { %v12175_v44 = vmul.f32 %v17016_v20, %v10976_v1  ;;  %v3581_v2 = vxor.u32 2147483648, %v12150_v14  ;;  %v12178_v7 = vand.u32 3, %v4614_v27  ;;  %v3229_v4 = vadd.s32 %v3228_v28, %v3224_v47 }
 0x1ee   : > { %v4604_v43 = vmul.f32 %v4603_v42, %v4601_v0  ;;  %v12180_v33 = vshrl.u32 %v4221_v25, 5  ;;  %v4226_v32 = vshll.u32 %v16976_v15, %v4223_v29  ;;  %v4227_v49 = vshrl.u32 %v16972_v23, %v4224_v36 }
 0x1ef   : > { %v4230_v35 = vshrl.u32 %v16973_v34, %v4224_v36  ;;  %vm3577_vm11 = vcmp.eq.s32.totalorder %v12152_v12, 0  ;;  %v3230_v46 = vadd.s32 536870912, %v3229_v4  ;;  %v4229_v6 = vshll.u32 %v16972_v23, %v4223_v29 }
 0x1f0   : > { %v4605_v21 = vxor.u32 2147483648, %v4604_v43  ;;  %v4233_v38 = vshrl.u32 %v16974_v39, %v4224_v36  ;;  %v4228_v0 = vor.u32 %v4227_v49, %v4226_v32  ;;  %v4232_v27 = vshll.u32 %v16973_v34, %v4223_v29 }
 0x1f1   : > { %v4235_v25 = vshll.u32 %v16974_v39, %v4223_v29  ;;  %v4236_v42 = vshrl.u32 %v16975_v24, %v4224_v36  ;;  %v3231_v28 = vshrl.u32 %v3230_v46, 30  ;;  %v4231_v17 = vor.u32 %v4230_v35, %v4229_v6 }
 0x1f2   : > { %v4606_v47 = vsel %vm4523_vm2, %v4605_v21, %v4604_v43  ;;  %v4239_v54 = vshrl.u32 %v16977_v52, %v4224_v36  ;;  %vm3576_vm13 = vcmp.lt.s32.totalorder %v12152_v12, 2  ;;  %v4234_v32 = vor.u32 %v4233_v38, %v4232_v27 }
 0x1f3   : > { %v4609_v48 = vsel %vm12104_vm3, %v11907_v16, %v4606_v47  ;;  %v4237_v49 = vor.u32 %v4236_v42, %v4235_v25  ;;  %v4238_v31 = vshll.u32 %v16975_v24, %v4223_v29  ;;  %v3232_v45 = vshll.u32 %v3231_v28, 30 }
 0x1f4   : > { %10470 = vcosq.f32 %v4609_v48  ;;  %v12199_v57 = vshll.u32 %v4217_v51, 8  ;;  %v981_v58 = vadd.f32 %v931_v37, %v799_v53  ;;  %v3578_v43 = vxor.u32 2147483648, %v12157_v63 }
 0x1f5   : > { %10472 = vsinq.f32 %v4609_v48  ;;  %v4240_v35 = vor.u32 %v4239_v54, %v4238_v31  ;;  %vm4241_vm14 = vcmp.lt.s32.totalorder %v12180_v33, 1  ;;  %vm3573_vm15 = vweird.f32 %v11877_v41 }
 0x1f6   : > { %v3582_v10 = vsel %vm3580_vm12, %v3581_v2, %v12157_v63  ;;  %vm3171_vm0 = vcmp.lt.s32.totalorder %v12055_v50, 0  ;;  %v12208_v29 = vsub.s32 %v3229_v4, %v3232_v45  ;;  %vm4244_vm1 = vcmp.lt.s32.totalorder %v12180_v33, 4 }
 0x1f7   : > { %v4249_v53 = vsel %vm4241_vm14, %v4228_v0, %v4231_v17  ;;  %v4225_v48 = vshrl.u32 %v16976_v15, %v4224_v36  ;;  %vm4243_vm2 = vcmp.lt.s32.totalorder %v12180_v33, 3  ;;  %v4246_v54 = vsel %vm4244_vm1, %v4234_v32, 2102212464 }
 0x1f8   : > { %v4250_v31 = vsel %vm4244_vm1, %v4237_v49, 920167782  ;;  %v3235_v37 = vsub.s32 0, %v12208_v29  ;;  %vm4242_vm3 = vcmp.lt.s32.totalorder %v12180_v33, 2  ;;  %v4253_v45 = vsel %vm4241_vm14, %v4231_v17, %v4234_v32 }
 0x1f9   : > { %v4251_v63 = vsel %vm4243_vm2, %v4234_v32, %v4250_v31  ;;  %v3579_v51 = vsel %vm3577_vm11, %v12150_v14, %v3578_v43  ;;  %v4245_v2 = vsel %vm4241_vm14, %v4225_v48, %v4228_v0  ;;  %v4254_v4 = vsel %vm4244_vm1, %v4240_v35, 1326507024 }
 0x1fa   : > { %v4252_v36 = vsel %vm4242_vm3, %v4249_v53, %v4251_v63  ;;  %v9862_v21 = vmin.u32 %v3235_v37, %v12208_v29  ;;  %v4247_v46 = vsel %vm4243_vm2, %v4231_v17, %v4246_v54  ;;  %v4255_v6 = vsel %vm4243_vm2, %v4237_v49, %v4254_v4 }
 0x1fb   : > { %v12228_v38 = vadd.f32 %v11685_v30, %v981_v58  ;;  %vm4613_vm4 = vweird.f32 %v11907_v16  ;;  %v3255_v27 = vsub.s32 4, %v3231_v28  ;;  %v4256_v14 = vsel %vm4242_vm3, %v4253_v45, %v4255_v6 }
 0x1fc   : > { %v12234_v25 = vmul.u32.u64.low %v12199_v57, %v4252_v36  ;;  %v12235_v0 = vmul.u32.u64.high %v12199_v57, %v4252_v36, %v12234_v25  ;;  %v3583_v42 = vsel %vm3576_vm13, %v3579_v51, %v3582_v10  ;;  %vm4616_vm5 = vcmp.lt.s32.totalorder %v12178_v7, 2 }
 0x1fd   : > { %vm4617_vm6 = vcmp.eq.s32.totalorder %v12178_v7, 0  ;;  %v3237_v58 = vclz %v9862_v21  ;;  %vm4620_vm7 = vcmp.eq.s32.totalorder %v12178_v7, 2  ;;  %v4248_v17 = vsel %vm4242_vm3, %v4245_v2, %v4247_v46 }
 0x1fe   : > { %v12246_v47 = vmul.u32.u64.low %v12199_v57, %v4256_v14  ;;  %v12247_v32 = vmul.u32.u64.high %v12199_v57, %v4256_v14, %v12246_v47  ;;  %v10471_v49 = vpop.eup %10470  ;;  %v3225_v43 = vadd.s32 %v12142_v18, %v12148_v62  ;;  %v991_v35 = vadd.f32 %v12175_v44, %v12164_v13 }
 0x1ff   : > { %v9863_v12 = vadd.s32 4294967294, %v3237_v58  ;;  %v3380_v10 = vand.u32 2139095040, %v12228_v38  ;;  %v10473_v53 = vpop.eup %10472  ;;  %v3584_v48 = vsel %vm3573_vm15, nan, %v3583_v42  ;;  %v4621_v33 = vxor.u32 2147483648, %v10471_v49 }
 0x200   : > { %v3256_v54 = vsel %vm3171_vm0, %v3255_v27, %v3231_v28  ;;  %v4267_v31 = vadd.s32 1, %v12235_v0  ;;  %v4618_v37 = vxor.u32 2147483648, %v10473_v53  ;;  %v4264_v18 = vmul.u32 %v12199_v57, %v4248_v17 }
 0x201   : > { %vm9864_vm8 = vcmp.lt.s32.totalorder %v9863_v12, 0  ;;  %v3381_v62 = vshrl.u32 %v3380_v10, 23  ;;  %v4622_v13 = vsel %vm4620_vm7, %v4621_v33, %v10473_v53  ;;  %vm4266_vm9 = vc.u32 %v12247_v32, %v12234_v25 }
 0x202   : > { %v3240_v44 = vsel %vm9864_vm8, 0, %v9863_v12  ;;  %v12265_v41 = vadd.f32 %v11749_v5, %v991_v35  ;;  %v4619_v28 = vsel %vm4617_vm6, %v10471_v49, %v4618_v37  ;;  %v3377_v51 = vand.u32 2147483647, %v12228_v38 }
 0x203   : > { %v3241_v63 = vsub.s32 32, %v3240_v44  ;;  %v3245_v45 = vsub.s32 4294967266, %v3240_v44  ;;  %v4623_v57 = vsel %vm4616_vm5, %v4619_v28, %v4622_v13  ;;  %v3242_v2 = vshll.u32 %v12208_v29, %v3240_v44 }
 0x204   : > { %v4268_v36 = vsel %vm4266_vm9, %v4267_v31, %v12235_v0  ;;  %v9869_v4 = vadd.s32 4294967169, %v3381_v62  ;;  %v4624_v21 = vsel %vm4613_vm4, nan, %v4623_v57  ;;  %v17018_v58 = vand.u32 2147483647, %v12055_v50 }
 0x205   : > { %v3243_v46 = vshrl.u32 %v3225_v43, %v3241_v63  ;;  %v3246_v6 = vadd.s32 127, %v3245_v45  ;;  %v4269_v27 = vadd.s32 %v4268_v36, %v4264_v18  ;;  %v12276_v14 = vpack.c.bf16 %v4624_v21, %v3584_v48 }
 0x206   : > { %v3387_v42 = vadd.s32 1, %v9869_v4  ;;  %vm12280_vm10 = vcmp.le.f32.partialorder %v17018_v58, 0.7853982  ;;  %v3384_v0 = vand.u32 8388607, %v3377_v51  ;;  %v4420_v35 = vand.u32 2139095040, %v12265_v41 }
 0x207   : > { %17017 = vst [vmem:[#allocation13_spill] sm:$0xff] %v12276_v14  ;;  %v3244_v7 = vor.u32 %v3243_v46, %v3242_v2  ;;  %v3247_v29 = vshll.u32 %v3246_v6, 23  ;;  %v4270_v47 = vadd.s32 536870912, %v4269_v27  ;;  %6450 = vmatprep.subr.bf16.mxu1 %v12276_v14  ;;  %v3258_v16 = vsel %vm12280_vm10, 0, %v3256_v54 }
 0x208   : > { %vm3388_vm12 = vcmp.gt.s32.totalorder %v3387_v42, 0  ;;  %v12293_v31 = vadd.s32 3, %v3258_v16  ;;  %v3385_v37 = vor.u32 8388608, %v3384_v0  ;;  %v4417_v54 = vand.u32 2147483647, %v12265_v41 }
 0x209   : > { %v3248_v49 = vor.u32 4788187, %v3247_v29  ;;  %v12289_v43 = vshrl.u32 %v4270_v47, 30  ;;  %v3389_v12 = vsel %vm3388_vm12, %v3387_v42, 0  ;;  %v3251_v48 = vcvt.s32.f32 %v3244_v7 }
 0x20a   : > { %v3391_v10 = vand.u32 31, %v3389_v12  ;;  %v4265_v13 = vadd.s32 %v12234_v25, %v12247_v32  ;;  %v4421_v28 = vshrl.u32 %v4420_v35, 23  ;;  %v3390_v63 = vshrl.u32 %v3389_v12, 5 }
 0x20b   : > { %v3249_v53 = vand.u32 2147483647, %v3248_v49  ;;  %v4272_v33 = vshll.u32 %v12289_v43, 30  ;;  %vm4211_vm11 = vcmp.lt.s32.totalorder %v12072_v40, 0  ;;  %v4295_v35 = vsub.s32 4, %v12289_v43 }
 0x20c   : > { %v3392_v18 = vsub.s32 32, %v3391_v10  ;;  %v3394_v45 = vshll.u32 %v16976_v15, %v3391_v10  ;;  %v3397_v21 = vshll.u32 %v16972_v23, %v3391_v10  ;;  %v3400_v25 = vshll.u32 %v16973_v34, %v3391_v10 }
 0x20d   : > { %v3252_v62 = vmul.f32 %v3251_v48, %v3249_v53  ;;  %v12298_v44 = vsub.s32 %v4269_v27, %v4272_v33  ;;  %v3403_v32 = vshll.u32 %v16974_v39, %v3391_v10  ;;  %v3406_v29 = vshll.u32 %v16975_v24, %v3391_v10 }
 0x20e   : > { %v3395_v57 = vshrl.u32 %v16972_v23, %v3392_v18  ;;  %v3398_v2 = vshrl.u32 %v16973_v34, %v3392_v18  ;;  %v3401_v46 = vshrl.u32 %v16974_v39, %v3392_v18  ;;  %v3404_v27 = vshrl.u32 %v16975_v24, %v3392_v18 }
 0x20f   : > { %v3253_v36 = vxor.u32 2147483648, %v3252_v62  ;;  %v4275_v4 = vsub.s32 0, %v12298_v44  ;;  %v3407_v49 = vshrl.u32 %v16977_v52, %v3392_v18  ;;  %v3425_v53 = vshll.u32 %v3385_v37, 8 }
 0x210   : > { %v3396_v6 = vor.u32 %v3395_v57, %v3394_v45  ;;  %v3399_v7 = vor.u32 %v3398_v2, %v3397_v21  ;;  %v3402_v16 = vor.u32 %v3401_v46, %v3400_v25  ;;  %v3405_v0 = vor.u32 %v3404_v27, %v3403_v32 }
 0x211   : > { %v3254_v42 = vsel %vm3171_vm0, %v3253_v36, %v3252_v62  ;;  %v9902_v58 = vmin.u32 %v4275_v4, %v12298_v44  ;;  %v9909_v48 = vadd.s32 4294967169, %v4421_v28  ;;  %v3393_v33 = vshrl.u32 %v16976_v15, %v3392_v18 }
 0x212   : > { %v3257_v47 = vsel %vm12280_vm10, %v12055_v50, %v3254_v42  ;;  %v3408_v62 = vor.u32 %v3407_v49, %v3406_v29  ;;  %vm3409_vm13 = vcmp.lt.s32.totalorder %v3390_v63, 1  ;;  %vm3411_vm14 = vcmp.lt.s32.totalorder %v3390_v63, 3 }
 0x213   : > { %v4277_v12 = vclz %v9902_v58  ;;  %10474 = vcosq.f32 %v3257_v47  ;;  %vm3412_vm15 = vcmp.lt.s32.totalorder %v3390_v63, 4  ;;  %v3417_v45 = vsel %vm3409_vm13, %v3396_v6, %v3399_v7 }
 0x214   : > { %10476 = vsinq.f32 %v3257_v47  ;;  %v3414_v17 = vsel %vm3412_vm15, %v3402_v16, 2102212464  ;;  %v3418_v57 = vsel %vm3412_vm15, %v3405_v0, 920167782  ;;  %v3421_v2 = vsel %vm3409_vm13, %v3399_v7, %v3402_v16 }
 0x215   : > { %v9903_v10 = vadd.s32 4294967294, %v4277_v12  ;;  %vm3410_vm1 = vcmp.lt.s32.totalorder %v3390_v63, 2  ;;  %v3419_v36 = vsel %vm3411_vm14, %v3402_v16, %v3418_v57  ;;  %v3422_v4 = vsel %vm3412_vm15, %v3408_v62, 1326507024 }
 0x216   : > { %v3413_v28 = vsel %vm3409_vm13, %v3393_v33, %v3396_v6  ;;  %v3420_v21 = vsel %vm3410_vm1, %v3417_v45, %v3419_v36  ;;  %v3423_v18 = vsel %vm3411_vm14, %v3405_v0, %v3422_v4  ;;  %v3415_v32 = vsel %vm3411_vm14, %v3399_v7, %v3414_v17 }
 0x217   : > { %vm9904_vm0 = vcmp.lt.s32.totalorder %v9903_v10, 0  ;;  %v3424_v27 = vsel %vm3410_vm1, %v3421_v2, %v3423_v18  ;;  %v12328_v29 = vmul.u32.u64.low %v3425_v53, %v3420_v21  ;;  %v12329_v47 = vmul.u32.u64.high %v3425_v53, %v3420_v21, %v12328_v29 }
 0x218   : > { %v4280_v37 = vsel %vm9904_vm0, 0, %v9903_v10  ;;  %v12325_v42 = vmul.u32.u64.low %v3425_v53, %v3424_v27  ;;  %v12326_v58 = vmul.u32.u64.high %v3425_v53, %v3424_v27, %v12325_v42  ;;  %v4427_v12 = vadd.s32 1, %v9909_v48 }
 0x219   : > { %v4281_v46 = vsub.s32 32, %v4280_v37  ;;  %v4285_v25 = vsub.s32 4294967266, %v4280_v37  ;;  %v4282_v16 = vshll.u32 %v12298_v44, %v4280_v37  ;;  %v4296_v0 = vsel %vm4211_vm11, %v4295_v35, %v12289_v43 }
 0x21a   : > { %v3416_v7 = vsel %vm3410_vm1, %v3413_v28, %v3415_v32  ;;  %v12338_v33 = vand.u32 3, %v12293_v31  ;;  %vm4428_vm2 = vcmp.gt.s32.totalorder %v4427_v12, 0  ;;  %v17021_v45 = vand.u32 2147483647, %v12072_v40 }
 0x21b   : > { %v4283_v6 = vshrl.u32 %v4265_v13, %v4281_v46  ;;  %v4286_v49 = vadd.s32 127, %v4285_v25  ;;  %vm3434_vm4 = vc.u32 %v12326_v58, %v12328_v29  ;;  %v3435_v43 = vadd.s32 1, %v12329_v47 }
 0x21c   : > { %vm12342_vm3 = vcmp.le.f32.partialorder %v17021_v45, 0.7853982  ;;  %v12351_v13 = vand.u32 8388607, %v4417_v54  ;;  %v3432_v48 = vmul.u32 %v3425_v53, %v3416_v7  ;;  %v4429_v57 = vsel %vm4428_vm2, %v4427_v12, 0 }
 0x21d   : > { %v4284_v62 = vor.u32 %v4283_v6, %v4282_v16  ;;  %v4287_v10 = vshll.u32 %v4286_v49, 23  ;;  %v10475_v17 = vpop.eup %10474  ;;  %v4298_v35 = vsel %vm12342_vm3, 0, %v4296_v0  ;;  %v3436_v2 = vsel %vm3434_vm4, %v3435_v43, %v12329_v47 }
 0x21e   : > { %v10477_v31 = vpop.eup %10476  ;;  %v4431_v36 = vand.u32 31, %v4429_v57  ;;  %vm3265_vm5 = vcmp.eq.s32.totalorder %v12338_v33, 0  ;;  %vm3268_vm6 = vcmp.eq.s32.totalorder %v12338_v33, 2  ;;  %v3437_v28 = vadd.s32 %v3436_v2, %v3432_v48  ;;  %v12377_v2 = vpop.permute.xlu0 %1036 }
 0x21f   : > { %v4288_v63 = vor.u32 4788187, %v4287_v10  ;;  %v4291_v37 = vcvt.s32.f32 %v4284_v62  ;;  %v818_v21 = vmul.f32 %v10955_v55, %v11652_v61  ;;  %v4302_v18 = vadd.s32 3, %v4298_v35  ;;  %17024 = vst [vmem:[#allocation14_spill] sm:$0xff] %v12377_v2 }
 0x220   : > { %v4425_v46 = vor.u32 8388608, %v12351_v13  ;;  %v4432_v25 = vsub.s32 32, %v4431_v36  ;;  %v950_v53 = vmul.f32 %v10958_v56, %v11724_v19  ;;  %v3269_v32 = vxor.u32 2147483648, %v10475_v17 }
 0x221   : > { %v4289_v4 = vand.u32 2147483647, %v4288_v63  ;;  %v3438_v42 = vadd.s32 536870912, %v3437_v28  ;;  %v4434_v47 = vshll.u32 %v16976_v15, %v4431_v36  ;;  %v4437_v6 = vshll.u32 %v16972_v23, %v4431_v36 }
 0x222   : > { %v4435_v16 = vshrl.u32 %v16972_v23, %v4432_v25  ;;  %v4438_v49 = vshrl.u32 %v16973_v34, %v4432_v25  ;;  %v4441_v55 = vshrl.u32 %v16974_v39, %v4432_v25  ;;  %v4440_v7 = vshll.u32 %v16973_v34, %v4431_v36 }
 0x223   : > { %v4292_v27 = vmul.f32 %v4291_v37, %v4289_v4  ;;  %v12368_v0 = vshrl.u32 %v3438_v42, 30  ;;  %v4444_v56 = vshrl.u32 %v16975_v24, %v4432_v25  ;;  %v3266_v62 = vxor.u32 2147483648, %v10477_v31 }
 0x224   : > { %v4430_v10 = vshrl.u32 %v4429_v57, 5  ;;  %v4436_v45 = vor.u32 %v4435_v16, %v4434_v47  ;;  %v4443_v43 = vshll.u32 %v16974_v39, %v4431_v36  ;;  %vm3264_vm7 = vcmp.lt.s32.totalorder %v12338_v33, 2 }
 0x225   : > { %v4293_v12 = vxor.u32 2147483648, %v4292_v27  ;;  %v3440_v63 = vshll.u32 %v12368_v0, 30  ;;  %v4439_v35 = vor.u32 %v4438_v49, %v4437_v6  ;;  %v4442_v48 = vor.u32 %v4441_v55, %v4440_v7 }
 0x226   : > { %v4445_v37 = vor.u32 %v4444_v56, %v4443_v43  ;;  %v4446_v57 = vshll.u32 %v16975_v24, %v4431_v36  ;;  %v4447_v42 = vshrl.u32 %v16977_v52, %v4432_v25  ;;  %v12384_v47 = vand.u32 3, %v4302_v18 }
 0x227   : > { %v4294_v13 = vsel %vm4211_vm11, %v4293_v12, %v4292_v27  ;;  %v12386_v16 = vsub.s32 %v3437_v28, %v3440_v63  ;;  %v1000_v27 = vadd.f32 %v950_v53, %v818_v21  ;;  %vm3261_vm8 = vweird.f32 %v12055_v50 }
 0x228   : > { %v4297_v4 = vsel %vm12342_vm3, %v12072_v40, %v4294_v13  ;;  %v3267_v6 = vsel %vm3265_vm5, %v10475_v17, %v3266_v62  ;;  %v3270_v44 = vsel %vm3268_vm6, %v3269_v32, %v10477_v31  ;;  %v4448_v49 = vor.u32 %v4447_v42, %v4446_v57 }
 0x229   : > { %10478 = vcosq.f32 %v4297_v4  ;;  %v3443_v36 = vsub.s32 0, %v12386_v16  ;;  %vm4449_vm9 = vcmp.lt.s32.totalorder %v4430_v10, 1  ;;  %vm4452_vm10 = vcmp.lt.s32.totalorder %v4430_v10, 4 }
 0x22a   : > { %10480 = vsinq.f32 %v4297_v4  ;;  %v12395_v18 = vadd.f32 %v12377_v2, %v1000_v27  ;;  %vm4451_vm12 = vcmp.lt.s32.totalorder %v4430_v10, 3  ;;  %v4454_v28 = vsel %vm4452_vm10, %v4442_v48, 2102212464 }
 0x22b   : > { %v4457_v21 = vsel %vm4449_vm9, %v4436_v45, %v4439_v35  ;;  %v4458_v53 = vsel %vm4452_vm10, %v4445_v37, 920167782  ;;  %v9870_v55 = vmin.u32 %v3443_v36, %v12386_v16  ;;  %v4433_v17 = vshrl.u32 %v16976_v15, %v4432_v25 }
 0x22c   : > { %vm4450_vm11 = vcmp.lt.s32.totalorder %v4430_v10, 2  ;;  %v4459_v31 = vsel %vm4451_vm12, %v4442_v48, %v4458_v53  ;;  %vm4305_vm13 = vcmp.eq.s32.totalorder %v12384_v47, 0  ;;  %v4461_v12 = vsel %vm4449_vm9, %v4439_v35, %v4442_v48 }
 0x22d   : > { %v4460_v32 = vsel %vm4450_vm11, %v4457_v21, %v4459_v31  ;;  %v4462_v7 = vsel %vm4452_vm10, %v4448_v49, 1326507024  ;;  %v4465_v56 = vshll.u32 %v4425_v46, 8  ;;  %vm4304_vm14 = vcmp.lt.s32.totalorder %v12384_v47, 2 }
 0x22e   : > { %vm4308_vm15 = vcmp.eq.s32.totalorder %v12384_v47, 2  ;;  %v3445_v62 = vclz %v9870_v55  ;;  %v4453_v43 = vsel %vm4449_vm9, %v4433_v17, %v4436_v45  ;;  %v4455_v25 = vsel %vm4451_vm12, %v4439_v35, %v4454_v28 }
 0x22f   : > { %v3271_v13 = vsel %vm3264_vm7, %v3267_v6, %v3270_v44  ;;  %vm4301_vm0 = vweird.f32 %v12072_v40  ;;  %vm3379_vm1 = vcmp.lt.s32.totalorder %v12228_v38, 0  ;;  %v4463_v63 = vsel %vm4451_vm12, %v4445_v37, %v4462_v7 }
 0x230   : > { %v12413_v48 = vmul.u32.u64.low %v4465_v56, %v4460_v32  ;;  %v12414_v46 = vmul.u32.u64.high %v4465_v56, %v4460_v32, %v12413_v48  ;;  %v9871_v4 = vadd.s32 4294967294, %v3445_v62  ;;  %v4464_v57 = vsel %vm4450_vm11, %v4461_v12, %v4463_v63 }
 0x231   : > { %v5356_v42 = vand.u32 2139095040, %v12395_v18  ;;  %v820_v45 = vmul.f32 %v10964_v59, %v11652_v61  ;;  %v3433_v33 = vadd.s32 %v12328_v29, %v12326_v58  ;;  %v4456_v35 = vsel %vm4450_vm11, %v4453_v43, %v4455_v25 }
 0x232   : > { %v12423_v27 = vmul.u32.u64.low %v4465_v56, %v4464_v57  ;;  %v12424_v6 = vmul.u32.u64.high %v4465_v56, %v4464_v57, %v12423_v27  ;;  %v3272_v44 = vsel %vm3261_vm8, nan, %v3271_v13  ;;  %vm9872_vm2 = vcmp.lt.s32.totalorder %v9871_v4, 0 }
 0x233   : > { %v10479_v37 = vpop.eup %10478  ;;  %v3463_v49 = vsub.s32 4, %v12368_v0  ;;  %v5357_v36 = vshrl.u32 %v5356_v42, 23  ;;  %v3448_v53 = vsel %vm9872_vm2, 0, %v9871_v4  ;;  %v4475_v59 = vadd.s32 1, %v12414_v46 }
 0x234   : > { %v10481_v28 = vpop.eup %10480  ;;  %v4309_v21 = vxor.u32 2147483648, %v10479_v37  ;;  %v5353_v58 = vand.u32 2147483647, %v12395_v18  ;;  %v3449_v10 = vsub.s32 32, %v3448_v53  ;;  %v3453_v55 = vsub.s32 4294967266, %v3448_v53 }
 0x235   : > { %v4306_v29 = vxor.u32 2147483648, %v10481_v28  ;;  %v4472_v17 = vmul.u32 %v4465_v56, %v4456_v35  ;;  %v3450_v50 = vshll.u32 %v12386_v16, %v3448_v53  ;;  %vm4474_vm3 = vc.u32 %v12424_v6, %v12413_v48 }
 0x236   : > { %v4310_v31 = vsel %vm4308_vm15, %v4309_v21, %v10481_v28  ;;  %v9945_v32 = vadd.s32 4294967169, %v5357_v36  ;;  %v3451_v7 = vshrl.u32 %v3433_v33, %v3449_v10  ;;  %v3454_v62 = vadd.s32 127, %v3453_v55 }
 0x237   : > { %v4307_v12 = vsel %vm4305_vm13, %v10479_v37, %v4306_v29  ;;  %v4476_v43 = vsel %vm4474_vm3, %v4475_v59, %v12414_v46  ;;  %v5360_v56 = vand.u32 8388607, %v5353_v58  ;;  %v3464_v42 = vsel %vm3379_vm1, %v3463_v49, %v12368_v0 }
 0x238   : > { %v4311_v25 = vsel %vm4304_vm14, %v4307_v12, %v4310_v31  ;;  %v4477_v13 = vadd.s32 %v4476_v43, %v4472_v17  ;;  %v5363_v63 = vadd.s32 1, %v9945_v32  ;;  %v3452_v4 = vor.u32 %v3451_v7, %v3450_v50 }
 0x239   : > { %v4312_v16 = vsel %vm4301_vm0, nan, %v4311_v25  ;;  %v3455_v57 = vshll.u32 %v3454_v62, 23  ;;  %v952_v47 = vmul.f32 %v10966_v60, %v11724_v19  ;;  %vm12453_vm5 = vcmp.le.f32.partialorder %v3377_v51, 0.7853982 }
 0x23a   : > { %v12447_v33 = vpack.c.bf16 %v4312_v16, %v3272_v44  ;;  %v4478_v46 = vadd.s32 536870912, %v4477_v13  ;;  %vm5364_vm4 = vcmp.gt.s32.totalorder %v5363_v63, 0  ;;  %v3466_v0 = vsel %vm12453_vm5, 0, %v3464_v42 }
 0x23b   : > { %v3456_v40 = vor.u32 4788187, %v3455_v57  ;;  %v5365_v27 = vsel %vm5364_vm4, %v5363_v63, 0  ;;  %v5361_v44 = vor.u32 8388608, %v5360_v56  ;;  %v3459_v28 = vcvt.s32.f32 %v3452_v4 }
 0x23c   : > { %17025 = vst [vmem:[#allocation20_spill] sm:$0xff] %v12447_v33  ;;  %6398 = vmatpush1.bf16.msra.mxu0 %v12447_v33  ;;  %v4479_v37 = vshrl.u32 %v4478_v46, 30  ;;  %v5367_v49 = vand.u32 31, %v5365_v27  ;;  %v1002_v53 = vadd.f32 %v952_v47, %v820_v45  ;;  %v12460_v51 = vadd.s32 3, %v3466_v0 }
 0x23d   : > { %v3457_v36 = vand.u32 2147483647, %v3456_v40  ;;  %vm4419_vm6 = vcmp.lt.s32.totalorder %v12265_v41, 0  ;;  %v4473_v29 = vadd.s32 %v12413_v48, %v12424_v6  ;;  %v12467_v17 = vshll.u32 %v5361_v44, 8 }
 0x23e   : > { %v4480_v21 = vshll.u32 %v4479_v37, 30  ;;  %v5368_v60 = vsub.s32 32, %v5367_v49  ;;  %v12470_v31 = vadd.f32 %v12377_v2, %v1002_v53  ;;  %v4503_v32 = vsub.s32 4, %v4479_v37 }
 0x23f   : > { %v3460_v59 = vmul.f32 %v3459_v28, %v3457_v36  ;;  %v5370_v62 = vshll.u32 %v16976_v15, %v5367_v49  ;;  %v5373_v48 = vshll.u32 %v16972_v23, %v5367_v49  ;;  %v5366_v25 = vshrl.u32 %v5365_v27, 5 }
 0x240   : > { %v12464_v10 = vsub.s32 %v4477_v13, %v4480_v21  ;;  %v5371_v55 = vshrl.u32 %v16972_v23, %v5368_v60  ;;  %v5374_v45 = vshrl.u32 %v16973_v34, %v5368_v60  ;;  %v5377_v12 = vshrl.u32 %v16974_v39, %v5368_v60 }
 0x241   : > { %v3461_v50 = vxor.u32 2147483648, %v3460_v59  ;;  %v5380_v6 = vshrl.u32 %v16975_v24, %v5368_v60  ;;  %v5376_v13 = vshll.u32 %v16973_v34, %v5367_v49  ;;  %v5379_v56 = vshll.u32 %v16974_v39, %v5367_v49 }
 0x242   : > { %v4483_v7 = vsub.s32 0, %v12464_v10  ;;  %v5372_v4 = vor.u32 %v5371_v55, %v5370_v62  ;;  %v5375_v57 = vor.u32 %v5374_v45, %v5373_v48  ;;  %v5382_v47 = vshll.u32 %v16975_v24, %v5367_v49 }
 0x243   : > { %v3462_v43 = vsel %vm3379_vm1, %v3461_v50, %v3460_v59  ;;  %v5378_v42 = vor.u32 %v5377_v12, %v5376_v13  ;;  %v5381_v46 = vor.u32 %v5380_v6, %v5379_v56  ;;  %v5383_v40 = vshrl.u32 %v16977_v52, %v5368_v60 }
 0x244   : > { %v3465_v63 = vsel %vm12453_vm5, %v12228_v38, %v3462_v43  ;;  %v9910_v16 = vmin.u32 %v4483_v7, %v12464_v10  ;;  %vm12490_vm7 = vcmp.le.f32.partialorder %v4417_v54, 0.7853982  ;;  %v4504_v35 = vsel %vm4419_vm6, %v4503_v32, %v4479_v37 }
 0x245   : > { %10482 = vcosq.f32 %v3465_v63  ;;  %v5564_v44 = vand.u32 2139095040, %v12470_v31  ;;  %v5369_v36 = vshrl.u32 %v16976_v15, %v5368_v60  ;;  %v5384_v28 = vor.u32 %v5383_v40, %v5382_v47 }
 0x246   : > { %v4485_v0 = vclz %v9910_v16  ;;  %10484 = vsinq.f32 %v3465_v63  ;;  %vm5385_vm8 = vcmp.lt.s32.totalorder %v5366_v25, 1  ;;  %vm5387_vm9 = vcmp.lt.s32.totalorder %v5366_v25, 3 }
 0x247   : > { %vm5388_vm10 = vcmp.lt.s32.totalorder %v5366_v25, 4  ;;  %v5393_v21 = vsel %vm5385_vm8, %v5372_v4, %v5375_v57  ;;  %v5397_v59 = vsel %vm5385_vm8, %v5375_v57, %v5378_v42  ;;  %vm5386_vm11 = vcmp.lt.s32.totalorder %v5366_v25, 2 }
 0x248   : > { %v9911_v49 = vadd.s32 4294967294, %v4485_v0  ;;  %v5390_v53 = vsel %vm5388_vm10, %v5378_v42, 2102212464  ;;  %v5394_v54 = vsel %vm5388_vm10, %v5381_v46, 920167782  ;;  %v5389_v45 = vsel %vm5385_vm8, %v5369_v36, %v5372_v4 }
 0x249   : > { %v5398_v55 = vsel %vm5388_vm10, %v5384_v28, 1326507024  ;;  %v5395_v50 = vsel %vm5387_vm9, %v5378_v42, %v5394_v54  ;;  %v5391_v48 = vsel %vm5387_vm9, %v5375_v57, %v5390_v53  ;;  %v5565_v6 = vshrl.u32 %v5564_v44, 23 }
 0x24a   : > { %vm9912_vm12 = vcmp.lt.s32.totalorder %v9911_v49, 0  ;;  %v5399_v37 = vsel %vm5387_vm9, %v5381_v46, %v5398_v55  ;;  %v5396_v60 = vsel %vm5386_vm11, %v5393_v21, %v5395_v50  ;;  %v4506_v47 = vsel %vm12490_vm7, 0, %v4504_v35 }
 0x24b   : > { %v4488_v32 = vsel %vm9912_vm12, 0, %v9911_v49  ;;  %v5400_v12 = vsel %vm5386_vm11, %v5397_v59, %v5399_v37  ;;  %v12508_v56 = vmul.u32.u64.low %v12467_v17, %v5396_v60  ;;  %v12509_v63 = vmul.u32.u64.high %v12467_v17, %v5396_v60, %v12508_v56 }
 0x24c   : > { %v4489_v7 = vsub.s32 32, %v4488_v32  ;;  %v4493_v62 = vsub.s32 4294967266, %v4488_v32  ;;  %v12504_v43 = vmul.u32.u64.low %v12467_v17, %v5400_v12  ;;  %v12505_v13 = vmul.u32.u64.high %v12467_v17, %v5400_v12, %v12504_v43 }
 0x24d   : > { %v4490_v16 = vshll.u32 %v12464_v10, %v4488_v32  ;;  %v9953_v46 = vadd.s32 4294967169, %v5565_v6  ;;  %v5392_v57 = vsel %vm5386_vm11, %v5389_v45, %v5391_v48  ;;  %v5561_v40 = vand.u32 2147483647, %v12470_v31 }
 0x24e   : > { %v4491_v4 = vshrl.u32 %v4473_v29, %v4489_v7  ;;  %v4494_v42 = vadd.s32 127, %v4493_v62  ;;  %v3471_v49 = vand.u32 3, %v12460_v51  ;;  %vm5410_vm13 = vc.u32 %v12505_v13, %v12508_v56 }
 0x24f   : > { %v10483_v0 = vpop.eup %10482  ;;  %v5411_v29 = vadd.s32 1, %v12509_v63  ;;  %v817_v10 = vmul.f32 %v11008_v22, %v11652_v61  ;;  %v4510_v35 = vadd.s32 3, %v4506_v47  ;;  %v5408_v25 = vmul.u32 %v12467_v17, %v5392_v57 }
 0x250   : > { %v4492_v44 = vor.u32 %v4491_v4, %v4490_v16  ;;  %v4495_v36 = vshll.u32 %v4494_v42, 23  ;;  %v10485_v28 = vpop.eup %10484  ;;  %v5571_v53 = vadd.s32 1, %v9953_v46  ;;  %v3477_v54 = vxor.u32 2147483648, %v10483_v0 }
 0x251   : > { %v5412_v59 = vsel %vm5410_vm13, %v5411_v29, %v12509_v63  ;;  %v5568_v55 = vand.u32 8388607, %v5561_v40  ;;  %v949_v51 = vmul.f32 %v11014_v26, %v11724_v19  ;;  %vm3473_vm15 = vcmp.eq.s32.totalorder %v3471_v49, 0 }
 0x252   : > { %v4496_v21 = vor.u32 4788187, %v4495_v36  ;;  %v4499_v37 = vcvt.s32.f32 %v4492_v44  ;;  %v5413_v32 = vadd.s32 %v5412_v59, %v5408_v25  ;;  %vm5572_vm14 = vcmp.gt.s32.totalorder %v5571_v53, 0 }
 0x253   : > { %v3474_v22 = vxor.u32 2147483648, %v10485_v28  ;;  %vm3476_vm0 = vcmp.eq.s32.totalorder %v3471_v49, 2  ;;  %v5573_v45 = vsel %vm5572_vm14, %v5571_v53, 0  ;;  %vm3472_vm1 = vcmp.lt.s32.totalorder %v3471_v49, 2 }
 0x254   : > { %v4497_v50 = vand.u32 2147483647, %v4496_v21  ;;  %v12529_v60 = vand.u32 3, %v4510_v35  ;;  %v5414_v12 = vadd.s32 536870912, %v5413_v32  ;;  %v5575_v7 = vand.u32 31, %v5573_v45 }
 0x255   : > { %v5569_v62 = vor.u32 8388608, %v5568_v55  ;;  %v999_v48 = vadd.f32 %v949_v51, %v817_v10  ;;  %v12533_v6 = vmul.f32 %v17015_v11, %v11652_v61  ;;  %v12537_v26 = vmul.f32 %v17016_v20, %v11724_v19 }
 0x256   : > { %v4500_v17 = vmul.f32 %v4499_v37, %v4497_v50  ;;  %v3478_v43 = vsel %vm3476_vm0, %v3477_v54, %v10485_v28  ;;  %v5415_v16 = vshrl.u32 %v5414_v12, 30  ;;  %v5576_v4 = vsub.s32 32, %v5575_v7 }
 0x257   : > { %v3475_v42 = vsel %vm3473_vm15, %v10483_v0, %v3474_v22  ;;  %vm5355_vm2 = vcmp.lt.s32.totalorder %v12395_v18, 0  ;;  %v12541_v46 = vshrl.u32 %v5573_v45, 5  ;;  %v5578_v47 = vshll.u32 %v16976_v15, %v5575_v7 }
 0x258   : > { %v4501_v63 = vxor.u32 2147483648, %v4500_v17  ;;  %v12545_v57 = vadd.f32 %v12377_v2, %v999_v48  ;;  %v5416_v20 = vshll.u32 %v5415_v16, 30  ;;  %v5581_v44 = vshll.u32 %v16972_v23, %v5575_v7 }
 0x259   : > { %v5584_v36 = vshll.u32 %v16973_v34, %v5575_v7  ;;  %v5579_v28 = vshrl.u32 %v16972_v23, %v5576_v4  ;;  %v5582_v29 = vshrl.u32 %v16973_v34, %v5576_v4  ;;  %v5585_v10 = vshrl.u32 %v16974_v39, %v5576_v4 }
 0x25a   : > { %v4502_v11 = vsel %vm4419_vm6, %v4501_v63, %v4500_v17  ;;  %v12557_v21 = vsub.s32 %v5413_v32, %v5416_v20  ;;  %v5587_v35 = vshll.u32 %v16974_v39, %v5575_v7  ;;  %v5588_v25 = vshrl.u32 %v16975_v24, %v5576_v4 }
 0x25b   : > { %v4505_v0 = vsel %vm12490_vm7, %v12265_v41, %v4502_v11  ;;  %v5409_v53 = vadd.s32 %v12508_v56, %v12505_v13  ;;  %v5580_v54 = vor.u32 %v5579_v28, %v5578_v47  ;;  %v5583_v27 = vor.u32 %v5582_v29, %v5581_v44 }
 0x25c   : > { %10486 = vcosq.f32 %v4505_v0  ;;  %vm3469_vm3 = vweird.f32 %v12228_v38  ;;  %v5419_v59 = vsub.s32 0, %v12557_v21  ;;  %v5439_v55 = vsub.s32 4, %v5415_v16 }
 0x25d   : > { %10488 = vsinq.f32 %v4505_v0  ;;  %v5586_v51 = vor.u32 %v5585_v10, %v5584_v36  ;;  %v5589_v50 = vor.u32 %v5588_v25, %v5587_v35  ;;  %v3479_v37 = vsel %vm3472_vm1, %v3475_v42, %v3478_v43 }
 0x25e   : > { %v5590_v32 = vshll.u32 %v16975_v24, %v5575_v7  ;;  %v5591_v22 = vshrl.u32 %v16977_v52, %v5576_v4  ;;  %v5609_v45 = vshll.u32 %v5569_v62, 8  ;;  %vm4516_vm4 = vcmp.eq.s32.totalorder %v12529_v60, 2 }
 0x25f   : > { %vm12571_vm5 = vcmp.le.f32.partialorder %v5353_v58, 0.7853982  ;;  %v9946_v56 = vmin.u32 %v5419_v59, %v12557_v21  ;;  %vm5593_vm6 = vcmp.lt.s32.totalorder %v12541_v46, 1  ;;  %vm5596_vm7 = vcmp.lt.s32.totalorder %v12541_v46, 4 }
 0x260   : > { %v5252_v49 = vand.u32 2139095040, %v12545_v57  ;;  %vm4513_vm8 = vcmp.eq.s32.totalorder %v12529_v60, 0  ;;  %v5577_v17 = vshrl.u32 %v16976_v15, %v5576_v4  ;;  %v5592_v12 = vor.u32 %v5591_v22, %v5590_v32 }
 0x261   : > { %v5601_v7 = vsel %vm5593_vm6, %v5580_v54, %v5583_v27  ;;  %v5602_v58 = vsel %vm5596_vm7, %v5589_v50, 920167782  ;;  %vm4512_vm9 = vcmp.lt.s32.totalorder %v12529_v60, 2  ;;  %v5421_v62 = vclz %v9946_v56 }
 0x262   : > { %v5440_v48 = vsel %vm5355_vm2, %v5439_v55, %v5415_v16  ;;  %vm5595_vm10 = vcmp.lt.s32.totalorder %v12541_v46, 3  ;;  %v5598_v43 = vsel %vm5596_vm7, %v5586_v51, 2102212464  ;;  %vm4509_vm12 = vweird.f32 %v12265_v41 }
 0x263   : > { %vm5594_vm11 = vcmp.lt.s32.totalorder %v12541_v46, 2  ;;  %v5603_v63 = vsel %vm5595_vm10, %v5586_v51, %v5602_v58  ;;  %v5605_v4 = vsel %vm5593_vm6, %v5583_v27, %v5586_v51  ;;  %v5606_v42 = vsel %vm5596_vm7, %v5592_v12, 1326507024 }
 0x264   : > { %v9947_v47 = vadd.s32 4294967294, %v5421_v62  ;;  %v5597_v16 = vsel %vm5593_vm6, %v5577_v17, %v5580_v54  ;;  %v5604_v11 = vsel %vm5594_vm11, %v5601_v7, %v5603_v63  ;;  %v5607_v20 = vsel %vm5595_vm10, %v5589_v50, %v5606_v42 }
 0x265   : > { %v5599_v44 = vsel %vm5595_vm10, %v5583_v27, %v5598_v43  ;;  %v5608_v36 = vsel %vm5594_vm11, %v5605_v4, %v5607_v20  ;;  %v12603_v0 = vmul.u32.u64.low %v5609_v45, %v5604_v11  ;;  %v12604_v28 = vmul.u32.u64.high %v5609_v45, %v5604_v11, %v12603_v0 }
 0x266   : > { %v10487_v29 = vpop.eup %10486  ;;  %vm9948_vm13 = vcmp.lt.s32.totalorder %v9947_v47, 0  ;;  %v12607_v10 = vmul.u32.u64.low %v5609_v45, %v5608_v36  ;;  %v12608_v35 = vmul.u32.u64.high %v5609_v45, %v5608_v36, %v12607_v10  ;;  %v5253_v25 = vshrl.u32 %v5252_v49, 23 }
 0x267   : > { %v10489_v59 = vpop.eup %10488  ;;  %v3480_v54 = vsel %vm3469_vm3, nan, %v3479_v37  ;;  %v4517_v55 = vxor.u32 2147483648, %v10487_v29  ;;  %v5424_v51 = vsel %vm9948_vm13, 0, %v9947_v47  ;;  %v5249_v27 = vand.u32 2147483647, %v12545_v57 }
 0x268   : > { %v4514_v50 = vxor.u32 2147483648, %v10489_v59  ;;  %v5425_v32 = vsub.s32 32, %v5424_v51  ;;  %v5429_v22 = vsub.s32 4294967266, %v5424_v51  ;;  %v5600_v56 = vsel %vm5594_vm11, %v5597_v16, %v5599_v44 }
 0x269   : > { %v4518_v17 = vsel %vm4516_vm4, %v4517_v55, %v10489_v59  ;;  %v5442_v49 = vsel %vm12571_vm5, 0, %v5440_v48  ;;  %v5619_v12 = vadd.s32 1, %v12604_v28  ;;  %v9941_v38 = vadd.s32 4294967169, %v5253_v25 }
 0x26a   : > { %v4515_v37 = vsel %vm4513_vm8, %v10487_v29, %v4514_v50  ;;  %v5426_v7 = vshll.u32 %v12557_v21, %v5424_v51  ;;  %v5427_v58 = vshrl.u32 %v5409_v53, %v5425_v32  ;;  %v5430_v62 = vadd.s32 127, %v5429_v22 }
 0x26b   : > { %v4519_v46 = vsel %vm4512_vm9, %v4515_v37, %v4518_v17  ;;  %v5616_v43 = vmul.u32 %v5609_v45, %v5600_v56  ;;  %vm5618_vm14 = vc.u32 %v12608_v35, %v12603_v0  ;;  %v5259_v63 = vadd.s32 1, %v9941_v38 }
 0x26c   : > { %v4520_v48 = vsel %vm4509_vm12, nan, %v4519_v46  ;;  %v5428_v4 = vor.u32 %v5427_v58, %v5426_v7  ;;  %v5431_v42 = vshll.u32 %v5430_v62, 23  ;;  %v5620_v47 = vsel %vm5618_vm14, %v5619_v12, %v12604_v28 }
 0x26d   : > { %v12630_v16 = vpack.c.bf16 %v4520_v48, %v3480_v54  ;;  %v5621_v21 = vadd.s32 %v5620_v47, %v5616_v43  ;;  %vm5260_vm15 = vcmp.gt.s32.totalorder %v5259_v63, 0  ;;  %v5446_v11 = vadd.s32 3, %v5442_v49 }
 0x26e   : > { %v5432_v53 = vor.u32 4788187, %v5431_v42  ;;  %v5256_v60 = vand.u32 8388607, %v5249_v27  ;;  %v5261_v45 = vsel %vm5260_vm15, %v5259_v63, 0  ;;  %v5435_v36 = vcvt.s32.f32 %v5428_v4 }
 0x26f   : > { %17032 = vst [vmem:[#allocation21_spill] sm:$0xff] %v12630_v16  ;;  %6451 = vmatpush1.bf16.msra.mxu1 %v12630_v16  ;;  %v5622_v20 = vadd.s32 536870912, %v5621_v21  ;;  %v5263_v44 = vand.u32 31, %v5261_v45  ;;  %v1001_v29 = vadd.f32 %v12537_v26, %v12533_v6  ;;  %v12637_v59 = vand.u32 3, %v5446_v11 }
 0x270   : > { %v5433_v41 = vand.u32 2147483647, %v5432_v53  ;;  %v5257_v54 = vor.u32 8388608, %v5256_v60  ;;  %v5262_v50 = vshrl.u32 %v5261_v45, 5  ;;  %vm5563_vm0 = vcmp.lt.s32.totalorder %v12470_v31, 0 }
 0x271   : > { %v5623_v28 = vshrl.u32 %v5622_v20, 30  ;;  %v5264_v10 = vsub.s32 32, %v5263_v44  ;;  %v12640_v55 = vadd.f32 %v12377_v2, %v1001_v29  ;;  %v5266_v32 = vshll.u32 %v16976_v15, %v5263_v44 }
 0x272   : > { %v5436_v25 = vmul.f32 %v5435_v36, %v5433_v41  ;;  %v5269_v12 = vshll.u32 %v16972_v23, %v5263_v44  ;;  %v5272_v38 = vshll.u32 %v16973_v34, %v5263_v44  ;;  %v5275_v62 = vshll.u32 %v16974_v39, %v5263_v44 }
 0x273   : > { %v5624_v51 = vshll.u32 %v5623_v28, 30  ;;  %v5267_v22 = vshrl.u32 %v16972_v23, %v5264_v10  ;;  %v5270_v17 = vshrl.u32 %v16973_v34, %v5264_v10  ;;  %v5273_v6 = vshrl.u32 %v16974_v39, %v5264_v10 }
 0x274   : > { %v5437_v56 = vxor.u32 2147483648, %v5436_v25  ;;  %v5276_v26 = vshrl.u32 %v16975_v24, %v5264_v10  ;;  %v5279_v37 = vshrl.u32 %v16977_v52, %v5264_v10  ;;  %v5278_v46 = vshll.u32 %v16975_v24, %v5263_v44 }
 0x275   : > { %v12648_v49 = vsub.s32 %v5621_v21, %v5624_v51  ;;  %v5268_v58 = vor.u32 %v5267_v22, %v5266_v32  ;;  %v5271_v48 = vor.u32 %v5270_v17, %v5269_v12  ;;  %v5274_v4 = vor.u32 %v5273_v6, %v5272_v38 }
 0x276   : > { %v5438_v7 = vsel %vm5355_vm2, %v5437_v56, %v5436_v25  ;;  %v5277_v42 = vor.u32 %v5276_v26, %v5275_v62  ;;  %v5280_v47 = vor.u32 %v5279_v37, %v5278_v46  ;;  %v12661_v21 = vshll.u32 %v5257_v54, 8 }
 0x277   : > { %v5441_v43 = vsel %vm12571_vm5, %v12395_v18, %v5438_v7  ;;  %v5627_v63 = vsub.s32 0, %v12648_v49  ;;  %vm12665_vm1 = vcmp.le.f32.partialorder %v5561_v40, 0.7853982  ;;  %v5647_v13 = vsub.s32 4, %v5623_v28 }
 0x278   : > { %10490 = vcosq.f32 %v5441_v43  ;;  %v5460_v60 = vand.u32 2139095040, %v12640_v55  ;;  %v5265_v45 = vshrl.u32 %v16976_v15, %v5264_v10  ;;  %vm5281_vm2 = vcmp.lt.s32.totalorder %v5262_v50, 1 }
 0x279   : > { %10492 = vsinq.f32 %v5441_v43  ;;  %v9954_v11 = vmin.u32 %v5627_v63, %v12648_v49  ;;  %vm5282_vm3 = vcmp.lt.s32.totalorder %v5262_v50, 2  ;;  %vm5283_vm4 = vcmp.lt.s32.totalorder %v5262_v50, 3 }
 0x27a   : > { %vm5284_vm5 = vcmp.lt.s32.totalorder %v5262_v50, 4  ;;  %v5289_v44 = vsel %vm5281_vm2, %v5268_v58, %v5271_v48  ;;  %v5293_v41 = vsel %vm5281_vm2, %v5271_v48, %v5274_v4  ;;  %v5285_v36 = vsel %vm5281_vm2, %v5265_v45, %v5268_v58 }
 0x27b   : > { %v5629_v20 = vclz %v9954_v11  ;;  %v5286_v29 = vsel %vm5284_vm5, %v5274_v4, 2102212464  ;;  %v5290_v40 = vsel %vm5284_vm5, %v5277_v42, 920167782  ;;  %v5294_v25 = vsel %vm5284_vm5, %v5280_v47, 1326507024 }
 0x27c   : > { %vm5449_vm6 = vcmp.eq.s32.totalorder %v12637_v59, 0  ;;  %v5287_v51 = vsel %vm5283_vm4, %v5271_v48, %v5286_v29  ;;  %v5291_v32 = vsel %vm5283_vm4, %v5274_v4, %v5290_v40  ;;  %v5295_v22 = vsel %vm5283_vm4, %v5277_v42, %v5294_v25 }
 0x27d   : > { %v9955_v54 = vadd.s32 4294967294, %v5629_v20  ;;  %vm5448_vm7 = vcmp.lt.s32.totalorder %v12637_v59, 2  ;;  %v5648_v10 = vsel %vm5563_vm0, %v5647_v13, %v5623_v28  ;;  %v5292_v56 = vsel %vm5282_vm3, %v5289_v44, %v5291_v32 }
 0x27e   : > { %v5296_v17 = vsel %vm5282_vm3, %v5293_v41, %v5295_v22  ;;  %v5461_v6 = vshrl.u32 %v5460_v60, 23  ;;  %v5288_v26 = vsel %vm5282_vm3, %v5285_v36, %v5287_v51  ;;  %vm6364_vm9 = vcmask 1043456  }
 0x27f   : > { %vm9956_vm8 = vcmp.lt.s32.totalorder %v9955_v54, 0  ;;  %v12680_v12 = vmul.u32.u64.low %v12661_v21, %v5296_v17  ;;  %v12681_v38 = vmul.u32.u64.high %v12661_v21, %v5296_v17, %v12680_v12  ;;  %vm5452_vm10 = vcmp.eq.s32.totalorder %v12637_v59, 2 }
 0x280   : > { %v5632_v37 = vsel %vm9956_vm8, 0, %v9955_v54  ;;  %v12684_v7 = vmul.u32.u64.low %v12661_v21, %v5292_v56  ;;  %v12685_v58 = vmul.u32.u64.high %v12661_v21, %v5292_v56, %v12684_v7  ;;  %v9949_v28 = vadd.s32 4294967169, %v5461_v6  ;;  %v17035_v56 = vld [vmem:[#allocation2_spill] sm:$0xff] }
 0x281   : > { %v5617_v62 = vadd.s32 %v12603_v0, %v12608_v35  ;;  %v5633_v46 = vsub.s32 32, %v5632_v37  ;;  %v5637_v50 = vsub.s32 4294967266, %v5632_v37  ;;  %v5650_v63 = vsel %vm12665_vm1, 0, %v5648_v10 }
 0x282   : > { %v10491_v43 = vpop.eup %10490  ;;  %v5304_v48 = vmul.u32 %v12661_v21, %v5288_v26  ;;  %v16871_v4 = vand.u32 2147483647, %v12640_v55  ;;  %v5467_v42 = vadd.s32 1, %v9949_v28  ;;  %v5634_v13 = vshll.u32 %v12648_v49, %v5632_v37 }
 0x283   : > { %v10493_v47 = vpop.eup %10492  ;;  %v5453_v11 = vxor.u32 2147483648, %v10491_v43  ;;  %v5635_v60 = vshrl.u32 %v5617_v62, %v5633_v46  ;;  %v5638_v45 = vadd.s32 127, %v5637_v50  ;;  %vm5306_vm12 = vc.u32 %v12681_v38, %v12684_v7 }
 0x284   : > { %v5450_v20 = vxor.u32 2147483648, %v10493_v47  ;;  %v5307_v0 = vadd.s32 1, %v12685_v58  ;;  %vm5468_vm11 = vcmp.gt.s32.totalorder %v5467_v42, 0  ;;  %v5654_v29 = vadd.s32 3, %v5650_v63 }
 0x285   : > { %v5454_v35 = vsel %vm5452_vm10, %v5453_v11, %v10493_v47  ;;  %v5636_v21 = vor.u32 %v5635_v60, %v5634_v13  ;;  %v5639_v44 = vshll.u32 %v5638_v45, 23  ;;  %v5469_v41 = vsel %vm5468_vm11, %v5467_v42, 0  ;;  %v12726_v47 = vld [vmem:[%s10942_s5] ss:$2 sm:$0xff] }
 0x286   : > { %v5451_v36 = vsel %vm5449_vm6, %v10491_v43, %v5450_v20  ;;  %v5308_v49 = vsel %vm5306_vm12, %v5307_v0, %v12685_v58  ;;  %v5471_v40 = vand.u32 31, %v5469_v41  ;;  %vm5445_vm13 = vweird.f32 %v12395_v18 }
 0x287   : > { %v5455_v25 = vsel %vm5448_vm7, %v5451_v36, %v5454_v35  ;;  %v5640_v54 = vor.u32 4788187, %v5639_v44  ;;  %v5309_v51 = vadd.s32 %v5308_v49, %v5304_v48  ;;  %v5464_v22 = vand.u32 8388607, %v16871_v4 }
 0x288   : > { %v5456_v32 = vsel %vm5445_vm13, nan, %v5455_v25  ;;  %v5472_v10 = vsub.s32 32, %v5471_v40  ;;  %v749_v17 = vsub.s32 5, %v17035_v56  ;;  %v5643_v12 = vcvt.s32.f32 %v5636_v21 }
 0x289   : > { %v12710_v6 = vpack.c.bf16 %v5456_v32, %v5456_v32  ;;  %v5641_v26 = vand.u32 2147483647, %v5640_v54  ;;  %v5310_v37 = vadd.s32 536870912, %v5309_v51  ;;  %v12712_v58 = vand.u32 3, %v5654_v29 }
 0x28a   : > { %v5474_v18 = vshll.u32 %v16976_v15, %v5471_v40  ;;  %v5475_v59 = vshrl.u32 %v16972_v23, %v5472_v10  ;;  %v5478_v28 = vshrl.u32 %v16973_v34, %v5472_v10  ;;  %v5481_v50 = vshrl.u32 %v16974_v39, %v5472_v10 }
 0x28b   : > { %17036 = vst [vmem:[#allocation2_spill] sm:$0xff] %v12710_v6  ;;  %9983 = vmatprep.subr.msk.bf16.mxu0 %vm6364_vm9, %v12710_v6  ;;  %v5644_v62 = vmul.f32 %v5643_v12, %v5641_v26  ;;  %v12719_v46 = vshrl.u32 %v5310_v37, 30  ;;  %v5484_v43 = vshrl.u32 %v16975_v24, %v5472_v10  ;;  %v5470_v63 = vshrl.u32 %v5469_v41, 5  ;;  %v12744_v26 = vld [vmem:[%s10942_s5 + $0x1] ss:$2 sm:$0xff] }
 0x28c   : > { %v5477_v48 = vshll.u32 %v16972_v23, %v5471_v40  ;;  %v5483_v42 = vshll.u32 %v16974_v39, %v5471_v40  ;;  %v12729_v11 = vrot.slane %v12726_v47, %v749_v17  ;;  %v5476_v45 = vor.u32 %v5475_v59, %v5474_v18 }
 0x28d   : > { %v5645_v13 = vxor.u32 2147483648, %v5644_v62  ;;  %v5312_v60 = vshll.u32 %v12719_v46, 30  ;;  %v5480_v20 = vshll.u32 %v16973_v34, %v5471_v40  ;;  %v5486_v21 = vshll.u32 %v16975_v24, %v5471_v40 }
 0x28e   : > { %v5479_v0 = vor.u32 %v5478_v28, %v5477_v48  ;;  %v5485_v35 = vor.u32 %v5484_v43, %v5483_v42  ;;  %v5487_v44 = vshrl.u32 %v16977_v52, %v5472_v10  ;;  %v5465_v29 = vor.u32 8388608, %v5464_v22  ;;  %v17037_v43 = vld [vmem:[#allocation4_spill] sm:$0xff] }
 0x28f   : > { %v5646_v41 = vsel %vm5563_vm0, %v5645_v13, %v5644_v62  ;;  %v12737_v36 = vsub.s32 %v5309_v51, %v5312_v60  ;;  %v5482_v49 = vor.u32 %v5481_v50, %v5480_v20  ;;  %v5473_v54 = vshrl.u32 %v16976_v15, %v5472_v10 }
 0x290   : > { %v5649_v25 = vsel %vm12665_vm1, %v12470_v31, %v5646_v41  ;;  %v5488_v32 = vor.u32 %v5487_v44, %v5486_v21  ;;  %v12747_v40 = vrot.slane %v12744_v26, %v749_v17  ;;  %vm5489_vm14 = vcmp.lt.s32.totalorder %v5470_v63, 1 }
 0x291   : > { %10494 = vcosq.f32 %v5649_v25  ;;  %v5315_v12 = vsub.s32 0, %v12737_v36  ;;  %vm5492_vm15 = vcmp.lt.s32.totalorder %v5470_v63, 4  ;;  %vm5491_vm0 = vcmp.lt.s32.totalorder %v5470_v63, 3 }
 0x292   : > { %10496 = vsinq.f32 %v5649_v25  ;;  %v5497_v51 = vsel %vm5489_vm14, %v5476_v45, %v5479_v0  ;;  %v5498_v22 = vsel %vm5492_vm15, %v5485_v35, 920167782  ;;  %vm5490_vm1 = vcmp.lt.s32.totalorder %v5470_v63, 2  ;;  %v17039_v25 = vld [vmem:[#allocation7_spill] sm:$0xff] }
 0x293   : > { %v9942_v53 = vmin.u32 %v5315_v12, %v12737_v36  ;;  %v5494_v10 = vsel %vm5492_vm15, %v5482_v49, 2102212464  ;;  %v5499_v37 = vsel %vm5491_vm0, %v5482_v49, %v5498_v22  ;;  %v5501_v17 = vsel %vm5489_vm14, %v5479_v0, %v5482_v49 }
 0x294   : > { %v5500_v18 = vsel %vm5490_vm1, %v5497_v51, %v5499_v37  ;;  %v5502_v59 = vsel %vm5492_vm15, %v5488_v32, 1326507024  ;;  %v5505_v28 = vshll.u32 %v5465_v29, 8  ;;  %vm5251_vm2 = vcmp.lt.s32.totalorder %v12545_v57, 0  ;;  %v17038_v29 = vld [vmem:[#allocation3_spill] sm:$0xff] }
 0x295   : > { %v5317_v62 = vclz %v9942_v53  ;;  %v5493_v50 = vsel %vm5489_vm14, %v5473_v54, %v5476_v45  ;;  %v782_v48 = vmul.f32 %v12729_v11, %v17037_v43  ;;  %v5495_v42 = vsel %vm5491_vm0, %v5479_v0, %v5494_v10  ;;  %v17040_v53 = vld [vmem:[#allocation6_spill] sm:$0xff] }
 0x296   : > { %v5503_v13 = vsel %vm5491_vm0, %v5485_v35, %v5502_v59  ;;  %v12761_v60 = vmul.u32.u64.low %v5505_v28, %v5500_v18  ;;  %v12762_v20 = vmul.u32.u64.high %v5505_v28, %v5500_v18, %v12761_v60  ;;  %vm5656_vm3 = vcmp.lt.s32.totalorder %v12712_v58, 2 }
 0x297   : > { %v9943_v21 = vadd.s32 4294967294, %v5317_v62  ;;  %v5335_v44 = vsub.s32 4, %v12719_v46  ;;  %v5504_v41 = vsel %vm5490_vm1, %v5501_v17, %v5503_v13  ;;  %v914_v45 = vmul.f32 %v12747_v40, %v17038_v29 }
 0x298   : > { %vm5657_vm4 = vcmp.eq.s32.totalorder %v12712_v58, 0  ;;  %vm5660_vm5 = vcmp.eq.s32.totalorder %v12712_v58, 2  ;;  %v12772_v0 = vmul.u32.u64.low %v5505_v28, %v5504_v41  ;;  %v12773_v35 = vmul.u32.u64.high %v5505_v28, %v5504_v41, %v12772_v0 }
 0x299   : > { %vm9944_vm6 = vcmp.lt.s32.totalorder %v9943_v21, 0  ;;  %v5496_v49 = vsel %vm5490_vm1, %v5493_v50, %v5495_v42  ;;  %v792_v54 = vmul.f32 %v12729_v11, %v17039_v25  ;;  %v964_v32 = vadd.f32 %v914_v45, %v782_v48 }
 0x29a   : > { %v5305_v12 = vadd.s32 %v12684_v7, %v12681_v38  ;;  %v5320_v51 = vsel %vm9944_vm6, 0, %v9943_v21  ;;  %v5515_v22 = vadd.s32 1, %v12762_v20  ;;  %v924_v10 = vmul.f32 %v12747_v40, %v17040_v53 }
 0x29b   : > { %v10495_v37 = vpop.eup %10494  ;;  %v5321_v18 = vsub.s32 32, %v5320_v51  ;;  %v5325_v17 = vsub.s32 4294967266, %v5320_v51  ;;  %v5336_v63 = vsel %vm5251_vm2, %v5335_v44, %v12719_v46  ;;  %v12787_v59 = vadd.f32 %v10986_v9, %v964_v32 }
 0x29c   : > { %v10497_v62 = vpop.eup %10496  ;;  %v5661_v50 = vxor.u32 2147483648, %v10495_v37  ;;  %v5322_v38 = vshll.u32 %v12737_v36, %v5320_v51  ;;  %v5512_v7 = vmul.u32 %v5505_v28, %v5496_v49  ;;  %vm5514_vm7 = vc.u32 %v12773_v35, %v12761_v60 }
 0x29d   : > { %v5658_v48 = vxor.u32 2147483648, %v10497_v62  ;;  %v5323_v42 = vshrl.u32 %v5305_v12, %v5321_v18  ;;  %v5326_v13 = vadd.s32 127, %v5325_v17  ;;  %v5516_v21 = vsel %vm5514_vm7, %v5515_v22, %v12762_v20 }
 0x29e   : > { %v5662_v41 = vsel %vm5660_vm5, %v5661_v50, %v10497_v62  ;;  %v5517_v46 = vadd.s32 %v5516_v21, %v5512_v7  ;;  %v974_v44 = vadd.f32 %v924_v10, %v792_v54  ;;  %v16870_v45 = vand.u32 2147483647, %v12787_v59 }
 0x29f   : > { %v5659_v0 = vsel %vm5657_vm4, %v10495_v37, %v5658_v48  ;;  %v5324_v36 = vor.u32 %v5323_v42, %v5322_v38  ;;  %v5327_v28 = vshll.u32 %v5326_v13, 23  ;;  %v1612_v49 = vand.u32 2139095040, %v12787_v59 }
 0x2a0   : > { %vm5653_vm8 = vweird.f32 %v12470_v31  ;;  %v5663_v32 = vsel %vm5656_vm3, %v5659_v0, %v5662_v41  ;;  %v5518_v20 = vadd.s32 536870912, %v5517_v46  ;;  %v12803_v12 = vadd.f32 %v10984_v8, %v974_v44 }
 0x2a1   : > { %v5664_v51 = vsel %vm5653_vm8, nan, %v5663_v32  ;;  %vm12807_vm10 = vcmp.le.f32.partialorder %v5249_v27, 0.7853982  ;;  %v5328_v22 = vor.u32 4788187, %v5327_v28  ;;  %v1613_v10 = vshrl.u32 %v1612_v49, 23 }
 0x2a2   : > { %v12811_v37 = vpack.c.bf16 %v5664_v51, %v5664_v51  ;;  %v5338_v31 = vsel %vm12807_vm10, 0, %v5336_v63  ;;  %v5519_v58 = vshrl.u32 %v5518_v20, 30  ;;  %v1616_v18 = vand.u32 8388607, %v16870_v45 }
 0x2a3   : > { %v5329_v17 = vand.u32 2147483647, %v5328_v22  ;;  %v5331_v62 = vcvt.s32.f32 %v5324_v36  ;;  %v9801_v50 = vadd.s32 4294967169, %v1613_v10  ;;  %v2652_v38 = vand.u32 2139095040, %v12803_v12 }
 0x2a4   : > { %17043 = vst [vmem:[#allocation22_spill] sm:$0xff] %v12811_v37  ;;  %9986 = vmatprep.subr.msk.bf16.mxu1 %vm6364_vm9, %v12811_v37  ;;  %v5520_v27 = vshll.u32 %v5519_v58, 30  ;;  %v5342_v48 = vadd.s32 3, %v5338_v31  ;;  %v1617_v21 = vor.u32 8388608, %v1616_v18  ;;  %v5543_v44 = vsub.s32 4, %v5519_v58 }
 0x2a5   : > { %v5332_v7 = vmul.f32 %v5331_v62, %v5329_v17  ;;  %v1619_v42 = vadd.s32 1, %v9801_v50  ;;  %v2653_v63 = vshrl.u32 %v2652_v38, 23  ;;  %v16869_v0 = vand.u32 2147483647, %v12803_v12 }
 0x2a6   : > { %v12820_v13 = vsub.s32 %v5517_v46, %v5520_v27  ;;  %vm5459_vm11 = vcmp.lt.s32.totalorder %v12640_v55, 0  ;;  %v12827_v20 = vand.u32 3, %v5342_v48  ;;  %v5513_v10 = vadd.s32 %v12761_v60, %v12773_v35 }
 0x2a7   : > { %v5333_v41 = vxor.u32 2147483648, %v5332_v7  ;;  %vm1620_vm12 = vcmp.gt.s32.totalorder %v1619_v42, 0  ;;  %v9841_v49 = vadd.s32 4294967169, %v2653_v63  ;;  %v12836_v18 = vshll.u32 %v1617_v21, 8 }
 0x2a8   : > { %v5523_v36 = vsub.s32 0, %v12820_v13  ;;  %v1621_v28 = vsel %vm1620_vm12, %v1619_v42, 0  ;;  %v12840_v17 = vsel %vm5459_vm11, %v5543_v44, %v5519_v58  ;;  %v12844_v50 = vand.u32 8388607, %v16869_v0 }
 0x2a9   : > { %v5334_v32 = vsel %vm5251_vm2, %v5333_v41, %v5332_v7  ;;  %v1623_v46 = vand.u32 31, %v1621_v28  ;;  %v1622_v27 = vshrl.u32 %v1621_v28, 5  ;;  %v2659_v38 = vadd.s32 1, %v9841_v49 }
 0x2aa   : > { %v5337_v22 = vsel %vm12807_vm10, %v12545_v57, %v5334_v32  ;;  %v9950_v31 = vmin.u32 %v5523_v36, %v12820_v13  ;;  %vm5348_vm13 = vcmp.eq.s32.totalorder %v12827_v20, 2  ;;  %vm5345_vm14 = vcmp.eq.s32.totalorder %v12827_v20, 0 }
 0x2ab   : > { %10498 = vcosq.f32 %v5337_v22  ;;  %v1624_v62 = vsub.s32 32, %v1623_v46  ;;  %v1626_v60 = vshll.u32 %v16976_v15, %v1623_v46  ;;  %v1629_v7 = vshll.u32 %v16972_v23, %v1623_v46 }
 0x2ac   : > { %10500 = vsinq.f32 %v5337_v22  ;;  %v5525_v54 = vclz %v9950_v31  ;;  %v1632_v21 = vshll.u32 %v16973_v34, %v1623_v46  ;;  %v1635_v36 = vshll.u32 %v16974_v39, %v1623_v46 }
 0x2ad   : > { %v1627_v35 = vshrl.u32 %v16972_v23, %v1624_v62  ;;  %v1630_v48 = vshrl.u32 %v16973_v34, %v1624_v62  ;;  %v1625_v58 = vshrl.u32 %v16976_v15, %v1624_v62  ;;  %v1633_v63 = vshrl.u32 %v16974_v39, %v1624_v62 }
 0x2ae   : > { %v9951_v42 = vadd.s32 4294967294, %v5525_v54  ;;  %v1636_v28 = vshrl.u32 %v16975_v24, %v1624_v62  ;;  %v1638_v32 = vshll.u32 %v16975_v24, %v1623_v46  ;;  %v1639_v22 = vshrl.u32 %v16977_v52, %v1624_v62 }
 0x2af   : > { %v1628_v41 = vor.u32 %v1627_v35, %v1626_v60  ;;  %v1631_v44 = vor.u32 %v1630_v48, %v1629_v7  ;;  %v1634_v49 = vor.u32 %v1633_v63, %v1632_v21  ;;  %vm5344_vm0 = vcmp.lt.s32.totalorder %v12827_v20, 2 }
 0x2b0   : > { %vm9952_vm15 = vcmp.lt.s32.totalorder %v9951_v42, 0  ;;  %v1637_v54 = vor.u32 %v1636_v28, %v1635_v36  ;;  %vm1641_vm1 = vcmp.lt.s32.totalorder %v1622_v27, 1  ;;  %vm1642_vm2 = vcmp.lt.s32.totalorder %v1622_v27, 2 }
 0x2b1   : > { %v5528_v31 = vsel %vm9952_vm15, 0, %v9951_v42  ;;  %vm5341_vm3 = vweird.f32 %v12545_v57  ;;  %v1640_v7 = vor.u32 %v1639_v22, %v1638_v32  ;;  %vm1643_vm4 = vcmp.lt.s32.totalorder %v1622_v27, 3 }
 0x2b2   : > { %v5529_v60 = vsub.s32 32, %v5528_v31  ;;  %v5533_v35 = vsub.s32 4294967266, %v5528_v31  ;;  %v5530_v48 = vshll.u32 %v12820_v13, %v5528_v31  ;;  %vm1644_vm5 = vcmp.lt.s32.totalorder %v1622_v27, 4 }
 0x2b3   : > { %v1645_v21 = vsel %vm1641_vm1, %v1625_v58, %v1628_v41  ;;  %v1649_v46 = vsel %vm1641_vm1, %v1628_v41, %v1631_v44  ;;  %v1646_v0 = vsel %vm1644_vm5, %v1634_v49, 2102212464  ;;  %v1650_v42 = vsel %vm1644_vm5, %v1637_v54, 920167782 }
 0x2b4   : > { %v5531_v62 = vshrl.u32 %v5513_v10, %v5529_v60  ;;  %v5534_v63 = vadd.s32 127, %v5533_v35  ;;  %v1647_v28 = vsel %vm1643_vm4, %v1631_v44, %v1646_v0  ;;  %v1651_v45 = vsel %vm1643_vm4, %v1634_v49, %v1650_v42 }
 0x2b5   : > { %v10499_v36 = vpop.eup %10498  ;;  %v1653_v51 = vsel %vm1641_vm1, %v1631_v44, %v1634_v49  ;;  %v1654_v32 = vsel %vm1644_vm5, %v1640_v7, 1326507024  ;;  %vm2660_vm6 = vcmp.gt.s32.totalorder %v2659_v38, 0  ;;  %v1648_v41 = vsel %vm1642_vm2, %v1645_v21, %v1647_v28 }
 0x2b6   : > { %v10501_v22 = vpop.eup %10500  ;;  %v5349_v4 = vxor.u32 2147483648, %v10499_v36  ;;  %v5532_v13 = vor.u32 %v5531_v62, %v5530_v48  ;;  %v5535_v31 = vshll.u32 %v5534_v63, 23  ;;  %v1652_v10 = vsel %vm1642_vm2, %v1649_v46, %v1651_v45 }
 0x2b7   : > { %v5346_v58 = vxor.u32 2147483648, %v10501_v22  ;;  %v1655_v60 = vsel %vm1643_vm4, %v1637_v54, %v1654_v32  ;;  %v2661_v62 = vsel %vm2660_vm6, %v2659_v38, 0  ;;  %v17047_v38 = vsub.s32 7, %v17035_v56 }
 0x2b8   : > { %v5350_v0 = vsel %vm5348_vm13, %v5349_v4, %v10501_v22  ;;  %v5536_v35 = vor.u32 4788187, %v5535_v31  ;;  %v5539_v42 = vcvt.s32.f32 %v5532_v13  ;;  %v1656_v44 = vsel %vm1642_vm2, %v1653_v51, %v1655_v60 }
 0x2b9   : > { %v5347_v49 = vsel %vm5345_vm14, %v10499_v36, %v5346_v58  ;;  %v12876_v7 = vmul.u32.u64.low %v12836_v18, %v1656_v44  ;;  %v12877_v48 = vmul.u32.u64.high %v12836_v18, %v1656_v44, %v12876_v7  ;;  %v17044_v51 = vand.u32 2147483647, %v12640_v55 }
 0x2ba   : > { %v5351_v45 = vsel %vm5344_vm0, %v5347_v49, %v5350_v0  ;;  %v5537_v21 = vand.u32 2147483647, %v5536_v35  ;;  %v12882_v54 = vmul.u32.u64.low %v12836_v18, %v1652_v10  ;;  %v12883_v46 = vmul.u32.u64.high %v12836_v18, %v1652_v10, %v12882_v54 }
 0x2bb   : > { %v5352_v4 = vsel %vm5341_vm3, nan, %v5351_v45  ;;  %vm12890_vm7 = vcmp.le.f32.partialorder %v17044_v51, 0.7853982  ;;  %v2663_v63 = vand.u32 31, %v2661_v62  ;;  %v12897_v20 = vrot.slane %v12726_v47, %v17047_v38 }
 0x2bc   : > { %v6309_v36 = vpack.c.bf16 %v5352_v4, %v5352_v4  ;;  %v5540_v28 = vmul.f32 %v5539_v42, %v5537_v21  ;;  %v5546_v32 = vsel %vm12890_vm7, 0, %v12840_v17  ;;  %v17048_v57 = vmov %v17047_v38 }
 0x2bd   : > { %v12905_v22 = vrot.slane %v12744_v26, %v17048_v57  ;;  %v1664_v13 = vmul.u32 %v12836_v18, %v1648_v41  ;;  %vm1666_vm8 = vc.u32 %v12877_v48, %v12882_v54  ;;  %v2657_v31 = vor.u32 8388608, %v12844_v50 }
 0x2be   : > { %v2664_v58 = vsub.s32 32, %v2663_v63  ;;  %v12912_v10 = vsel %vm6364_vm9, %v6309_v36, 0  ;;  %v5541_v60 = vxor.u32 2147483648, %v5540_v28  ;;  %v1667_v0 = vadd.s32 1, %v12883_v46 }
 0x2bf   : > { %17049 = vst [vmem:[#allocation23_spill] sm:$0xff] %v12912_v10  ;;  %v12915_v17 = vshrl.u32 %v2661_v62, 5  ;;  %6400 = vmatpush1.bf16.msra.mxu0 %v12912_v10  ;;  %v2666_v35 = vshll.u32 %v16976_v15, %v2663_v63  ;;  %v2669_v41 = vshll.u32 %v16972_v23, %v2663_v63  ;;  %v2672_v49 = vshll.u32 %v16973_v34, %v2663_v63 }
 0x2c0   : > { %v2667_v18 = vshrl.u32 %v16972_v23, %v2664_v58  ;;  %v2670_v42 = vshrl.u32 %v16973_v34, %v2664_v58  ;;  %v5542_v50 = vsel %vm5459_vm11, %v5541_v60, %v5540_v28  ;;  %v1668_v44 = vsel %vm1666_vm8, %v1667_v0, %v12883_v46 }
 0x2c1   : > { %v2673_v7 = vshrl.u32 %v16974_v39, %v2664_v58  ;;  %v5545_v62 = vsel %vm12890_vm7, %v12640_v55, %v5542_v50  ;;  %v1669_v45 = vadd.s32 %v1668_v44, %v1664_v13  ;;  %v2675_v4 = vshll.u32 %v16974_v39, %v2663_v63 }
 0x2c2   : > { %v2668_v21 = vor.u32 %v2667_v18, %v2666_v35  ;;  %10502 = vcosq.f32 %v5545_v62  ;;  %v2671_v51 = vor.u32 %v2670_v42, %v2669_v41  ;;  %v2676_v36 = vshrl.u32 %v16975_v24, %v2664_v58 }
 0x2c3   : > { %v2674_v38 = vor.u32 %v2673_v7, %v2672_v49  ;;  %10504 = vsinq.f32 %v5545_v62  ;;  %v1670_v28 = vadd.s32 536870912, %v1669_v45  ;;  %v2678_v46 = vshll.u32 %v16975_v24, %v2663_v63 }
 0x2c4   : > { %v2679_v57 = vshrl.u32 %v16977_v52, %v2664_v58  ;;  %v5550_v60 = vadd.s32 3, %v5546_v32  ;;  %v2665_v0 = vshrl.u32 %v16976_v15, %v2664_v58  ;;  %v2677_v27 = vor.u32 %v2676_v36, %v2675_v4 }
 0x2c5   : > { %v2697_v50 = vshll.u32 %v2657_v31, 8  ;;  %v12935_v13 = vshrl.u32 %v1670_v28, 30  ;;  %vm2681_vm10 = vcmp.lt.s32.totalorder %v12915_v17, 1  ;;  %vm2684_vm12 = vcmp.lt.s32.totalorder %v12915_v17, 4 }
 0x2c6   : > { %v2680_v35 = vor.u32 %v2679_v57, %v2678_v46  ;;  %vm2682_vm11 = vcmp.lt.s32.totalorder %v12915_v17, 2  ;;  %vm2683_vm13 = vcmp.lt.s32.totalorder %v12915_v17, 3  ;;  %v2689_v63 = vsel %vm2681_vm10, %v2668_v21, %v2671_v51 }
 0x2c7   : > { %v2690_v18 = vsel %vm2684_vm12, %v2677_v27, 920167782  ;;  %v1672_v32 = vshll.u32 %v12935_v13, 30  ;;  %v2686_v58 = vsel %vm2684_vm12, %v2674_v38, 2102212464  ;;  %v2693_v41 = vsel %vm2681_vm10, %v2671_v51, %v2674_v38 }
 0x2c8   : > { %v2691_v31 = vsel %vm2683_vm13, %v2674_v38, %v2690_v18  ;;  %v2694_v44 = vsel %vm2684_vm12, %v2680_v35, 1326507024  ;;  %v784_v49 = vmul.f32 %v12897_v20, %v17037_v43  ;;  %v916_v7 = vmul.f32 %v12905_v22, %v17038_v29  ;;  %v12963_v38 = vld [vmem:[%s17050_s6] sm:$0xff]  }
 0x2c9   : > { %v2692_v42 = vsel %vm2682_vm11, %v2689_v63, %v2691_v31  ;;  %v5551_v62 = vand.u32 3, %v5550_v60  ;;  %v12954_v4 = vsub.s32 %v1669_v45, %v1672_v32  ;;  %v2685_v36 = vsel %vm2681_vm10, %v2665_v0, %v2668_v21 }
 0x2ca   : > { %v2695_v28 = vsel %vm2683_vm13, %v2677_v27, %v2694_v44  ;;  %v2687_v46 = vsel %vm2683_vm13, %v2671_v51, %v2686_v58  ;;  %v12969_v60 = vmul.u32.u64.low %v2697_v50, %v2692_v42  ;;  %v12970_v45 = vmul.u32.u64.high %v2697_v50, %v2692_v42, %v12969_v60 }
 0x2cb   : > { %v2696_v57 = vsel %vm2682_vm11, %v2693_v41, %v2695_v28  ;;  %vm5549_vm14 = vweird.f32 %v12640_v55  ;;  %v1675_v21 = vsub.s32 0, %v12954_v4  ;;  %vm1611_vm15 = vcmp.lt.s32.totalorder %v12787_v59, 0 }
 0x2cc   : > { %v12975_v0 = vmul.u32.u64.low %v2697_v50, %v2696_v57  ;;  %v12976_v27 = vmul.u32.u64.high %v2697_v50, %v2696_v57, %v12975_v0  ;;  %v10503_v35 = vpop.eup %10502  ;;  %v794_v51 = vmul.f32 %v12897_v20, %v17039_v25  ;;  %v966_v63 = vadd.f32 %v916_v7, %v784_v49 }
 0x2cd   : > { %vm6357_vm0 = vcmask 326656   ;;  %v10505_v18 = vpop.eup %10504  ;;  %v5557_v32 = vxor.u32 2147483648, %v10503_v35  ;;  %v9802_v58 = vmin.u32 %v1675_v21, %v12954_v4  ;;  %v2688_v31 = vsel %vm2682_vm11, %v2685_v36, %v2687_v46 }
 0x2ce   : > { %v926_v41 = vmul.f32 %v12905_v22, %v17040_v53  ;;  %9984 = vmatmul.mubr.msk.bf16.vlgmr.msra.gmra.mrb[0].mxu0 %vm6357_vm0, %v12963_v38  ;;  %v5554_v42 = vxor.u32 2147483648, %v10505_v18  ;;  %vm5556_vm1 = vcmp.eq.s32.totalorder %v5551_v62, 2  ;;  %v2707_v44 = vadd.s32 1, %v12970_v45 }
 0x2cf   : > { %v12990_v49 = vadd.f32 %v10986_v9, %v966_v63  ;;  %v17051_v7 = vmov 0   ;;  %vm5553_vm2 = vcmp.eq.s32.totalorder %v5551_v62, 0  ;;  %v5558_v28 = vsel %vm5556_vm1, %v5557_v32, %v10505_v18 }
 0x2d0   : > { %6437 = vmatprep.mubr.bf16.mxu0 %v17051_v7  ;;  %v1677_v57 = vclz %v9802_v58  ;;  %v1695_v17 = vsub.s32 4, %v12935_v13  ;;  %vm5552_vm3 = vcmp.lt.s32.totalorder %v5551_v62, 2  ;;  %v5555_v36 = vsel %vm5553_vm2, %v10503_v35, %v5554_v42 }
 0x2d1   : > { %v2704_v46 = vmul.u32 %v2697_v50, %v2688_v31  ;;  %vm2706_vm4 = vc.u32 %v12976_v27, %v12969_v60  ;;  %v5559_v21 = vsel %vm5552_vm3, %v5555_v36, %v5558_v28  ;;  %v976_v16 = vadd.f32 %v926_v41, %v794_v51 }
 0x2d2   : > { %v9803_v0 = vadd.s32 4294967294, %v1677_v57  ;;  %v2708_v37 = vsel %vm2706_vm4, %v2707_v44, %v12970_v45  ;;  %v5560_v63 = vsel %vm5549_vm14, nan, %v5559_v21  ;;  %v16879_v18 = vand.u32 2147483647, %v12990_v49 }
 0x2d3   : > { %v2709_v14 = vadd.s32 %v2708_v37, %v2704_v46  ;;  %v1820_v32 = vand.u32 2139095040, %v12990_v49  ;;  %v6311_v58 = vpack.c.bf16 %v5560_v63, %v5560_v63  ;;  %v17052_v62 = vand.u32 2147483647, %v12787_v59 }
 0x2d4   : > { %vm9804_vm6 = vcmp.lt.s32.totalorder %v9803_v0, 0  ;;  %v1696_v45 = vsel %vm1611_vm15, %v1695_v17, %v12935_v13  ;;  %v13011_v37 = vadd.f32 %v10984_v8, %v976_v16  ;;  %v1665_v41 = vadd.s32 %v12882_v54, %v12877_v48 }
 0x2d5   : > { %vm13003_vm5 = vcmp.le.f32.partialorder %v17052_v62, 0.7853982  ;;  %v1680_v35 = vsel %vm9804_vm6, 0, %v9803_v0  ;;  %v2710_v55 = vadd.s32 536870912, %v2709_v14  ;;  %v1821_v51 = vshrl.u32 %v1820_v32, 23 }
 0x2d6   : > { %v13014_v31 = vsel %vm6364_vm9, %v6311_v58, 0  ;;  %v1681_v42 = vsub.s32 32, %v1680_v35  ;;  %v1685_v44 = vsub.s32 4294967266, %v1680_v35  ;;  %v1698_v28 = vsel %vm13003_vm5, 0, %v1696_v45 }
 0x2d7   : > { %17055 = vst [vmem:[#allocation24_spill] sm:$0xff] %v13014_v31  ;;  %6453 = vmatpush1.bf16.msra.mxu1 %v13014_v31  ;;  %v2711_v13 = vshrl.u32 %v2710_v55, 30  ;;  %v9809_v57 = vadd.s32 4294967169, %v1821_v51  ;;  %v1824_v16 = vand.u32 8388607, %v16879_v18  ;;  %v1682_v17 = vshll.u32 %v12954_v4, %v1680_v35 }
 0x2d8   : > { %v1683_v36 = vshrl.u32 %v1665_v41, %v1681_v42  ;;  %v1686_v46 = vadd.s32 127, %v1685_v44  ;;  %v745_v21 = vsub.s32 4, %v17035_v56  ;;  %v2860_v63 = vand.u32 2139095040, %v13011_v37 }
 0x2d9   : > { %v2712_v0 = vshll.u32 %v2711_v13, 30  ;;  %v2735_v48 = vsub.s32 4, %v2711_v13  ;;  %v1827_v54 = vadd.s32 1, %v9809_v57  ;;  %v1702_v62 = vadd.s32 3, %v1698_v28 }
 0x2da   : > { %v1684_v32 = vor.u32 %v1683_v36, %v1682_v17  ;;  %v1687_v58 = vshll.u32 %v1686_v46, 23  ;;  %vm2651_vm7 = vcmp.lt.s32.totalorder %v12803_v12, 0  ;;  %9987 = vmatmul.mubr.msk.bf16.vlgmr.msra.gmra.mrb[0].mxu1 %vm6357_vm0, %v12963_v38  ;;  %v17056_v45 = vand.u32 2147483647, %v12803_v12 }
 0x2db   : > { %v13035_v35 = vsub.s32 %v2709_v14, %v2712_v0  ;;  %v1825_v55 = vor.u32 8388608, %v1824_v16  ;;  %vm1828_vm10 = vcmp.gt.s32.totalorder %v1827_v54, 0  ;;  %6490 = vmatprep.mubr.bf16.mxu1 %v17051_v7  ;;  %v16878_v42 = vand.u32 2147483647, %v13011_v37 }
 0x2dc   : > { %vm13031_vm8 = vcmp.le.f32.partialorder %v17056_v45, 0.7853982  ;;  %v1688_v51 = vor.u32 4788187, %v1687_v58  ;;  %v1829_v41 = vsel %vm1828_vm10, %v1827_v54, 0  ;;  %v13040_v44 = vrot.slane %v12726_v47, %v745_v21 }
 0x2dd   : > { %v2715_v38 = vsub.s32 0, %v13035_v35  ;;  %v13045_v28 = vsel %vm2651_vm7, %v2735_v48, %v2711_v13  ;;  %v1831_v57 = vand.u32 31, %v1829_v41  ;;  %v2861_v14 = vshrl.u32 %v2860_v63, 23 }
 0x2de   : > { %v1689_v17 = vand.u32 2147483647, %v1688_v51  ;;  %v1691_v16 = vcvt.s32.f32 %v1684_v32  ;;  %v13047_v36 = vand.u32 3, %v1702_v62  ;;  %v13050_v46 = vrot.slane %v12744_v26, %v745_v21 }
 0x2df   : > { %v2705_v0 = vadd.s32 %v12969_v60, %v12976_v27  ;;  %v9842_v47 = vmin.u32 %v2715_v38, %v13035_v35  ;;  %v1832_v54 = vsub.s32 32, %v1831_v57  ;;  %v13055_v58 = vshll.u32 %v1825_v55, 8 }
 0x2e0   : > { %v1692_v45 = vmul.f32 %v1691_v16, %v1689_v17  ;;  %v2738_v13 = vsel %vm13031_vm8, 0, %v13045_v28  ;;  %v1830_v48 = vshrl.u32 %v1829_v41, 5  ;;  %v13062_v63 = vand.u32 8388607, %v16878_v42 }
 0x2e1   : > { %v2717_v26 = vclz %v9842_v47  ;;  %v1834_v21 = vshll.u32 %v16976_v15, %v1831_v57  ;;  %v1837_v60 = vshll.u32 %v16972_v23, %v1831_v57  ;;  %v9849_v27 = vadd.s32 4294967169, %v2861_v14 }
 0x2e2   : > { %v1693_v32 = vxor.u32 2147483648, %v1692_v45  ;;  %v1835_v62 = vshrl.u32 %v16972_v23, %v1832_v54  ;;  %v1838_v55 = vshrl.u32 %v16973_v34, %v1832_v54  ;;  %v1840_v51 = vshll.u32 %v16973_v34, %v1831_v57 }
 0x2e3   : > { %v9843_v38 = vadd.s32 4294967294, %v2717_v26  ;;  %v1841_v41 = vshrl.u32 %v16974_v39, %v1832_v54  ;;  %v1843_v28 = vshll.u32 %v16974_v39, %v1831_v57  ;;  %v1844_v17 = vshrl.u32 %v16975_v24, %v1832_v54 }
 0x2e4   : > { %v1694_v16 = vsel %vm1611_vm15, %v1693_v32, %v1692_v45  ;;  %v1836_v47 = vor.u32 %v1835_v62, %v1834_v21  ;;  %v1846_v14 = vshll.u32 %v16975_v24, %v1831_v57  ;;  %v1847_v42 = vshrl.u32 %v16977_v52, %v1832_v54 }
 0x2e5   : > { %v1697_v18 = vsel %vm13003_vm5, %v12787_v59, %v1694_v16  ;;  %vm9844_vm12 = vcmp.lt.s32.totalorder %v9843_v38, 0  ;;  %v1839_v26 = vor.u32 %v1838_v55, %v1837_v60  ;;  %v1842_v31 = vor.u32 %v1841_v41, %v1840_v51 }
 0x2e6   : > { %10506 = vcosq.f32 %v1697_v18  ;;  %v2720_v10 = vsel %vm9844_vm12, 0, %v9843_v38  ;;  %v1845_v6 = vor.u32 %v1844_v17, %v1843_v28  ;;  %v1848_v33 = vor.u32 %v1847_v42, %v1846_v14 }
 0x2e7   : > { %10508 = vsinq.f32 %v1697_v18  ;;  %v2721_v2 = vsub.s32 32, %v2720_v10  ;;  %v2725_v7 = vsub.s32 4294967266, %v2720_v10  ;;  %v1833_v45 = vshrl.u32 %v16976_v15, %v1832_v54 }
 0x2e8   : > { %v2722_v57 = vshll.u32 %v13035_v35, %v2720_v10  ;;  %vm1849_vm11 = vcmp.lt.s32.totalorder %v1830_v48, 1  ;;  %vm1850_vm13 = vcmp.lt.s32.totalorder %v1830_v48, 2  ;;  %vm1852_vm14 = vcmp.lt.s32.totalorder %v1830_v48, 4 }
 0x2e9   : > { %v2723_v21 = vshrl.u32 %v2705_v0, %v2721_v2  ;;  %v2726_v50 = vadd.s32 127, %v2725_v7  ;;  %v1854_v32 = vsel %vm1852_vm14, %v1842_v31, 2102212464  ;;  %v1857_v62 = vsel %vm1849_vm11, %v1836_v47, %v1839_v26 }
 0x2ea   : > { %vm1851_vm15 = vcmp.lt.s32.totalorder %v1830_v48, 3  ;;  %v1858_v60 = vsel %vm1852_vm14, %v1845_v6, 920167782  ;;  %v1861_v55 = vsel %vm1849_vm11, %v1839_v26, %v1842_v31  ;;  %v1862_v51 = vsel %vm1852_vm14, %v1848_v33, 1326507024 }
 0x2eb   : > { %v2724_v38 = vor.u32 %v2723_v21, %v2722_v57  ;;  %v2727_v42 = vshll.u32 %v2726_v50, 23  ;;  %v1853_v18 = vsel %vm1849_vm11, %v1833_v45, %v1836_v47  ;;  %v1859_v41 = vsel %vm1851_vm15, %v1842_v31, %v1858_v60 }
 0x2ec   : > { %v1855_v28 = vsel %vm1851_vm15, %v1839_v26, %v1854_v32  ;;  %v1860_v54 = vsel %vm1850_vm13, %v1857_v62, %v1859_v41  ;;  %v1863_v17 = vsel %vm1851_vm15, %v1845_v6, %v1862_v51  ;;  %v2867_v10 = vadd.s32 1, %v9849_v27 }
 0x2ed   : > { %v2728_v35 = vor.u32 4788187, %v2727_v42  ;;  %v2742_v16 = vadd.s32 3, %v2738_v13  ;;  %v1864_v2 = vsel %vm1850_vm13, %v1861_v55, %v1863_v17  ;;  %v2865_v7 = vor.u32 8388608, %v13062_v63 }
 0x2ee   : > { %v13085_v0 = vmul.u32.u64.low %v13055_v58, %v1864_v2  ;;  %v13086_v14 = vmul.u32.u64.high %v13055_v58, %v1864_v2, %v13085_v0  ;;  %v13089_v33 = vmul.u32.u64.low %v13055_v58, %v1860_v54  ;;  %v13090_v57 = vmul.u32.u64.high %v13055_v58, %v1860_v54, %v13089_v33 }
 0x2ef   : > { %v2729_v31 = vand.u32 2147483647, %v2728_v35  ;;  %v2731_v47 = vcvt.s32.f32 %v2724_v38  ;;  %v1856_v6 = vsel %vm1850_vm13, %v1853_v18, %v1855_v28  ;;  %vm2868_vm1 = vcmp.gt.s32.totalorder %v2867_v10, 0 }
 0x2f0   : > { %v10507_v27 = vpop.eup %10506  ;;  %v2869_v13 = vsel %vm2868_vm1, %v2867_v10, 0  ;;  %vm1705_vm2 = vcmp.eq.s32.totalorder %v13047_v36, 0  ;;  %vm1708_vm3 = vcmp.eq.s32.totalorder %v13047_v36, 2  ;;  %v13098_v21 = vmul.f32 %v13040_v44, %v17037_v43 }
 0x2f1   : > { %v10509_v26 = vpop.eup %10508  ;;  %v2732_v63 = vmul.f32 %v2731_v47, %v2729_v31  ;;  %v2871_v45 = vand.u32 31, %v2869_v13  ;;  %v13100_v50 = vand.u32 3, %v2742_v16  ;;  %v1872_v32 = vmul.u32 %v13055_v58, %v1856_v6 }
 0x2f2   : > { %vm1874_vm4 = vc.u32 %v13086_v14, %v13089_v33  ;;  %v1875_v48 = vadd.s32 1, %v13090_v57  ;;  %v13106_v55 = vshll.u32 %v2865_v7, 8  ;;  %v913_v51 = vmul.f32 %v13050_v46, %v17038_v29 }
 0x2f3   : > { %v2733_v62 = vxor.u32 2147483648, %v2732_v63  ;;  %v2872_v60 = vsub.s32 32, %v2871_v45  ;;  %v1706_v38 = vxor.u32 2147483648, %v10509_v26  ;;  %v1709_v42 = vxor.u32 2147483648, %v10507_v27 }
 0x2f4   : > { %v1876_v18 = vsel %vm1874_vm4, %v1875_v48, %v13090_v57  ;;  %v2870_v41 = vshrl.u32 %v2869_v13, 5  ;;  %v2874_v54 = vshll.u32 %v16976_v15, %v2871_v45  ;;  %v2877_v17 = vshll.u32 %v16972_v23, %v2871_v45 }
 0x2f5   : > { %v2734_v58 = vsel %vm2651_vm7, %v2733_v62, %v2732_v63  ;;  %v1877_v28 = vadd.s32 %v1876_v18, %v1872_v32  ;;  %vm1704_vm5 = vcmp.lt.s32.totalorder %v13047_v36, 2  ;;  %v2875_v35 = vshrl.u32 %v16972_v23, %v2872_v60 }
 0x2f6   : > { %v2737_v10 = vsel %vm13031_vm8, %v12803_v12, %v2734_v58  ;;  %v2878_v16 = vshrl.u32 %v16973_v34, %v2872_v60  ;;  %v2880_v2 = vshll.u32 %v16973_v34, %v2871_v45  ;;  %v2881_v0 = vshrl.u32 %v16974_v39, %v2872_v60 }
 0x2f7   : > { %10510 = vcosq.f32 %v2737_v10  ;;  %v1878_v7 = vadd.s32 536870912, %v1877_v28  ;;  %v2883_v57 = vshll.u32 %v16974_v39, %v2871_v45  ;;  %v2876_v31 = vor.u32 %v2875_v35, %v2874_v54 }
 0x2f8   : > { %10512 = vsinq.f32 %v2737_v10  ;;  %v2879_v47 = vor.u32 %v2878_v16, %v2877_v17  ;;  %v2884_v6 = vshrl.u32 %v16975_v24, %v2872_v60  ;;  %v2882_v4 = vor.u32 %v2881_v0, %v2880_v2 }
 0x2f9   : > { %v1879_v13 = vshrl.u32 %v1878_v7, 30  ;;  %v2886_v63 = vshll.u32 %v16975_v24, %v2871_v45  ;;  %v2887_v32 = vshrl.u32 %v16977_v52, %v2872_v60  ;;  %v1707_v48 = vsel %vm1705_vm2, %v10507_v27, %v1706_v38 }
 0x2fa   : > { %v1710_v62 = vsel %vm1708_vm3, %v1709_v42, %v10509_v26  ;;  %v2873_v18 = vshrl.u32 %v16976_v15, %v2872_v60  ;;  %v2885_v58 = vor.u32 %v2884_v6, %v2883_v57  ;;  %vm1701_vm6 = vweird.f32 %v12787_v59 }
 0x2fb   : > { %v1880_v54 = vshll.u32 %v1879_v13, 30  ;;  %v2888_v17 = vor.u32 %v2887_v32, %v2886_v63  ;;  %vm2889_vm7 = vcmp.lt.s32.totalorder %v2870_v41, 1  ;;  %vm2892_vm8 = vcmp.lt.s32.totalorder %v2870_v41, 4 }
 0x2fc   : > { %vm1819_vm10 = vcmp.lt.s32.totalorder %v12990_v49, 0  ;;  %vm2891_vm12 = vcmp.lt.s32.totalorder %v2870_v41, 3  ;;  %v2894_v45 = vsel %vm2892_vm8, %v2882_v4, 2102212464  ;;  %v2897_v10 = vsel %vm2889_vm7, %v2876_v31, %v2879_v47 }
 0x2fd   : > { %v2898_v27 = vsel %vm2892_vm8, %v2885_v58, 920167782  ;;  %v13136_v38 = vsub.s32 %v1877_v28, %v1880_v54  ;;  %vm2890_vm11 = vcmp.lt.s32.totalorder %v2870_v41, 2  ;;  %v791_v60 = vmul.f32 %v13040_v44, %v17039_v25 }
 0x2fe   : > { %v2899_v26 = vsel %vm2891_vm12, %v2882_v4, %v2898_v27  ;;  %vm2741_vm13 = vweird.f32 %v12803_v12  ;;  %v2893_v42 = vsel %vm2889_vm7, %v2873_v18, %v2876_v31  ;;  %v2895_v35 = vsel %vm2891_vm12, %v2879_v47, %v2894_v45 }
 0x2ff   : > { %v2900_v16 = vsel %vm2890_vm11, %v2897_v10, %v2899_v26  ;;  %v2901_v2 = vsel %vm2889_vm7, %v2879_v47, %v2882_v4  ;;  %v1711_v7 = vsel %vm1704_vm5, %v1707_v48, %v1710_v62  ;;  %v1883_v28 = vsub.s32 0, %v13136_v38 }
 0x300   : > { %v2902_v0 = vsel %vm2892_vm8, %v2888_v17, 1326507024  ;;  %v923_v57 = vmul.f32 %v13050_v46, %v17040_v53  ;;  %v13152_v63 = vmul.u32.u64.low %v13106_v55, %v2900_v16  ;;  %v13153_v31 = vmul.u32.u64.high %v13106_v55, %v2900_v16, %v13152_v63 }
 0x301   : > { %v2903_v6 = vsel %vm2891_vm12, %v2885_v58, %v2902_v0  ;;  %v963_v32 = vadd.f32 %v913_v51, %v13098_v21  ;;  %v10511_v47 = vpop.eup %10510  ;;  %v9810_v36 = vmin.u32 %v1883_v28, %v13136_v38  ;;  %v1903_v4 = vsub.s32 4, %v1879_v13 }
 0x302   : > { %v2896_v48 = vsel %vm2890_vm11, %v2893_v42, %v2895_v35  ;;  %v2904_v62 = vsel %vm2890_vm11, %v2901_v2, %v2903_v6  ;;  %v10513_v18 = vpop.eup %10512  ;;  %v2749_v54 = vxor.u32 2147483648, %v10511_v47  ;;  %vm2744_vm14 = vcmp.lt.s32.totalorder %v13100_v50, 2 }
 0x303   : > { %v13161_v17 = vmul.u32.u64.low %v13106_v55, %v2904_v62  ;;  %v13162_v58 = vmul.u32.u64.high %v13106_v55, %v2904_v62, %v13161_v17  ;;  %v13165_v45 = vadd.f32 %v10986_v9, %v963_v32  ;;  %v2746_v21 = vxor.u32 2147483648, %v10513_v18 }
 0x304   : > { %vm2748_vm15 = vcmp.eq.s32.totalorder %v13100_v50, 2  ;;  %v1885_v51 = vclz %v9810_v36  ;;  %v1712_v10 = vsel %vm1701_vm6, nan, %v1711_v7  ;;  %vm2745_vm1 = vcmp.eq.s32.totalorder %v13100_v50, 0 }
 0x305   : > { %v2750_v41 = vsel %vm2748_vm15, %v2749_v54, %v10513_v18  ;;  %v2915_v27 = vadd.s32 1, %v13153_v31  ;;  %v2747_v26 = vsel %vm2745_vm1, %v10511_v47, %v2746_v21  ;;  %v1904_v35 = vsel %vm1819_vm10, %v1903_v4, %v1879_v13 }
 0x306   : > { %v9811_v42 = vadd.s32 4294967294, %v1885_v51  ;;  %v2912_v16 = vmul.u32 %v13106_v55, %v2896_v48  ;;  %v2751_v2 = vsel %vm2744_vm14, %v2747_v26, %v2750_v41  ;;  %vm2914_vm2 = vc.u32 %v13162_v58, %v13152_v63 }
 0x307   : > { %v973_v28 = vadd.f32 %v923_v57, %v791_v60  ;;  %v1508_v59 = vand.u32 2139095040, %v13165_v45  ;;  %v2752_v50 = vsel %vm2741_vm13, nan, %v2751_v2  ;;  %v2916_v7 = vsel %vm2914_vm2, %v2915_v27, %v13153_v31 }
 0x308   : > { %vm9812_vm3 = vcmp.lt.s32.totalorder %v9811_v42, 0  ;;  %v16892_v0 = vand.u32 2147483647, %v13165_v45  ;;  %v13183_v6 = vpack.c.bf16 %v2752_v50, %v1712_v10  ;;  %v2917_v32 = vadd.s32 %v2916_v7, %v2912_v16 }
 0x309   : > { %v1888_v13 = vsel %vm9812_vm3, 0, %v9811_v42  ;;  %v1509_v55 = vshrl.u32 %v1508_v59, 23  ;;  %v17060_v47 = vand.u32 2147483647, %v12990_v49  ;;  %v1873_v12 = vadd.s32 %v13089_v33, %v13086_v14 }
 0x30a   : > { %17059 = vst [vmem:[#allocation25_spill] sm:$0xff] %v13183_v6  ;;  %v1889_v60 = vsub.s32 32, %v1888_v13  ;;  %v1893_v57 = vsub.s32 4294967266, %v1888_v13  ;;  %6501 = vmatprep.subr.bf16.mxu0 %v13183_v6  ;;  %v2918_v4 = vadd.s32 536870912, %v2917_v32  ;;  %v13197_v48 = vadd.f32 %v10984_v8, %v973_v28 }
 0x30b   : > { %vm13187_vm4 = vcmp.le.f32.partialorder %v17060_v47, 0.7853982  ;;  %v9797_v62 = vadd.s32 4294967169, %v1509_v55  ;;  %v1890_v18 = vshll.u32 %v13136_v38, %v1888_v13  ;;  %v1512_v21 = vand.u32 8388607, %v16892_v0 }
 0x30c   : > { %v1906_v31 = vsel %vm13187_vm4, 0, %v1904_v35  ;;  %v1891_v54 = vshrl.u32 %v1873_v12, %v1889_v60  ;;  %v1894_v17 = vadd.s32 127, %v1893_v57  ;;  %v2919_v14 = vshrl.u32 %v2918_v4, 30 }
 0x30d   : > { %v1515_v33 = vadd.s32 1, %v9797_v62  ;;  %v1910_v41 = vadd.s32 3, %v1906_v31  ;;  %v2548_v42 = vand.u32 2139095040, %v13197_v48  ;;  %v1513_v16 = vor.u32 8388608, %v1512_v21 }
 0x30e   : > { %v1892_v51 = vor.u32 %v1891_v54, %v1890_v18  ;;  %v1895_v10 = vshll.u32 %v1894_v17, 23  ;;  %v2920_v27 = vshll.u32 %v2919_v14, 30  ;;  %v2943_v26 = vsub.s32 4, %v2919_v14 }
 0x30f   : > { %vm1516_vm5 = vcmp.gt.s32.totalorder %v1515_v33, 0  ;;  %v16891_v38 = vand.u32 2147483647, %v13197_v48  ;;  %vm2859_vm6 = vcmp.lt.s32.totalorder %v13011_v37, 0  ;;  %v17063_v55 = vand.u32 2147483647, %v13011_v37 }
 0x310   : > { %v1896_v35 = vor.u32 4788187, %v1895_v10  ;;  %v1517_v2 = vsel %vm1516_vm5, %v1515_v33, 0  ;;  %v13205_v28 = vsub.s32 %v2917_v32, %v2920_v27  ;;  %v1899_v13 = vcvt.s32.f32 %v1892_v51 }
 0x311   : > { %v1519_v59 = vand.u32 31, %v1517_v2  ;;  %vm13210_vm7 = vcmp.le.f32.partialorder %v17063_v55, 0.7853982  ;;  %v13216_v12 = vsel %vm2859_vm6, %v2943_v26, %v2919_v14  ;;  %v13218_v60 = vand.u32 3, %v1910_v41 }
 0x312   : > { %v1897_v7 = vand.u32 2147483647, %v1896_v35  ;;  %v2923_v32 = vsub.s32 0, %v13205_v28  ;;  %v2549_v31 = vshrl.u32 %v2548_v42, 23  ;;  %v2913_v62 = vadd.s32 %v13152_v63, %v13162_v58 }
 0x313   : > { %v1520_v57 = vsub.s32 32, %v1519_v59  ;;  %v13223_v18 = vshll.u32 %v1513_v16, 8  ;;  %v13227_v54 = vand.u32 8388607, %v16891_v38  ;;  %v2946_v21 = vsel %vm13210_vm7, 0, %v13216_v12 }
 0x314   : > { %v1900_v4 = vmul.f32 %v1899_v13, %v1897_v7  ;;  %v9850_v17 = vmin.u32 %v2923_v32, %v13205_v28  ;;  %v1518_v14 = vshrl.u32 %v1517_v2, 5  ;;  %v1522_v27 = vshll.u32 %v16976_v15, %v1519_v59 }
 0x315   : > { %v1523_v33 = vshrl.u32 %v16972_v23, %v1520_v57  ;;  %v1526_v10 = vshrl.u32 %v16973_v34, %v1520_v57  ;;  %v1529_v63 = vshrl.u32 %v16974_v39, %v1520_v57  ;;  %v1532_v58 = vshrl.u32 %v16975_v24, %v1520_v57 }
 0x316   : > { %v1901_v51 = vxor.u32 2147483648, %v1900_v4  ;;  %v2925_v41 = vclz %v9850_v17  ;;  %v1528_v26 = vshll.u32 %v16973_v34, %v1519_v59  ;;  %v9837_v42 = vadd.s32 4294967169, %v2549_v31 }
 0x317   : > { %v1521_v16 = vshrl.u32 %v16976_v15, %v1520_v57  ;;  %v1525_v2 = vshll.u32 %v16972_v23, %v1519_v59  ;;  %v1531_v7 = vshll.u32 %v16974_v39, %v1519_v59  ;;  %v1524_v12 = vor.u32 %v1523_v33, %v1522_v27 }
 0x318   : > { %v1902_v35 = vsel %vm1819_vm10, %v1901_v51, %v1900_v4  ;;  %v9851_v55 = vadd.s32 4294967294, %v2925_v41  ;;  %v1530_v32 = vor.u32 %v1529_v63, %v1528_v26  ;;  %v1534_v31 = vshll.u32 %v16975_v24, %v1519_v59 }
 0x319   : > { %v1905_v13 = vsel %vm13187_vm4, %v12990_v49, %v1902_v35  ;;  %v1527_v17 = vor.u32 %v1526_v10, %v1525_v2  ;;  %v1533_v38 = vor.u32 %v1532_v58, %v1531_v7  ;;  %v1535_v0 = vshrl.u32 %v16977_v52, %v1520_v57 }
 0x31a   : > { %10514 = vcosq.f32 %v1905_v13  ;;  %vm9852_vm8 = vcmp.lt.s32.totalorder %v9851_v55, 0  ;;  %vm1537_vm10 = vcmp.lt.s32.totalorder %v1518_v14, 1  ;;  %vm1538_vm12 = vcmp.lt.s32.totalorder %v1518_v14, 2 }
 0x31b   : > { %10516 = vsinq.f32 %v1905_v13  ;;  %v2928_v4 = vsel %vm9852_vm8, 0, %v9851_v55  ;;  %v1536_v51 = vor.u32 %v1535_v0, %v1534_v31  ;;  %vm1540_vm11 = vcmp.lt.s32.totalorder %v1518_v14, 4 }
 0x31c   : > { %v2929_v50 = vsub.s32 32, %v2928_v4  ;;  %v2933_v36 = vsub.s32 4294967266, %v2928_v4  ;;  %vm1539_vm13 = vcmp.lt.s32.totalorder %v1518_v14, 3  ;;  %v1542_v41 = vsel %vm1540_vm11, %v1530_v32, 2102212464 }
 0x31d   : > { %v2930_v33 = vshll.u32 %v13205_v28, %v2928_v4  ;;  %v1545_v10 = vsel %vm1537_vm10, %v1524_v12, %v1527_v17  ;;  %v1546_v63 = vsel %vm1540_vm11, %v1533_v38, 920167782  ;;  %v1549_v59 = vsel %vm1537_vm10, %v1527_v17, %v1530_v32 }
 0x31e   : > { %v2931_v57 = vshrl.u32 %v2913_v62, %v2929_v50  ;;  %v2934_v58 = vadd.s32 127, %v2933_v36  ;;  %v1547_v27 = vsel %vm1539_vm13, %v1530_v32, %v1546_v63  ;;  %v1550_v26 = vsel %vm1540_vm11, %v1536_v51, 1326507024 }
 0x31f   : > { %v1541_v35 = vsel %vm1537_vm10, %v1521_v16, %v1524_v12  ;;  %v1548_v0 = vsel %vm1538_vm12, %v1545_v10, %v1547_v27  ;;  %v1551_v2 = vsel %vm1539_vm13, %v1533_v38, %v1550_v26  ;;  %v2555_v7 = vadd.s32 1, %v9837_v42  ;;  %v10648_v10 = vld [vmem:[%s10942_s5] ss:$2 sm:$0xff] }
 0x320   : > { %v2932_v13 = vor.u32 %v2931_v57, %v2930_v33  ;;  %v2935_v28 = vshll.u32 %v2934_v58, 23  ;;  %v1543_v55 = vsel %vm1539_vm13, %v1527_v17, %v1542_v41  ;;  %v1552_v31 = vsel %vm1538_vm12, %v1549_v59, %v1551_v2 }
 0x321   : > { %v13259_v50 = vmul.u32.u64.low %v13223_v18, %v1552_v31  ;;  %v13260_v62 = vmul.u32.u64.high %v13223_v18, %v1552_v31, %v13259_v50  ;;  %v13263_v32 = vmul.u32.u64.low %v13223_v18, %v1548_v0  ;;  %v13264_v4 = vmul.u32.u64.high %v13223_v18, %v1548_v0, %v13263_v32 }
 0x322   : > { %v2936_v16 = vor.u32 4788187, %v2935_v28  ;;  %v2553_v38 = vor.u32 8388608, %v13227_v54  ;;  %vm2556_vm14 = vcmp.gt.s32.totalorder %v2555_v7, 0  ;;  %v2950_v42 = vadd.s32 3, %v2946_v21 }
 0x323   : > { %v1544_v12 = vsel %vm1538_vm12, %v1541_v35, %v1543_v55  ;;  %v2557_v17 = vsel %vm2556_vm14, %v2555_v7, 0  ;;  %v2939_v41 = vcvt.s32.f32 %v2932_v13  ;;  %v17066_v63 = vsub.s32 6, %v17035_v56  ;;  %v10649_v21 = vld [vmem:[%s10942_s5 + $0x1] ss:$2 sm:$0xff] }
 0x324   : > { %v10515_v51 = vpop.eup %10514  ;;  %v2937_v36 = vand.u32 2147483647, %v2936_v16  ;;  %v2559_v33 = vand.u32 31, %v2557_v17  ;;  %vm1916_vm15 = vcmp.eq.s32.totalorder %v13218_v60, 2  ;;  %vm1562_vm1 = vc.u32 %v13260_v62, %v13263_v32 }
 0x325   : > { %v13272_v59 = vrot.slane %v10648_v10, %v17066_v63  ;;  %v10517_v57 = vpop.eup %10516  ;;  %v1563_v54 = vadd.s32 1, %v13264_v4  ;;  %v17067_v14 = vmov %v17066_v63  ;;  %v1560_v26 = vmul.u32 %v13223_v18, %v1544_v12 }
 0x326   : > { %v13281_v58 = vrot.slane %v10649_v21, %v17067_v14  ;;  %v2940_v27 = vmul.f32 %v2939_v41, %v2937_v36  ;;  %v2560_v35 = vsub.s32 32, %v2559_v33  ;;  %v13284_v0 = vshll.u32 %v2553_v38, 8 }
 0x327   : > { %v1917_v2 = vxor.u32 2147483648, %v10515_v51  ;;  %v13286_v7 = vand.u32 3, %v2950_v42  ;;  %v1564_v13 = vsel %vm1562_vm1, %v1563_v54, %v13264_v4  ;;  %v13289_v28 = vshrl.u32 %v2557_v17, 5 }
 0x328   : > { %vm1913_vm2 = vcmp.eq.s32.totalorder %v13218_v60, 0  ;;  %v2941_v55 = vxor.u32 2147483648, %v2940_v27  ;;  %v1565_v31 = vadd.s32 %v1564_v13, %v1560_v26  ;;  %v2562_v56 = vshll.u32 %v16976_v15, %v2559_v33 }
 0x329   : > { %v2565_v50 = vshll.u32 %v16972_v23, %v2559_v33  ;;  %v2563_v18 = vshrl.u32 %v16972_v23, %v2560_v35  ;;  %v2566_v16 = vshrl.u32 %v16973_v34, %v2560_v35  ;;  %v2568_v38 = vshll.u32 %v16973_v34, %v2559_v33 }
 0x32a   : > { %v2569_v42 = vshrl.u32 %v16974_v39, %v2560_v35  ;;  %v2942_v4 = vsel %vm2859_vm6, %v2941_v55, %v2940_v27  ;;  %v1566_v12 = vadd.s32 536870912, %v1565_v31  ;;  %v2571_v17 = vshll.u32 %v16974_v39, %v2559_v33 }
 0x32b   : > { %v2572_v36 = vshrl.u32 %v16975_v24, %v2560_v35  ;;  %v2945_v41 = vsel %vm13210_vm7, %v13011_v37, %v2942_v4  ;;  %v2564_v10 = vor.u32 %v2563_v18, %v2562_v56  ;;  %v2567_v63 = vor.u32 %v2566_v16, %v2565_v50 }
 0x32c   : > { %v783_v54 = vmul.f32 %v13272_v59, %v17037_v43  ;;  %10518 = vcosq.f32 %v2945_v41  ;;  %v13307_v21 = vshrl.u32 %v1566_v12, 30  ;;  %v2570_v14 = vor.u32 %v2569_v42, %v2568_v38 }
 0x32d   : > { %v2573_v26 = vor.u32 %v2572_v36, %v2571_v17  ;;  %v1914_v27 = vxor.u32 2147483648, %v10517_v57  ;;  %10520 = vsinq.f32 %v2945_v41  ;;  %v2574_v13 = vshll.u32 %v16975_v24, %v2559_v33 }
 0x32e   : > { %v2575_v55 = vshrl.u32 %v16977_v52, %v2560_v35  ;;  %v1918_v47 = vsel %vm1916_vm15, %v1917_v2, %v10517_v57  ;;  %v1568_v56 = vshll.u32 %v13307_v21, 30  ;;  %vm2577_vm3 = vcmp.lt.s32.totalorder %v13289_v28, 1 }
 0x32f   : > { %v915_v50 = vmul.f32 %v13281_v58, %v17038_v29  ;;  %vm1909_vm4 = vweird.f32 %v12990_v49  ;;  %v2561_v18 = vshrl.u32 %v16976_v15, %v2560_v35  ;;  %vm2580_vm5 = vcmp.lt.s32.totalorder %v13289_v28, 4 }
 0x330   : > { %v2576_v16 = vor.u32 %v2575_v55, %v2574_v13  ;;  %v2585_v33 = vsel %vm2577_vm3, %v2564_v10, %v2567_v63  ;;  %v13322_v38 = vsub.s32 %v1565_v31, %v1568_v56  ;;  %vm2579_vm6 = vcmp.lt.s32.totalorder %v13289_v28, 3 }
 0x331   : > { %v2582_v57 = vsel %vm2580_vm5, %v2570_v14, 2102212464  ;;  %v2586_v2 = vsel %vm2580_vm5, %v2573_v26, 920167782  ;;  %v1915_v42 = vsel %vm1913_vm2, %v10515_v51, %v1914_v27  ;;  %vm2578_vm7 = vcmp.lt.s32.totalorder %v13289_v28, 2 }
 0x332   : > { %v2587_v4 = vsel %vm2579_vm6, %v2570_v14, %v2586_v2  ;;  %v2589_v35 = vsel %vm2577_vm3, %v2567_v63, %v2570_v14  ;;  %v1571_v12 = vsub.s32 0, %v13322_v38  ;;  %v2581_v17 = vsel %vm2577_vm3, %v2561_v18, %v2564_v10 }
 0x333   : > { %v2588_v31 = vsel %vm2578_vm7, %v2585_v33, %v2587_v4  ;;  %v2590_v36 = vsel %vm2580_vm5, %v2576_v16, 1326507024  ;;  %vm2949_vm8 = vweird.f32 %v13011_v37  ;;  %v2583_v41 = vsel %vm2579_vm6, %v2567_v63, %v2582_v57 }
 0x334   : > { %v2591_v13 = vsel %vm2579_vm6, %v2573_v26, %v2590_v36  ;;  %v13337_v51 = vmul.u32.u64.low %v13284_v0, %v2588_v31  ;;  %v13338_v27 = vmul.u32.u64.high %v13284_v0, %v2588_v31, %v13337_v51  ;;  %vm1912_vm10 = vcmp.lt.s32.totalorder %v13218_v60, 2 }
 0x335   : > { %vm2952_vm12 = vcmp.lt.s32.totalorder %v13286_v7, 2  ;;  %v9798_v14 = vmin.u32 %v1571_v12, %v13322_v38  ;;  %v2592_v10 = vsel %vm2578_vm7, %v2589_v35, %v2591_v13  ;;  %v1919_v55 = vsel %vm1912_vm10, %v1915_v42, %v1918_v47 }
 0x336   : > { %vm2953_vm11 = vcmp.eq.s32.totalorder %v13286_v7, 0  ;;  %v13348_v63 = vmul.u32.u64.low %v13284_v0, %v2592_v10  ;;  %v13349_v26 = vmul.u32.u64.high %v13284_v0, %v2592_v10, %v13348_v63  ;;  %v10519_v56 = vpop.eup %10518  ;;  %v2584_v16 = vsel %vm2578_vm7, %v2581_v17, %v2583_v41 }
 0x337   : > { %v1573_v18 = vclz %v9798_v14  ;;  %v793_v60 = vmul.f32 %v13272_v59, %v17039_v25  ;;  %v925_v33 = vmul.f32 %v13281_v58, %v17040_v53  ;;  %v10521_v57 = vpop.eup %10520  ;;  %vm2956_vm13 = vcmp.eq.s32.totalorder %v13286_v7, 2 }
 0x338   : > { %v2957_v47 = vxor.u32 2147483648, %v10519_v56  ;;  %v2603_v2 = vadd.s32 1, %v13338_v27  ;;  %v965_v42 = vadd.f32 %v915_v50, %v783_v54  ;;  %v1920_v4 = vsel %vm1909_vm4, nan, %v1919_v55 }
 0x339   : > { %v2954_v35 = vxor.u32 2147483648, %v10521_v57  ;;  %v1561_v28 = vadd.s32 %v13263_v32, %v13260_v62  ;;  %v9799_v12 = vadd.s32 4294967294, %v1573_v18  ;;  %v2600_v31 = vmul.u32 %v13284_v0, %v2584_v16 }
 0x33a   : > { %v2958_v17 = vsel %vm2956_vm13, %v2957_v47, %v10521_v57  ;;  %vm2602_vm14 = vc.u32 %v13349_v26, %v13337_v51  ;;  %v13367_v36 = vadd.f32 %v10986_v9, %v965_v42  ;;  %v975_v50 = vadd.f32 %v925_v33, %v793_v60 }
 0x33b   : > { %v2955_v54 = vsel %vm2953_vm11, %v10519_v56, %v2954_v35  ;;  %vm9800_vm15 = vcmp.lt.s32.totalorder %v9799_v12, 0  ;;  %v2604_v49 = vsel %vm2602_vm14, %v2603_v2, %v13338_v27  ;;  %v1591_v41 = vsub.s32 4, %v13307_v21 }
 0x33c   : > { %v2959_v62 = vsel %vm2952_vm12, %v2955_v54, %v2958_v17  ;;  %v1576_v32 = vsel %vm9800_vm15, 0, %v9799_v12  ;;  %v2605_v0 = vadd.s32 %v2604_v49, %v2600_v31  ;;  %v13378_v55 = vadd.f32 %v10984_v8, %v975_v50 }
 0x33d   : > { %v2960_v13 = vsel %vm2949_vm8, nan, %v2959_v62  ;;  %v1577_v14 = vsub.s32 32, %v1576_v32  ;;  %v1581_v10 = vsub.s32 4294967266, %v1576_v32  ;;  %v16894_v27 = vand.u32 2147483647, %v13367_v36 }
 0x33e   : > { %v13380_v63 = vpack.c.bf16 %v2960_v13, %v1920_v4  ;;  %v2606_v56 = vadd.s32 536870912, %v2605_v0  ;;  %v1716_v7 = vand.u32 2139095040, %v13367_v36  ;;  %v1578_v18 = vshll.u32 %v13322_v38, %v1576_v32 }
 0x33f   : > { %v1579_v16 = vshrl.u32 %v1561_v28, %v1577_v14  ;;  %v1582_v60 = vadd.s32 127, %v1581_v10  ;;  %vm1507_vm1 = vcmp.lt.s32.totalorder %v13165_v45, 0  ;;  %v2756_v2 = vand.u32 2139095040, %v13378_v55 }
 0x340   : > { %17068 = vst [vmem:[#allocation26_spill] sm:$0xff] %v13380_v63  ;;  %6554 = vmatprep.subr.bf16.mxu1 %v13380_v63  ;;  %v2607_v37 = vshrl.u32 %v2606_v56, 30  ;;  %v1717_v33 = vshrl.u32 %v1716_v7, 23  ;;  %v1592_v42 = vsel %vm1507_vm1, %v1591_v41, %v13307_v21  ;;  %v1720_v38 = vand.u32 8388607, %v16894_v27 }
 0x341   : > { %v1580_v57 = vor.u32 %v1579_v16, %v1578_v18  ;;  %v1583_v47 = vshll.u32 %v1582_v60, 23  ;;  %v16893_v17 = vand.u32 2147483647, %v13378_v55  ;;  %v2757_v31 = vshrl.u32 %v2756_v2, 23 }
 0x342   : > { %v2608_v4 = vshll.u32 %v2607_v37, 30  ;;  %v9805_v35 = vadd.s32 4294967169, %v1717_v33  ;;  %v2631_v12 = vsub.s32 4, %v2607_v37  ;;  %v17069_v54 = vand.u32 2147483647, %v13165_v45 }
 0x343   : > { %v1584_v28 = vor.u32 4788187, %v1583_v47  ;;  %v1587_v32 = vcvt.s32.f32 %v1580_v57  ;;  %vm2547_vm3 = vcmp.lt.s32.totalorder %v13197_v48, 0  ;;  %v1721_v14 = vor.u32 8388608, %v1720_v38 }
 0x344   : > { %vm13396_vm2 = vcmp.le.f32.partialorder %v17069_v54, 0.7853982  ;;  %v13400_v50 = vsub.s32 %v2605_v0, %v2608_v4  ;;  %v1723_v62 = vadd.s32 1, %v9805_v35  ;;  %v9845_v10 = vadd.s32 4294967169, %v2757_v31 }
 0x345   : > { %v1585_v21 = vand.u32 2147483647, %v1584_v28  ;;  %v1594_v41 = vsel %vm13396_vm2, 0, %v1592_v42  ;;  %v13408_v7 = vsel %vm2547_vm3, %v2631_v12, %v2607_v37  ;;  %v13412_v18 = vand.u32 8388607, %v16893_v17 }
 0x346   : > { %v2611_v13 = vsub.s32 0, %v13400_v50  ;;  %vm1724_vm4 = vcmp.gt.s32.totalorder %v1723_v62, 0  ;;  %v17072_v16 = vand.u32 2147483647, %v13197_v48  ;;  %v13421_v2 = vadd.s32 3, %v1594_v41 }
 0x347   : > { %v1588_v56 = vmul.f32 %v1587_v32, %v1585_v21  ;;  %v1725_v0 = vsel %vm1724_vm4, %v1723_v62, 0  ;;  %v2601_v37 = vadd.s32 %v13337_v51, %v13349_v26  ;;  %v13427_v42 = vmul.f32 %v12747_v40, %v10978_v3 }
 0x348   : > { %vm13416_vm5 = vcmp.le.f32.partialorder %v17072_v16, 0.7853982  ;;  %v9838_v33 = vmin.u32 %v2611_v13, %v13400_v50  ;;  %v1727_v57 = vand.u32 31, %v1725_v0  ;;  %v13432_v38 = vshll.u32 %v1721_v14, 8 }
 0x349   : > { %v1589_v47 = vxor.u32 2147483648, %v1588_v56  ;;  %v2634_v35 = vsel %vm13416_vm5, 0, %v13408_v7  ;;  %v2763_v28 = vadd.s32 1, %v9845_v10  ;;  %v1726_v31 = vshrl.u32 %v1725_v0, 5 }
 0x34a   : > { %v2613_v4 = vclz %v9838_v33  ;;  %v1728_v54 = vsub.s32 32, %v1727_v57  ;;  %v1730_v21 = vshll.u32 %v16976_v15, %v1727_v57  ;;  %v1733_v32 = vshll.u32 %v16972_v23, %v1727_v57 }
 0x34b   : > { %v1590_v12 = vsel %vm1507_vm1, %v1589_v47, %v1588_v56  ;;  %v1736_v14 = vshll.u32 %v16973_v34, %v1727_v57  ;;  %v1739_v10 = vshll.u32 %v16974_v39, %v1727_v57  ;;  %vm2764_vm7 = vcmp.gt.s32.totalorder %v2763_v28, 0 }
 0x34c   : > { %v1593_v51 = vsel %vm13396_vm2, %v13165_v45, %v1590_v12  ;;  %v9839_v26 = vadd.s32 4294967294, %v2613_v4  ;;  %v1731_v41 = vshrl.u32 %v16972_v23, %v1728_v54  ;;  %v1734_v13 = vshrl.u32 %v16973_v34, %v1728_v54 }
 0x34d   : > { %10522 = vcosq.f32 %v1593_v51  ;;  %v1737_v56 = vshrl.u32 %v16974_v39, %v1728_v54  ;;  %v1740_v49 = vshrl.u32 %v16975_v24, %v1728_v54  ;;  %v1729_v0 = vshrl.u32 %v16976_v15, %v1728_v54 }
 0x34e   : > { %vm9840_vm6 = vcmp.lt.s32.totalorder %v9839_v26, 0  ;;  %v1732_v16 = vor.u32 %v1731_v41, %v1730_v21  ;;  %v1735_v33 = vor.u32 %v1734_v13, %v1733_v32  ;;  %10524 = vsinq.f32 %v1593_v51 }
 0x34f   : > { %v2616_v7 = vsel %vm9840_vm6, 0, %v9839_v26  ;;  %v1738_v12 = vor.u32 %v1737_v56, %v1736_v14  ;;  %v1741_v27 = vor.u32 %v1740_v49, %v1739_v10  ;;  %v1742_v62 = vshll.u32 %v16975_v24, %v1727_v57 }
 0x350   : > { %v2617_v47 = vsub.s32 32, %v2616_v7  ;;  %v2621_v4 = vsub.s32 4294967266, %v2616_v7  ;;  %v2618_v17 = vshll.u32 %v13400_v50, %v2616_v7  ;;  %v1743_v63 = vshrl.u32 %v16977_v52, %v1728_v54 }
 0x351   : > { %vm1745_vm8 = vcmp.lt.s32.totalorder %v1726_v31, 1  ;;  %vm1748_vm10 = vcmp.lt.s32.totalorder %v1726_v31, 4  ;;  %vm1746_vm12 = vcmp.lt.s32.totalorder %v1726_v31, 2  ;;  %vm1747_vm11 = vcmp.lt.s32.totalorder %v1726_v31, 3 }
 0x352   : > { %v2619_v6 = vshrl.u32 %v2601_v37, %v2617_v47  ;;  %v2622_v8 = vadd.s32 127, %v2621_v4  ;;  %v1744_v26 = vor.u32 %v1743_v63, %v1742_v62  ;;  %v1750_v9 = vsel %vm1748_vm10, %v1738_v12, 2102212464 }
 0x353   : > { %v1753_v21 = vsel %vm1745_vm8, %v1732_v16, %v1735_v33  ;;  %v1754_v41 = vsel %vm1748_vm10, %v1741_v27, 920167782  ;;  %v1749_v13 = vsel %vm1745_vm8, %v1729_v0, %v1732_v16  ;;  %v1757_v50 = vsel %vm1745_vm8, %v1735_v33, %v1738_v12 }
 0x354   : > { %v2620_v32 = vor.u32 %v2619_v6, %v2618_v17  ;;  %v2623_v51 = vshll.u32 %v2622_v8, 23  ;;  %v1755_v14 = vsel %vm1747_vm11, %v1738_v12, %v1754_v41  ;;  %v1758_v10 = vsel %vm1748_vm10, %v1744_v26, 1326507024  ;;  %v17075_v26 = vld [vmem:[#allocation9_spill] sm:$0xff] }
 0x355   : > { %v1751_v57 = vsel %vm1747_vm11, %v1735_v33, %v1750_v9  ;;  %v1756_v54 = vsel %vm1746_vm12, %v1753_v21, %v1755_v14  ;;  %v1759_v37 = vsel %vm1747_vm11, %v1741_v27, %v1758_v10  ;;  %v2638_v49 = vadd.s32 3, %v2634_v35 }
 0x356   : > { %v2624_v56 = vor.u32 4788187, %v2623_v51  ;;  %v1760_v7 = vsel %vm1746_vm12, %v1757_v50, %v1759_v37  ;;  %v13455_v63 = vmul.u32.u64.low %v13432_v38, %v1756_v54  ;;  %v13456_v62 = vmul.u32.u64.high %v13432_v38, %v1756_v54, %v13455_v63 }
 0x357   : > { %v13459_v8 = vpop.eup %10522  ;;  %v2627_v17 = vcvt.s32.f32 %v2620_v32  ;;  %v13462_v0 = vmul.u32.u64.low %v13432_v38, %v1760_v7  ;;  %v13463_v16 = vmul.u32.u64.high %v13432_v38, %v1760_v7, %v13462_v0  ;;  %v1752_v9 = vsel %vm1746_vm12, %v1749_v13, %v1751_v57 }
 0x358   : > { %v2625_v6 = vand.u32 2147483647, %v2624_v56  ;;  %v2765_v27 = vsel %vm2764_vm7, %v2763_v28, 0  ;;  %v944_v35 = vmul.f32 %v12747_v40, %v10976_v1  ;;  %v10525_v33 = vpop.eup %10524  ;;  %v13470_v47 = vand.u32 3, %v13421_v2  ;;  %v17077_v28 = vld [vmem:[#allocation8_spill] sm:$0xff] }
 0x359   : > { %v2767_v12 = vand.u32 31, %v2765_v27  ;;  %v802_v21 = vmul.f32 %v12729_v11, %v17075_v26  ;;  %v13474_v32 = vand.u32 3, %v2638_v49  ;;  %v1771_v51 = vadd.s32 1, %v13456_v62 }
 0x35a   : > { %v2628_v4 = vmul.f32 %v2627_v17, %v2625_v6  ;;  %v17076_v31 = vor.u32 8388608, %v13412_v18  ;;  %v812_v13 = vmul.f32 %v12729_v11, %v17077_v28  ;;  %v1768_v2 = vmul.u32 %v13432_v38, %v1752_v9 }
 0x35b   : > { %vm1770_vm13 = vc.u32 %v13463_v16, %v13455_v63  ;;  %v984_v50 = vadd.f32 %v13427_v42, %v802_v21  ;;  %v13488_v56 = vshrl.u32 %v2765_v27, 5  ;;  %v2768_v57 = vsub.s32 32, %v2767_v12 }
 0x35c   : > { %v13479_v41 = vshll.u32 %v17076_v31, 8  ;;  %v2629_v14 = vxor.u32 2147483648, %v2628_v4  ;;  %v1772_v10 = vsel %vm1770_vm13, %v1771_v51, %v13456_v62  ;;  %v13490_v54 = vadd.f32 %v944_v35, %v812_v13 }
 0x35d   : > { %vm1601_vm14 = vcmp.eq.s32.totalorder %v13470_v47, 0  ;;  %vm1604_vm15 = vcmp.eq.s32.totalorder %v13470_v47, 2  ;;  %v1773_v38 = vadd.s32 %v1772_v10, %v1768_v2  ;;  %v2770_v37 = vshll.u32 %v16976_v15, %v2767_v12 }
 0x35e   : > { %v2630_v18 = vsel %vm2547_vm3, %v2629_v14, %v2628_v4  ;;  %v2773_v49 = vshll.u32 %v16972_v23, %v2767_v12  ;;  %v2771_v7 = vshrl.u32 %v16972_v23, %v2768_v57  ;;  %v2774_v62 = vshrl.u32 %v16973_v34, %v2768_v57 }
 0x35f   : > { %v2633_v42 = vsel %vm13416_vm5, %v13197_v48, %v2630_v18  ;;  %v2776_v6 = vshll.u32 %v16973_v34, %v2767_v12  ;;  %v1774_v17 = vadd.s32 536870912, %v1773_v38  ;;  %v2777_v0 = vshrl.u32 %v16974_v39, %v2768_v57 }
 0x360   : > { %10526 = vcosq.f32 %v2633_v42  ;;  %v2779_v9 = vshll.u32 %v16974_v39, %v2767_v12  ;;  %vm1600_vm1 = vcmp.lt.s32.totalorder %v13470_v47, 2  ;;  %v2772_v27 = vor.u32 %v2771_v7, %v2770_v37 }
 0x361   : > { %10528 = vsinq.f32 %v2633_v42  ;;  %v2775_v35 = vor.u32 %v2774_v62, %v2773_v49  ;;  %v2780_v60 = vshrl.u32 %v16975_v24, %v2768_v57  ;;  %v13508_v4 = vshrl.u32 %v1774_v17, 30 }
 0x362   : > { %v2778_v21 = vor.u32 %v2777_v0, %v2776_v6  ;;  %v2782_v51 = vshll.u32 %v16975_v24, %v2767_v12  ;;  %v2783_v31 = vshrl.u32 %v16977_v52, %v2768_v57  ;;  %v1602_v13 = vxor.u32 2147483648, %v10525_v33 }
 0x363   : > { %v1605_v14 = vxor.u32 2147483648, %v13459_v8  ;;  %v2781_v2 = vor.u32 %v2780_v60, %v2779_v9  ;;  %v13514_v10 = vadd.f32 %v11685_v30, %v984_v50  ;;  %v1776_v18 = vshll.u32 %v13508_v4, 30 }
 0x364   : > { %v2784_v37 = vor.u32 %v2783_v31, %v2782_v51  ;;  %vm2785_vm2 = vcmp.lt.s32.totalorder %v13488_v56, 1  ;;  %vm2788_vm3 = vcmp.lt.s32.totalorder %v13488_v56, 4  ;;  %vm1597_vm4 = vweird.f32 %v13165_v45 }
 0x365   : > { %vm2787_vm5 = vcmp.lt.s32.totalorder %v13488_v56, 3  ;;  %v2790_v12 = vsel %vm2788_vm3, %v2778_v21, 2102212464  ;;  %v2793_v49 = vsel %vm2785_vm2, %v2772_v27, %v2775_v35  ;;  %v2794_v50 = vsel %vm2788_vm3, %v2781_v2, 920167782 }
 0x366   : > { %vm2640_vm6 = vcmp.lt.s32.totalorder %v13474_v32, 2  ;;  %v13528_v42 = vsub.s32 %v1773_v38, %v1776_v18  ;;  %v2769_v7 = vshrl.u32 %v16976_v15, %v2768_v57  ;;  %vm2786_vm7 = vcmp.lt.s32.totalorder %v13488_v56, 2 }
 0x367   : > { %v2795_v62 = vsel %vm2787_vm5, %v2778_v21, %v2794_v50  ;;  %v1603_v6 = vsel %vm1601_vm14, %v13459_v8, %v1602_v13  ;;  %v1606_v17 = vsel %vm1604_vm15, %v1605_v14, %v10525_v33  ;;  %vm2637_vm8 = vweird.f32 %v13197_v48 }
 0x368   : > { %vm1715_vm10 = vcmp.lt.s32.totalorder %v13367_v36, 0  ;;  %v2796_v38 = vsel %vm2786_vm7, %v2793_v49, %v2795_v62  ;;  %v2797_v57 = vsel %vm2785_vm2, %v2775_v35, %v2778_v21  ;;  %v1779_v0 = vsub.s32 0, %v13528_v42 }
 0x369   : > { %v2789_v9 = vsel %vm2785_vm2, %v2769_v7, %v2772_v27  ;;  %v2791_v8 = vsel %vm2787_vm5, %v2775_v35, %v2790_v12  ;;  %v2798_v33 = vsel %vm2788_vm3, %v2784_v37, 1326507024  ;;  %v16903_v21 = vand.u32 2147483647, %v13514_v10 }
 0x36a   : > { %v2799_v60 = vsel %vm2787_vm5, %v2781_v2, %v2798_v33  ;;  %v13555_v51 = vmul.u32.u64.low %v13479_v41, %v2796_v38  ;;  %v13556_v31 = vmul.u32.u64.high %v13479_v41, %v2796_v38, %v13555_v51  ;;  %v10527_v13 = vpop.eup %10526  ;;  %v1607_v14 = vsel %vm1600_vm1, %v1603_v6, %v1606_v17 }
 0x36b   : > { %v17078_v27 = vand.u32 2147483647, %v13367_v36  ;;  %v9806_v18 = vmin.u32 %v1779_v0, %v13528_v42  ;;  %v2800_v2 = vsel %vm2786_vm7, %v2797_v57, %v2799_v60  ;;  %v3692_v37 = vand.u32 2139095040, %v13514_v10  ;;  %v10529_v12 = vpop.eup %10528 }
 0x36c   : > { %v2645_v49 = vxor.u32 2147483648, %v10527_v13  ;;  %v2792_v50 = vsel %vm2786_vm7, %v2789_v9, %v2791_v8  ;;  %v13574_v47 = vmul.u32.u64.low %v13479_v41, %v2800_v2  ;;  %v13575_v7 = vmul.u32.u64.high %v13479_v41, %v2800_v2, %v13574_v47 }
 0x36d   : > { %vm13563_vm12 = vcmp.le.f32.partialorder %v17078_v27, 0.7853982  ;;  %v2642_v62 = vxor.u32 2147483648, %v10529_v12  ;;  %vm2644_vm11 = vcmp.eq.s32.totalorder %v13474_v32, 2  ;;  %v1781_v6 = vclz %v9806_v18 }
 0x36e   : > { %v1799_v17 = vsub.s32 4, %v13508_v4  ;;  %vm2641_vm13 = vcmp.eq.s32.totalorder %v13474_v32, 0  ;;  %v2646_v38 = vsel %vm2644_vm11, %v2645_v49, %v10529_v12  ;;  %v2811_v57 = vadd.s32 1, %v13556_v31 }
 0x36f   : > { %v3693_v0 = vshrl.u32 %v3692_v37, 23  ;;  %v1608_v56 = vsel %vm1597_vm4, nan, %v1607_v14  ;;  %v2643_v9 = vsel %vm2641_vm13, %v10527_v13, %v2642_v62  ;;  %v9807_v8 = vadd.s32 4294967294, %v1781_v6 }
 0x370   : > { %v2808_v33 = vmul.u32 %v13479_v41, %v2792_v50  ;;  %v2647_v60 = vsel %vm2640_vm6, %v2643_v9, %v2646_v38  ;;  %vm2810_vm14 = vc.u32 %v13575_v7, %v13555_v51  ;;  %v3696_v18 = vand.u32 8388607, %v16903_v21 }
 0x371   : > { %v9881_v27 = vadd.s32 4294967169, %v3693_v0  ;;  %v2648_v2 = vsel %vm2637_vm8, nan, %v2647_v60  ;;  %vm9808_vm15 = vcmp.lt.s32.totalorder %v9807_v8, 0  ;;  %v1800_v45 = vsel %vm1715_vm10, %v1799_v17, %v13508_v4 }
 0x372   : > { %v2812_v13 = vsel %vm2810_vm14, %v2811_v57, %v13556_v31  ;;  %v13595_v41 = vpack.c.bf16 %v2648_v2, %v1608_v56  ;;  %v1784_v32 = vsel %vm9808_vm15, 0, %v9807_v8  ;;  %v1769_v12 = vadd.s32 %v13455_v63, %v13463_v16 }
 0x373   : > { %v2813_v14 = vadd.s32 %v2812_v13, %v2808_v33  ;;  %v3699_v37 = vadd.s32 1, %v9881_v27  ;;  %v1785_v49 = vsub.s32 32, %v1784_v32  ;;  %v1789_v50 = vsub.s32 4294967266, %v1784_v32 }
 0x374   : > { %17081 = vst [vmem:[#allocation8_spill] sm:$0xff] %v13595_v41  ;;  %v13601_v48 = vadd.f32 %v11749_v5, %v13490_v54  ;;  %6502 = vmatpush1.bf16.msra.mxu0 %v13595_v41  ;;  %v1802_v4 = vsel %vm13563_vm12, 0, %v1800_v45  ;;  %v3697_v47 = vor.u32 8388608, %v3696_v18  ;;  %v1786_v62 = vshll.u32 %v13528_v42, %v1784_v32 }
 0x375   : > { %v2814_v31 = vadd.s32 536870912, %v2813_v14  ;;  %vm3700_vm1 = vcmp.gt.s32.totalorder %v3699_v37, 0  ;;  %v1787_v6 = vshrl.u32 %v1769_v12, %v1785_v49  ;;  %v1790_v17 = vadd.s32 127, %v1789_v50 }
 0x376   : > { %v3701_v38 = vsel %vm3700_vm1, %v3699_v37, 0  ;;  %v13607_v56 = vadd.s32 3, %v1802_v4  ;;  %vm2755_vm2 = vcmp.lt.s32.totalorder %v13378_v55, 0  ;;  %v2809_v33 = vadd.s32 %v13555_v51, %v13575_v7 }
 0x377   : > { %v2815_v63 = vshrl.u32 %v2814_v31, 30  ;;  %v3703_v16 = vand.u32 31, %v3701_v38  ;;  %v1788_v57 = vor.u32 %v1787_v6, %v1786_v62  ;;  %v1791_v0 = vshll.u32 %v1790_v17, 23 }
 0x378   : > { %v13611_v60 = vshll.u32 %v3697_v47, 8  ;;  %v3702_v18 = vshrl.u32 %v3701_v38, 5  ;;  %v4732_v45 = vand.u32 2139095040, %v13601_v48  ;;  %v17082_v21 = vand.u32 2147483647, %v13378_v55 }
 0x379   : > { %v2816_v54 = vshll.u32 %v2815_v63, 30  ;;  %v3704_v9 = vsub.s32 32, %v3703_v16  ;;  %v1792_v8 = vor.u32 4788187, %v1791_v0  ;;  %v1795_v32 = vcvt.s32.f32 %v1788_v57 }
 0x37a   : > { %v2839_v51 = vsub.s32 4, %v2815_v63  ;;  %v3706_v7 = vshll.u32 %v16976_v15, %v3703_v16  ;;  %v3712_v50 = vshll.u32 %v16973_v34, %v3703_v16  ;;  %v3709_v4 = vshll.u32 %v16972_v23, %v3703_v16 }
 0x37b   : > { %v13614_v27 = vsub.s32 %v2813_v14, %v2816_v54  ;;  %v3707_v2 = vshrl.u32 %v16972_v23, %v3704_v9  ;;  %v1793_v13 = vand.u32 2147483647, %v1792_v8  ;;  %v3710_v37 = vshrl.u32 %v16973_v34, %v3704_v9 }
 0x37c   : > { %v3713_v12 = vshrl.u32 %v16974_v39, %v3704_v9  ;;  %v3715_v31 = vshll.u32 %v16974_v39, %v3703_v16  ;;  %v3716_v47 = vshrl.u32 %v16975_v24, %v3704_v9  ;;  %v3719_v38 = vshrl.u32 %v16977_v52, %v3704_v9 }
 0x37d   : > { %v2819_v49 = vsub.s32 0, %v13614_v27  ;;  %v1796_v14 = vmul.f32 %v1795_v32, %v1793_v13  ;;  %v3708_v6 = vor.u32 %v3707_v2, %v3706_v7  ;;  %v3711_v0 = vor.u32 %v3710_v37, %v3709_v4 }
 0x37e   : > { %v3714_v17 = vor.u32 %v3713_v12, %v3712_v50  ;;  %v3717_v54 = vor.u32 %v3716_v47, %v3715_v31  ;;  %v3718_v8 = vshll.u32 %v16975_v24, %v3703_v16  ;;  %vm13631_vm3 = vcmp.le.f32.partialorder %v17082_v21, 0.7853982 }
 0x37f   : > { %v9846_v62 = vmin.u32 %v2819_v49, %v13614_v27  ;;  %v1797_v57 = vxor.u32 2147483648, %v1796_v14  ;;  %v2840_v42 = vsel %vm2755_vm2, %v2839_v51, %v2815_v63  ;;  %v3705_v2 = vshrl.u32 %v16976_v15, %v3704_v9 }
 0x380   : > { %v4733_v12 = vshrl.u32 %v4732_v45, 23  ;;  %v3720_v37 = vor.u32 %v3719_v38, %v3718_v8  ;;  %vm3721_vm4 = vcmp.lt.s32.totalorder %v3702_v18, 1  ;;  %vm3724_vm5 = vcmp.lt.s32.totalorder %v3702_v18, 4 }
 0x381   : > { %v2821_v32 = vclz %v9846_v62  ;;  %v1798_v49 = vsel %vm1715_vm10, %v1797_v57, %v1796_v14  ;;  %vm3722_vm6 = vcmp.lt.s32.totalorder %v3702_v18, 2  ;;  %v3726_v7 = vsel %vm3724_vm5, %v3714_v17, 2102212464 }
 0x382   : > { %v1801_v21 = vsel %vm13563_vm12, %v13367_v36, %v1798_v49  ;;  %vm3723_vm7 = vcmp.lt.s32.totalorder %v3702_v18, 3  ;;  %v3725_v63 = vsel %vm3721_vm4, %v3705_v2, %v3708_v6  ;;  %v3729_v9 = vsel %vm3721_vm4, %v3708_v6, %v3711_v0 }
 0x383   : > { %v9847_v16 = vadd.s32 4294967294, %v2821_v32  ;;  %v3730_v45 = vsel %vm3724_vm5, %v3717_v54, 920167782  ;;  %10530 = vcosq.f32 %v1801_v21  ;;  %v3727_v51 = vsel %vm3723_vm7, %v3711_v0, %v3726_v7 }
 0x384   : > { %v3731_v50 = vsel %vm3723_vm7, %v3714_v17, %v3730_v45  ;;  %v3733_v35 = vsel %vm3721_vm4, %v3711_v0, %v3714_v17  ;;  %v3734_v31 = vsel %vm3724_vm5, %v3720_v37, 1326507024  ;;  %10532 = vsinq.f32 %v1801_v21 }
 0x385   : > { %vm9848_vm8 = vcmp.lt.s32.totalorder %v9847_v16, 0  ;;  %v3732_v4 = vsel %vm3722_vm6, %v3729_v9, %v3731_v50  ;;  %v3735_v38 = vsel %vm3723_vm7, %v3717_v54, %v3734_v31  ;;  %v2842_v17 = vsel %vm13631_vm3, 0, %v2840_v42 }
 0x386   : > { %v2824_v14 = vsel %vm9848_vm8, 0, %v9847_v16  ;;  %v3736_v6 = vsel %vm3722_vm6, %v3733_v35, %v3735_v38  ;;  %v13653_v8 = vmul.u32.u64.low %v13611_v60, %v3732_v4  ;;  %v13654_v32 = vmul.u32.u64.high %v13611_v60, %v3732_v4, %v13653_v8 }
 0x387   : > { %v2825_v47 = vsub.s32 32, %v2824_v14  ;;  %v2829_v62 = vsub.s32 4294967266, %v2824_v14  ;;  %v2826_v57 = vshll.u32 %v13614_v27, %v2824_v14  ;;  %v3728_v0 = vsel %vm3722_vm6, %v3725_v63, %v3727_v51 }
 0x388   : > { %v13657_v16 = vmul.u32.u64.low %v13611_v60, %v3736_v6  ;;  %v13658_v7 = vmul.u32.u64.high %v13611_v60, %v3736_v6, %v13657_v16  ;;  %v9921_v54 = vadd.s32 4294967169, %v4733_v12  ;;  %v17085_v27 = vand.u32 2147483647, %v13601_v48 }
 0x389   : > { %v2827_v2 = vshrl.u32 %v2809_v33, %v2825_v47  ;;  %v2830_v49 = vadd.s32 127, %v2829_v62  ;;  %v13666_v45 = vand.u32 3, %v13607_v56  ;;  %v3747_v33 = vadd.s32 1, %v13654_v32 }
 0x38a   : > { %v4736_v37 = vand.u32 8388607, %v17085_v27  ;;  %v4739_v50 = vadd.s32 1, %v9921_v54  ;;  %v2846_v4 = vadd.s32 3, %v2842_v17  ;;  %v3744_v35 = vmul.u32 %v13611_v60, %v3728_v0 }
 0x38b   : > { %v2828_v21 = vor.u32 %v2827_v2, %v2826_v57  ;;  %v2831_v9 = vshll.u32 %v2830_v49, 23  ;;  %vm3746_vm10 = vc.u32 %v13658_v7, %v13653_v8  ;;  %vm1809_vm11 = vcmp.eq.s32.totalorder %v13666_v45, 0 }
 0x38c   : > { %v3748_v42 = vsel %vm3746_vm10, %v3747_v33, %v13654_v32  ;;  %v4737_v18 = vor.u32 8388608, %v4736_v37  ;;  %vm4740_vm12 = vcmp.gt.s32.totalorder %v4739_v50, 0  ;;  %vm1812_vm13 = vcmp.eq.s32.totalorder %v13666_v45, 2 }
 0x38d   : > { %v2832_v14 = vor.u32 4788187, %v2831_v9  ;;  %v10531_v12 = vpop.eup %10530  ;;  %v2835_v51 = vcvt.s32.f32 %v2828_v21  ;;  %v3749_v31 = vadd.s32 %v3748_v42, %v3744_v35  ;;  %v4741_v47 = vsel %vm4740_vm12, %v4739_v50, 0 }
 0x38e   : > { %v4743_v56 = vand.u32 31, %v4741_v47  ;;  %v10533_v62 = vpop.eup %10532  ;;  %v13674_v57 = vand.u32 3, %v2846_v4  ;;  %v804_v32 = vmul.f32 %v12897_v20, %v17075_v26  ;;  %v13680_v2 = vmul.f32 %v12897_v20, %v17077_v28 }
 0x38f   : > { %v2833_v63 = vand.u32 2147483647, %v2832_v14  ;;  %v3750_v60 = vadd.s32 536870912, %v3749_v31  ;;  %v936_v49 = vmul.f32 %v12905_v22, %v10978_v3  ;;  %v13686_v0 = vshll.u32 %v4737_v18, 8 }
 0x390   : > { %v4744_v6 = vsub.s32 32, %v4743_v56  ;;  %v13690_v54 = vmul.f32 %v12905_v22, %v10976_v1  ;;  %v1813_v27 = vxor.u32 2147483648, %v10531_v12  ;;  %v13693_v37 = vadd.s32 %v13653_v8, %v13658_v7 }
 0x391   : > { %v2836_v38 = vmul.f32 %v2835_v51, %v2833_v63  ;;  %v13684_v17 = vshrl.u32 %v3750_v60, 30  ;;  %vm1808_vm14 = vcmp.lt.s32.totalorder %v13666_v45, 2  ;;  %v4746_v14 = vshll.u32 %v16976_v15, %v4743_v56 }
 0x392   : > { %v4747_v21 = vshrl.u32 %v16972_v23, %v4744_v6  ;;  %v4750_v9 = vshrl.u32 %v16973_v34, %v4744_v6  ;;  %v4753_v4 = vshrl.u32 %v16974_v39, %v4744_v6  ;;  %v1810_v35 = vxor.u32 2147483648, %v10533_v62 }
 0x393   : > { %v2837_v16 = vxor.u32 2147483648, %v2836_v38  ;;  %v3752_v50 = vshll.u32 %v13684_v17, 30  ;;  %v4742_v7 = vshrl.u32 %v4741_v47, 5  ;;  %v4749_v42 = vshll.u32 %v16972_v23, %v4743_v56 }
 0x394   : > { %v4748_v63 = vor.u32 %v4747_v21, %v4746_v14  ;;  %v4752_v51 = vshll.u32 %v16973_v34, %v4743_v56  ;;  %vm1805_vm15 = vweird.f32 %v13367_v36  ;;  %v4755_v60 = vshll.u32 %v16974_v39, %v4743_v56 }
 0x395   : > { %v2838_v33 = vsel %vm2755_vm2, %v2837_v16, %v2836_v38  ;;  %v13707_v18 = vsub.s32 %v3749_v31, %v3752_v50  ;;  %v4751_v38 = vor.u32 %v4750_v9, %v4749_v42  ;;  %v4756_v16 = vshrl.u32 %v16975_v24, %v4744_v6 }
 0x396   : > { %v2841_v8 = vsel %vm13631_vm3, %v13378_v55, %v2838_v33  ;;  %v4754_v33 = vor.u32 %v4753_v4, %v4752_v51  ;;  %v4758_v47 = vshll.u32 %v16975_v24, %v4743_v56  ;;  %v4759_v41 = vshrl.u32 %v16977_v52, %v4744_v6 }
 0x397   : > { %10534 = vcosq.f32 %v2841_v8  ;;  %v3755_v13 = vsub.s32 0, %v13707_v18  ;;  %v1811_v31 = vsel %vm1809_vm11, %v10531_v12, %v1810_v35  ;;  %v1814_v21 = vsel %vm1812_vm13, %v1813_v27, %v10533_v62 }
 0x398   : > { %10536 = vsinq.f32 %v2841_v8  ;;  %v4757_v50 = vor.u32 %v4756_v16, %v4755_v60  ;;  %v986_v14 = vadd.f32 %v936_v49, %v804_v32  ;;  %vm2852_vm1 = vcmp.eq.s32.totalorder %v13674_v57, 2 }
 0x399   : > { %v9882_v9 = vmin.u32 %v3755_v13, %v13707_v18  ;;  %v4760_v8 = vor.u32 %v4759_v41, %v4758_v47  ;;  %vm4761_vm2 = vcmp.lt.s32.totalorder %v4742_v7, 1  ;;  %vm4764_vm3 = vcmp.lt.s32.totalorder %v4742_v7, 4 }
 0x39a   : > { %vm2849_vm4 = vcmp.eq.s32.totalorder %v13674_v57, 0  ;;  %v4745_v56 = vshrl.u32 %v16976_v15, %v4744_v6  ;;  %v4769_v4 = vsel %vm4761_vm2, %v4748_v63, %v4751_v38  ;;  %v4770_v42 = vsel %vm4764_vm3, %v4757_v50, 920167782 }
 0x39b   : > { %v13726_v12 = vadd.f32 %v11685_v30, %v986_v14  ;;  %vm2848_vm5 = vcmp.lt.s32.totalorder %v13674_v57, 2  ;;  %v3757_v62 = vclz %v9882_v9  ;;  %vm4763_vm6 = vcmp.lt.s32.totalorder %v4742_v7, 3 }
 0x39c   : > { %v4766_v32 = vsel %vm4764_vm3, %v4754_v33, 2102212464  ;;  %v4773_v49 = vsel %vm4761_vm2, %v4751_v38, %v4754_v33  ;;  %v1815_v41 = vsel %vm1808_vm14, %v1811_v31, %v1814_v21  ;;  %vm2845_vm7 = vweird.f32 %v13378_v55 }
 0x39d   : > { %vm4762_vm8 = vcmp.lt.s32.totalorder %v4742_v7, 2  ;;  %v4771_v6 = vsel %vm4763_vm6, %v4754_v33, %v4770_v42  ;;  %v4774_v27 = vsel %vm4764_vm3, %v4760_v8, 1326507024  ;;  %v9883_v35 = vadd.s32 4294967294, %v3757_v62 }
 0x39e   : > { %v4765_v51 = vsel %vm4761_vm2, %v4745_v56, %v4748_v63  ;;  %v4772_v60 = vsel %vm4762_vm8, %v4769_v4, %v4771_v6  ;;  %v4775_v16 = vsel %vm4763_vm6, %v4757_v50, %v4774_v27  ;;  %v4767_v13 = vsel %vm4763_vm6, %v4751_v38, %v4766_v32 }
 0x39f   : > { %v4776_v47 = vsel %vm4762_vm8, %v4773_v49, %v4775_v16  ;;  %v13737_v14 = vmul.u32.u64.low %v13686_v0, %v4772_v60  ;;  %v13738_v9 = vmul.u32.u64.high %v13686_v0, %v4772_v60, %v13737_v14  ;;  %v1816_v31 = vsel %vm1805_vm15, nan, %v1815_v41 }
 0x3a0   : > { %vm9884_vm10 = vcmp.lt.s32.totalorder %v9883_v35, 0  ;;  %v13744_v33 = vmul.u32.u64.low %v13686_v0, %v4776_v47  ;;  %v13745_v21 = vmul.u32.u64.high %v13686_v0, %v4776_v47, %v13744_v33  ;;  %v3775_v38 = vsub.s32 4, %v13684_v17 }
 0x3a1   : > { %v10535_v45 = vpop.eup %10534  ;;  %v3760_v50 = vsel %vm9884_vm10, 0, %v9883_v35  ;;  %v3900_v56 = vand.u32 2139095040, %v13726_v12  ;;  %v4768_v32 = vsel %vm4762_vm8, %v4765_v51, %v4767_v13  ;;  %v4787_v49 = vadd.s32 1, %v13738_v9 }
 0x3a2   : > { %v10537_v63 = vpop.eup %10536  ;;  %v2853_v8 = vxor.u32 2147483648, %v10535_v45  ;;  %v3761_v42 = vsub.s32 32, %v3760_v50  ;;  %v3765_v62 = vsub.s32 4294967266, %v3760_v50  ;;  %v16906_v41 = vand.u32 2147483647, %v13726_v12 }
 0x3a3   : > { %v2850_v4 = vxor.u32 2147483648, %v10537_v63  ;;  %v3901_v6 = vshrl.u32 %v3900_v56, 23  ;;  %v3762_v35 = vshll.u32 %v13707_v18, %v3760_v50  ;;  %v4784_v51 = vmul.u32 %v13686_v0, %v4768_v32 }
 0x3a4   : > { %v2854_v36 = vsel %vm2852_vm1, %v2853_v8, %v10537_v63  ;;  %v3763_v60 = vshrl.u32 %v13693_v37, %v3761_v42  ;;  %v3766_v16 = vadd.s32 127, %v3765_v62  ;;  %vm4786_vm12 = vc.u32 %v13745_v21, %v13737_v14 }
 0x3a5   : > { %v2851_v27 = vsel %vm2849_vm4, %v10535_v45, %v2850_v4  ;;  %v9889_v13 = vadd.s32 4294967169, %v3901_v6  ;;  %v4788_v45 = vsel %vm4786_vm12, %v4787_v49, %v13738_v9  ;;  %v3904_v57 = vand.u32 8388607, %v16906_v41 }
 0x3a6   : > { %v2855_v7 = vsel %vm2848_vm5, %v2851_v27, %v2854_v36  ;;  %v3764_v33 = vor.u32 %v3763_v60, %v3762_v35  ;;  %v3767_v63 = vshll.u32 %v3766_v16, 23  ;;  %v4789_v37 = vadd.s32 %v4788_v45, %v4784_v51 }
 0x3a7   : > { %v2856_v47 = vsel %vm2845_vm7, nan, %v2855_v7  ;;  %v3907_v8 = vadd.s32 1, %v9889_v13  ;;  %v996_v0 = vadd.f32 %v13690_v54, %v13680_v2  ;;  %vm3691_vm11 = vcmp.lt.s32.totalorder %v13514_v10, 0 }
 0x3a8   : > { %v13766_v18 = vpack.c.bf16 %v2856_v47, %v1816_v31  ;;  %v3768_v50 = vor.u32 4788187, %v3767_v63  ;;  %v4790_v55 = vadd.s32 536870912, %v4789_v37  ;;  %v3771_v4 = vcvt.s32.f32 %v3764_v33 }
 0x3a9   : > { %vm3908_vm13 = vcmp.gt.s32.totalorder %v3907_v8, 0  ;;  %v13775_v9 = vadd.f32 %v11749_v5, %v996_v0  ;;  %v13780_v42 = vsel %vm3691_vm11, %v3775_v38, %v13684_v17  ;;  %v3905_v32 = vor.u32 8388608, %v3904_v57 }
 0x3aa   : > { %17086 = vst [vmem:[#allocation27_spill] sm:$0xff] %v13766_v18  ;;  %6555 = vmatpush1.bf16.msra.mxu1 %v13766_v18  ;;  %v3769_v56 = vand.u32 2147483647, %v3768_v50  ;;  %v3909_v31 = vsel %vm3908_vm13, %v3907_v8, 0  ;;  %v4791_v62 = vshrl.u32 %v4790_v55, 30  ;;  %vm4731_vm15 = vcmp.lt.s32.totalorder %v13601_v48, 0 }
 0x3ab   : > { %v3911_v2 = vand.u32 31, %v3909_v31  ;;  %v17087_v36 = vand.u32 2147483647, %v13514_v10  ;;  %v4940_v17 = vand.u32 2139095040, %v13775_v9  ;;  %v3910_v16 = vshrl.u32 %v3909_v31, 5 }
 0x3ac   : > { %v3772_v54 = vmul.f32 %v3771_v4, %v3769_v56  ;;  %v4792_v6 = vshll.u32 %v4791_v62, 30  ;;  %v13796_v51 = vshll.u32 %v3905_v32, 8  ;;  %v4815_v47 = vsub.s32 4, %v4791_v62 }
 0x3ad   : > { %vm13784_vm14 = vcmp.le.f32.partialorder %v17087_v36, 0.7853982  ;;  %v3912_v27 = vsub.s32 32, %v3911_v2  ;;  %v3914_v57 = vshll.u32 %v16976_v15, %v3911_v2  ;;  %v3920_v8 = vshll.u32 %v16973_v34, %v3911_v2 }
 0x3ae   : > { %v3773_v35 = vxor.u32 2147483648, %v3772_v54  ;;  %v13793_v38 = vsub.s32 %v4789_v37, %v4792_v6  ;;  %v3917_v37 = vshll.u32 %v16972_v23, %v3911_v2  ;;  %v3923_v0 = vshll.u32 %v16974_v39, %v3911_v2 }
 0x3af   : > { %v3915_v7 = vshrl.u32 %v16972_v23, %v3912_v27  ;;  %v3918_v33 = vshrl.u32 %v16973_v34, %v3912_v27  ;;  %v3921_v63 = vshrl.u32 %v16974_v39, %v3912_v27  ;;  %v3924_v55 = vshrl.u32 %v16975_v24, %v3912_v27 }
 0x3b0   : > { %v3774_v13 = vsel %vm3691_vm11, %v3773_v35, %v3772_v54  ;;  %v4795_v45 = vsub.s32 0, %v13793_v38  ;;  %v4941_v56 = vshrl.u32 %v4940_v17, 23  ;;  %v17090_v4 = vand.u32 2147483647, %v13601_v48 }
 0x3b1   : > { %v3777_v50 = vsel %vm13784_vm14, %v13514_v10, %v3774_v13  ;;  %v3916_v54 = vor.u32 %v3915_v7, %v3914_v57  ;;  %v3919_v36 = vor.u32 %v3918_v33, %v3917_v37  ;;  %v3922_v6 = vor.u32 %v3921_v63, %v3920_v8 }
 0x3b2   : > { %vm13813_vm1 = vcmp.le.f32.partialorder %v17090_v4, 0.7853982  ;;  %v9922_v32 = vmin.u32 %v4795_v45, %v13793_v38  ;;  %v4816_v35 = vsel %vm4731_vm15, %v4815_v47, %v4791_v62  ;;  %v3925_v13 = vor.u32 %v3924_v55, %v3923_v0 }
 0x3b3   : > { %v3926_v41 = vshll.u32 %v16975_v24, %v3911_v2  ;;  %v3927_v60 = vshrl.u32 %v16977_v52, %v3912_v27  ;;  %10538 = vcosq.f32 %v3777_v50  ;;  %v3913_v4 = vshrl.u32 %v16976_v15, %v3912_v27 }
 0x3b4   : > { %v4797_v17 = vclz %v9922_v32  ;;  %vm3929_vm2 = vcmp.lt.s32.totalorder %v3910_v16, 1  ;;  %vm3930_vm3 = vcmp.lt.s32.totalorder %v3910_v16, 2  ;;  %vm3931_vm4 = vcmp.lt.s32.totalorder %v3910_v16, 3 }
 0x3b5   : > { %v3928_v18 = vor.u32 %v3927_v60, %v3926_v41  ;;  %vm3932_vm5 = vcmp.lt.s32.totalorder %v3910_v16, 4  ;;  %v3937_v63 = vsel %vm3929_vm2, %v3916_v54, %v3919_v36  ;;  %v3933_v57 = vsel %vm3929_vm2, %v3913_v4, %v3916_v54 }
 0x3b6   : > { %v9923_v7 = vadd.s32 4294967294, %v4797_v17  ;;  %v3934_v33 = vsel %vm3932_vm5, %v3922_v6, 2102212464  ;;  %v3938_v45 = vsel %vm3932_vm5, %v3925_v13, 920167782  ;;  %v3941_v47 = vsel %vm3929_vm2, %v3919_v36, %v3922_v6 }
 0x3b7   : > { %v3939_v62 = vsel %vm3931_vm4, %v3922_v6, %v3938_v45  ;;  %v3942_v37 = vsel %vm3932_vm5, %v3928_v18, 1326507024  ;;  %v3935_v2 = vsel %vm3931_vm4, %v3919_v36, %v3934_v33  ;;  %v4785_v32 = vadd.s32 %v13737_v14, %v13745_v21 }
 0x3b8   : > { %vm9924_vm6 = vcmp.lt.s32.totalorder %v9923_v7, 0  ;;  %v3940_v8 = vsel %vm3930_vm3, %v3937_v63, %v3939_v62  ;;  %v3943_v0 = vsel %vm3931_vm4, %v3925_v13, %v3942_v37  ;;  %v16909_v18 = vand.u32 2147483647, %v13775_v9 }
 0x3b9   : > { %v4800_v55 = vsel %vm9924_vm6, 0, %v9923_v7  ;;  %v3944_v27 = vsel %vm3930_vm3, %v3941_v47, %v3943_v0  ;;  %v13826_v41 = vmul.u32.u64.low %v13796_v51, %v3940_v8  ;;  %v13827_v60 = vmul.u32.u64.high %v13796_v51, %v3940_v8, %v13826_v41 }
 0x3ba   : > { %v4801_v54 = vsub.s32 32, %v4800_v55  ;;  %v4805_v17 = vsub.s32 4294967266, %v4800_v55  ;;  %v4818_v36 = vsel %vm13813_vm1, 0, %v4816_v35  ;;  %v9929_v4 = vadd.s32 4294967169, %v4941_v56 }
 0x3bb   : > { %v13836_v6 = vmul.u32.u64.low %v13796_v51, %v3944_v27  ;;  %v13837_v13 = vmul.u32.u64.high %v13796_v51, %v3944_v27, %v13836_v6  ;;  %v4802_v7 = vshll.u32 %v13793_v38, %v4800_v55  ;;  %v3936_v45 = vsel %vm3930_vm3, %v3933_v57, %v3935_v2 }
 0x3bc   : > { %v4803_v33 = vshrl.u32 %v4785_v32, %v4801_v54  ;;  %v4806_v63 = vadd.s32 127, %v4805_v17  ;;  %v3955_v14 = vadd.s32 1, %v13827_v60  ;;  %v4947_v21 = vadd.s32 1, %v9929_v4 }
 0x3bd   : > { %v13842_v62 = vpop.eup %10538  ;;  %10540 = vsinq.f32 %v3777_v50  ;;  %v17093_v35 = vsel %vm13784_vm14, 0, %v13780_v42  ;;  %v4822_v56 = vadd.s32 3, %v4818_v36  ;;  %v3952_v38 = vmul.u32 %v13796_v51, %v3936_v45 }
 0x3be   : > { %v3782_v47 = vadd.s32 3, %v17093_v35  ;;  %v4804_v37 = vor.u32 %v4803_v33, %v4802_v7  ;;  %v4807_v8 = vshll.u32 %v4806_v63, 23  ;;  %vm3954_vm7 = vc.u32 %v13837_v13, %v13826_v41 }
 0x3bf   : > { %vm4948_vm8 = vcmp.gt.s32.totalorder %v4947_v21, 0  ;;  %v3956_v57 = vsel %vm3954_vm7, %v3955_v14, %v13827_v60  ;;  %v13854_v50 = vand.u32 8388607, %v16909_v18  ;;  %v801_v42 = vmul.f32 %v13040_v44, %v17075_v26 }
 0x3c0   : > { %v4808_v16 = vor.u32 4788187, %v4807_v8  ;;  %v3957_v49 = vadd.s32 %v3956_v57, %v3952_v38  ;;  %v4949_v2 = vsel %vm4948_vm8, %v4947_v21, 0  ;;  %v13858_v0 = vand.u32 3, %v3782_v47 }
 0x3c1   : > { %v4811_v51 = vcvt.s32.f32 %v4804_v37  ;;  %v4951_v27 = vand.u32 31, %v4949_v2  ;;  %v13860_v32 = vand.u32 3, %v4822_v56  ;;  %v13864_v60 = vmul.f32 %v13040_v44, %v17077_v28 }
 0x3c2   : > { %v4809_v55 = vand.u32 2147483647, %v4808_v16  ;;  %v3958_v54 = vadd.s32 536870912, %v3957_v49  ;;  %v933_v17 = vmul.f32 %v13050_v46, %v10978_v3  ;;  %v3789_v36 = vxor.u32 2147483648, %v13842_v62 }
 0x3c3   : > { %v4945_v4 = vor.u32 8388608, %v13854_v50  ;;  %v4952_v7 = vsub.s32 32, %v4951_v27  ;;  %v4950_v63 = vshrl.u32 %v4949_v2, 5  ;;  %v4954_v45 = vshll.u32 %v16976_v15, %v4951_v27 }
 0x3c4   : > { %v4812_v6 = vmul.f32 %v4811_v51, %v4809_v55  ;;  %v13870_v33 = vshrl.u32 %v3958_v54, 30  ;;  %v4957_v14 = vshll.u32 %v16972_v23, %v4951_v27  ;;  %vm3788_vm10 = vcmp.eq.s32.totalorder %v13858_v0, 2 }
 0x3c5   : > { %v4955_v35 = vshrl.u32 %v16972_v23, %v4952_v7  ;;  %v4958_v47 = vshrl.u32 %v16973_v34, %v4952_v7  ;;  %v4960_v37 = vshll.u32 %v16973_v34, %v4951_v27  ;;  %vm3785_vm12 = vcmp.eq.s32.totalorder %v13858_v0, 0 }
 0x3c6   : > { %v4813_v21 = vxor.u32 2147483648, %v4812_v6  ;;  %v3960_v8 = vshll.u32 %v13870_v33, 30  ;;  %v4961_v56 = vshrl.u32 %v16974_v39, %v4952_v7  ;;  %v4963_v38 = vshll.u32 %v16974_v39, %v4951_v27 }
 0x3c7   : > { %v4964_v16 = vshrl.u32 %v16975_v24, %v4952_v7  ;;  %v10541_v57 = vpop.eup %10540  ;;  %v4956_v2 = vor.u32 %v4955_v35, %v4954_v45  ;;  %v4966_v55 = vshll.u32 %v16975_v24, %v4951_v27  ;;  %v4967_v51 = vshrl.u32 %v16977_v52, %v4952_v7 }
 0x3c8   : > { %v4814_v50 = vsel %vm4731_vm15, %v4813_v21, %v4812_v6  ;;  %v13890_v18 = vsub.s32 %v3957_v49, %v3960_v8  ;;  %v4959_v53 = vor.u32 %v4958_v47, %v4957_v14  ;;  %v4962_v25 = vor.u32 %v4961_v56, %v4960_v37 }
 0x3c9   : > { %v4817_v54 = vsel %vm13813_vm1, %v13601_v48, %v4814_v50  ;;  %vm3784_vm11 = vcmp.lt.s32.totalorder %v13858_v0, 2  ;;  %v4965_v29 = vor.u32 %v4964_v16, %v4963_v38  ;;  %v4968_v43 = vor.u32 %v4967_v51, %v4966_v55 }
 0x3ca   : > { %10542 = vcosq.f32 %v4817_v54  ;;  %v943_v6 = vmul.f32 %v13050_v46, %v10976_v1  ;;  %v3786_v45 = vxor.u32 2147483648, %v10541_v57  ;;  %v3963_v27 = vsub.s32 0, %v13890_v18 }
 0x3cb   : > { %10544 = vsinq.f32 %v4817_v54  ;;  %v4953_v21 = vshrl.u32 %v16976_v15, %v4952_v7  ;;  %vm4969_vm13 = vcmp.lt.s32.totalorder %v4950_v63, 1  ;;  %vm4971_vm14 = vcmp.lt.s32.totalorder %v4950_v63, 3 }
 0x3cc   : > { %vm4972_vm15 = vcmp.lt.s32.totalorder %v4950_v63, 4  ;;  %v983_v31 = vadd.f32 %v933_v17, %v801_v42  ;;  %v9890_v49 = vmin.u32 %v3963_v27, %v13890_v18  ;;  %v4977_v47 = vsel %vm4969_vm13, %v4956_v2, %v4959_v53 }
 0x3cd   : > { %v4973_v14 = vsel %vm4969_vm13, %v4953_v21, %v4956_v2  ;;  %v4974_v35 = vsel %vm4972_vm15, %v4962_v25, 2102212464  ;;  %vm4828_vm1 = vcmp.eq.s32.totalorder %v13860_v32, 2  ;;  %v4978_v8 = vsel %vm4972_vm15, %v4965_v29, 920167782 }
 0x3ce   : > { %v4975_v37 = vsel %vm4971_vm14, %v4959_v53, %v4974_v35  ;;  %v4981_v56 = vsel %vm4969_vm13, %v4959_v53, %v4962_v25  ;;  %v4982_v38 = vsel %vm4972_vm15, %v4968_v43, 1326507024  ;;  %vm3781_vm2 = vweird.f32 %v13514_v10 }
 0x3cf   : > { %v3790_v7 = vsel %vm3788_vm10, %v3789_v36, %v10541_v57  ;;  %vm4825_vm3 = vcmp.eq.s32.totalorder %v13860_v32, 0  ;;  %v3965_v42 = vclz %v9890_v49  ;;  %v4985_v17 = vshll.u32 %v4945_v4, 8 }
 0x3d0   : > { %v13905_v16 = vadd.f32 %v11685_v30, %v983_v31  ;;  %v3787_v50 = vsel %vm3785_vm12, %v13842_v62, %v3786_v45  ;;  %vm4824_vm4 = vcmp.lt.s32.totalorder %v13860_v32, 2  ;;  %vm4970_vm5 = vcmp.lt.s32.totalorder %v4950_v63, 2 }
 0x3d1   : > { %v4979_v43 = vsel %vm4971_vm14, %v4962_v25, %v4978_v8  ;;  %v4983_v53 = vsel %vm4971_vm14, %v4965_v29, %v4982_v38  ;;  %vm4821_vm6 = vweird.f32 %v13601_v48  ;;  %vm3899_vm7 = vcmp.lt.s32.totalorder %v13726_v12, 0 }
 0x3d2   : > { %v9891_v36 = vadd.s32 4294967294, %v3965_v42  ;;  %v4976_v4 = vsel %vm4970_vm5, %v4973_v14, %v4975_v37  ;;  %v4980_v57 = vsel %vm4970_vm5, %v4977_v47, %v4979_v43  ;;  %v4984_v2 = vsel %vm4970_vm5, %v4981_v56, %v4983_v53 }
 0x3d3   : > { %v13915_v55 = vmul.u32.u64.low %v4985_v17, %v4984_v2  ;;  %v13916_v51 = vmul.u32.u64.high %v4985_v17, %v4984_v2, %v13915_v55  ;;  %v13918_v54 = vmul.u32.u64.low %v4985_v17, %v4980_v57  ;;  %v13919_v62 = vmul.u32.u64.high %v4985_v17, %v4980_v57, %v13918_v54 }
 0x3d4   : > { %v3791_v45 = vsel %vm3784_vm11, %v3787_v50, %v3790_v7  ;;  %v3953_v29 = vadd.s32 %v13826_v41, %v13837_v13  ;;  %vm9892_vm8 = vcmp.lt.s32.totalorder %v9891_v36, 0  ;;  %v3588_v25 = vand.u32 2139095040, %v13905_v16  ;;  %v10543_v63 = vpop.eup %10542 }
 0x3d5   : > { %v3968_v27 = vsel %vm9892_vm8, 0, %v9891_v36  ;;  %v3983_v21 = vsub.s32 4, %v13870_v33  ;;  %v993_v31 = vadd.f32 %v943_v6, %v13864_v60  ;;  %v16915_v49 = vand.u32 2147483647, %v13905_v16  ;;  %v10545_v14 = vpop.eup %10544 }
 0x3d6   : > { %v4829_v35 = vxor.u32 2147483648, %v10543_v63  ;;  %v3969_v47 = vsub.s32 32, %v3968_v27  ;;  %v3973_v37 = vsub.s32 4294967266, %v3968_v27  ;;  %v4992_v0 = vmul.u32 %v4985_v17, %v4976_v4 }
 0x3d7   : > { %v4826_v8 = vxor.u32 2147483648, %v10545_v14  ;;  %v3970_v56 = vshll.u32 %v13890_v18, %v3968_v27  ;;  %vm4994_vm10 = vc.u32 %v13916_v51, %v13918_v54  ;;  %v4995_v41 = vadd.s32 1, %v13919_v62 }
 0x3d8   : > { %v4830_v13 = vsel %vm4828_vm1, %v4829_v35, %v10545_v14  ;;  %v3971_v38 = vshrl.u32 %v3953_v29, %v3969_v47  ;;  %v3974_v7 = vadd.s32 127, %v3973_v37  ;;  %v3589_v60 = vshrl.u32 %v3588_v25, 23 }
 0x3d9   : > { %v3792_v6 = vsel %vm3781_vm2, nan, %v3791_v45  ;;  %v4827_v42 = vsel %vm4825_vm3, %v10543_v63, %v4826_v8  ;;  %v4996_v17 = vsel %vm4994_vm10, %v4995_v41, %v13919_v62  ;;  %v13940_v18 = vadd.f32 %v11749_v5, %v993_v31 }
 0x3da   : > { %v4831_v50 = vsel %vm4824_vm4, %v4827_v42, %v4830_v13  ;;  %v3972_v43 = vor.u32 %v3971_v38, %v3970_v56  ;;  %v3975_v53 = vshll.u32 %v3974_v7, 23  ;;  %v4997_v36 = vadd.s32 %v4996_v17, %v4992_v0 }
 0x3db   : > { %v4832_v4 = vsel %vm4821_vm6, nan, %v4831_v50  ;;  %v3984_v10 = vsel %vm3899_vm7, %v3983_v21, %v13870_v33  ;;  %v9877_v57 = vadd.s32 4294967169, %v3589_v60  ;;  %v3592_v45 = vand.u32 8388607, %v16915_v49 }
 0x3dc   : > { %v13949_v2 = vpack.c.bf16 %v4832_v4, %v3792_v6  ;;  %v3976_v55 = vor.u32 4788187, %v3975_v53  ;;  %v4998_v62 = vadd.s32 536870912, %v4997_v36  ;;  %v16914_v29 = vand.u32 2147483647, %v13940_v18 }
 0x3dd   : > { %v3595_v32 = vadd.s32 1, %v9877_v57  ;;  %v17095_v48 = vand.u32 2147483647, %v13726_v12  ;;  %v3979_v63 = vcvt.s32.f32 %v3972_v43  ;;  %v4628_v31 = vand.u32 2139095040, %v13940_v18 }
 0x3de   : > { %17094 = vst [vmem:[#allocation28_spill] sm:$0xff] %v13949_v2  ;;  %6503 = vmatprep.subr.bf16.mxu0 %v13949_v2  ;;  %v3977_v33 = vand.u32 2147483647, %v3976_v55  ;;  %v13961_v27 = vshrl.u32 %v4998_v62, 30  ;;  %v3593_v47 = vor.u32 8388608, %v3592_v45  ;;  %v13975_v13 = vmul.f32 %v13272_v59, %v17075_v26 }
 0x3df   : > { %vm13957_vm12 = vcmp.le.f32.partialorder %v17095_v48, 0.7853982  ;;  %vm3596_vm11 = vcmp.gt.s32.totalorder %v3595_v32, 0  ;;  %v13969_v8 = vand.u32 8388607, %v16914_v29  ;;  %v4993_v7 = vadd.s32 %v13918_v54, %v13916_v51 }
 0x3e0   : > { %v3986_v21 = vsel %vm13957_vm12, 0, %v3984_v10  ;;  %v3980_v14 = vmul.f32 %v3979_v63, %v3977_v33  ;;  %v5000_v35 = vshll.u32 %v13961_v27, 30  ;;  %v3597_v37 = vsel %vm3596_vm11, %v3595_v32, 0 }
 0x3e1   : > { %v3599_v0 = vand.u32 31, %v3597_v37  ;;  %v13977_v38 = vadd.s32 3, %v3986_v21  ;;  %v4629_v6 = vshrl.u32 %v4628_v31, 23  ;;  %v13983_v50 = vshll.u32 %v3593_v47, 8 }
 0x3e2   : > { %v3981_v56 = vxor.u32 2147483648, %v3980_v14  ;;  %v13971_v41 = vsub.s32 %v4997_v36, %v5000_v35  ;;  %v13987_v43 = vmul.f32 %v13281_v58, %v10978_v3  ;;  %v3598_v53 = vshrl.u32 %v3597_v37, 5 }
 0x3e3   : > { %v3600_v60 = vsub.s32 32, %v3599_v0  ;;  %v3602_v10 = vshll.u32 %v16976_v15, %v3599_v0  ;;  %v3605_v57 = vshll.u32 %v16972_v23, %v3599_v0  ;;  %v5023_v45 = vsub.s32 4, %v13961_v27 }
 0x3e4   : > { %v3982_v42 = vsel %vm3899_vm7, %v3981_v56, %v3980_v14  ;;  %v5003_v17 = vsub.s32 0, %v13971_v41  ;;  %v3608_v32 = vshll.u32 %v16973_v34, %v3599_v0  ;;  %v9917_v48 = vadd.s32 4294967169, %v4629_v6 }
 0x3e5   : > { %v3603_v36 = vshrl.u32 %v16972_v23, %v3600_v60  ;;  %v3606_v4 = vshrl.u32 %v16973_v34, %v3600_v60  ;;  %v3609_v55 = vshrl.u32 %v16974_v39, %v3600_v60  ;;  %v3985_v62 = vsel %vm13957_vm12, %v13726_v12, %v3982_v42 }
 0x3e6   : > { %v9930_v54 = vmin.u32 %v5003_v17, %v13971_v41  ;;  %vm4939_vm13 = vcmp.lt.s32.totalorder %v13775_v9, 0  ;;  %v3611_v31 = vshll.u32 %v16974_v39, %v3599_v0  ;;  %v3612_v35 = vshrl.u32 %v16975_v24, %v3600_v60 }
 0x3e7   : > { %v3604_v63 = vor.u32 %v3603_v36, %v3602_v10  ;;  %v3607_v21 = vor.u32 %v3606_v4, %v3605_v57  ;;  %v3610_v14 = vor.u32 %v3609_v55, %v3608_v32  ;;  %v3614_v47 = vshll.u32 %v16975_v24, %v3599_v0 }
 0x3e8   : > { %v5005_v33 = vclz %v9930_v54  ;;  %v3615_v25 = vshrl.u32 %v16977_v52, %v3600_v60  ;;  %10546 = vcosq.f32 %v3985_v62  ;;  %v3601_v56 = vshrl.u32 %v16976_v15, %v3600_v60 }
 0x3e9   : > { %vm3617_vm14 = vcmp.lt.s32.totalorder %v3598_v53, 1  ;;  %v3613_v6 = vor.u32 %v3612_v35, %v3611_v31  ;;  %vm3618_vm15 = vcmp.lt.s32.totalorder %v3598_v53, 2  ;;  %vm3620_vm1 = vcmp.lt.s32.totalorder %v3598_v53, 4 }
 0x3ea   : > { %v9931_v37 = vadd.s32 4294967294, %v5005_v33  ;;  %v3616_v42 = vor.u32 %v3615_v25, %v3614_v47  ;;  %v17098_v17 = vand.u32 2147483647, %v13775_v9  ;;  %vm3619_vm4 = vcmp.lt.s32.totalorder %v3598_v53, 3 }
 0x3eb   : > { %v3622_v0 = vsel %vm3620_vm1, %v3610_v14, 2102212464  ;;  %v3625_v4 = vsel %vm3617_vm14, %v3604_v63, %v3607_v21  ;;  %v3626_v10 = vsel %vm3620_vm1, %v3613_v6, 920167782  ;;  %v3629_v60 = vsel %vm3617_vm14, %v3607_v21, %v3610_v14 }
 0x3ec   : > { %vm14009_vm2 = vcmp.le.f32.partialorder %v17098_v17, 0.7853982  ;;  %vm9932_vm3 = vcmp.lt.s32.totalorder %v9931_v37, 0  ;;  %v3630_v57 = vsel %vm3620_vm1, %v3616_v42, 1326507024  ;;  %v3621_v33 = vsel %vm3617_vm14, %v3601_v56, %v3604_v63 }
 0x3ed   : > { %v5008_v54 = vsel %vm9932_vm3, 0, %v9931_v37  ;;  %v3623_v31 = vsel %vm3619_vm4, %v3607_v21, %v3622_v0  ;;  %v3627_v47 = vsel %vm3619_vm4, %v3610_v14, %v3626_v10  ;;  %v3631_v25 = vsel %vm3619_vm4, %v3613_v6, %v3630_v57 }
 0x3ee   : > { %v5009_v55 = vsub.s32 32, %v5008_v54  ;;  %v5013_v32 = vsub.s32 4294967266, %v5008_v54  ;;  %v5010_v35 = vshll.u32 %v13971_v41, %v5008_v54  ;;  %v4635_v17 = vadd.s32 1, %v9917_v48 }
 0x3ef   : > { %v3628_v51 = vsel %vm3618_vm15, %v3625_v4, %v3627_v47  ;;  %v3632_v37 = vsel %vm3618_vm15, %v3629_v60, %v3631_v25  ;;  %v5024_v42 = vsel %vm4939_vm13, %v5023_v45, %v13961_v27  ;;  %v3624_v21 = vsel %vm3618_vm15, %v3621_v33, %v3623_v31 }
 0x3f0   : > { %v5011_v29 = vshrl.u32 %v4993_v7, %v5009_v55  ;;  %v5014_v49 = vadd.s32 127, %v5013_v32  ;;  %v14023_v2 = vmul.u32.u64.low %v13983_v50, %v3632_v37  ;;  %v14024_v26 = vmul.u32.u64.high %v13983_v50, %v3632_v37, %v14023_v2 }
 0x3f1   : > { %vm4636_vm5 = vcmp.gt.s32.totalorder %v4635_v17, 0  ;;  %v14028_v7 = vand.u32 3, %v13977_v38  ;;  %v14031_v14 = vmul.u32.u64.low %v13983_v50, %v3628_v51  ;;  %v14032_v56 = vmul.u32.u64.high %v13983_v50, %v3628_v51, %v14031_v14 }
 0x3f2   : > { %v5012_v63 = vor.u32 %v5011_v29, %v5010_v35  ;;  %v5015_v41 = vshll.u32 %v5014_v49, 23  ;;  %v4637_v48 = vsel %vm4636_vm5, %v4635_v17, 0  ;;  %v14037_v27 = vmul.f32 %v13272_v59, %v17077_v28  ;;  %v14039_v45 = vpop.eup %10546 }
 0x3f3   : > { %10548 = vsinq.f32 %v3985_v62  ;;  %v4639_v49 = vand.u32 31, %v4637_v48  ;;  %v14043_v29 = vmul.f32 %v13281_v58, %v10976_v1  ;;  %v5026_v38 = vsel %vm14009_vm2, 0, %v5024_v42 }
 0x3f4   : > { %v5016_v2 = vor.u32 4788187, %v5015_v41  ;;  %v3640_v53 = vmul.u32 %v13983_v50, %v3624_v21  ;;  %v17101_v51 = vor.u32 8388608, %v13969_v8  ;;  %v985_v0 = vadd.f32 %v13987_v43, %v13975_v13 }
 0x3f5   : > { %v5019_v62 = vcvt.s32.f32 %v5012_v63  ;;  %vm3642_vm6 = vc.u32 %v14024_v26, %v14031_v14  ;;  %v4640_v54 = vsub.s32 32, %v4639_v49  ;;  %v3643_v10 = vadd.s32 1, %v14032_v56 }
 0x3f6   : > { %v14050_v6 = vshll.u32 %v17101_v51, 8  ;;  %v5017_v4 = vand.u32 2147483647, %v5016_v2  ;;  %v14057_v60 = vshrl.u32 %v4637_v48, 5  ;;  %v4642_v57 = vshll.u32 %v16976_v15, %v4639_v49 }
 0x3f7   : > { %v4645_v50 = vshll.u32 %v16972_v23, %v4639_v49  ;;  %v4643_v55 = vshrl.u32 %v16972_v23, %v4640_v54  ;;  %v4646_v32 = vshrl.u32 %v16973_v34, %v4640_v54  ;;  %v4648_v13 = vshll.u32 %v16973_v34, %v4639_v49 }
 0x3f8   : > { %v5020_v8 = vmul.f32 %v5019_v62, %v5017_v4  ;;  %v3644_v43 = vsel %vm3642_vm6, %v3643_v10, %v14032_v56  ;;  %v4649_v33 = vshrl.u32 %v16974_v39, %v4640_v54  ;;  %v4651_v31 = vshll.u32 %v16974_v39, %v4639_v49 }
 0x3f9   : > { %v4652_v35 = vshrl.u32 %v16975_v24, %v4640_v54  ;;  %v3645_v25 = vadd.s32 %v3644_v43, %v3640_v53  ;;  %v4644_v17 = vor.u32 %v4643_v55, %v4642_v57  ;;  %v4647_v37 = vor.u32 %v4646_v32, %v4645_v50 }
 0x3fa   : > { %v5021_v47 = vxor.u32 2147483648, %v5020_v8  ;;  %v4650_v42 = vor.u32 %v4649_v33, %v4648_v13  ;;  %v4654_v41 = vshll.u32 %v16975_v24, %v4639_v49  ;;  %v4655_v21 = vshrl.u32 %v16977_v52, %v4640_v54 }
 0x3fb   : > { %v4653_v63 = vor.u32 %v4652_v35, %v4651_v31  ;;  %vm3993_vm7 = vcmp.eq.s32.totalorder %v14028_v7, 0  ;;  %vm3996_vm8 = vcmp.eq.s32.totalorder %v14028_v7, 2  ;;  %v3997_v48 = vxor.u32 2147483648, %v14039_v45 }
 0x3fc   : > { %v5022_v56 = vsel %vm4939_vm13, %v5021_v47, %v5020_v8  ;;  %v5030_v2 = vadd.s32 3, %v5026_v38  ;;  %v3646_v51 = vadd.s32 536870912, %v3645_v25  ;;  %v4656_v4 = vor.u32 %v4655_v21, %v4654_v41 }
 0x3fd   : > { %v5025_v53 = vsel %vm14009_vm2, %v13775_v9, %v5022_v56  ;;  %vm4657_vm10 = vcmp.lt.s32.totalorder %v14057_v60, 1  ;;  %vm4658_vm12 = vcmp.lt.s32.totalorder %v14057_v60, 2  ;;  %v10549_v49 = vpop.eup %10548  ;;  %vm4660_vm11 = vcmp.lt.s32.totalorder %v14057_v60, 4 }
 0x3fe   : > { %10550 = vcosq.f32 %v5025_v53  ;;  %v3647_v62 = vshrl.u32 %v3646_v51, 30  ;;  %v4665_v10 = vsel %vm4657_vm10, %v4644_v17, %v4647_v37  ;;  %vm3992_vm13 = vcmp.lt.s32.totalorder %v14028_v7, 2 }
 0x3ff   : > { %10552 = vsinq.f32 %v5025_v53  ;;  %vm4659_vm14 = vcmp.lt.s32.totalorder %v14057_v60, 3  ;;  %v4666_v36 = vsel %vm4660_vm11, %v4653_v63, 920167782  ;;  %v4669_v38 = vsel %vm4657_vm10, %v4647_v37, %v4650_v42 }
 0x400   : > { %v3648_v57 = vshll.u32 %v3647_v62, 30  ;;  %v4662_v50 = vsel %vm4660_vm11, %v4650_v42, 2102212464  ;;  %v4667_v8 = vsel %vm4659_vm14, %v4650_v42, %v4666_v36  ;;  %v4670_v55 = vsel %vm4660_vm11, %v4656_v4, 1326507024 }
 0x401   : > { %v3994_v32 = vxor.u32 2147483648, %v10549_v49  ;;  %v4641_v13 = vshrl.u32 %v16976_v15, %v4640_v54  ;;  %v4668_v43 = vsel %vm4658_vm12, %v4665_v10, %v4667_v8  ;;  %v4671_v33 = vsel %vm4659_vm14, %v4653_v63, %v4670_v55 }
 0x402   : > { %v5031_v31 = vand.u32 3, %v5030_v2  ;;  %v14094_v35 = vsub.s32 %v3645_v25, %v3648_v57  ;;  %v4672_v47 = vsel %vm4658_vm12, %v4669_v38, %v4671_v33  ;;  %v14099_v41 = vadd.f32 %v11685_v30, %v985_v0 }
 0x403   : > { %vm3989_vm15 = vweird.f32 %v13726_v12  ;;  %v4661_v54 = vsel %vm4657_vm10, %v4641_v13, %v4644_v17  ;;  %v4663_v42 = vsel %vm4659_vm14, %v4647_v37, %v4662_v50  ;;  %v17102_v25 = vand.u32 2147483647, %v13905_v16 }
 0x404   : > { %v14107_v21 = vmul.u32.u64.low %v14050_v6, %v4672_v47  ;;  %v14108_v63 = vmul.u32.u64.high %v14050_v6, %v4672_v47, %v14107_v21  ;;  %vm3587_vm2 = vcmp.lt.s32.totalorder %v13905_v16, 0  ;;  %v3651_v0 = vsub.s32 0, %v14094_v35 }
 0x405   : > { %vm14112_vm1 = vcmp.le.f32.partialorder %v17102_v25, 0.7853982  ;;  %v14119_v2 = vmul.u32.u64.low %v14050_v6, %v4668_v43  ;;  %v14120_v17 = vmul.u32.u64.high %v14050_v6, %v4668_v43, %v14119_v2  ;;  %v3995_v37 = vsel %vm3993_vm7, %v14039_v45, %v3994_v32 }
 0x406   : > { %v3998_v51 = vsel %vm3996_vm8, %v3997_v48, %v10549_v49  ;;  %vm5029_vm3 = vweird.f32 %v13775_v9  ;;  %v995_v53 = vadd.f32 %v14043_v29, %v14037_v27  ;;  %v3796_v4 = vand.u32 2139095040, %v14099_v41 }
 0x407   : > { %vm5032_vm4 = vcmp.lt.s32.totalorder %v5031_v31, 2  ;;  %v9878_v10 = vmin.u32 %v3651_v0, %v14094_v35  ;;  %v3671_v36 = vsub.s32 4, %v3647_v62  ;;  %v4664_v38 = vsel %vm4658_vm12, %v4661_v54, %v4663_v42 }
 0x408   : > { %vm5033_vm5 = vcmp.eq.s32.totalorder %v5031_v31, 0  ;;  %vm5036_vm6 = vcmp.eq.s32.totalorder %v5031_v31, 2  ;;  %v14135_v45 = vadd.f32 %v11749_v5, %v995_v53  ;;  %v3797_v48 = vshrl.u32 %v3796_v4, 23  ;;  %v10551_v49 = vpop.eup %10550 }
 0x409   : > { %v3999_v57 = vsel %vm3992_vm13, %v3995_v37, %v3998_v51  ;;  %v3641_v27 = vadd.s32 %v14031_v14, %v14024_v26  ;;  %v3653_v29 = vclz %v9878_v10  ;;  %vm4682_vm7 = vc.u32 %v14108_v63, %v14119_v2  ;;  %v10553_v50 = vpop.eup %10552 }
 0x40a   : > { %v5037_v8 = vxor.u32 2147483648, %v10551_v49  ;;  %v4680_v60 = vmul.u32 %v14050_v6, %v4664_v38  ;;  %v4683_v55 = vadd.s32 1, %v14120_v17  ;;  %v9885_v32 = vadd.s32 4294967169, %v3797_v48 }
 0x40b   : > { %v5034_v13 = vxor.u32 2147483648, %v10553_v50  ;;  %v9879_v43 = vadd.s32 4294967294, %v3653_v29  ;;  %v3672_v33 = vsel %vm3587_vm2, %v3671_v36, %v3647_v62  ;;  %v3793_v7 = vand.u32 2147483647, %v14099_v41 }
 0x40c   : > { %v5038_v47 = vsel %vm5036_vm6, %v5037_v8, %v10553_v50  ;;  %v4684_v26 = vsel %vm4682_vm7, %v4683_v55, %v14120_v17  ;;  %v3803_v14 = vadd.s32 1, %v9885_v32  ;;  %v4836_v54 = vand.u32 2139095040, %v14135_v45 }
 0x40d   : > { %v4000_v6 = vsel %vm3989_vm15, nan, %v3999_v57  ;;  %v5035_v42 = vsel %vm5033_vm5, %v10551_v49, %v5034_v13  ;;  %vm9880_vm8 = vcmp.lt.s32.totalorder %v9879_v43, 0  ;;  %v4685_v21 = vadd.s32 %v4684_v26, %v4680_v60 }
 0x40e   : > { %v5039_v25 = vsel %vm5032_vm4, %v5035_v42, %v5038_v47  ;;  %v3656_v0 = vsel %vm9880_vm8, 0, %v9879_v43  ;;  %v3674_v62 = vsel %vm14112_vm1, 0, %v3672_v33  ;;  %vm3804_vm10 = vcmp.gt.s32.totalorder %v3803_v14, 0 }
 0x40f   : > { %v5040_v17 = vsel %vm5029_vm3, nan, %v5039_v25  ;;  %v3657_v37 = vsub.s32 32, %v3656_v0  ;;  %v3661_v51 = vsub.s32 4294967266, %v3656_v0  ;;  %v3800_v12 = vand.u32 8388607, %v3793_v7 }
 0x410   : > { %v14160_v53 = vpack.c.bf16 %v5040_v17, %v4000_v6  ;;  %v4686_v4 = vadd.s32 536870912, %v4685_v21  ;;  %v3805_v10 = vsel %vm3804_vm10, %v3803_v14, 0  ;;  %v4837_v36 = vshrl.u32 %v4836_v54, 23 }
 0x411   : > { %v3658_v31 = vshll.u32 %v14094_v35, %v3656_v0  ;;  %v3659_v38 = vshrl.u32 %v3641_v27, %v3657_v37  ;;  %v3662_v48 = vadd.s32 127, %v3661_v51  ;;  %v3807_v49 = vand.u32 31, %v3805_v10 }
 0x412   : > { %17105 = vst [vmem:[#allocation29_spill] sm:$0xff] %v14160_v53  ;;  %6556 = vmatprep.subr.bf16.mxu1 %v14160_v53  ;;  %v4687_v57 = vshrl.u32 %v4686_v4, 30  ;;  %vm4627_vm12 = vcmp.lt.s32.totalorder %v13940_v18, 0  ;;  %v14165_v8 = vadd.s32 3, %v3674_v62  ;;  %v14168_v60 = vadd.s32 %v14119_v2, %v14108_v63 }
 0x413   : > { %v3660_v9 = vor.u32 %v3659_v38, %v3658_v31  ;;  %v3663_v29 = vshll.u32 %v3662_v48, 23  ;;  %v3808_v50 = vsub.s32 32, %v3807_v49  ;;  %v3801_v32 = vor.u32 8388608, %v3800_v12 }
 0x414   : > { %v4688_v55 = vshll.u32 %v4687_v57, 30  ;;  %v14170_v35 = vshrl.u32 %v3805_v10, 5  ;;  %v9925_v43 = vadd.s32 4294967169, %v4837_v36  ;;  %v3810_v47 = vshll.u32 %v16976_v15, %v3807_v49 }
 0x415   : > { %v3664_v13 = vor.u32 4788187, %v3663_v29  ;;  %v3811_v27 = vshrl.u32 %v16972_v23, %v3808_v50  ;;  %v3814_v26 = vshrl.u32 %v16973_v34, %v3808_v50  ;;  %v3817_v14 = vshrl.u32 %v16974_v39, %v3808_v50 }
 0x416   : > { %v14173_v33 = vsub.s32 %v4685_v21, %v4688_v55  ;;  %v3667_v6 = vcvt.s32.f32 %v3660_v9  ;;  %v4711_v63 = vsub.s32 4, %v4687_v57  ;;  %v3813_v2 = vshll.u32 %v16972_v23, %v3807_v49 }
 0x417   : > { %v3665_v54 = vand.u32 2147483647, %v3664_v13  ;;  %v3812_v25 = vor.u32 %v3811_v27, %v3810_v47  ;;  %v3816_v0 = vshll.u32 %v16973_v34, %v3807_v49  ;;  %v3819_v62 = vshll.u32 %v16974_v39, %v3807_v49 }
 0x418   : > { %v4691_v42 = vsub.s32 0, %v14173_v33  ;;  %v3815_v17 = vor.u32 %v3814_v26, %v3813_v2  ;;  %v3820_v37 = vshrl.u32 %v16975_v24, %v3808_v50  ;;  %v3823_v51 = vshrl.u32 %v16977_v52, %v3808_v50 }
 0x419   : > { %v3668_v21 = vmul.f32 %v3667_v6, %v3665_v54  ;;  %v17106_v12 = vand.u32 2147483647, %v13940_v18  ;;  %v3818_v36 = vor.u32 %v3817_v14, %v3816_v0  ;;  %v3822_v31 = vshll.u32 %v16975_v24, %v3807_v49 }
 0x41a   : > { %v9918_v10 = vmin.u32 %v4691_v42, %v14173_v33  ;;  %v3841_v38 = vshll.u32 %v3801_v32, 8  ;;  %v3809_v9 = vshrl.u32 %v16976_v15, %v3808_v50  ;;  %v3821_v29 = vor.u32 %v3820_v37, %v3819_v62 }
 0x41b   : > { %vm14186_vm11 = vcmp.le.f32.partialorder %v17106_v12, 0.7853982  ;;  %v3669_v48 = vxor.u32 2147483648, %v3668_v21  ;;  %v4843_v55 = vadd.s32 1, %v9925_v43  ;;  %v4712_v27 = vsel %vm4627_vm12, %v4711_v63, %v4687_v57 }
 0x41c   : > { %v4693_v13 = vclz %v9918_v10  ;;  %v3824_v47 = vor.u32 %v3823_v51, %v3822_v31  ;;  %vm3825_vm13 = vcmp.lt.s32.totalorder %v14170_v35, 1  ;;  %vm3827_vm14 = vcmp.lt.s32.totalorder %v14170_v35, 3 }
 0x41d   : > { %v3670_v26 = vsel %vm3587_vm2, %v3669_v48, %v3668_v21  ;;  %vm3828_vm15 = vcmp.lt.s32.totalorder %v14170_v35, 4  ;;  %v3833_v49 = vsel %vm3825_vm13, %v3812_v25, %v3815_v17  ;;  %vm3826_vm3 = vcmp.lt.s32.totalorder %v14170_v35, 2 }
 0x41e   : > { %v3673_v50 = vsel %vm14112_vm1, %v13905_v16, %v3670_v26  ;;  %v9919_v32 = vadd.s32 4294967294, %v4693_v13  ;;  %v3830_v43 = vsel %vm3828_vm15, %v3818_v36, 2102212464  ;;  %v3834_v57 = vsel %vm3828_vm15, %v3821_v29, 920167782 }
 0x41f   : > { %10554 = vcosq.f32 %v3673_v50  ;;  %v3829_v14 = vsel %vm3825_vm13, %v3809_v9, %v3812_v25  ;;  %v3835_v54 = vsel %vm3827_vm14, %v3818_v36, %v3834_v57  ;;  %v3831_v6 = vsel %vm3827_vm14, %v3815_v17, %v3830_v43 }
 0x420   : > { %vm9920_vm2 = vcmp.lt.s32.totalorder %v9919_v32, 0  ;;  %v3836_v56 = vsel %vm3826_vm3, %v3833_v49, %v3835_v54  ;;  %v3837_v63 = vsel %vm3825_vm13, %v3815_v17, %v3818_v36  ;;  %v3838_v42 = vsel %vm3828_vm15, %v3824_v47, 1326507024 }
 0x421   : > { %v4696_v2 = vsel %vm9920_vm2, 0, %v9919_v32  ;;  %v14216_v0 = vmul.u32.u64.low %v3841_v38, %v3836_v56  ;;  %v14217_v62 = vmul.u32.u64.high %v3841_v38, %v3836_v56, %v14216_v0  ;;  %10556 = vsinq.f32 %v3673_v50 }
 0x422   : > { %v4697_v25 = vsub.s32 32, %v4696_v2  ;;  %v4701_v21 = vsub.s32 4294967266, %v4696_v2  ;;  %v3839_v37 = vsel %vm3827_vm14, %v3821_v29, %v3838_v42  ;;  %v4698_v51 = vshll.u32 %v14173_v33, %v4696_v2 }
 0x423   : > { %v4714_v12 = vsel %vm14186_vm11, 0, %v4712_v27  ;;  %v3840_v17 = vsel %vm3826_vm3, %v3837_v63, %v3839_v37  ;;  %vm4844_vm1 = vcmp.gt.s32.totalorder %v4843_v55, 0  ;;  %v3832_v9 = vsel %vm3826_vm3, %v3829_v14, %v3831_v6 }
 0x424   : > { %v4699_v10 = vshrl.u32 %v14168_v60, %v4697_v25  ;;  %v4702_v36 = vadd.s32 127, %v4701_v21  ;;  %v14228_v31 = vmul.u32.u64.low %v3841_v38, %v3840_v17  ;;  %v14229_v48 = vmul.u32.u64.high %v3841_v38, %v3840_v17, %v14228_v31 }
 0x425   : > { %v3851_v29 = vadd.s32 1, %v14217_v62  ;;  %v4845_v13 = vsel %vm4844_vm1, %v4843_v55, 0  ;;  %v14235_v33 = vand.u32 3, %v14165_v8  ;;  %v4718_v49 = vadd.s32 3, %v4714_v12 }
 0x426   : > { %v4700_v27 = vor.u32 %v4699_v10, %v4698_v51  ;;  %v4703_v47 = vshll.u32 %v4702_v36, 23  ;;  %v4847_v26 = vand.u32 31, %v4845_v13  ;;  %v16919_v50 = vand.u32 2147483647, %v14135_v45 }
 0x427   : > { %v3848_v32 = vmul.u32 %v3841_v38, %v3832_v9  ;;  %vm3850_vm4 = vc.u32 %v14229_v48, %v14216_v0  ;;  %v822_v55 = vmul.f32 %v12729_v11, %v11652_v61  ;;  %vm3684_vm5 = vcmp.eq.s32.totalorder %v14235_v33, 2 }
 0x428   : > { %v4704_v60 = vor.u32 4788187, %v4703_v47  ;;  %v3852_v35 = vsel %vm3850_vm4, %v3851_v29, %v14217_v62  ;;  %v4848_v57 = vsub.s32 32, %v4847_v26  ;;  %v4707_v14 = vcvt.s32.f32 %v4700_v27 }
 0x429   : > { %v10555_v43 = vpop.eup %10554  ;;  %v3853_v54 = vadd.s32 %v3852_v35, %v3848_v32  ;;  %v14244_v6 = vand.u32 3, %v4718_v49  ;;  %v4840_v38 = vand.u32 8388607, %v16919_v50  ;;  %v14248_v56 = vshrl.u32 %v4845_v13, 5 }
 0x42a   : > { %v4705_v8 = vand.u32 2147483647, %v4704_v60  ;;  %v954_v63 = vmul.f32 %v12747_v40, %v11724_v19  ;;  %vm3681_vm6 = vcmp.eq.s32.totalorder %v14235_v33, 0  ;;  %v4851_v62 = vshrl.u32 %v16972_v23, %v4848_v57  ;;  %v10409_v40 = vld [vmem:[%s17050_s6 + $0x8] sm:$0xff]  }
 0x42b   : > { %v10557_v2 = vpop.eup %10556  ;;  %v3854_v11 = vadd.s32 536870912, %v3853_v54  ;;  %v4854_v25 = vshrl.u32 %v16973_v34, %v4848_v57  ;;  %v3685_v21 = vxor.u32 2147483648, %v10555_v43  ;;  %v4850_v37 = vshll.u32 %v16976_v15, %v4847_v26  ;;  %9985 = vmatmul.mubr.msk.bf16.gmra.mrb[4].mxu0 %vm6357_vm0, %v10409_v40  ;;  %9988 = vmatmul.mubr.msk.bf16.gmra.mrb[4].mxu1 %vm6357_vm0, %v10409_v40 }
 0x42c   : > { %v4708_v42 = vmul.f32 %v4707_v14, %v4705_v8  ;;  %v4853_v51 = vshll.u32 %v16972_v23, %v4847_v26  ;;  %v4857_v12 = vshrl.u32 %v16974_v39, %v4848_v57  ;;  %v4856_v36 = vshll.u32 %v16973_v34, %v4847_v26 }
 0x42d   : > { %v14261_v10 = vshrl.u32 %v3854_v11, 30  ;;  %v4859_v31 = vshll.u32 %v16974_v39, %v4847_v26  ;;  %v3682_v9 = vxor.u32 2147483648, %v10557_v2  ;;  %v4860_v29 = vshrl.u32 %v16975_v24, %v4848_v57 }
 0x42e   : > { %v4709_v17 = vxor.u32 2147483648, %v4708_v42  ;;  %v4862_v13 = vshll.u32 %v16975_v24, %v4847_v26  ;;  %v4863_v27 = vshrl.u32 %v16977_v52, %v4848_v57  ;;  %vm3680_vm7 = vcmp.lt.s32.totalorder %v14235_v33, 2 }
 0x42f   : > { %v3856_v49 = vshll.u32 %v14261_v10, 30  ;;  %v4852_v60 = vor.u32 %v4851_v62, %v4850_v37  ;;  %v4855_v32 = vor.u32 %v4854_v25, %v4853_v51  ;;  %v17109_v35 = vmov 0  }
 0x430   : > { %v4710_v47 = vsel %vm4627_vm12, %v4709_v17, %v4708_v42  ;;  %6533 = vmatprep.mubr.bf16.mxu0 %v17109_v35  ;;  %6586 = vmatprep.mubr.bf16.mxu1 %v17109_v35  ;;  %v4858_v8 = vor.u32 %v4857_v12, %v4856_v36  ;;  %v4861_v14 = vor.u32 %v4860_v29, %v4859_v31  ;;  %v4841_v50 = vor.u32 8388608, %v4840_v38  ;;  %v17110_v17 = vld [vmem:[#allocation14_spill] sm:$0xff] }
 0x431   : > { %v4713_v26 = vsel %vm14186_vm11, %v13940_v18, %v4710_v47  ;;  %v4864_v11 = vor.u32 %v4863_v27, %v4862_v13  ;;  %v14279_v40 = vsub.s32 %v3853_v54, %v3856_v49  ;;  %v1004_v42 = vadd.f32 %v954_v63, %v822_v55 }
 0x432   : > { %10558 = vcosq.f32 %v4713_v26  ;;  %vm3677_vm8 = vweird.f32 %v13905_v16  ;;  %v3686_v62 = vsel %vm3684_vm5, %v3685_v21, %v10557_v2  ;;  %v4849_v25 = vshrl.u32 %v16976_v15, %v4848_v57 }
 0x433   : > { %10560 = vsinq.f32 %v4713_v26  ;;  %vm4865_vm10 = vcmp.lt.s32.totalorder %v14248_v56, 1  ;;  %v3859_v4 = vsub.s32 0, %v14279_v40  ;;  %vm4867_vm12 = vcmp.lt.s32.totalorder %v14248_v56, 3 }
 0x434   : > { %vm4868_vm11 = vcmp.lt.s32.totalorder %v14248_v56, 4  ;;  %v4873_v54 = vsel %vm4865_vm10, %v4852_v60, %v4855_v32  ;;  %v3683_v55 = vsel %vm3681_vm6, %v10555_v43, %v3682_v9  ;;  %vm4866_vm13 = vcmp.lt.s32.totalorder %v14248_v56, 2 }
 0x435   : > { %v4870_v38 = vsel %vm4868_vm11, %v4858_v8, 2102212464  ;;  %v4874_v63 = vsel %vm4868_vm11, %v4861_v14, 920167782  ;;  %v4878_v2 = vsel %vm4868_vm11, %v4864_v11, 1326507024  ;;  %v9886_v21 = vmin.u32 %v3859_v4, %v14279_v40 }
 0x436   : > { %v4875_v57 = vsel %vm4867_vm12, %v4858_v8, %v4874_v63  ;;  %v4877_v37 = vsel %vm4865_vm10, %v4855_v32, %v4858_v8  ;;  %v4879_v12 = vsel %vm4867_vm12, %v4861_v14, %v4878_v2  ;;  %v4881_v43 = vshll.u32 %v4841_v50, 8 }
 0x437   : > { %v4876_v51 = vsel %vm4866_vm13, %v4873_v54, %v4875_v57  ;;  %v14304_v36 = vadd.f32 %v17110_v17, %v1004_v42  ;;  %vm4720_vm14 = vcmp.lt.s32.totalorder %v14244_v6, 2  ;;  %vm4721_vm15 = vcmp.eq.s32.totalorder %v14244_v6, 0 }
 0x438   : > { %v3861_v31 = vclz %v9886_v21  ;;  %v4869_v9 = vsel %vm4865_vm10, %v4849_v25, %v4852_v60  ;;  %v4871_v29 = vsel %vm4867_vm12, %v4855_v32, %v4870_v38  ;;  %v3687_v13 = vsel %vm3680_vm7, %v3683_v55, %v3686_v62 }
 0x439   : > { %vm4717_vm3 = vweird.f32 %v13940_v18  ;;  %vm3795_vm2 = vcmp.lt.s32.totalorder %v14099_v41, 0  ;;  %v4880_v50 = vsel %vm4866_vm13, %v4877_v37, %v4879_v12  ;;  %vm4724_vm1 = vcmp.eq.s32.totalorder %v14244_v6, 2 }
 0x43a   : > { %v14318_v27 = vmul.u32.u64.low %v4881_v43, %v4876_v51  ;;  %v14319_v47 = vmul.u32.u64.high %v4881_v43, %v4876_v51, %v14318_v27  ;;  %v9887_v49 = vadd.s32 4294967294, %v3861_v31  ;;  %v3849_v33 = vadd.s32 %v14216_v0, %v14229_v48 }
 0x43b   : > { %v14322_v60 = vmul.u32.u64.low %v4881_v43, %v4880_v50  ;;  %v14323_v26 = vmul.u32.u64.high %v4881_v43, %v4880_v50, %v14322_v60  ;;  %v4872_v32 = vsel %vm4866_vm13, %v4869_v9, %v4871_v29  ;;  %v5772_v8 = vand.u32 2139095040, %v14304_v36 }
 0x43c   : > { %v824_v14 = vmul.f32 %v12897_v20, %v11652_v61  ;;  %v10559_v11 = vpop.eup %10558  ;;  %v3688_v42 = vsel %vm3677_vm8, nan, %v3687_v13  ;;  %vm9888_vm4 = vcmp.lt.s32.totalorder %v9887_v49, 0  ;;  %v3879_v62 = vsub.s32 4, %v14261_v10 }
 0x43d   : > { %v5769_v25 = vand.u32 2147483647, %v14304_v36  ;;  %v10561_v4 = vpop.eup %10560  ;;  %v4725_v54 = vxor.u32 2147483648, %v10559_v11  ;;  %v3864_v0 = vsel %vm9888_vm4, 0, %v9887_v49  ;;  %v4891_v48 = vadd.s32 1, %v14319_v47 }
 0x43e   : > { %v5773_v56 = vshrl.u32 %v5772_v8, 23  ;;  %v4722_v55 = vxor.u32 2147483648, %v10561_v4  ;;  %v3865_v38 = vsub.s32 32, %v3864_v0  ;;  %v3869_v63 = vsub.s32 4294967266, %v3864_v0 }
 0x43f   : > { %v4888_v2 = vmul.u32 %v4881_v43, %v4872_v32  ;;  %v4726_v20 = vsel %vm4724_vm1, %v4725_v54, %v10561_v4  ;;  %v3866_v16 = vshll.u32 %v14279_v40, %v3864_v0  ;;  %vm4890_vm5 = vc.u32 %v14323_v26, %v14318_v27 }
 0x440   : > { %v9961_v21 = vadd.s32 4294967169, %v5773_v56  ;;  %v4723_v57 = vsel %vm4721_vm15, %v10559_v11, %v4722_v55  ;;  %v3867_v37 = vshrl.u32 %v3849_v33, %v3865_v38  ;;  %v3870_v51 = vadd.s32 127, %v3869_v63 }
 0x441   : > { %v4892_v12 = vsel %vm4890_vm5, %v4891_v48, %v14319_v47  ;;  %v4727_v31 = vsel %vm4720_vm14, %v4723_v57, %v4726_v20  ;;  %v5776_v43 = vand.u32 8388607, %v5769_v25  ;;  %v3880_v49 = vsel %vm3795_vm2, %v3879_v62, %v14261_v10 }
 0x442   : > { %v4893_v9 = vadd.s32 %v4892_v12, %v4888_v2  ;;  %v5779_v29 = vadd.s32 1, %v9961_v21  ;;  %v4728_v40 = vsel %vm4717_vm3, nan, %v4727_v31  ;;  %v3868_v13 = vor.u32 %v3867_v37, %v3866_v16 }
 0x443   : > { %v3871_v50 = vshll.u32 %v3870_v51, 23  ;;  %v14353_v60 = vpack.c.bf16 %v4728_v40, %v3688_v42  ;;  %v956_v6 = vmul.f32 %v12905_v22, %v11724_v19  ;;  %vm14359_vm7 = vcmp.le.f32.partialorder %v3793_v7, 0.7853982 }
 0x444   : > { %v4894_v47 = vadd.s32 536870912, %v4893_v9  ;;  %vm5780_vm6 = vcmp.gt.s32.totalorder %v5779_v29, 0  ;;  %v3882_v10 = vsel %vm14359_vm7, 0, %v3880_v49  ;;  %v5777_v11 = vor.u32 8388608, %v5776_v43 }
 0x445   : > { %17111 = vst [vmem:[#allocation14_spill] sm:$0xff] %v14353_v60  ;;  %v3872_v18 = vor.u32 4788187, %v3871_v50  ;;  %v5781_v32 = vsel %vm5780_vm6, %v5779_v29, 0  ;;  %6504 = vmatpush1.bf16.msra.mxu0 %v14353_v60  ;;  %v3875_v4 = vcvt.s32.f32 %v3868_v13  ;;  %v1006_v0 = vadd.f32 %v956_v6, %v824_v14 }
 0x446   : > { %v4895_v8 = vshrl.u32 %v4894_v47, 30  ;;  %v5783_v42 = vand.u32 31, %v5781_v32  ;;  %v14366_v7 = vadd.s32 3, %v3882_v10  ;;  %vm4835_vm8 = vcmp.lt.s32.totalorder %v14135_v45, 0 }
 0x447   : > { %v3873_v62 = vand.u32 2147483647, %v3872_v18  ;;  %v4889_v56 = vadd.s32 %v14318_v27, %v14323_v26  ;;  %v14373_v63 = vshll.u32 %v5777_v11, 8  ;;  %v14376_v2 = vadd.f32 %v17110_v17, %v1006_v0 }
 0x448   : > { %v4896_v54 = vshll.u32 %v4895_v8, 30  ;;  %v5784_v22 = vsub.s32 32, %v5783_v42  ;;  %v4919_v16 = vsub.s32 4, %v4895_v8  ;;  %v5786_v37 = vshll.u32 %v16976_v15, %v5783_v42 }
 0x449   : > { %v3876_v48 = vmul.f32 %v3875_v4, %v3873_v62  ;;  %v5789_v27 = vshll.u32 %v16972_v23, %v5783_v42  ;;  %v5782_v12 = vshrl.u32 %v5781_v32, 5  ;;  %v5792_v31 = vshll.u32 %v16973_v34, %v5783_v42 }
 0x44a   : > { %v14370_v55 = vsub.s32 %v4893_v9, %v4896_v54  ;;  %v5787_v38 = vshrl.u32 %v16972_v23, %v5784_v22  ;;  %v5790_v14 = vshrl.u32 %v16973_v34, %v5784_v22  ;;  %v5793_v21 = vshrl.u32 %v16974_v39, %v5784_v22 }
 0x44b   : > { %v3877_v20 = vxor.u32 2147483648, %v3876_v48  ;;  %v5796_v26 = vshrl.u32 %v16975_v24, %v5784_v22  ;;  %v5795_v9 = vshll.u32 %v16974_v39, %v5783_v42  ;;  %v5798_v47 = vshll.u32 %v16975_v24, %v5783_v42 }
 0x44c   : > { %v4899_v57 = vsub.s32 0, %v14370_v55  ;;  %v5788_v40 = vor.u32 %v5787_v38, %v5786_v37  ;;  %v5791_v13 = vor.u32 %v5790_v14, %v5789_v27  ;;  %v5794_v50 = vor.u32 %v5793_v21, %v5792_v31 }
 0x44d   : > { %v3878_v51 = vsel %vm3795_vm2, %v3877_v20, %v3876_v48  ;;  %v5797_v49 = vor.u32 %v5796_v26, %v5795_v9  ;;  %v5799_v6 = vshrl.u32 %v16977_v52, %v5784_v22  ;;  %v4920_v32 = vsel %vm4835_vm8, %v4919_v16, %v4895_v8 }
 0x44e   : > { %v3881_v43 = vsel %vm14359_vm7, %v14099_v41, %v3878_v51  ;;  %v9926_v29 = vmin.u32 %v4899_v57, %v14370_v55  ;;  %v5980_v10 = vand.u32 2139095040, %v14376_v2  ;;  %v5785_v33 = vshrl.u32 %v16976_v15, %v5784_v22 }
 0x44f   : > { %10562 = vcosq.f32 %v3881_v43  ;;  %v5800_v11 = vor.u32 %v5799_v6, %v5798_v47  ;;  %vm5801_vm10 = vcmp.lt.s32.totalorder %v5782_v12, 1  ;;  %vm5803_vm12 = vcmp.lt.s32.totalorder %v5782_v12, 3 }
 0x450   : > { %v4901_v18 = vclz %v9926_v29  ;;  %10564 = vsinq.f32 %v3881_v43  ;;  %vm5804_vm11 = vcmp.lt.s32.totalorder %v5782_v12, 4  ;;  %v5809_v4 = vsel %vm5801_vm10, %v5788_v40, %v5791_v13 }
 0x451   : > { %v5806_v54 = vsel %vm5804_vm11, %v5794_v50, 2102212464  ;;  %v5810_v42 = vsel %vm5804_vm11, %v5797_v49, 920167782  ;;  %v5813_v0 = vsel %vm5801_vm10, %v5791_v13, %v5794_v50  ;;  %v5814_v48 = vsel %vm5804_vm11, %v5800_v11, 1326507024 }
 0x452   : > { %v9927_v62 = vadd.s32 4294967294, %v4901_v18  ;;  %vm5802_vm14 = vcmp.lt.s32.totalorder %v5782_v12, 2  ;;  %v5811_v38 = vsel %vm5803_vm12, %v5794_v50, %v5810_v42  ;;  %v5815_v8 = vsel %vm5803_vm12, %v5797_v49, %v5814_v48 }
 0x453   : > { %v5805_v16 = vsel %vm5801_vm10, %v5785_v33, %v5788_v40  ;;  %v5812_v22 = vsel %vm5802_vm14, %v5809_v4, %v5811_v38  ;;  %v5816_v14 = vsel %vm5802_vm14, %v5813_v0, %v5815_v8  ;;  %v5807_v37 = vsel %vm5803_vm12, %v5791_v13, %v5806_v54 }
 0x454   : > { %vm9928_vm13 = vcmp.lt.s32.totalorder %v9927_v62, 0  ;;  %v5981_v27 = vshrl.u32 %v5980_v10, 23  ;;  %v14404_v26 = vmul.u32.u64.low %v14373_v63, %v5816_v14  ;;  %v14405_v51 = vmul.u32.u64.high %v14373_v63, %v5816_v14, %v14404_v26 }
 0x455   : > { %v4904_v20 = vsel %vm9928_vm13, 0, %v9927_v62  ;;  %v14408_v31 = vmul.u32.u64.low %v14373_v63, %v5812_v22  ;;  %v14409_v9 = vmul.u32.u64.high %v14373_v63, %v5812_v22, %v14408_v31  ;;  %v17114_v49 = vand.u32 2147483647, %v14135_v45 }
 0x456   : > { %v4905_v21 = vsub.s32 32, %v4904_v20  ;;  %v4909_v57 = vsub.s32 4294967266, %v4904_v20  ;;  %v4906_v43 = vshll.u32 %v14370_v55, %v4904_v20  ;;  %v9969_v50 = vadd.s32 4294967169, %v5981_v27 }
 0x457   : > { %vm14415_vm15 = vcmp.le.f32.partialorder %v17114_v49, 0.7853982  ;;  %v5808_v13 = vsel %vm5802_vm14, %v5805_v16, %v5807_v37  ;;  %v5977_v6 = vand.u32 2147483647, %v14376_v2  ;;  %vm5826_vm3 = vc.u32 %v14405_v51, %v14408_v31 }
 0x458   : > { %v4907_v29 = vshrl.u32 %v4889_v56, %v4905_v21  ;;  %v4910_v40 = vadd.s32 127, %v4909_v57  ;;  %v4922_v11 = vsel %vm14415_vm15, 0, %v4920_v32  ;;  %v3887_v56 = vand.u32 3, %v14366_v7 }
 0x459   : > { %v10563_v18 = vpop.eup %10562  ;;  %v5827_v62 = vadd.s32 1, %v14409_v9  ;;  %v821_v12 = vmul.f32 %v13040_v44, %v11652_v61  ;;  %v5824_v54 = vmul.u32 %v14373_v63, %v5808_v13  ;;  %v5987_v42 = vadd.s32 1, %v9969_v50 }
 0x45a   : > { %v4908_v10 = vor.u32 %v4907_v29, %v4906_v43  ;;  %v4911_v33 = vshll.u32 %v4910_v40, 23  ;;  %v10565_v55 = vpop.eup %10564  ;;  %v953_v0 = vmul.f32 %v13050_v46, %v11724_v19  ;;  %v3893_v48 = vxor.u32 2147483648, %v10563_v18 }
 0x45b   : > { %v4926_v32 = vadd.s32 3, %v4922_v11  ;;  %v5828_v38 = vsel %vm5826_vm3, %v5827_v62, %v14409_v9  ;;  %v5984_v7 = vand.u32 8388607, %v5977_v6  ;;  %vm5988_vm2 = vcmp.gt.s32.totalorder %v5987_v42, 0 }
 0x45c   : > { %v4912_v4 = vor.u32 4788187, %v4911_v33  ;;  %v4915_v20 = vcvt.s32.f32 %v4908_v10  ;;  %v5829_v16 = vadd.s32 %v5828_v38, %v5824_v54  ;;  %vm3889_vm1 = vcmp.eq.s32.totalorder %v3887_v56, 0 }
 0x45d   : > { %v3890_v44 = vxor.u32 2147483648, %v10565_v55  ;;  %vm3892_vm4 = vcmp.eq.s32.totalorder %v3887_v56, 2  ;;  %v5989_v22 = vsel %vm5988_vm2, %v5987_v42, 0  ;;  %vm3888_vm5 = vcmp.lt.s32.totalorder %v3887_v56, 2 }
 0x45e   : > { %v4913_v8 = vand.u32 2147483647, %v4912_v4  ;;  %v5830_v14 = vadd.s32 536870912, %v5829_v16  ;;  %v5991_v21 = vand.u32 31, %v5989_v22  ;;  %v14437_v46 = vmul.f32 %v13272_v59, %v11652_v61 }
 0x45f   : > { %v14439_v57 = vand.u32 3, %v4926_v32  ;;  %v5985_v37 = vor.u32 8388608, %v5984_v7  ;;  %v1003_v27 = vadd.f32 %v953_v0, %v821_v12  ;;  %v14443_v26 = vmul.f32 %v13281_v58, %v11724_v19 }
 0x460   : > { %v4916_v63 = vmul.f32 %v4915_v20, %v4913_v8  ;;  %v3894_v9 = vsel %vm3892_vm4, %v3893_v48, %v10565_v55  ;;  %v5831_v29 = vshrl.u32 %v5830_v14, 30  ;;  %v5992_v40 = vsub.s32 32, %v5991_v21 }
 0x461   : > { %v3891_v50 = vsel %vm3889_vm1, %v10563_v18, %v3890_v44  ;;  %vm5771_vm6 = vcmp.lt.s32.totalorder %v14304_v36, 0  ;;  %v14447_v49 = vshrl.u32 %v5989_v22, 5  ;;  %v5994_v59 = vshll.u32 %v16976_v15, %v5991_v21 }
 0x462   : > { %v4917_v43 = vxor.u32 2147483648, %v4916_v63  ;;  %v14451_v13 = vadd.f32 %v17110_v17, %v1003_v27  ;;  %v5832_v58 = vshll.u32 %v5831_v29, 30  ;;  %v5997_v33 = vshll.u32 %v16972_v23, %v5991_v21 }
 0x463   : > { %v6000_v11 = vshll.u32 %v16973_v34, %v5991_v21  ;;  %v5995_v55 = vshrl.u32 %v16972_v23, %v5992_v40  ;;  %v5998_v62 = vshrl.u32 %v16973_v34, %v5992_v40  ;;  %v6001_v12 = vshrl.u32 %v16974_v39, %v5992_v40 }
 0x464   : > { %v4918_v10 = vsel %vm4835_vm8, %v4917_v43, %v4916_v63  ;;  %v14463_v4 = vsub.s32 %v5829_v16, %v5832_v58  ;;  %v6003_v54 = vshll.u32 %v16974_v39, %v5991_v21  ;;  %v6004_v42 = vshrl.u32 %v16975_v24, %v5992_v40 }
 0x465   : > { %v4921_v18 = vsel %vm14415_vm15, %v14135_v45, %v4918_v10  ;;  %v5825_v0 = vadd.s32 %v14408_v31, %v14405_v51  ;;  %v5996_v48 = vor.u32 %v5995_v55, %v5994_v59  ;;  %v5999_v47 = vor.u32 %v5998_v62, %v5997_v33 }
 0x466   : > { %10566 = vcosq.f32 %v4921_v18  ;;  %vm3885_vm7 = vweird.f32 %v14099_v41  ;;  %v5835_v32 = vsub.s32 0, %v14463_v4  ;;  %v5855_v38 = vsub.s32 4, %v5831_v29 }
 0x467   : > { %10568 = vsinq.f32 %v4921_v18  ;;  %v6002_v7 = vor.u32 %v6001_v12, %v6000_v11  ;;  %v6005_v8 = vor.u32 %v6004_v42, %v6003_v54  ;;  %v3895_v20 = vsel %vm3888_vm5, %v3891_v50, %v3894_v9 }
 0x468   : > { %v6006_v16 = vshll.u32 %v16975_v24, %v5991_v21  ;;  %v6007_v44 = vshrl.u32 %v16977_v52, %v5992_v40  ;;  %v6025_v22 = vshll.u32 %v5985_v37, 8  ;;  %vm4932_vm8 = vcmp.eq.s32.totalorder %v14439_v57, 2 }
 0x469   : > { %vm14477_vm10 = vcmp.le.f32.partialorder %v5769_v25, 0.7853982  ;;  %v9962_v31 = vmin.u32 %v5835_v32, %v14463_v4  ;;  %vm6009_vm12 = vcmp.lt.s32.totalorder %v14447_v49, 1  ;;  %vm6012_vm11 = vcmp.lt.s32.totalorder %v14447_v49, 4 }
 0x46a   : > { %v5668_v56 = vand.u32 2139095040, %v14451_v13  ;;  %vm4929_vm13 = vcmp.eq.s32.totalorder %v14439_v57, 0  ;;  %v5993_v63 = vshrl.u32 %v16976_v15, %v5992_v40  ;;  %v6008_v14 = vor.u32 %v6007_v44, %v6006_v16 }
 0x46b   : > { %v6017_v21 = vsel %vm6009_vm12, %v5996_v48, %v5999_v47  ;;  %v6018_v25 = vsel %vm6012_vm11, %v6005_v8, 920167782  ;;  %vm4928_vm14 = vcmp.lt.s32.totalorder %v14439_v57, 2  ;;  %v5837_v37 = vclz %v9962_v31 }
 0x46c   : > { %v5856_v27 = vsel %vm5771_vm6, %v5855_v38, %v5831_v29  ;;  %vm6011_vm15 = vcmp.lt.s32.totalorder %v14447_v49, 3  ;;  %v6014_v9 = vsel %vm6012_vm11, %v6002_v7, 2102212464  ;;  %vm4925_vm3 = vweird.f32 %v14135_v45 }
 0x46d   : > { %vm6010_vm2 = vcmp.lt.s32.totalorder %v14447_v49, 2  ;;  %v6019_v43 = vsel %vm6011_vm15, %v6002_v7, %v6018_v25  ;;  %v6021_v40 = vsel %vm6009_vm12, %v5999_v47, %v6002_v7  ;;  %v6022_v50 = vsel %vm6012_vm11, %v6008_v14, 1326507024 }
 0x46e   : > { %v9963_v59 = vadd.s32 4294967294, %v5837_v37  ;;  %v6013_v29 = vsel %vm6009_vm12, %v5993_v63, %v5996_v48  ;;  %v6020_v10 = vsel %vm6010_vm2, %v6017_v21, %v6019_v43  ;;  %v6023_v58 = vsel %vm6011_vm15, %v6005_v8, %v6022_v50 }
 0x46f   : > { %v6015_v33 = vsel %vm6011_vm15, %v5999_v47, %v6014_v9  ;;  %v6024_v11 = vsel %vm6010_vm2, %v6021_v40, %v6023_v58  ;;  %v14509_v18 = vmul.u32.u64.low %v6025_v22, %v6020_v10  ;;  %v14510_v55 = vmul.u32.u64.high %v6025_v22, %v6020_v10, %v14509_v18 }
 0x470   : > { %v10567_v62 = vpop.eup %10566  ;;  %vm9964_vm1 = vcmp.lt.s32.totalorder %v9963_v59, 0  ;;  %v14513_v12 = vmul.u32.u64.low %v6025_v22, %v6024_v11  ;;  %v14514_v54 = vmul.u32.u64.high %v6025_v22, %v6024_v11, %v14513_v12  ;;  %v5669_v42 = vshrl.u32 %v5668_v56, 23 }
 0x471   : > { %v10569_v32 = vpop.eup %10568  ;;  %v3896_v48 = vsel %vm3885_vm7, nan, %v3895_v20  ;;  %v4933_v38 = vxor.u32 2147483648, %v10567_v62  ;;  %v5840_v7 = vsel %vm9964_vm1, 0, %v9963_v59  ;;  %v5665_v47 = vand.u32 2147483647, %v14451_v13 }
 0x472   : > { %v4930_v8 = vxor.u32 2147483648, %v10569_v32  ;;  %v5841_v16 = vsub.s32 32, %v5840_v7  ;;  %v5845_v44 = vsub.s32 4294967266, %v5840_v7  ;;  %v6016_v31 = vsel %vm6010_vm2, %v6013_v29, %v6015_v33 }
 0x473   : > { %v4934_v63 = vsel %vm4932_vm8, %v4933_v38, %v10569_v32  ;;  %v5858_v56 = vsel %vm14477_vm10, 0, %v5856_v27  ;;  %v6035_v14 = vadd.s32 1, %v14510_v55  ;;  %v9957_v41 = vadd.s32 4294967169, %v5669_v42 }
 0x474   : > { %v4931_v20 = vsel %vm4929_vm13, %v10567_v62, %v4930_v8  ;;  %v5842_v21 = vshll.u32 %v14463_v4, %v5840_v7  ;;  %v5843_v25 = vshrl.u32 %v5825_v0, %v5841_v16  ;;  %v5846_v37 = vadd.s32 127, %v5845_v44 }
 0x475   : > { %v4935_v49 = vsel %vm4928_vm14, %v4931_v20, %v4934_v63  ;;  %v6032_v9 = vmul.u32 %v6025_v22, %v6016_v31  ;;  %vm6034_vm4 = vc.u32 %v14514_v54, %v14509_v18  ;;  %v5675_v43 = vadd.s32 1, %v9957_v41 }
 0x476   : > { %v4936_v27 = vsel %vm4925_vm3, nan, %v4935_v49  ;;  %v5844_v40 = vor.u32 %v5843_v25, %v5842_v21  ;;  %v5847_v50 = vshll.u32 %v5846_v37, 23  ;;  %v6036_v59 = vsel %vm6034_vm4, %v6035_v14, %v14510_v55 }
 0x477   : > { %v14536_v29 = vpack.c.bf16 %v4936_v27, %v3896_v48  ;;  %v6037_v4 = vadd.s32 %v6036_v59, %v6032_v9  ;;  %vm5676_vm5 = vcmp.gt.s32.totalorder %v5675_v43, 0  ;;  %v5862_v10 = vadd.s32 3, %v5858_v56 }
 0x478   : > { %v5848_v0 = vor.u32 4788187, %v5847_v50  ;;  %v5672_v57 = vand.u32 8388607, %v5665_v47  ;;  %v5677_v22 = vsel %vm5676_vm5, %v5675_v43, 0  ;;  %v5851_v11 = vcvt.s32.f32 %v5844_v40 }
 0x479   : > { %17119 = vst [vmem:[#allocation30_spill] sm:$0xff] %v14536_v29  ;;  %6557 = vmatpush1.bf16.msra.mxu1 %v14536_v29  ;;  %v6038_v58 = vadd.s32 536870912, %v6037_v4  ;;  %v5679_v33 = vand.u32 31, %v5677_v22  ;;  %v1005_v62 = vadd.f32 %v14443_v26, %v14437_v46  ;;  %v14543_v32 = vand.u32 3, %v5862_v10 }
 0x47a   : > { %v5849_v45 = vand.u32 2147483647, %v5848_v0  ;;  %v5673_v48 = vor.u32 8388608, %v5672_v57  ;;  %v5678_v8 = vshrl.u32 %v5677_v22, 5  ;;  %vm5979_vm7 = vcmp.lt.s32.totalorder %v14376_v2, 0 }
 0x47b   : > { %v6039_v55 = vshrl.u32 %v6038_v58, 30  ;;  %v5680_v12 = vsub.s32 32, %v5679_v33  ;;  %v14546_v38 = vadd.f32 %v17110_v17, %v1005_v62  ;;  %v5682_v16 = vshll.u32 %v16976_v15, %v5679_v33 }
 0x47c   : > { %v5852_v42 = vmul.f32 %v5851_v11, %v5849_v45  ;;  %v5685_v14 = vshll.u32 %v16972_v23, %v5679_v33  ;;  %v5688_v41 = vshll.u32 %v16973_v34, %v5679_v33  ;;  %v5691_v37 = vshll.u32 %v16974_v39, %v5679_v33 }
 0x47d   : > { %v6040_v7 = vshll.u32 %v6039_v55, 30  ;;  %v5683_v44 = vshrl.u32 %v16972_v23, %v5680_v12  ;;  %v5686_v63 = vshrl.u32 %v16973_v34, %v5680_v12  ;;  %v5689_v46 = vshrl.u32 %v16974_v39, %v5680_v12 }
 0x47e   : > { %v5853_v31 = vxor.u32 2147483648, %v5852_v42  ;;  %v5692_v26 = vshrl.u32 %v16975_v24, %v5680_v12  ;;  %v5695_v20 = vshrl.u32 %v16977_v52, %v5680_v12  ;;  %v5694_v49 = vshll.u32 %v16975_v24, %v5679_v33 }
 0x47f   : > { %v14554_v56 = vsub.s32 %v6037_v4, %v6040_v7  ;;  %v5684_v25 = vor.u32 %v5683_v44, %v5682_v16  ;;  %v5687_v27 = vor.u32 %v5686_v63, %v5685_v14  ;;  %v5690_v40 = vor.u32 %v5689_v46, %v5688_v41 }
 0x480   : > { %v5854_v21 = vsel %vm5771_vm6, %v5853_v31, %v5852_v42  ;;  %v5693_v50 = vor.u32 %v5692_v26, %v5691_v37  ;;  %v5696_v59 = vor.u32 %v5695_v20, %v5694_v49  ;;  %v14567_v4 = vshll.u32 %v5673_v48, 8 }
 0x481   : > { %v5857_v9 = vsel %vm14477_vm10, %v14304_v36, %v5854_v21  ;;  %v6043_v43 = vsub.s32 0, %v14554_v56  ;;  %vm14571_vm6 = vcmp.le.f32.partialorder %v5977_v6, 0.7853982  ;;  %v6063_v51 = vsub.s32 4, %v6039_v55 }
 0x482   : > { %10570 = vcosq.f32 %v5857_v9  ;;  %v5876_v57 = vand.u32 2139095040, %v14546_v38  ;;  %v5681_v22 = vshrl.u32 %v16976_v15, %v5680_v12  ;;  %vm5697_vm8 = vcmp.lt.s32.totalorder %v5678_v8, 1 }
 0x483   : > { %10572 = vsinq.f32 %v5857_v9  ;;  %v9970_v10 = vmin.u32 %v6043_v43, %v14554_v56  ;;  %vm5698_vm10 = vcmp.lt.s32.totalorder %v5678_v8, 2  ;;  %vm5699_vm12 = vcmp.lt.s32.totalorder %v5678_v8, 3 }
 0x484   : > { %vm5700_vm11 = vcmp.lt.s32.totalorder %v5678_v8, 4  ;;  %v5705_v33 = vsel %vm5697_vm8, %v5684_v25, %v5687_v27  ;;  %v5709_v45 = vsel %vm5697_vm8, %v5687_v27, %v5690_v40  ;;  %v5701_v11 = vsel %vm5697_vm8, %v5681_v22, %v5684_v25 }
 0x485   : > { %v6045_v58 = vclz %v9970_v10  ;;  %v5702_v62 = vsel %vm5700_vm11, %v5690_v40, 2102212464  ;;  %v5706_v6 = vsel %vm5700_vm11, %v5693_v50, 920167782  ;;  %v5710_v42 = vsel %vm5700_vm11, %v5696_v59, 1326507024 }
 0x486   : > { %v5703_v7 = vsel %vm5699_vm12, %v5687_v27, %v5702_v62  ;;  %v5707_v16 = vsel %vm5699_vm12, %v5690_v40, %v5706_v6  ;;  %v5711_v44 = vsel %vm5699_vm12, %v5693_v50, %v5710_v42  ;;  %vm5864_vm13 = vcmp.lt.s32.totalorder %v14543_v32, 2 }
 0x487   : > { %v9971_v48 = vadd.s32 4294967294, %v6045_v58  ;;  %v6064_v12 = vsel %vm5979_vm7, %v6063_v51, %v6039_v55  ;;  %v5708_v31 = vsel %vm5698_vm10, %v5705_v33, %v5707_v16  ;;  %v5712_v63 = vsel %vm5698_vm10, %v5709_v45, %v5711_v44 }
 0x488   : > { %v5877_v46 = vshrl.u32 %v5876_v57, 23  ;;  %v5704_v26 = vsel %vm5698_vm10, %v5701_v11, %v5703_v7  ;;  %v14585_v14 = vmul.u32.u64.low %v14567_v4, %v5712_v63  ;;  %v14586_v41 = vmul.u32.u64.high %v14567_v4, %v5712_v63, %v14585_v14  ;;  %v14605_v11 = vld [vmem:[%s10942_s5 + $0x10] ss:$2 sm:$0x3] }
 0x489   : > { %vm9972_vm14 = vcmp.lt.s32.totalorder %v9971_v48, 0  ;;  %v14589_v21 = vmul.u32.u64.low %v14567_v4, %v5708_v31  ;;  %v14590_v25 = vmul.u32.u64.high %v14567_v4, %v5708_v31, %v14589_v21  ;;  %vm5865_vm15 = vcmp.eq.s32.totalorder %v14543_v32, 0  ;;  %v17122_v31 = vld [vmem:[#allocation5_spill] sm:$0xff] }
 0x48a   : > { %v6048_v20 = vsel %vm9972_vm14, 0, %v9971_v48  ;;  %v9965_v37 = vadd.s32 4294967169, %v5877_v46  ;;  %v6033_v55 = vadd.s32 %v14509_v18, %v14514_v54  ;;  %vm5868_vm3 = vcmp.eq.s32.totalorder %v14543_v32, 2 }
 0x48b   : > { %v6049_v49 = vsub.s32 32, %v6048_v20  ;;  %v6053_v9 = vsub.s32 4294967266, %v6048_v20  ;;  %v6066_v43 = vsel %vm14571_vm6, 0, %v6064_v12  ;;  %v5720_v27 = vmul.u32 %v14567_v4, %v5704_v26 }
 0x48c   : > { %v10571_v8 = vpop.eup %10570  ;;  %v5883_v40 = vadd.s32 1, %v9965_v37  ;;  %v6050_v10 = vshll.u32 %v14554_v56, %v6048_v20  ;;  %vm5722_vm2 = vc.u32 %v14586_v41, %v14589_v21  ;;  %v5723_v18 = vadd.s32 1, %v14590_v25 }
 0x48d   : > { %v10573_v50 = vpop.eup %10572  ;;  %v5869_v59 = vxor.u32 2147483648, %v10571_v8  ;;  %v6051_v51 = vshrl.u32 %v6033_v55, %v6049_v49  ;;  %v6054_v57 = vadd.s32 127, %v6053_v9  ;;  %v5873_v62 = vand.u32 2147483647, %v14546_v38 }
 0x48e   : > { %v5866_v22 = vxor.u32 2147483648, %v10573_v50  ;;  %vm5884_vm1 = vcmp.gt.s32.totalorder %v5883_v40, 0  ;;  %v5724_v56 = vsel %vm5722_vm2, %v5723_v18, %v14590_v25  ;;  %vm5861_vm4 = vweird.f32 %v14304_v36 }
 0x48f   : > { %v5870_v54 = vsel %vm5868_vm3, %v5869_v59, %v10573_v50  ;;  %v6052_v58 = vor.u32 %v6051_v51, %v6050_v10  ;;  %v6055_v33 = vshll.u32 %v6054_v57, 23  ;;  %v5885_v45 = vsel %vm5884_vm1, %v5883_v40, 0 }
 0x490   : > { %v5867_v4 = vsel %vm5865_vm15, %v10571_v8, %v5866_v22  ;;  %v5887_v6 = vand.u32 31, %v5885_v45  ;;  %v5725_v7 = vadd.s32 %v5724_v56, %v5720_v27  ;;  %v6070_v44 = vadd.s32 3, %v6066_v43  ;;  %v14638_v22 = vld [vmem:[%s10942_s5 + $0x11] ss:$2 sm:$0x3]  ;;  %s16753_s5 = scalar_lea.vmem %s16807_s22, %s9777_s30 }
 0x491   : > { %v5871_v42 = vsel %vm5864_vm13, %v5867_v4, %v5870_v54  ;;  %v6056_v48 = vor.u32 4788187, %v6055_v33  ;;  %v14616_v63 = vrot.slane %v14605_v11, %v17122_v31  ;;  %v6059_v14 = vcvt.s32.f32 %v6052_v58 }
 0x492   : > { %v5872_v16 = vsel %vm5861_vm4, nan, %v5871_v42  ;;  %v5888_v12 = vsub.s32 32, %v5887_v6  ;;  %v5726_v20 = vadd.s32 536870912, %v5725_v7  ;;  %v5880_v36 = vand.u32 8388607, %v5873_v62 }
 0x493   : > { %v14618_v46 = vpack.c.bf16 %v5872_v16, %v5872_v16  ;;  %v6057_v26 = vand.u32 2147483647, %v6056_v48  ;;  %v5890_v32 = vshll.u32 %v16976_v15, %v5887_v6  ;;  %v14631_v43 = vand.u32 3, %v6070_v44 }
 0x494   : > { %v5891_v25 = vshrl.u32 %v16972_v23, %v5888_v12  ;;  %v5894_v37 = vshrl.u32 %v16973_v34, %v5888_v12  ;;  %v14627_v49 = vshrl.u32 %v5726_v20, 30  ;;  %v5897_v9 = vshrl.u32 %v16974_v39, %v5888_v12 }
 0x495   : > { %17123 = vst [vmem:[#allocation5_spill] sm:$0xff] %v14618_v46  ;;  %9989 = vmatprep.subr.msk.bf16.mxu0 %vm6364_vm9, %v14618_v46  ;;  %v6060_v55 = vmul.f32 %v6059_v14, %v6057_v26  ;;  %v5900_v8 = vshrl.u32 %v16975_v24, %v5888_v12  ;;  %v5886_v27 = vshrl.u32 %v5885_v45, 5  ;;  %v5893_v40 = vshll.u32 %v16972_v23, %v5887_v6 }
 0x496   : > { %v5899_v50 = vshll.u32 %v16974_v39, %v5887_v6  ;;  %v5728_v10 = vshll.u32 %v14627_v49, 30  ;;  %v5892_v51 = vor.u32 %v5891_v25, %v5890_v32  ;;  %v5896_v57 = vshll.u32 %v16973_v34, %v5887_v6 }
 0x497   : > { %v6061_v59 = vxor.u32 2147483648, %v6060_v55  ;;  %v5895_v18 = vor.u32 %v5894_v37, %v5893_v40  ;;  %v5902_v58 = vshll.u32 %v16975_v24, %v5887_v6  ;;  %v5903_v33 = vshrl.u32 %v16977_v52, %v5888_v12 }
 0x498   : > { %v5901_v54 = vor.u32 %v5900_v8, %v5899_v50  ;;  %v14644_v4 = vsub.s32 %v5725_v7, %v5728_v10  ;;  %v5881_v56 = vor.u32 8388608, %v5880_v36  ;;  %v5898_v42 = vor.u32 %v5897_v9, %v5896_v57  ;;  %v17124_v9 = vld [vmem:[#allocation4_spill] sm:$0xff] }
 0x499   : > { %v6062_v45 = vsel %vm5979_vm7, %v6061_v59, %v6060_v55  ;;  %v5889_v16 = vshrl.u32 %v16976_v15, %v5888_v12  ;;  %v5904_v44 = vor.u32 %v5903_v33, %v5902_v58  ;;  %v14652_v26 = vrot.slane %v14638_v22, %v17122_v31 }
 0x49a   : > { %v6065_v48 = vsel %vm14571_vm6, %v14376_v2, %v6062_v45  ;;  %v5731_v6 = vsub.s32 0, %v14644_v4  ;;  %vm5905_vm5 = vcmp.lt.s32.totalorder %v5886_v27, 1  ;;  %vm5908_vm7 = vcmp.lt.s32.totalorder %v5886_v27, 4  ;;  %v17125_v45 = vld [vmem:[#allocation3_spill] sm:$0xff] }
 0x49b   : > { %10574 = vcosq.f32 %v6065_v48  ;;  %vm5907_vm8 = vcmp.lt.s32.totalorder %v5886_v27, 3  ;;  %v5913_v7 = vsel %vm5905_vm5, %v5892_v51, %v5895_v18  ;;  %v5914_v14 = vsel %vm5908_vm7, %v5901_v54, 920167782 }
 0x49c   : > { %10576 = vsinq.f32 %v6065_v48  ;;  %v9958_v0 = vmin.u32 %v5731_v6, %v14644_v4  ;;  %vm5906_vm6 = vcmp.lt.s32.totalorder %v5886_v27, 2  ;;  %v5910_v20 = vsel %vm5908_vm7, %v5898_v42, 2102212464 }
 0x49d   : > { %v5915_v12 = vsel %vm5907_vm8, %v5898_v42, %v5914_v14  ;;  %v5917_v31 = vsel %vm5905_vm5, %v5895_v18, %v5898_v42  ;;  %v5918_v32 = vsel %vm5908_vm7, %v5904_v44, 1326507024  ;;  %v5921_v25 = vshll.u32 %v5881_v56, 8  ;;  %v17126_v42 = vld [vmem:[#allocation7_spill] sm:$0xff]  ;;  %v17127_v14 = vld [vmem:[#allocation6_spill] sm:$0xff] }
 0x49e   : > { %v5916_v36 = vsel %vm5906_vm6, %v5913_v7, %v5915_v12  ;;  %vm5667_vm10 = vcmp.lt.s32.totalorder %v14451_v13, 0  ;;  %v5733_v37 = vclz %v9958_v0  ;;  %v5909_v55 = vsel %vm5905_vm5, %v5889_v16, %v5892_v51 }
 0x49f   : > { %v786_v8 = vmul.f32 %v14616_v63, %v17124_v9  ;;  %v5911_v40 = vsel %vm5907_vm8, %v5895_v18, %v5910_v20  ;;  %v5919_v50 = vsel %vm5907_vm8, %v5901_v54, %v5918_v32  ;;  %vm6072_vm12 = vcmp.lt.s32.totalorder %v14631_v43, 2 }
 0x4a0   : > { %v14666_v59 = vmul.u32.u64.low %v5921_v25, %v5916_v36  ;;  %v14667_v10 = vmul.u32.u64.high %v5921_v25, %v5916_v36, %v14666_v59  ;;  %v9959_v57 = vadd.s32 4294967294, %v5733_v37  ;;  %v5751_v58 = vsub.s32 4, %v14627_v49 }
 0x4a1   : > { %v5920_v33 = vsel %vm5906_vm6, %v5917_v31, %v5919_v50  ;;  %v918_v51 = vmul.f32 %v14652_v26, %v17125_v45  ;;  %vm6073_vm11 = vcmp.eq.s32.totalorder %v14631_v43, 0  ;;  %vm6076_vm13 = vcmp.eq.s32.totalorder %v14631_v43, 2  ;;  %v17128_v31 = vld [vmem:[#allocation11_spill] sm:$0xff] }
 0x4a2   : > { %v14677_v18 = vmul.u32.u64.low %v5921_v25, %v5920_v33  ;;  %v14678_v54 = vmul.u32.u64.high %v5921_v25, %v5920_v33, %v14677_v18  ;;  %vm9960_vm14 = vcmp.lt.s32.totalorder %v9959_v57, 0  ;;  %v5912_v56 = vsel %vm5906_vm6, %v5909_v55, %v5911_v40 }
 0x4a3   : > { %v796_v48 = vmul.f32 %v14616_v63, %v17126_v42  ;;  %v968_v16 = vadd.f32 %v918_v51, %v786_v8  ;;  %v5721_v44 = vadd.s32 %v14589_v21, %v14586_v41  ;;  %v5736_v6 = vsel %vm9960_vm14, 0, %v9959_v57 }
 0x4a4   : > { %v5931_v7 = vadd.s32 1, %v14667_v10  ;;  %v928_v0 = vmul.f32 %v14652_v26, %v17127_v14  ;;  %v5737_v12 = vsub.s32 32, %v5736_v6  ;;  %v5741_v36 = vsub.s32 4294967266, %v5736_v6 }
 0x4a5   : > { %v10575_v20 = vpop.eup %10574  ;;  %v5752_v27 = vsel %vm5667_vm10, %v5751_v58, %v14627_v49  ;;  %v14692_v32 = vadd.f32 %v17128_v31, %v968_v16  ;;  %v5738_v41 = vshll.u32 %v14644_v4, %v5736_v6  ;;  %v5928_v21 = vmul.u32 %v5921_v25, %v5912_v56 }
 0x4a6   : > { %v10577_v37 = vpop.eup %10576  ;;  %v6077_v55 = vxor.u32 2147483648, %v10575_v20  ;;  %vm5930_vm15 = vc.u32 %v14678_v54, %v14666_v59  ;;  %v5739_v40 = vshrl.u32 %v5721_v44, %v5737_v12  ;;  %v5742_v50 = vadd.s32 127, %v5741_v36  ;;  %v17129_v44 = vld [vmem:[#allocation10_spill] sm:$0xff] }
 0x4a7   : > { %v6074_v8 = vxor.u32 2147483648, %v10577_v37  ;;  %v5932_v57 = vsel %vm5930_vm15, %v5931_v7, %v14667_v10  ;;  %v978_v58 = vadd.f32 %v928_v0, %v796_v48  ;;  %v16921_v51 = vand.u32 2147483647, %v14692_v32 }
 0x4a8   : > { %v6078_v33 = vsel %vm6076_vm13, %v6077_v55, %v10577_v37  ;;  %v5933_v49 = vadd.s32 %v5932_v57, %v5928_v21  ;;  %v5740_v4 = vor.u32 %v5739_v40, %v5738_v41  ;;  %v5743_v25 = vshll.u32 %v5742_v50, 23 }
 0x4a9   : > { %v6075_v18 = vsel %vm6073_vm11, %v10575_v20, %v6074_v8  ;;  %v2028_v56 = vand.u32 2139095040, %v14692_v32  ;;  %vm6069_vm3 = vweird.f32 %v14376_v2  ;;  %v14708_v6 = vadd.f32 %v17129_v44, %v978_v58  ;;  %v17133_v8 = vld [vmem:[#allocation12_spill] sm:$0xff] }
 0x4aa   : > { %v6079_v16 = vsel %vm6072_vm12, %v6075_v18, %v6078_v33  ;;  %v5934_v10 = vadd.s32 536870912, %v5933_v49  ;;  %vm14712_vm2 = vcmp.le.f32.partialorder %v5665_v47, 0.7853982  ;;  %v5744_v0 = vor.u32 4788187, %v5743_v25 }
 0x4ab   : > { %v6080_v7 = vsel %vm6069_vm3, nan, %v6079_v16  ;;  %v2029_v20 = vshrl.u32 %v2028_v56, 23  ;;  %v5754_v2 = vsel %vm14712_vm2, 0, %v5752_v27  ;;  %v2032_v36 = vand.u32 8388607, %v16921_v51 }
 0x4ac   : > { %v14716_v12 = vpack.c.bf16 %v6080_v7, %v6080_v7  ;;  %v5935_v43 = vshrl.u32 %v5934_v10, 30  ;;  %v5745_v37 = vand.u32 2147483647, %v5744_v0  ;;  %v5747_v55 = vcvt.s32.f32 %v5740_v4 }
 0x4ad   : > { %v9817_v41 = vadd.s32 4294967169, %v2029_v20  ;;  %v14726_v40 = vrot.slane %v14605_v11, %v17133_v8  ;;  %v3068_v50 = vand.u32 2139095040, %v14708_v6  ;;  %v5758_v27 = vadd.s32 3, %v5754_v2 }
 0x4ae   : > { %17132 = vst [vmem:[#allocation4_spill] sm:$0xff] %v14716_v12  ;;  %9992 = vmatprep.subr.msk.bf16.mxu1 %vm6364_vm9, %v14716_v12  ;;  %v5936_v47 = vshll.u32 %v5935_v43, 30  ;;  %v5959_v21 = vsub.s32 4, %v5935_v43  ;;  %v5748_v57 = vmul.f32 %v5747_v55, %v5745_v37  ;;  %vm5875_vm1 = vcmp.lt.s32.totalorder %v14546_v38, 0 }
 0x4af   : > { %v2035_v33 = vadd.s32 1, %v9817_v41  ;;  %vm14732_vm4 = vcmp.le.f32.partialorder %v5873_v62, 0.7853982  ;;  %v2033_v4 = vor.u32 8388608, %v2032_v36  ;;  %v3069_v25 = vshrl.u32 %v3068_v50, 23 }
 0x4b0   : > { %v14736_v18 = vsub.s32 %v5933_v49, %v5936_v47  ;;  %v5749_v56 = vxor.u32 2147483648, %v5748_v57  ;;  %v14740_v11 = vrot.slane %v14638_v22, %v17133_v8  ;;  %v16920_v16 = vand.u32 2147483647, %v14708_v6 }
 0x4b1   : > { %vm2036_vm5 = vcmp.gt.s32.totalorder %v2035_v33, 0  ;;  %v14746_v62 = vsel %vm5875_vm1, %v5959_v21, %v5935_v43  ;;  %v9857_v0 = vadd.s32 4294967169, %v3069_v25  ;;  %v14750_v20 = vand.u32 3, %v5758_v27 }
 0x4b2   : > { %v5939_v10 = vsub.s32 0, %v14736_v18  ;;  %v2037_v7 = vsel %vm2036_vm5, %v2035_v33, 0  ;;  %v5750_v49 = vsel %vm5667_vm10, %v5749_v56, %v5748_v57  ;;  %v14754_v22 = vmul.f32 %v14726_v40, %v17124_v9 }
 0x4b3   : > { %v2039_v2 = vand.u32 31, %v2037_v7  ;;  %v5753_v36 = vsel %vm14712_vm2, %v14451_v13, %v5750_v49  ;;  %v5929_v43 = vadd.s32 %v14666_v59, %v14678_v54  ;;  %v14762_v55 = vshll.u32 %v2033_v4, 8 }
 0x4b4   : > { %v9966_v37 = vmin.u32 %v5939_v10, %v14736_v18  ;;  %10578 = vcosq.f32 %v5753_v36  ;;  %v14769_v9 = vand.u32 8388607, %v16920_v16  ;;  %v2038_v21 = vshrl.u32 %v2037_v7, 5 }
 0x4b5   : > { %v2040_v47 = vsub.s32 32, %v2039_v2  ;;  %10580 = vsinq.f32 %v5753_v36  ;;  %v3075_v8 = vadd.s32 1, %v9857_v0  ;;  %v2042_v59 = vshll.u32 %v16976_v15, %v2039_v2 }
 0x4b6   : > { %v5941_v48 = vclz %v9966_v37  ;;  %v2045_v50 = vshll.u32 %v16972_v23, %v2039_v2  ;;  %v2048_v4 = vshll.u32 %v16973_v34, %v2039_v2  ;;  %vm5764_vm7 = vcmp.eq.s32.totalorder %v14750_v20, 2 }
 0x4b7   : > { %v2043_v54 = vshrl.u32 %v16972_v23, %v2040_v47  ;;  %v2046_v57 = vshrl.u32 %v16973_v34, %v2040_v47  ;;  %v2041_v33 = vshrl.u32 %v16976_v15, %v2040_v47  ;;  %v2049_v25 = vshrl.u32 %v16974_v39, %v2040_v47 }
 0x4b8   : > { %v9967_v27 = vadd.s32 4294967294, %v5941_v48  ;;  %v2051_v7 = vshll.u32 %v16974_v39, %v2039_v2  ;;  %v2052_v0 = vshrl.u32 %v16975_v24, %v2040_v47  ;;  %vm5761_vm8 = vcmp.eq.s32.totalorder %v14750_v20, 0 }
 0x4b9   : > { %v2044_v56 = vor.u32 %v2043_v54, %v2042_v59  ;;  %v2047_v10 = vor.u32 %v2046_v57, %v2045_v50  ;;  %v2050_v49 = vor.u32 %v2049_v25, %v2048_v4  ;;  %v2054_v36 = vshll.u32 %v16975_v24, %v2039_v2 }
 0x4ba   : > { %vm9968_vm6 = vcmp.lt.s32.totalorder %v9967_v27, 0  ;;  %v2055_v37 = vshrl.u32 %v16977_v52, %v2040_v47  ;;  %vm5760_vm10 = vcmp.lt.s32.totalorder %v14750_v20, 2  ;;  %v2053_v16 = vor.u32 %v2052_v0, %v2051_v7 }
 0x4bb   : > { %v5944_v48 = vsel %vm9968_vm6, 0, %v9967_v27  ;;  %vm2057_vm12 = vcmp.lt.s32.totalorder %v2038_v21, 1  ;;  %vm2058_vm11 = vcmp.lt.s32.totalorder %v2038_v21, 2  ;;  %vm5757_vm13 = vweird.f32 %v14451_v13 }
 0x4bc   : > { %v5945_v59 = vsub.s32 32, %v5944_v48  ;;  %v5949_v54 = vsub.s32 4294967266, %v5944_v48  ;;  %v2056_v50 = vor.u32 %v2055_v37, %v2054_v36  ;;  %vm2059_vm14 = vcmp.lt.s32.totalorder %v2038_v21, 3 }
 0x4bd   : > { %v5946_v57 = vshll.u32 %v14736_v18, %v5944_v48  ;;  %vm2060_vm15 = vcmp.lt.s32.totalorder %v2038_v21, 4  ;;  %v2061_v4 = vsel %vm2057_vm12, %v2041_v33, %v2044_v56  ;;  %v2065_v2 = vsel %vm2057_vm12, %v2044_v56, %v2047_v10 }
 0x4be   : > { %v5947_v47 = vshrl.u32 %v5929_v43, %v5945_v59  ;;  %v5950_v25 = vadd.s32 127, %v5949_v54  ;;  %v2062_v51 = vsel %vm2060_vm15, %v2050_v49, 2102212464  ;;  %v2066_v27 = vsel %vm2060_vm15, %v2053_v16, 920167782  ;;  %v10579_v7 = vpop.eup %10578 }
 0x4bf   : > { %v2063_v0 = vsel %vm2059_vm14, %v2047_v10, %v2062_v51  ;;  %v2067_v41 = vsel %vm2059_vm14, %v2050_v49, %v2066_v27  ;;  %v2069_v12 = vsel %vm2057_vm12, %v2047_v10, %v2050_v49  ;;  %v2070_v36 = vsel %vm2060_vm15, %v2056_v50, 1326507024  ;;  %v10581_v37 = vpop.eup %10580 }
 0x4c0   : > { %v5765_v29 = vxor.u32 2147483648, %v10579_v7  ;;  %v5948_v18 = vor.u32 %v5947_v47, %v5946_v57  ;;  %v5951_v48 = vshll.u32 %v5950_v25, 23  ;;  %vm3076_vm3 = vcmp.gt.s32.totalorder %v3075_v8, 0 }
 0x4c1   : > { %v5762_v33 = vxor.u32 2147483648, %v10581_v37  ;;  %v2064_v56 = vsel %vm2058_vm11, %v2061_v4, %v2063_v0  ;;  %v2068_v43 = vsel %vm2058_vm11, %v2065_v2, %v2067_v41  ;;  %v2071_v59 = vsel %vm2059_vm14, %v2053_v16, %v2070_v36 }
 0x4c2   : > { %v5766_v51 = vsel %vm5764_vm7, %v5765_v29, %v10581_v37  ;;  %v5952_v54 = vor.u32 4788187, %v5951_v48  ;;  %v5955_v27 = vcvt.s32.f32 %v5948_v18  ;;  %v2072_v10 = vsel %vm2058_vm11, %v2069_v12, %v2071_v59 }
 0x4c3   : > { %v5763_v49 = vsel %vm5761_vm8, %v10579_v7, %v5762_v33  ;;  %v14801_v50 = vmul.u32.u64.low %v14762_v55, %v2072_v10  ;;  %v14802_v57 = vmul.u32.u64.high %v14762_v55, %v2072_v10, %v14801_v50  ;;  %v3077_v47 = vsel %vm3076_vm3, %v3075_v8, 0 }
 0x4c4   : > { %v5767_v41 = vsel %vm5760_vm10, %v5763_v49, %v5766_v51  ;;  %v5953_v4 = vand.u32 2147483647, %v5952_v54  ;;  %v14807_v16 = vmul.u32.u64.low %v14762_v55, %v2068_v43  ;;  %v14808_v2 = vmul.u32.u64.high %v14762_v55, %v2068_v43, %v14807_v16 }
 0x4c5   : > { %v5768_v29 = vsel %vm5757_vm13, nan, %v5767_v41  ;;  %v3079_v12 = vand.u32 31, %v3077_v47  ;;  %v14815_v21 = vmul.f32 %v14726_v40, %v17126_v42  ;;  %v917_v8 = vmul.f32 %v14740_v11, %v17125_v45 }
 0x4c6   : > { %v6313_v25 = vpack.c.bf16 %v5768_v29, %v5768_v29  ;;  %v5956_v20 = vmul.f32 %v5955_v27, %v5953_v4  ;;  %v3073_v7 = vor.u32 8388608, %v14769_v9  ;;  %v14822_v0 = vmul.f32 %v14740_v11, %v17127_v14  ;;  %v14855_v4 = vld [vmem:[%s17050_s6] sm:$0xff]  }
 0x4c7   : > { %v17136_v13 = vsel %vm14732_vm4, 0, %v14746_v62  ;;  %v2080_v37 = vmul.u32 %v14762_v55, %v2064_v56  ;;  %vm2082_vm2 = vc.u32 %v14802_v57, %v14807_v16  ;;  %v3080_v42 = vsub.s32 32, %v3079_v12 }
 0x4c8   : > { %v5966_v36 = vadd.s32 3, %v17136_v13  ;;  %v14832_v45 = vsel %vm6364_vm9, %v6313_v25, 0  ;;  %v5957_v18 = vxor.u32 2147483648, %v5956_v20  ;;  %v2083_v9 = vadd.s32 1, %v14808_v2 }
 0x4c9   : > { %17137 = vst [vmem:[#allocation3_spill] sm:$0xff] %v14832_v45  ;;  %v14835_v48 = vshrl.u32 %v3077_v47, 5  ;;  %6506 = vmatpush1.bf16.msra.mxu0 %v14832_v45  ;;  %v3082_v14 = vshll.u32 %v16976_v15, %v3079_v12  ;;  %v3083_v62 = vshrl.u32 %v16972_v23, %v3080_v42  ;;  %v3085_v55 = vshll.u32 %v16972_v23, %v3079_v12 }
 0x4ca   : > { %v3086_v33 = vshrl.u32 %v16973_v34, %v3080_v42  ;;  %v5958_v56 = vsel %vm5875_vm1, %v5957_v18, %v5956_v20  ;;  %v2084_v43 = vsel %vm2082_vm2, %v2083_v9, %v14808_v2  ;;  %v3088_v59 = vshll.u32 %v16973_v34, %v3079_v12 }
 0x4cb   : > { %v3089_v51 = vshrl.u32 %v16974_v39, %v3080_v42  ;;  %v5961_v54 = vsel %vm14732_vm4, %v14546_v38, %v5958_v56  ;;  %v2085_v27 = vadd.s32 %v2084_v43, %v2080_v37  ;;  %v3084_v10 = vor.u32 %v3083_v62, %v3082_v14 }
 0x4cc   : > { %v3091_v49 = vshll.u32 %v16974_v39, %v3079_v12  ;;  %10582 = vcosq.f32 %v5961_v54  ;;  %v3087_v50 = vor.u32 %v3086_v33, %v3085_v55  ;;  %v3092_v41 = vshrl.u32 %v16975_v24, %v3080_v42  ;;  %9990 = vmatmul.mubr.msk.bf16.vlgmr.msra.gmra.mrb[8].mxu0 %vm6357_vm0, %v14855_v4 }
 0x4cd   : > { %v3090_v47 = vor.u32 %v3089_v51, %v3088_v59  ;;  %10584 = vsinq.f32 %v5961_v54  ;;  %v2086_v58 = vadd.s32 536870912, %v2085_v27  ;;  %v3094_v2 = vshll.u32 %v16975_v24, %v3079_v12  ;;  %6543 = vmatprep.mubr.bf16.mxu0 %v17109_v35 }
 0x4ce   : > { %v3095_v29 = vshrl.u32 %v16977_v52, %v3080_v42  ;;  %v3081_v25 = vshrl.u32 %v16976_v15, %v3080_v42  ;;  %v3093_v20 = vor.u32 %v3092_v41, %v3091_v49  ;;  %v3113_v13 = vshll.u32 %v3073_v7, 8 }
 0x4cf   : > { %v967_v37 = vadd.f32 %v917_v8, %v14754_v22  ;;  %v2087_v18 = vshrl.u32 %v2086_v58, 30  ;;  %vm3097_vm1 = vcmp.lt.s32.totalorder %v14835_v48, 1  ;;  %vm3100_vm4 = vcmp.lt.s32.totalorder %v14835_v48, 4 }
 0x4d0   : > { %v3096_v9 = vor.u32 %v3095_v29, %v3094_v2  ;;  %vm3098_vm5 = vcmp.lt.s32.totalorder %v14835_v48, 2  ;;  %vm3099_vm7 = vcmp.lt.s32.totalorder %v14835_v48, 3  ;;  %v3105_v12 = vsel %vm3097_vm1, %v3084_v10, %v3087_v50 }
 0x4d1   : > { %v3106_v14 = vsel %vm3100_vm4, %v3093_v20, 920167782  ;;  %v2088_v62 = vshll.u32 %v2087_v18, 30  ;;  %v3102_v55 = vsel %vm3100_vm4, %v3090_v47, 2102212464  ;;  %v3109_v42 = vsel %vm3097_vm1, %v3087_v50, %v3090_v47 }
 0x4d2   : > { %v3107_v33 = vsel %vm3099_vm7, %v3090_v47, %v3106_v14  ;;  %v5967_v56 = vand.u32 3, %v5966_v36  ;;  %v3110_v8 = vsel %vm3100_vm4, %v3096_v9, 1326507024  ;;  %v14871_v7 = vadd.f32 %v17128_v31, %v967_v37  ;;  %v14884_v36 = vld [vmem:[%s17050_s6 + $0x8] sm:$0xff]  }
 0x4d3   : > { %v3108_v22 = vsel %vm3098_vm5, %v3105_v12, %v3107_v33  ;;  %v14873_v43 = vsub.s32 %v2085_v27, %v2088_v62  ;;  %v3101_v59 = vsel %vm3097_vm1, %v3081_v25, %v3084_v10  ;;  %v3111_v51 = vsel %vm3099_vm7, %v3093_v20, %v3110_v8 }
 0x4d4   : > { %v3103_v54 = vsel %vm3099_vm7, %v3087_v50, %v3102_v55  ;;  %v3112_v49 = vsel %vm3098_vm5, %v3109_v42, %v3111_v51  ;;  %v14877_v41 = vmul.u32.u64.low %v3113_v13, %v3108_v22  ;;  %v14878_v58 = vmul.u32.u64.high %v3113_v13, %v3108_v22, %v14877_v41  ;;  %9991 = vmatmul.mubr.msk.bf16.gmra.mrb[12].mxu0 %vm6357_vm0, %v14884_v36 }
 0x4d5   : > { %vm5965_vm8 = vweird.f32 %v14546_v38  ;;  %v2091_v31 = vsub.s32 0, %v14873_v43  ;;  %v14890_v27 = vmul.u32.u64.low %v3113_v13, %v3112_v49  ;;  %v14891_v10 = vmul.u32.u64.high %v3113_v13, %v3112_v49, %v14890_v27  ;;  %6639 = vmatprep.mubr.bf16.mxu0 %v17109_v35 }
 0x4d6   : > { %v10583_v50 = vpop.eup %10582  ;;  %vm5972_vm6 = vcmp.eq.s32.totalorder %v5967_v56, 2  ;;  %vm2027_vm10 = vcmp.lt.s32.totalorder %v14692_v32, 0  ;;  %v977_v47 = vadd.f32 %v14822_v0, %v14815_v21  ;;  %v1924_v2 = vand.u32 2139095040, %v14871_v7 }
 0x4d7   : > { %v10585_v29 = vpop.eup %10584  ;;  %v5973_v25 = vxor.u32 2147483648, %v10583_v50  ;;  %v9818_v20 = vmin.u32 %v2091_v31, %v14873_v43  ;;  %v2111_v37 = vsub.s32 4, %v2087_v18  ;;  %v3104_v9 = vsel %vm3098_vm5, %v3101_v59, %v3103_v54 }
 0x4d8   : > { %v5970_v12 = vxor.u32 2147483648, %v10585_v29  ;;  %v3123_v14 = vadd.s32 1, %v14878_v58  ;;  %v1921_v62 = vand.u32 2147483647, %v14871_v7  ;;  %v1925_v55 = vshrl.u32 %v1924_v2, 23 }
 0x4d9   : > { %vm5968_vm12 = vcmp.lt.s32.totalorder %v5967_v56, 2  ;;  %vm5969_vm11 = vcmp.eq.s32.totalorder %v5967_v56, 0  ;;  %v5974_v21 = vsel %vm5972_vm6, %v5973_v25, %v10585_v29  ;;  %v2093_v0 = vclz %v9818_v20 }
 0x4da   : > { %v5971_v33 = vsel %vm5969_vm11, %v10583_v50, %v5970_v12  ;;  %v3120_v42 = vmul.u32 %v3113_v13, %v3104_v9  ;;  %vm3122_vm13 = vc.u32 %v14891_v10, %v14877_v41  ;;  %v14907_v22 = vadd.f32 %v17129_v44, %v977_v47 }
 0x4db   : > { %v5975_v48 = vsel %vm5968_vm12, %v5971_v33, %v5974_v21  ;;  %v9819_v8 = vadd.s32 4294967294, %v2093_v0  ;;  %v3124_v59 = vsel %vm3122_vm13, %v3123_v14, %v14878_v58  ;;  %v9813_v51 = vadd.s32 4294967169, %v1925_v55 }
 0x4dc   : > { %v5976_v54 = vsel %vm5965_vm8, nan, %v5975_v48  ;;  %v2112_v56 = vsel %vm2027_vm10, %v2111_v37, %v2087_v18  ;;  %v3125_v49 = vadd.s32 %v3124_v59, %v3120_v42  ;;  %v1928_v13 = vand.u32 8388607, %v1921_v62 }
 0x4dd   : > { %v6315_v31 = vpack.c.bf16 %v5976_v54, %v5976_v54  ;;  %v17138_v27 = vand.u32 2147483647, %v14692_v32  ;;  %vm9820_vm15 = vcmp.lt.s32.totalorder %v9819_v8, 0  ;;  %v1931_v58 = vadd.s32 1, %v9813_v51 }
 0x4de   : > { %v2081_v38 = vadd.s32 %v14807_v16, %v14802_v57  ;;  %v2096_v50 = vsel %vm9820_vm15, 0, %v9819_v8  ;;  %v3126_v47 = vadd.s32 536870912, %v3125_v49  ;;  %v2964_v18 = vand.u32 2139095040, %v14907_v22 }
 0x4df   : > { %vm14918_vm14 = vcmp.le.f32.partialorder %v17138_v27, 0.7853982  ;;  %v14926_v2 = vsel %vm6364_vm9, %v6315_v31, 0  ;;  %v2097_v29 = vsub.s32 32, %v2096_v50  ;;  %v2101_v25 = vsub.s32 4294967266, %v2096_v50 }
 0x4e0   : > { %17141 = vst [vmem:[#allocation7_spill] sm:$0xff] %v14926_v2  ;;  %v2114_v20 = vsel %vm14918_vm14, 0, %v2112_v56  ;;  %6559 = vmatpush1.bf16.msra.mxu1 %v14926_v2  ;;  %v3127_v37 = vshrl.u32 %v3126_v47, 30  ;;  %v1929_v9 = vor.u32 8388608, %v1928_v13  ;;  %vm1932_vm3 = vcmp.gt.s32.totalorder %v1931_v58, 0 }
 0x4e1   : > { %v2961_v12 = vand.u32 2147483647, %v14907_v22  ;;  %v2098_v57 = vshll.u32 %v14873_v43, %v2096_v50  ;;  %v2099_v16 = vshrl.u32 %v2081_v38, %v2097_v29  ;;  %v2102_v14 = vadd.s32 127, %v2101_v25 }
 0x4e2   : > { %v1933_v55 = vsel %vm1932_vm3, %v1931_v58, 0  ;;  %v3128_v21 = vshll.u32 %v3127_v37, 30  ;;  %v3151_v0 = vsub.s32 4, %v3127_v37  ;;  %v2965_v42 = vshrl.u32 %v2964_v18, 23 }
 0x4e3   : > { %v1935_v33 = vand.u32 31, %v1933_v55  ;;  %v2100_v48 = vor.u32 %v2099_v16, %v2098_v57  ;;  %v2103_v8 = vshll.u32 %v2102_v14, 23  ;;  %v17142_v59 = vand.u32 2147483647, %v14708_v6  ;;  %9993 = vmatmul.mubr.msk.bf16.vlgmr.msra.gmra.mrb[8].mxu1 %vm6357_vm0, %v14855_v4 }
 0x4e4   : > { %vm3067_vm1 = vcmp.lt.s32.totalorder %v14708_v6, 0  ;;  %v14942_v43 = vadd.s32 3, %v2114_v20  ;;  %v3121_v54 = vadd.s32 %v14877_v41, %v14891_v10  ;;  %v14946_v56 = vsub.s32 %v3125_v49, %v3128_v21  ;;  %6596 = vmatprep.mubr.bf16.mxu1 %v17109_v35 }
 0x4e5   : > { %vm14935_vm2 = vcmp.le.f32.partialorder %v17142_v59, 0.7853982  ;;  %v1936_v13 = vsub.s32 32, %v1935_v33  ;;  %v2104_v31 = vor.u32 4788187, %v2103_v8  ;;  %v1934_v27 = vshrl.u32 %v1933_v55, 5 }
 0x4e6   : > { %v14949_v58 = vshll.u32 %v1929_v9, 8  ;;  %v14953_v38 = vand.u32 8388607, %v2961_v12  ;;  %v3131_v4 = vsub.s32 0, %v14946_v56  ;;  %v14958_v50 = vsel %vm3067_vm1, %v3151_v0, %v3127_v37 }
 0x4e7   : > { %v1939_v41 = vshrl.u32 %v16972_v23, %v1936_v13  ;;  %v9853_v10 = vadd.s32 4294967169, %v2965_v42  ;;  %v2105_v49 = vand.u32 2147483647, %v2104_v31  ;;  %v2107_v47 = vcvt.s32.f32 %v2100_v48 }
 0x4e8   : > { %v1942_v18 = vshrl.u32 %v16973_v34, %v1936_v13  ;;  %v1945_v29 = vshrl.u32 %v16974_v39, %v1936_v13  ;;  %v9858_v25 = vmin.u32 %v3131_v4, %v14946_v56  ;;  %v1938_v20 = vshll.u32 %v16976_v15, %v1935_v33 }
 0x4e9   : > { %v1941_v9 = vshll.u32 %v16972_v23, %v1935_v33  ;;  %v1944_v57 = vshll.u32 %v16973_v34, %v1935_v33  ;;  %v2108_v16 = vmul.f32 %v2107_v47, %v2105_v49  ;;  %v3154_v37 = vsel %vm14935_vm2, 0, %v14958_v50 }
 0x4ea   : > { %v1947_v14 = vshll.u32 %v16974_v39, %v1935_v33  ;;  %v1948_v55 = vshrl.u32 %v16975_v24, %v1936_v13  ;;  %v3133_v21 = vclz %v9858_v25  ;;  %v1940_v0 = vor.u32 %v1939_v41, %v1938_v20 }
 0x4eb   : > { %v1943_v42 = vor.u32 %v1942_v18, %v1941_v9  ;;  %v1946_v48 = vor.u32 %v1945_v29, %v1944_v57  ;;  %v2109_v8 = vxor.u32 2147483648, %v2108_v16  ;;  %v1950_v31 = vshll.u32 %v16975_v24, %v1935_v33  ;;  %9994 = vmatmul.mubr.msk.bf16.gmra.mrb[12].mxu1 %vm6357_vm0, %v14884_v36 }
 0x4ec   : > { %v1949_v59 = vor.u32 %v1948_v55, %v1947_v14  ;;  %v1951_v4 = vshrl.u32 %v16977_v52, %v1936_v13  ;;  %v9859_v49 = vadd.s32 4294967294, %v3133_v21  ;;  %v1937_v50 = vshrl.u32 %v16976_v15, %v1936_v13  ;;  %6777 = vmatprep.mubr.bf16.mxu1 %v17109_v35 }
 0x4ed   : > { %vm1953_vm4 = vcmp.lt.s32.totalorder %v1934_v27, 1  ;;  %vm1954_vm5 = vcmp.lt.s32.totalorder %v1934_v27, 2  ;;  %v2110_v41 = vsel %vm2027_vm10, %v2109_v8, %v2108_v16  ;;  %vm1955_vm7 = vcmp.lt.s32.totalorder %v1934_v27, 3 }
 0x4ee   : > { %v1952_v47 = vor.u32 %v1951_v4, %v1950_v31  ;;  %vm1956_vm8 = vcmp.lt.s32.totalorder %v1934_v27, 4  ;;  %v2113_v33 = vsel %vm14918_vm14, %v14692_v32, %v2110_v41  ;;  %vm9860_vm6 = vcmp.lt.s32.totalorder %v9859_v49, 0 }
 0x4ef   : > { %v1957_v36 = vsel %vm1953_vm4, %v1937_v50, %v1940_v0  ;;  %v1958_v18 = vsel %vm1956_vm8, %v1946_v48, 2102212464  ;;  %10586 = vcosq.f32 %v2113_v33  ;;  %v3136_v13 = vsel %vm9860_vm6, 0, %v9859_v49 }
 0x4f0   : > { %v1961_v29 = vsel %vm1953_vm4, %v1940_v0, %v1943_v42  ;;  %v1962_v25 = vsel %vm1956_vm8, %v1949_v59, 920167782  ;;  %10588 = vsinq.f32 %v2113_v33  ;;  %v3137_v20 = vsub.s32 32, %v3136_v13 }
 0x4f1   : > { %v3141_v9 = vsub.s32 4294967266, %v3136_v13  ;;  %v1959_v57 = vsel %vm1955_vm7, %v1943_v42, %v1958_v18  ;;  %v3138_v16 = vshll.u32 %v14946_v56, %v3136_v13  ;;  %v1963_v44 = vsel %vm1955_vm7, %v1946_v48, %v1962_v25 }
 0x4f2   : > { %v1965_v14 = vsel %vm1953_vm4, %v1943_v42, %v1946_v48  ;;  %v1966_v55 = vsel %vm1956_vm8, %v1952_v47, 1326507024  ;;  %v3139_v21 = vshrl.u32 %v3121_v54, %v3137_v20  ;;  %v1964_v31 = vsel %vm1954_vm5, %v1961_v29, %v1963_v44 }
 0x4f3   : > { %v3142_v8 = vadd.s32 127, %v3141_v9  ;;  %v1967_v0 = vsel %vm1955_vm7, %v1949_v59, %v1966_v55  ;;  %v1960_v4 = vsel %vm1954_vm5, %v1957_v36, %v1959_v57  ;;  %v2971_v54 = vadd.s32 1, %v9853_v10  ;;  %v17145_v57 = vld [vmem:[#allocation9_spill] sm:$0xff] }
 0x4f4   : > { %v1968_v49 = vsel %vm1954_vm5, %v1965_v14, %v1967_v0  ;;  %v14997_v50 = vmul.u32.u64.low %v14949_v58, %v1964_v31  ;;  %v14998_v41 = vmul.u32.u64.high %v14949_v58, %v1964_v31, %v14997_v50  ;;  %v3140_v56 = vor.u32 %v3139_v21, %v3138_v16 }
 0x4f5   : > { %v3143_v33 = vshll.u32 %v3142_v8, 23  ;;  %v15002_v42 = vmul.u32.u64.low %v14949_v58, %v1968_v49  ;;  %v15003_v48 = vmul.u32.u64.high %v14949_v58, %v1968_v49, %v15002_v42  ;;  %v15006_v47 = vand.u32 3, %v14942_v43 }
 0x4f6   : > { %v3158_v18 = vadd.s32 3, %v3154_v37  ;;  %v2969_v27 = vor.u32 8388608, %v14953_v38  ;;  %v1976_v36 = vmul.u32 %v14949_v58, %v1960_v4  ;;  %v1979_v13 = vadd.s32 1, %v14998_v41 }
 0x4f7   : > { %v3144_v59 = vor.u32 4788187, %v3143_v33  ;;  %vm2972_vm10 = vcmp.gt.s32.totalorder %v2971_v54, 0  ;;  %v938_v29 = vmul.f32 %v14652_v26, %v10978_v3  ;;  %v3147_v20 = vcvt.s32.f32 %v3140_v56 }
 0x4f8   : > { %vm1978_vm12 = vc.u32 %v15003_v48, %v14997_v50  ;;  %v2973_v10 = vsel %vm2972_vm10, %v2971_v54, 0  ;;  %v806_v38 = vmul.f32 %v14616_v63, %v17145_v57  ;;  %v15020_v58 = vmul.f32 %v14616_v63, %v17077_v28 }
 0x4f9   : > { %v3145_v25 = vand.u32 2147483647, %v3144_v59  ;;  %v10587_v43 = vpop.eup %10586  ;;  %v1980_v9 = vsel %vm1978_vm12, %v1979_v13, %v14998_v41  ;;  %v2975_v37 = vand.u32 31, %v2973_v10  ;;  %vm2121_vm11 = vcmp.eq.s32.totalorder %v15006_v47, 0 }
 0x4fa   : > { %v10589_v16 = vpop.eup %10588  ;;  %vm2124_vm13 = vcmp.eq.s32.totalorder %v15006_v47, 2  ;;  %v1981_v14 = vadd.s32 %v1980_v9, %v1976_v36  ;;  %v2125_v55 = vxor.u32 2147483648, %v10587_v43  ;;  %v15024_v21 = vand.u32 3, %v3158_v18 }
 0x4fb   : > { %v3148_v44 = vmul.f32 %v3147_v20, %v3145_v25  ;;  %v2976_v8 = vsub.s32 32, %v2975_v37  ;;  %v15026_v31 = vshll.u32 %v2969_v27, 8  ;;  %v15030_v49 = vmul.f32 %v14652_v26, %v10976_v1 }
 0x4fc   : > { %v1982_v4 = vadd.s32 536870912, %v1981_v14  ;;  %v988_v41 = vadd.f32 %v938_v29, %v806_v38  ;;  %v2122_v56 = vxor.u32 2147483648, %v10589_v16  ;;  %v2978_v33 = vshll.u32 %v16976_v15, %v2975_v37 }
 0x4fd   : > { %v3149_v0 = vxor.u32 2147483648, %v3148_v44  ;;  %v2979_v42 = vshrl.u32 %v16972_v23, %v2976_v8  ;;  %v2982_v54 = vshrl.u32 %v16973_v34, %v2976_v8  ;;  %vm2120_vm14 = vcmp.lt.s32.totalorder %v15006_v47, 2 }
 0x4fe   : > { %v1983_v18 = vshrl.u32 %v1982_v4, 30  ;;  %v2981_v27 = vshll.u32 %v16972_v23, %v2975_v37  ;;  %v2985_v36 = vshrl.u32 %v16974_v39, %v2976_v8  ;;  %v2126_v13 = vsel %vm2124_vm13, %v2125_v55, %v10589_v16 }
 0x4ff   : > { %v3150_v59 = vsel %vm3067_vm1, %v3149_v0, %v3148_v44  ;;  %vm1923_vm15 = vcmp.lt.s32.totalorder %v14871_v7, 0  ;;  %v2974_v25 = vshrl.u32 %v2973_v10, 5  ;;  %v2984_v20 = vshll.u32 %v16973_v34, %v2975_v37 }
 0x500   : > { %v3153_v29 = vsel %vm14935_vm2, %v14708_v6, %v3150_v59  ;;  %v1984_v9 = vshll.u32 %v1983_v18, 30  ;;  %v2980_v38 = vor.u32 %v2979_v42, %v2978_v33  ;;  %v2983_v44 = vor.u32 %v2982_v54, %v2981_v27 }
 0x501   : > { %10590 = vcosq.f32 %v3153_v29  ;;  %vm2117_vm3 = vweird.f32 %v14692_v32  ;;  %v2986_v0 = vor.u32 %v2985_v36, %v2984_v20  ;;  %v2987_v4 = vshll.u32 %v16974_v39, %v2975_v37 }
 0x502   : > { %10592 = vsinq.f32 %v3153_v29  ;;  %v2988_v16 = vshrl.u32 %v16975_v24, %v2976_v8  ;;  %v2123_v51 = vsel %vm2121_vm11, %v10587_v43, %v2122_v56  ;;  %vm15054_vm2 = vcmp.le.f32.partialorder %v1921_v62, 0.7853982 }
 0x503   : > { %v15058_v55 = vsub.s32 %v1981_v14, %v1984_v9  ;;  %v2990_v33 = vshll.u32 %v16975_v24, %v2975_v37  ;;  %v2991_v42 = vshrl.u32 %v16977_v52, %v2976_v8  ;;  %v2007_v54 = vsub.s32 4, %v1983_v18 }
 0x504   : > { %v2977_v59 = vshrl.u32 %v16976_v15, %v2976_v8  ;;  %v2989_v27 = vor.u32 %v2988_v16, %v2987_v4  ;;  %vm2993_vm1 = vcmp.lt.s32.totalorder %v2974_v25, 1  ;;  %vm3164_vm4 = vcmp.eq.s32.totalorder %v15024_v21, 2 }
 0x505   : > { %v1987_v43 = vsub.s32 0, %v15058_v55  ;;  %v2992_v56 = vor.u32 %v2991_v42, %v2990_v33  ;;  %vm2994_vm5 = vcmp.lt.s32.totalorder %v2974_v25, 2  ;;  %vm2996_vm7 = vcmp.lt.s32.totalorder %v2974_v25, 4 }
 0x506   : > { %vm3161_vm8 = vcmp.eq.s32.totalorder %v15024_v21, 0  ;;  %vm2995_vm6 = vcmp.lt.s32.totalorder %v2974_v25, 3  ;;  %v2998_v62 = vsel %vm2996_vm7, %v2986_v0, 2102212464  ;;  %v3001_v37 = vsel %vm2993_vm1, %v2980_v38, %v2983_v44 }
 0x507   : > { %v3002_v14 = vsel %vm2996_vm7, %v2989_v27, 920167782  ;;  %vm3160_vm10 = vcmp.lt.s32.totalorder %v15024_v21, 2  ;;  %v9814_v8 = vmin.u32 %v1987_v43, %v15058_v55  ;;  %v2997_v36 = vsel %vm2993_vm1, %v2977_v59, %v2980_v38 }
 0x508   : > { %v2999_v29 = vsel %vm2995_vm6, %v2983_v44, %v2998_v62  ;;  %v3003_v20 = vsel %vm2995_vm6, %v2986_v0, %v3002_v14  ;;  %v2127_v9 = vsel %vm2120_vm14, %v2123_v51, %v2126_v13  ;;  %vm3157_vm12 = vweird.f32 %v14708_v6 }
 0x509   : > { %v3004_v4 = vsel %vm2994_vm5, %v3001_v37, %v3003_v20  ;;  %v3005_v16 = vsel %vm2993_vm1, %v2983_v44, %v2986_v0  ;;  %v3006_v33 = vsel %vm2996_vm7, %v2992_v56, 1326507024  ;;  %v1977_v42 = vadd.s32 %v14997_v50, %v15003_v48 }
 0x50a   : > { %v1989_v43 = vclz %v9814_v8  ;;  %v2008_v38 = vsel %vm1923_vm15, %v2007_v54, %v1983_v18  ;;  %v15082_v59 = vadd.f32 %v11685_v30, %v988_v41  ;;  %v3000_v47 = vsel %vm2994_vm5, %v2997_v36, %v2999_v29 }
 0x50b   : > { %v3007_v13 = vsel %vm2995_vm6, %v2989_v27, %v3006_v33  ;;  %v15087_v51 = vmul.u32.u64.low %v15026_v31, %v3004_v4  ;;  %v15088_v62 = vmul.u32.u64.high %v15026_v31, %v3004_v4, %v15087_v51  ;;  %v10591_v44 = vpop.eup %10590  ;;  %v2128_v0 = vsel %vm2117_vm3, nan, %v2127_v9 }
 0x50c   : > { %v9815_v50 = vadd.s32 4294967294, %v1989_v43  ;;  %v3008_v48 = vsel %vm2994_vm5, %v3005_v16, %v3007_v13  ;;  %v998_v18 = vadd.f32 %v15030_v49, %v15020_v58  ;;  %v10593_v41 = vpop.eup %10592  ;;  %v3165_v54 = vxor.u32 2147483648, %v10591_v44 }
 0x50d   : > { %v2010_v56 = vsel %vm15054_vm2, 0, %v2008_v38  ;;  %v15098_v27 = vmul.u32.u64.low %v15026_v31, %v3008_v48  ;;  %v15099_v37 = vmul.u32.u64.high %v15026_v31, %v3008_v48, %v15098_v27  ;;  %v3162_v14 = vxor.u32 2147483648, %v10593_v41 }
 0x50e   : > { %vm9816_vm11 = vcmp.lt.s32.totalorder %v9815_v50, 0  ;;  %v3016_v32 = vmul.u32 %v15026_v31, %v3000_v47  ;;  %v4108_v8 = vand.u32 2139095040, %v15082_v59  ;;  %v3166_v25 = vsel %vm3164_vm4, %v3165_v54, %v10593_v41 }
 0x50f   : > { %v1992_v36 = vsel %vm9816_vm11, 0, %v9815_v50  ;;  %v3019_v58 = vadd.s32 1, %v15088_v62  ;;  %v16927_v49 = vand.u32 2147483647, %v15082_v59  ;;  %v3163_v29 = vsel %vm3161_vm8, %v10591_v44, %v3162_v14 }
 0x510   : > { %v1993_v20 = vsub.s32 32, %v1992_v36  ;;  %v1997_v9 = vsub.s32 4294967266, %v1992_v36  ;;  %v15110_v4 = vadd.f32 %v11749_v5, %v998_v18  ;;  %v3167_v31 = vsel %vm3160_vm10, %v3163_v29, %v3166_v25 }
 0x511   : > { %v1994_v16 = vshll.u32 %v15058_v55, %v1992_v36  ;;  %vm3018_vm13 = vc.u32 %v15099_v37, %v15087_v51  ;;  %v4109_v33 = vshrl.u32 %v4108_v8, 23  ;;  %v3168_v43 = vsel %vm3157_vm12, nan, %v3167_v31 }
 0x512   : > { %v1995_v38 = vshrl.u32 %v1977_v42, %v1993_v20  ;;  %v1998_v47 = vadd.s32 127, %v1997_v9  ;;  %v3020_v13 = vsel %vm3018_vm13, %v3019_v58, %v15088_v62  ;;  %v15119_v44 = vpack.c.bf16 %v3168_v43, %v2128_v0 }
 0x513   : > { %v3021_v50 = vadd.s32 %v3020_v13, %v3016_v32  ;;  %v9897_v48 = vadd.s32 4294967169, %v4109_v33  ;;  %v4112_v21 = vand.u32 8388607, %v16927_v49  ;;  %v2014_v6 = vadd.s32 3, %v2010_v56 }
 0x514   : > { %17148 = vst [vmem:[#allocation6_spill] sm:$0xff] %v15119_v44  ;;  %v1996_v18 = vor.u32 %v1995_v38, %v1994_v16  ;;  %v1999_v41 = vshll.u32 %v1998_v47, 23  ;;  %6607 = vmatprep.subr.bf16.mxu0 %v15119_v44  ;;  %v16926_v62 = vand.u32 2147483647, %v15110_v4  ;;  %v5148_v25 = vand.u32 2139095040, %v15110_v4 }
 0x515   : > { %v3022_v55 = vadd.s32 536870912, %v3021_v50  ;;  %v4115_v54 = vadd.s32 1, %v9897_v48  ;;  %v4113_v42 = vor.u32 8388608, %v4112_v21  ;;  %vm15128_vm3 = vcmp.le.f32.partialorder %v2961_v12, 0.7853982 }
 0x516   : > { %v2000_v27 = vor.u32 4788187, %v1999_v41  ;;  %v2003_v8 = vcvt.s32.f32 %v1996_v18  ;;  %vm2963_vm1 = vcmp.lt.s32.totalorder %v14907_v22, 0  ;;  %v15133_v56 = vand.u32 3, %v2014_v6 }
 0x517   : > { %v3023_v14 = vshrl.u32 %v3022_v55, 30  ;;  %vm4116_vm14 = vcmp.gt.s32.totalorder %v4115_v54, 0  ;;  %v3017_v31 = vadd.s32 %v15087_v51, %v15099_v37  ;;  %v15136_v38 = vshll.u32 %v4113_v42, 8 }
 0x518   : > { %v2001_v0 = vand.u32 2147483647, %v2000_v27  ;;  %v4117_v32 = vsel %vm4116_vm14, %v4115_v54, 0  ;;  %v5149_v47 = vshrl.u32 %v5148_v25, 23  ;;  %v15140_v13 = vand.u32 8388607, %v16926_v62 }
 0x519   : > { %v3024_v36 = vshll.u32 %v3023_v14, 30  ;;  %v3047_v58 = vsub.s32 4, %v3023_v14  ;;  %v4119_v29 = vand.u32 31, %v4117_v32  ;;  %v4118_v21 = vshrl.u32 %v4117_v32, 5 }
 0x51a   : > { %v2004_v20 = vmul.f32 %v2003_v8, %v2001_v0  ;;  %vm2020_vm6 = vcmp.eq.s32.totalorder %v15133_v56, 2  ;;  %vm2017_vm12 = vcmp.eq.s32.totalorder %v15133_v56, 0  ;;  %vm2016_vm11 = vcmp.lt.s32.totalorder %v15133_v56, 2 }
 0x51b   : > { %v3025_v16 = vsub.s32 %v3021_v50, %v3024_v36  ;;  %v4120_v33 = vsub.s32 32, %v4119_v29  ;;  %v3048_v48 = vsel %vm2963_vm1, %v3047_v58, %v3023_v14  ;;  %v4122_v37 = vshll.u32 %v16976_v15, %v4119_v29 }
 0x51c   : > { %v2005_v43 = vxor.u32 2147483648, %v2004_v20  ;;  %v4125_v27 = vshll.u32 %v16972_v23, %v4119_v29  ;;  %v4128_v6 = vshll.u32 %v16973_v34, %v4119_v29  ;;  %v3050_v14 = vsel %vm15128_vm3, 0, %v3048_v48 }
 0x51d   : > { %v3027_v12 = vsub.s32 0, %v3025_v16  ;;  %v4123_v18 = vshrl.u32 %v16972_v23, %v4120_v33  ;;  %v4126_v50 = vshrl.u32 %v16973_v34, %v4120_v33  ;;  %v4129_v41 = vshrl.u32 %v16974_v39, %v4120_v33 }
 0x51e   : > { %v2006_v51 = vsel %vm1923_vm15, %v2005_v43, %v2004_v20  ;;  %v4131_v42 = vshll.u32 %v16974_v39, %v4119_v29  ;;  %v4132_v0 = vshrl.u32 %v16975_v24, %v4120_v33  ;;  %v4134_v10 = vshll.u32 %v16975_v24, %v4119_v29 }
 0x51f   : > { %v2009_v55 = vsel %vm15054_vm2, %v14871_v7, %v2006_v51  ;;  %v9854_v54 = vmin.u32 %v3027_v12, %v3025_v16  ;;  %v4124_v32 = vor.u32 %v4123_v18, %v4122_v37  ;;  %v4127_v25 = vor.u32 %v4126_v50, %v4125_v27 }
 0x520   : > { %10594 = vcosq.f32 %v2009_v55  ;;  %v4130_v36 = vor.u32 %v4129_v41, %v4128_v6  ;;  %v4133_v58 = vor.u32 %v4132_v0, %v4131_v42  ;;  %v4135_v20 = vshrl.u32 %v16977_v52, %v4120_v33 }
 0x521   : > { %v3029_v8 = vclz %v9854_v54  ;;  %v9937_v43 = vadd.s32 4294967169, %v5149_v47  ;;  %10596 = vsinq.f32 %v2009_v55  ;;  %v3054_v51 = vadd.s32 3, %v3050_v14 }
 0x522   : > { %v4121_v62 = vshrl.u32 %v16976_v15, %v4120_v33  ;;  %v4136_v48 = vor.u32 %v4135_v20, %v4134_v10  ;;  %vm4137_vm15 = vcmp.lt.s32.totalorder %v4118_v21, 1  ;;  %vm4139_vm2 = vcmp.lt.s32.totalorder %v4118_v21, 3 }
 0x523   : > { %v9855_v12 = vadd.s32 4294967294, %v3029_v8  ;;  %vm4140_vm4 = vcmp.lt.s32.totalorder %v4118_v21, 4  ;;  %v4145_v18 = vsel %vm4137_vm15, %v4124_v32, %v4127_v25  ;;  %v4149_v29 = vsel %vm4137_vm15, %v4127_v25, %v4130_v36 }
 0x524   : > { %v4142_v54 = vsel %vm4140_vm4, %v4130_v36, 2102212464  ;;  %v4146_v37 = vsel %vm4140_vm4, %v4133_v58, 920167782  ;;  %v4150_v27 = vsel %vm4140_vm4, %v4136_v48, 1326507024  ;;  %v4141_v55 = vsel %vm4137_vm15, %v4121_v62, %v4124_v32 }
 0x525   : > { %vm9856_vm5 = vcmp.lt.s32.totalorder %v9855_v12, 0  ;;  %v4147_v41 = vsel %vm4139_vm2, %v4130_v36, %v4146_v37  ;;  %vm4138_vm7 = vcmp.lt.s32.totalorder %v4118_v21, 2  ;;  %v4143_v14 = vsel %vm4139_vm2, %v4127_v25, %v4142_v54 }
 0x526   : > { %v3032_v50 = vsel %vm9856_vm5, 0, %v9855_v12  ;;  %v4148_v33 = vsel %vm4138_vm7, %v4145_v18, %v4147_v41  ;;  %v4151_v42 = vsel %vm4139_vm2, %v4133_v58, %v4150_v27  ;;  %v5155_v0 = vadd.s32 1, %v9937_v43 }
 0x527   : > { %v3033_v6 = vsub.s32 32, %v3032_v50  ;;  %v3037_v47 = vsub.s32 4294967266, %v3032_v50  ;;  %v3034_v8 = vshll.u32 %v3025_v16, %v3032_v50  ;;  %v4152_v12 = vsel %vm4138_vm7, %v4149_v29, %v4151_v42 }
 0x528   : > { %v15170_v36 = vmul.u32.u64.low %v15136_v38, %v4152_v12  ;;  %v15171_v48 = vmul.u32.u64.high %v15136_v38, %v4152_v12, %v15170_v36  ;;  %v15174_v62 = vmul.u32.u64.low %v15136_v38, %v4148_v33  ;;  %v15175_v32 = vmul.u32.u64.high %v15136_v38, %v4148_v33, %v15174_v62 }
 0x529   : > { %v3035_v10 = vshrl.u32 %v3017_v31, %v3033_v6  ;;  %v3038_v20 = vadd.s32 127, %v3037_v47  ;;  %vm5156_vm8 = vcmp.gt.s32.totalorder %v5155_v0, 0  ;;  %v805_v31 = vmul.f32 %v14726_v40, %v17145_v57 }
 0x52a   : > { %v15167_v49 = vpop.eup %10594  ;;  %v4144_v16 = vsel %vm4138_vm7, %v4141_v55, %v4143_v14  ;;  %v5153_v58 = vor.u32 8388608, %v15140_v13  ;;  %v5157_v43 = vsel %vm5156_vm8, %v5155_v0, 0  ;;  %v937_v18 = vmul.f32 %v14740_v11, %v10978_v3 }
 0x52b   : > { %v3036_v25 = vor.u32 %v3035_v10, %v3034_v8  ;;  %v3039_v54 = vshll.u32 %v3038_v20, 23  ;;  %v10597_v37 = vpop.eup %10596  ;;  %v2021_v50 = vxor.u32 2147483648, %v15167_v49  ;;  %v15188_v29 = vmul.f32 %v14726_v40, %v17077_v28 }
 0x52c   : > { %v15190_v27 = vand.u32 3, %v3054_v51  ;;  %vm4162_vm10 = vc.u32 %v15171_v48, %v15174_v62  ;;  %v4163_v57 = vadd.s32 1, %v15175_v32  ;;  %v15197_v3 = vmul.f32 %v14740_v11, %v10976_v1 }
 0x52d   : > { %v3040_v41 = vor.u32 4788187, %v3039_v54  ;;  %v3043_v21 = vcvt.s32.f32 %v3036_v25  ;;  %v4160_v6 = vmul.u32 %v15136_v38, %v4144_v16  ;;  %v5159_v47 = vand.u32 31, %v5157_v43 }
 0x52e   : > { %v2018_v55 = vxor.u32 2147483648, %v10597_v37  ;;  %v4164_v28 = vsel %vm4162_vm10, %v4163_v57, %v15175_v32  ;;  %v15201_v14 = vshll.u32 %v5153_v58, 8  ;;  %v987_v51 = vadd.f32 %v937_v18, %v805_v31 }
 0x52f   : > { %v3041_v13 = vand.u32 2147483647, %v3040_v41  ;;  %v2022_v33 = vsel %vm2020_vm6, %v2021_v50, %v10597_v37  ;;  %v4165_v0 = vadd.s32 %v4164_v28, %v4160_v6  ;;  %v5160_v1 = vsub.s32 32, %v5159_v47 }
 0x530   : > { %v5158_v8 = vshrl.u32 %v5157_v43, 5  ;;  %v5162_v10 = vshll.u32 %v16976_v15, %v5159_v47  ;;  %v5165_v38 = vshll.u32 %v16972_v23, %v5159_v47  ;;  %v5168_v20 = vshll.u32 %v16973_v34, %v5159_v47 }
 0x531   : > { %v3044_v42 = vmul.f32 %v3043_v21, %v3041_v13  ;;  %v4166_v36 = vadd.s32 536870912, %v4165_v0  ;;  %v5163_v32 = vshrl.u32 %v16972_v23, %v5160_v1  ;;  %v5171_v25 = vshll.u32 %v16974_v39, %v5159_v47 }
 0x532   : > { %v5166_v54 = vshrl.u32 %v16973_v34, %v5160_v1  ;;  %v5169_v31 = vshrl.u32 %v16974_v39, %v5160_v1  ;;  %v5172_v16 = vshrl.u32 %v16975_v24, %v5160_v1  ;;  %v5175_v58 = vshrl.u32 %v16977_v52, %v5160_v1 }
 0x533   : > { %v3045_v12 = vxor.u32 2147483648, %v3044_v42  ;;  %v4167_v18 = vshrl.u32 %v4166_v36, 30  ;;  %v5164_v37 = vor.u32 %v5163_v32, %v5162_v10  ;;  %v5174_v50 = vshll.u32 %v16975_v24, %v5159_v47 }
 0x534   : > { %v5167_v57 = vor.u32 %v5166_v54, %v5165_v38  ;;  %v5170_v13 = vor.u32 %v5169_v31, %v5168_v20  ;;  %v5173_v21 = vor.u32 %v5172_v16, %v5171_v25  ;;  %vm5177_vm13 = vcmp.lt.s32.totalorder %v5158_v8, 1 }
 0x535   : > { %v3046_v43 = vsel %vm2963_vm1, %v3045_v12, %v3044_v42  ;;  %v4168_v6 = vshll.u32 %v4167_v18, 30  ;;  %v5176_v28 = vor.u32 %v5175_v58, %v5174_v50  ;;  %vm2013_vm14 = vweird.f32 %v14871_v7 }
 0x536   : > { %v3049_v41 = vsel %vm15128_vm3, %v14907_v22, %v3046_v43  ;;  %vm4107_vm1 = vcmp.lt.s32.totalorder %v15082_v59, 0  ;;  %vm5179_vm15 = vcmp.lt.s32.totalorder %v5158_v8, 3  ;;  %vm5180_vm2 = vcmp.lt.s32.totalorder %v5158_v8, 4 }
 0x537   : > { %10598 = vcosq.f32 %v3049_v41  ;;  %v5185_v47 = vsel %vm5177_vm13, %v5164_v37, %v5167_v57  ;;  %v15225_v42 = vsub.s32 %v4165_v0, %v4168_v6  ;;  %v5161_v9 = vshrl.u32 %v16976_v15, %v5160_v1 }
 0x538   : > { %10600 = vsinq.f32 %v3049_v41  ;;  %v5182_v10 = vsel %vm5180_vm2, %v5170_v13, 2102212464  ;;  %v5186_v38 = vsel %vm5180_vm2, %v5173_v21, 920167782  ;;  %v2019_v20 = vsel %vm2017_vm12, %v15167_v49, %v2018_v55 }
 0x539   : > { %vm5178_vm3 = vcmp.lt.s32.totalorder %v5158_v8, 2  ;;  %v5187_v12 = vsel %vm5179_vm15, %v5170_v13, %v5186_v38  ;;  %v5189_v36 = vsel %vm5177_vm13, %v5167_v57, %v5170_v13  ;;  %v4171_v32 = vsub.s32 0, %v15225_v42 }
 0x53a   : > { %v5181_v25 = vsel %vm5177_vm13, %v5161_v9, %v5164_v37  ;;  %v5188_v0 = vsel %vm5178_vm3, %v5185_v47, %v5187_v12  ;;  %v5190_v54 = vsel %vm5180_vm2, %v5176_v28, 1326507024  ;;  %v5183_v1 = vsel %vm5179_vm15, %v5167_v57, %v5182_v10 }
 0x53b   : > { %v5191_v31 = vsel %vm5179_vm15, %v5173_v21, %v5190_v54  ;;  %v15239_v16 = vmul.u32.u64.low %v15201_v14, %v5188_v0  ;;  %v15240_v58 = vmul.u32.u64.high %v15201_v14, %v5188_v0, %v15239_v16  ;;  %v9898_v49 = vmin.u32 %v4171_v32, %v15225_v42 }
 0x53c   : > { %v4191_v55 = vsub.s32 4, %v4167_v18  ;;  %v5192_v43 = vsel %vm5178_vm3, %v5189_v36, %v5191_v31  ;;  %v15246_v50 = vadd.f32 %v11685_v30, %v987_v51  ;;  %v2023_v37 = vsel %vm2016_vm11, %v2019_v20, %v2022_v33 }
 0x53d   : > { %vm3053_vm4 = vweird.f32 %v14907_v22  ;;  %v17151_v41 = vand.u32 2147483647, %v15082_v59  ;;  %v15258_v13 = vmul.u32.u64.low %v15201_v14, %v5192_v43  ;;  %v15259_v21 = vmul.u32.u64.high %v15201_v14, %v5192_v43, %v15258_v13 }
 0x53e   : > { %vm3056_vm7 = vcmp.lt.s32.totalorder %v15190_v27, 2  ;;  %vm3057_vm8 = vcmp.eq.s32.totalorder %v15190_v27, 0  ;;  %v4173_v30 = vclz %v9898_v49  ;;  %v5184_v56 = vsel %vm5178_vm3, %v5181_v25, %v5183_v1 }
 0x53f   : > { %vm15253_vm5 = vcmp.le.f32.partialorder %v17151_v41, 0.7853982  ;;  %vm3060_vm6 = vcmp.eq.s32.totalorder %v15190_v27, 2  ;;  %v5203_v51 = vadd.s32 1, %v15240_v58  ;;  %v997_v33 = vadd.f32 %v15197_v3, %v15188_v29 }
 0x540   : > { %v4004_v6 = vand.u32 2139095040, %v15246_v50  ;;  %v2024_v47 = vsel %vm2013_vm14, nan, %v2023_v37  ;;  %v4161_v9 = vadd.s32 %v15174_v62, %v15171_v48  ;;  %v9899_v10 = vadd.s32 4294967294, %v4173_v30 }
 0x541   : > { %v10599_v28 = vpop.eup %10598  ;;  %v4192_v8 = vsel %vm4107_vm1, %v4191_v55, %v4167_v18  ;;  %v5200_v12 = vmul.u32 %v15201_v14, %v5184_v56  ;;  %vm5202_vm10 = vc.u32 %v15259_v21, %v15239_v16  ;;  %v4001_v29 = vand.u32 2147483647, %v15246_v50 }
 0x542   : > { %v10601_v38 = vpop.eup %10600  ;;  %v3061_v20 = vxor.u32 2147483648, %v10599_v28  ;;  %vm9900_vm12 = vcmp.lt.s32.totalorder %v9899_v10, 0  ;;  %v5204_v7 = vsel %vm5202_vm10, %v5203_v51, %v15240_v58  ;;  %v4005_v36 = vshrl.u32 %v4004_v6, 23 }
 0x543   : > { %v3058_v3 = vxor.u32 2147483648, %v10601_v38  ;;  %v4176_v62 = vsel %vm9900_vm12, 0, %v9899_v10  ;;  %v4194_v18 = vsel %vm15253_vm5, 0, %v4192_v8  ;;  %v5205_v32 = vadd.s32 %v5204_v7, %v5200_v12 }
 0x544   : > { %v3062_v48 = vsel %vm3060_vm6, %v3061_v20, %v10601_v38  ;;  %v4177_v25 = vsub.s32 32, %v4176_v62  ;;  %v4181_v0 = vsub.s32 4294967266, %v4176_v62  ;;  %v15287_v54 = vadd.f32 %v11749_v5, %v997_v33 }
 0x545   : > { %v3059_v14 = vsel %vm3057_vm8, %v10599_v28, %v3058_v3  ;;  %v5206_v31 = vadd.s32 536870912, %v5205_v32  ;;  %v9893_v58 = vadd.s32 4294967169, %v4005_v36  ;;  %v4008_v49 = vand.u32 8388607, %v4001_v29 }
 0x546   : > { %v3063_v1 = vsel %vm3056_vm7, %v3059_v14, %v3062_v48  ;;  %v4178_v43 = vshll.u32 %v15225_v42, %v4176_v62  ;;  %v4179_v37 = vshrl.u32 %v4161_v9, %v4177_v25  ;;  %v4182_v41 = vadd.s32 127, %v4181_v0 }
 0x547   : > { %v3064_v55 = vsel %vm3053_vm4, nan, %v3063_v1  ;;  %v5207_v30 = vshrl.u32 %v5206_v31, 30  ;;  %v4011_v5 = vadd.s32 1, %v9893_v58  ;;  %v4198_v27 = vadd.s32 3, %v4194_v18 }
 0x548   : > { %v15296_v13 = vpack.c.bf16 %v3064_v55, %v2024_v47  ;;  %v4180_v56 = vor.u32 %v4179_v37, %v4178_v43  ;;  %v4183_v51 = vshll.u32 %v4182_v41, 23  ;;  %v5044_v28 = vand.u32 2139095040, %v15287_v54 }
 0x549   : > { %v5208_v33 = vshll.u32 %v5207_v30, 30  ;;  %v5231_v6 = vsub.s32 4, %v5207_v30  ;;  %vm4012_vm11 = vcmp.gt.s32.totalorder %v4011_v5, 0  ;;  %v4009_v10 = vor.u32 8388608, %v4008_v49 }
 0x54a   : > { %17154 = vst [vmem:[#allocation11_spill] sm:$0xff] %v15296_v13  ;;  %6608 = vmatpush1.bf16.msra.mxu0 %v15296_v13  ;;  %v4184_v22 = vor.u32 4788187, %v4183_v51  ;;  %v4013_v8 = vsel %vm4012_vm11, %v4011_v5, 0  ;;  %vm5147_vm13 = vcmp.lt.s32.totalorder %v15110_v4, 0  ;;  %v4187_v38 = vcvt.s32.f32 %v4180_v56 }
 0x54b   : > { %v15301_v42 = vsub.s32 %v5205_v32, %v5208_v33  ;;  %v4015_v47 = vand.u32 31, %v4013_v8  ;;  %v17155_v20 = vand.u32 2147483647, %v15110_v4  ;;  %v15311_v3 = vsel %vm5147_vm13, %v5231_v6, %v5207_v30 }
 0x54c   : > { %v4185_v9 = vand.u32 2147483647, %v4184_v22  ;;  %v15313_v7 = vand.u32 3, %v4198_v27  ;;  %v5045_v62 = vshrl.u32 %v5044_v28, 23  ;;  %v5201_v32 = vadd.s32 %v15239_v16, %v15259_v21 }
 0x54d   : > { %vm15305_vm14 = vcmp.le.f32.partialorder %v17155_v20, 0.7853982  ;;  %v5211_v36 = vsub.s32 0, %v15301_v42  ;;  %v4016_v48 = vsub.s32 32, %v4015_v47  ;;  %v15318_v14 = vshll.u32 %v4009_v10, 8 }
 0x54e   : > { %v4188_v18 = vmul.f32 %v4187_v38, %v4185_v9  ;;  %v5041_v25 = vand.u32 2147483647, %v15287_v54  ;;  %v5234_v1 = vsel %vm15305_vm14, 0, %v15311_v3  ;;  %v4014_v31 = vshrl.u32 %v4013_v8, 5 }
 0x54f   : > { %v9938_v0 = vmin.u32 %v5211_v36, %v15301_v42  ;;  %v4019_v58 = vshrl.u32 %v16972_v23, %v4016_v48  ;;  %v4022_v55 = vshrl.u32 %v16973_v34, %v4016_v48  ;;  %v4025_v43 = vshrl.u32 %v16974_v39, %v4016_v48 }
 0x550   : > { %v4189_v49 = vxor.u32 2147483648, %v4188_v18  ;;  %v4028_v16 = vshrl.u32 %v16975_v24, %v4016_v48  ;;  %v4018_v37 = vshll.u32 %v16976_v15, %v4015_v47  ;;  %v4024_v41 = vshll.u32 %v16973_v34, %v4015_v47 }
 0x551   : > { %v5213_v21 = vclz %v9938_v0  ;;  %v9933_v30 = vadd.s32 4294967169, %v5045_v62  ;;  %v4017_v56 = vshrl.u32 %v16976_v15, %v4016_v48  ;;  %v4021_v51 = vshll.u32 %v16972_v23, %v4015_v47 }
 0x552   : > { %v4190_v5 = vsel %vm4107_vm1, %v4189_v49, %v4188_v18  ;;  %v4027_v27 = vshll.u32 %v16974_v39, %v4015_v47  ;;  %v4020_v28 = vor.u32 %v4019_v58, %v4018_v37  ;;  %v4026_v22 = vor.u32 %v4025_v43, %v4024_v41 }
 0x553   : > { %v4193_v33 = vsel %vm15253_vm5, %v15082_v59, %v4190_v5  ;;  %v9939_v6 = vadd.s32 4294967294, %v5213_v21  ;;  %v4023_v10 = vor.u32 %v4022_v55, %v4021_v51  ;;  %v4030_v9 = vshll.u32 %v16975_v24, %v4015_v47 }
 0x554   : > { %v4029_v8 = vor.u32 %v4028_v16, %v4027_v27  ;;  %v4031_v38 = vshrl.u32 %v16977_v52, %v4016_v48  ;;  %10602 = vcosq.f32 %v4193_v33  ;;  %vm4033_vm15 = vcmp.lt.s32.totalorder %v4014_v31, 1 }
 0x555   : > { %vm9940_vm1 = vcmp.lt.s32.totalorder %v9939_v6, 0  ;;  %vm4034_vm2 = vcmp.lt.s32.totalorder %v4014_v31, 2  ;;  %10604 = vsinq.f32 %v4193_v33  ;;  %vm4036_vm3 = vcmp.lt.s32.totalorder %v4014_v31, 4 }
 0x556   : > { %v5216_v20 = vsel %vm9940_vm1, 0, %v9939_v6  ;;  %v4032_v3 = vor.u32 %v4031_v38, %v4030_v9  ;;  %vm4035_vm4 = vcmp.lt.s32.totalorder %v4014_v31, 3  ;;  %v4038_v62 = vsel %vm4036_vm3, %v4026_v22, 2102212464 }
 0x557   : > { %v5217_v36 = vsub.s32 32, %v5216_v20  ;;  %v5221_v57 = vsub.s32 4294967266, %v5216_v20  ;;  %v5218_v18 = vshll.u32 %v15301_v42, %v5216_v20  ;;  %v4041_v0 = vsel %vm4033_vm15, %v4020_v28, %v4023_v10 }
 0x558   : > { %v4042_v58 = vsel %vm4036_vm3, %v4029_v8, 920167782  ;;  %v4045_v47 = vsel %vm4033_vm15, %v4023_v10, %v4026_v22  ;;  %v4046_v43 = vsel %vm4036_vm3, %v4032_v3, 1326507024  ;;  %v4037_v16 = vsel %vm4033_vm15, %v4017_v56, %v4020_v28 }
 0x559   : > { %v5219_v48 = vshrl.u32 %v5201_v32, %v5217_v36  ;;  %v5222_v49 = vadd.s32 127, %v5221_v57  ;;  %v4043_v55 = vsel %vm4035_vm4, %v4026_v22, %v4042_v58  ;;  %v4047_v37 = vsel %vm4035_vm4, %v4029_v8, %v4046_v43 }
 0x55a   : > { %v4044_v21 = vsel %vm4034_vm2, %v4041_v0, %v4043_v55  ;;  %v5051_v41 = vadd.s32 1, %v9933_v30  ;;  %v4039_v42 = vsel %vm4035_vm4, %v4023_v10, %v4038_v62  ;;  %v4048_v27 = vsel %vm4034_vm2, %v4045_v47, %v4047_v37 }
 0x55b   : > { %v5220_v5 = vor.u32 %v5219_v48, %v5218_v18  ;;  %v5223_v51 = vshll.u32 %v5222_v49, 23  ;;  %v15351_v33 = vmul.u32.u64.low %v15318_v14, %v4048_v27  ;;  %v15352_v32 = vmul.u32.u64.high %v15318_v14, %v4048_v27, %v15351_v33 }
 0x55c   : > { %v15355_v6 = vmul.u32.u64.low %v15318_v14, %v4044_v21  ;;  %v15356_v22 = vmul.u32.u64.high %v15318_v14, %v4044_v21, %v15355_v6  ;;  %v5048_v28 = vand.u32 8388607, %v5041_v25  ;;  %vm5052_vm5 = vcmp.gt.s32.totalorder %v5051_v41, 0 }
 0x55d   : > { %v5224_v56 = vor.u32 4788187, %v5223_v51  ;;  %v5238_v30 = vadd.s32 3, %v5234_v1  ;;  %v4040_v8 = vsel %vm4034_vm2, %v4037_v16, %v4039_v42  ;;  %v5053_v10 = vsel %vm5052_vm5, %v5051_v41, 0 }
 0x55e   : > { %v10603_v9 = vpop.eup %10602  ;;  %v5227_v20 = vcvt.s32.f32 %v5220_v5  ;;  %v5055_v3 = vand.u32 31, %v5053_v10  ;;  %vm4204_vm7 = vcmp.eq.s32.totalorder %v15313_v7, 2  ;;  %vm4058_vm8 = vc.u32 %v15352_v32, %v15355_v6 }
 0x55f   : > { %v5225_v38 = vand.u32 2147483647, %v5224_v56  ;;  %v10605_v36 = vpop.eup %10604  ;;  %v4059_v57 = vadd.s32 1, %v15356_v22  ;;  %v15368_v62 = vmul.f32 %v14616_v63, %v11652_v61  ;;  %v4056_v31 = vmul.u32 %v15318_v14, %v4040_v8 }
 0x560   : > { %v5049_v18 = vor.u32 8388608, %v5048_v28  ;;  %v5056_v0 = vsub.s32 32, %v5055_v3  ;;  %v4205_v58 = vxor.u32 2147483648, %v10603_v9  ;;  %v15371_v47 = vand.u32 3, %v5238_v30 }
 0x561   : > { %v5228_v1 = vmul.f32 %v5227_v20, %v5225_v38  ;;  %v4060_v48 = vsel %vm4058_vm8, %v4059_v57, %v15356_v22  ;;  %v15374_v49 = vshrl.u32 %v5053_v10, 5  ;;  %vm4201_vm6 = vcmp.eq.s32.totalorder %v15313_v7, 0 }
 0x562   : > { %v4061_v43 = vadd.s32 %v4060_v48, %v4056_v31  ;;  %v5058_v16 = vshll.u32 %v16976_v15, %v5055_v3  ;;  %v5061_v63 = vshll.u32 %v16972_v23, %v5055_v3  ;;  %v5059_v21 = vshrl.u32 %v16972_v23, %v5056_v0 }
 0x563   : > { %v5229_v55 = vxor.u32 2147483648, %v5228_v1  ;;  %v5062_v14 = vshrl.u32 %v16973_v34, %v5056_v0  ;;  %v5064_v37 = vshll.u32 %v16973_v34, %v5055_v3  ;;  %v5065_v41 = vshrl.u32 %v16974_v39, %v5056_v0 }
 0x564   : > { %v4062_v51 = vadd.s32 536870912, %v4061_v43  ;;  %v5067_v42 = vshll.u32 %v16974_v39, %v5055_v3  ;;  %v5068_v27 = vshrl.u32 %v16975_v24, %v5056_v0  ;;  %v5060_v22 = vor.u32 %v5059_v21, %v5058_v16 }
 0x565   : > { %v5230_v5 = vsel %vm5147_vm13, %v5229_v55, %v5228_v1  ;;  %v5063_v56 = vor.u32 %v5062_v14, %v5061_v63  ;;  %v15390_v28 = vshll.u32 %v5049_v18, 8  ;;  %vm4200_vm10 = vcmp.lt.s32.totalorder %v15313_v7, 2 }
 0x566   : > { %v5233_v33 = vsel %vm15305_vm14, %v15110_v4, %v5230_v5  ;;  %v15393_v30 = vshrl.u32 %v4062_v51, 30  ;;  %v5066_v8 = vor.u32 %v5065_v41, %v5064_v37  ;;  %v5069_v10 = vor.u32 %v5068_v27, %v5067_v42  ;;  %v15427_v51 = vpop.f32.mrb[0].mxu0  ;;  %v15429_v42 = vpop.f32.mrb[0].mxu1 }
 0x567   : > { %10606 = vcosq.f32 %v5233_v33  ;;  %v4202_v38 = vxor.u32 2147483648, %v10605_v36  ;;  %v5070_v20 = vshll.u32 %v16975_v24, %v5055_v3  ;;  %v5071_v57 = vshrl.u32 %v16977_v52, %v5056_v0 }
 0x568   : > { %10608 = vsinq.f32 %v5233_v33  ;;  %v4206_v12 = vsel %vm4204_vm7, %v4205_v58, %v10605_v36  ;;  %v4064_v1 = vshll.u32 %v15393_v30, 30  ;;  %vm5073_vm12 = vcmp.lt.s32.totalorder %v15374_v49, 1 }
 0x569   : > { %v958_v31 = vmul.f32 %v14652_v26, %v11724_v19  ;;  %vm4197_vm11 = vweird.f32 %v15082_v59  ;;  %v5057_v18 = vshrl.u32 %v16976_v15, %v5056_v0  ;;  %v5072_v48 = vor.u32 %v5071_v57, %v5070_v20 }
 0x56a   : > { %vm5076_vm13 = vcmp.lt.s32.totalorder %v15374_v49, 4  ;;  %v5081_v3 = vsel %vm5073_vm12, %v5060_v22, %v5063_v56  ;;  %v15408_v55 = vsub.s32 %v4061_v43, %v4064_v1  ;;  %vm5075_vm14 = vcmp.lt.s32.totalorder %v15374_v49, 3 }
 0x56b   : > { %v5078_v36 = vsel %vm5076_vm13, %v5066_v8, 2102212464  ;;  %v5082_v58 = vsel %vm5076_vm13, %v5069_v10, 920167782  ;;  %v4203_v16 = vsel %vm4201_vm6, %v10603_v9, %v4202_v38  ;;  %vm5074_vm1 = vcmp.lt.s32.totalorder %v15374_v49, 2 }
 0x56c   : > { %v5083_v26 = vsel %vm5075_vm14, %v5066_v8, %v5082_v58  ;;  %v5085_v0 = vsel %vm5073_vm12, %v5063_v56, %v5066_v8  ;;  %v4067_v63 = vsub.s32 0, %v15408_v55  ;;  %v5077_v21 = vsel %vm5073_vm12, %v5057_v18, %v5060_v22  ;;  %v15439_v8 = vpop.f32.mrb[1].mxu1 }
 0x56d   : > { %v5084_v43 = vsel %vm5074_vm1, %v5081_v3, %v5083_v26  ;;  %v5086_v14 = vsel %vm5076_vm13, %v5072_v48, 1326507024  ;;  %vm5237_vm15 = vweird.f32 %v15110_v4  ;;  %v5079_v37 = vsel %vm5075_vm14, %v5063_v56, %v5078_v36  ;;  %v15437_v56 = vpop.f32.mrb[1].mxu0  ;;  %v15451_v18 = vpop.f32.mrb[2].mxu1 }
 0x56e   : > { %v5087_v41 = vsel %vm5075_vm14, %v5069_v10, %v5086_v14  ;;  %v15423_v9 = vmul.u32.u64.low %v15390_v28, %v5084_v43  ;;  %v15424_v5 = vmul.u32.u64.high %v15390_v28, %v5084_v43, %v15423_v9  ;;  %vm5240_vm2 = vcmp.lt.s32.totalorder %v15371_v47, 2  ;;  %v15449_v1 = vpop.f32.mrb[2].mxu0  ;;  %v15459_v3 = vpop.f32.mrb[3].mxu1 }
 0x56f   : > { %v9894_v27 = vmin.u32 %v4067_v63, %v15408_v55  ;;  %v5088_v33 = vsel %vm5074_vm1, %v5085_v0, %v5087_v41  ;;  %v825_v22 = vmul.f32 %v14726_v40, %v11652_v61  ;;  %v4207_v10 = vsel %vm4200_vm10, %v4203_v16, %v4206_v12  ;;  %v15457_v12 = vpop.f32.mrb[3].mxu0  ;;  %v15467_v26 = vpop.f32.mrb[4].mxu1 }
 0x570   : > { %v15444_v38 = vmul.u32.u64.low %v15390_v28, %v5088_v33  ;;  %v15445_v20 = vmul.u32.u64.high %v15390_v28, %v5088_v33, %v15444_v38  ;;  %v957_v57 = vmul.f32 %v14740_v11, %v11724_v19  ;;  %vm5241_vm3 = vcmp.eq.s32.totalorder %v15371_v47, 0  ;;  %v15465_v16 = vpop.f32.mrb[4].mxu0 }
 0x571   : > { %v10607_v48 = vpop.eup %10606  ;;  %v4069_v61 = vclz %v9894_v27  ;;  %v5080_v40 = vsel %vm5074_vm1, %v5077_v21, %v5079_v37  ;;  %v1008_v7 = vadd.f32 %v958_v31, %v15368_v62  ;;  %vm5244_vm4 = vcmp.eq.s32.totalorder %v15371_v47, 2  ;;  %v15474_v63 = vpop.f32.mrb[5].mxu0 }
 0x572   : > { %v10609_v36 = vpop.eup %10608  ;;  %v5245_v19 = vxor.u32 2147483648, %v10607_v48  ;;  %v4057_v11 = vadd.s32 %v15355_v6, %v15352_v32  ;;  %v5099_v58 = vadd.s32 1, %v15424_v5  ;;  %v4208_v62 = vsel %vm4197_vm11, nan, %v4207_v10  ;;  %v15476_v21 = vpop.f32.mrb[5].mxu1 }
 0x573   : > { %v5242_v49 = vxor.u32 2147483648, %v10609_v36  ;;  %v9895_v31 = vadd.s32 4294967294, %v4069_v61  ;;  %v15472_v0 = vadd.f32 %v17110_v17, %v1008_v7  ;;  %v5096_v32 = vmul.u32 %v15390_v28, %v5080_v40  ;;  %v15481_v14 = vpop.f32.mrb[6].mxu0  ;;  %v15483_v59 = vpop.f32.mrb[6].mxu1 }
 0x574   : > { %v5246_v43 = vsel %vm5244_vm4, %v5245_v19, %v10609_v36  ;;  %vm5098_vm5 = vc.u32 %v15445_v20, %v15423_v9  ;;  %v1007_v6 = vadd.f32 %v957_v57, %v825_v22  ;;  %v4087_v41 = vsub.s32 4, %v15393_v30  ;;  %v15489_v33 = vpop.f32.mrb[7].mxu0  ;;  %v15491_v10 = vpop.f32.mrb[7].mxu1 }
 0x575   : > { %v5243_v37 = vsel %vm5241_vm3, %v10607_v48, %v5242_v49  ;;  %vm9896_vm7 = vcmp.lt.s32.totalorder %v9895_v31, 0  ;;  %v5100_v27 = vsel %vm5098_vm5, %v5099_v58, %v15424_v5  ;;  %v16929_v7 = vand.u32 2147483647, %v15472_v0 }
 0x576   : > { %v5247_v28 = vsel %vm5240_vm2, %v5243_v37, %v5246_v43  ;;  %v4072_v22 = vsel %vm9896_vm7, 0, %v9895_v31  ;;  %v5101_v38 = vadd.s32 %v5100_v27, %v5096_v32  ;;  %v15496_v57 = vadd.f32 %v17110_v17, %v1007_v6 }
 0x577   : > { %v5248_v48 = vsel %vm5237_vm15, nan, %v5247_v28  ;;  %v4073_v61 = vsub.s32 32, %v4072_v22  ;;  %v4077_v40 = vsub.s32 4294967266, %v4072_v22  ;;  %v6188_v19 = vand.u32 2139095040, %v15472_v0 }
 0x578   : > { %v15501_v5 = vpack.c.bf16 %v5248_v48, %v4208_v62  ;;  %v5102_v36 = vadd.s32 536870912, %v5101_v38  ;;  %vm4003_vm8 = vcmp.lt.s32.totalorder %v15246_v50, 0  ;;  %v4074_v47 = vshll.u32 %v15408_v55, %v4072_v22 }
 0x579   : > { %v4075_v58 = vshrl.u32 %v4057_v11, %v4073_v61  ;;  %v4078_v49 = vadd.s32 127, %v4077_v40  ;;  %v4088_v17 = vsel %vm4003_vm8, %v4087_v41, %v15393_v30  ;;  %v6189_v31 = vshrl.u32 %v6188_v19, 23 }
 0x57a   : > { %17158 = vst [vmem:[#allocation10_spill] sm:$0xff] %v15501_v5  ;;  %6609 = vmatprep.subr.bf16.mxu0 %v15501_v5  ;;  %v5103_v4 = vshrl.u32 %v5102_v36, 30  ;;  %v6192_v32 = vand.u32 8388607, %v16929_v7  ;;  %v6084_v6 = vand.u32 2139095040, %v15496_v57  ;;  %vm5043_vm10 = vcmp.lt.s32.totalorder %v15287_v54, 0 }
 0x57b   : > { %v4076_v43 = vor.u32 %v4075_v58, %v4074_v47  ;;  %v4079_v62 = vshll.u32 %v4078_v49, 23  ;;  %v9977_v27 = vadd.s32 4294967169, %v6189_v31  ;;  %vm15515_vm6 = vcmp.le.f32.partialorder %v4001_v29, 0.7853982  ;;  %v15532_v49 = vpop.permute.xlu1 %6329 }
 0x57c   : > { %v5104_v37 = vshll.u32 %v5103_v4, 30  ;;  %v5127_v28 = vsub.s32 4, %v5103_v4  ;;  %v6085_v30 = vshrl.u32 %v6084_v6, 23  ;;  %v4090_v41 = vsel %vm15515_vm6, 0, %v4088_v17 }
 0x57d   : > { %v4080_v11 = vor.u32 4788187, %v4079_v62  ;;  %v6195_v48 = vadd.s32 1, %v9977_v27  ;;  %v4083_v40 = vcvt.s32.f32 %v4076_v43  ;;  %v6193_v36 = vor.u32 8388608, %v6192_v32 }
 0x57e   : > { %v15522_v22 = vsub.s32 %v5101_v38, %v5104_v37  ;;  %v16928_v19 = vand.u32 2147483647, %v15496_v57  ;;  %vm15527_vm12 = vcmp.le.f32.partialorder %v5041_v25, 0.7853982  ;;  %v9973_v58 = vadd.s32 4294967169, %v6085_v30 }
 0x57f   : > { %v4081_v61 = vand.u32 2147483647, %v4080_v11  ;;  %vm6196_vm11 = vcmp.gt.s32.totalorder %v6195_v48, 0  ;;  %v15534_v17 = vadd.s32 3, %v4090_v41  ;;  %v15538_v31 = vsel %vm5043_vm10, %v5127_v28, %v5103_v4  ;;  %v15557_v28 = vpop.permute.xlu0 %6334 }
 0x580   : > { %v5107_v47 = vsub.s32 0, %v15522_v22  ;;  %v6197_v43 = vsel %vm6196_vm11, %v6195_v48, 0  ;;  %v15543_v32 = vadd.f32 %v15427_v51, %v15532_v49  ;;  %v15547_v6 = vadd.f32 %v15429_v42, %v15532_v49 }
 0x581   : > { %v4084_v38 = vmul.f32 %v4083_v40, %v4081_v61  ;;  %v6199_v25 = vand.u32 31, %v6197_v43  ;;  %v5097_v27 = vadd.s32 %v15423_v9, %v15445_v20  ;;  %v15551_v11 = vshll.u32 %v6193_v36, 8 }
 0x582   : > { %v9934_v62 = vmin.u32 %v5107_v47, %v15522_v22  ;;  %v15555_v4 = vand.u32 8388607, %v16928_v19  ;;  %v5130_v51 = vsel %vm15527_vm12, 0, %v15538_v31  ;;  %v6198_v41 = vshrl.u32 %v6197_v43, 5 }
 0x583   : > { %v4085_v37 = vxor.u32 2147483648, %v4084_v38  ;;  %v6091_v42 = vadd.s32 1, %v9973_v58  ;;  %v6200_v61 = vsub.s32 32, %v6199_v25  ;;  %v15566_v9 = vadd.f32 %v15449_v1, %v15557_v28 }
 0x584   : > { %v5109_v30 = vclz %v9934_v62  ;;  %v15570_v20 = vadd.f32 %v15451_v18, %v15557_v28  ;;  %v6202_v47 = vshll.u32 %v16976_v15, %v6199_v25  ;;  %v6205_v58 = vshll.u32 %v16972_v23, %v6199_v25 }
 0x585   : > { %v4086_v48 = vsel %vm4003_vm8, %v4085_v37, %v4084_v38  ;;  %v6203_v38 = vshrl.u32 %v16972_v23, %v6200_v61  ;;  %v6206_v31 = vshrl.u32 %v16973_v34, %v6200_v61  ;;  %v6208_v1 = vshll.u32 %v16973_v34, %v6199_v25 }
 0x586   : > { %v4089_v40 = vsel %vm15515_vm6, %v15246_v50, %v4086_v48  ;;  %v9935_v36 = vadd.s32 4294967294, %v5109_v30  ;;  %v6211_v43 = vshll.u32 %v16974_v39, %v6199_v25  ;;  %v6209_v18 = vshrl.u32 %v16974_v39, %v6200_v61 }
 0x587   : > { %10610 = vcosq.f32 %v4089_v40  ;;  %v6212_v55 = vshrl.u32 %v16975_v24, %v6200_v61  ;;  %vm6092_vm14 = vcmp.gt.s32.totalorder %v6091_v42, 0  ;;  %v6201_v37 = vshrl.u32 %v16976_v15, %v6200_v61 }
 0x588   : > { %vm9936_vm13 = vcmp.lt.s32.totalorder %v9935_v36, 0  ;;  %v6204_v30 = vor.u32 %v6203_v38, %v6202_v47  ;;  %v6207_v48 = vor.u32 %v6206_v31, %v6205_v58  ;;  %10612 = vsinq.f32 %v4089_v40 }
 0x589   : > { %v5112_v62 = vsel %vm9936_vm13, 0, %v9935_v36  ;;  %v6210_v2 = vor.u32 %v6209_v18, %v6208_v1  ;;  %v6213_v5 = vor.u32 %v6212_v55, %v6211_v43  ;;  %v6214_v13 = vshll.u32 %v16975_v24, %v6199_v25 }
 0x58a   : > { %v5113_v19 = vsub.s32 32, %v5112_v62  ;;  %v5117_v7 = vsub.s32 4294967266, %v5112_v62  ;;  %v5114_v53 = vshll.u32 %v15522_v22, %v5112_v62  ;;  %v6215_v44 = vshrl.u32 %v16977_v52, %v6200_v61 }
 0x58b   : > { %vm6217_vm1 = vcmp.lt.s32.totalorder %v6198_v41, 1  ;;  %vm6220_vm15 = vcmp.lt.s32.totalorder %v6198_v41, 4  ;;  %vm6218_vm2 = vcmp.lt.s32.totalorder %v6198_v41, 2  ;;  %vm6219_vm3 = vcmp.lt.s32.totalorder %v6198_v41, 3 }
 0x58c   : > { %v5115_v45 = vshrl.u32 %v5097_v27, %v5113_v19  ;;  %v5118_v46 = vadd.s32 127, %v5117_v7  ;;  %v6216_v36 = vor.u32 %v6215_v44, %v6214_v13  ;;  %v6222_v60 = vsel %vm6220_vm15, %v6210_v2, 2102212464 }
 0x58d   : > { %v6225_v47 = vsel %vm6217_vm1, %v6204_v30, %v6207_v48  ;;  %v6226_v38 = vsel %vm6220_vm15, %v6213_v5, 920167782  ;;  %v6221_v31 = vsel %vm6217_vm1, %v6201_v37, %v6204_v30  ;;  %v6229_v22 = vsel %vm6217_vm1, %v6207_v48, %v6210_v2 }
 0x58e   : > { %v5116_v58 = vor.u32 %v5115_v45, %v5114_v53  ;;  %v5119_v40 = vshll.u32 %v5118_v46, 23  ;;  %v6227_v1 = vsel %vm6219_vm3, %v6210_v2, %v6226_v38  ;;  %v6230_v43 = vsel %vm6220_vm15, %v6216_v36, 1326507024 }
 0x58f   : > { %v6223_v25 = vsel %vm6219_vm3, %v6207_v48, %v6222_v60  ;;  %v6228_v61 = vsel %vm6218_vm2, %v6225_v47, %v6227_v1  ;;  %v6231_v19 = vsel %vm6219_vm3, %v6213_v5, %v6230_v43  ;;  %v5134_v7 = vadd.s32 3, %v5130_v51 }
 0x590   : > { %v5120_v18 = vor.u32 4788187, %v5119_v40  ;;  %v6232_v27 = vsel %vm6218_vm2, %v6229_v22, %v6231_v19  ;;  %v15590_v44 = vmul.u32.u64.low %v15551_v11, %v6228_v61  ;;  %v15591_v13 = vmul.u32.u64.high %v15551_v11, %v6228_v61, %v15590_v44 }
 0x591   : > { %v15594_v53 = vpop.eup %10610  ;;  %v5123_v45 = vcvt.s32.f32 %v5116_v58  ;;  %v15597_v2 = vmul.u32.u64.low %v15551_v11, %v6232_v27  ;;  %v15598_v55 = vmul.u32.u64.high %v15551_v11, %v6232_v27, %v15597_v2  ;;  %v6224_v60 = vsel %vm6218_vm2, %v6221_v31, %v6223_v25 }
 0x592   : > { %v5121_v46 = vand.u32 2147483647, %v5120_v18  ;;  %v6093_v5 = vsel %vm6092_vm14, %v6091_v42, 0  ;;  %v6660_v51 = vpack.c.bf16 %v15566_v9, %v15543_v32  ;;  %v6662_v62 = vpack.c.bf16 %v15570_v20, %v15547_v6  ;;  %v10613_v37 = vpop.eup %10612  ;;  %v10653_v20 = vld [vmem:[%s17050_s6 + $0x8] sm:$0xff]  }
 0x593   : > { %v15607_v30 = vand.u32 3, %v15534_v17  ;;  %v6095_v36 = vand.u32 31, %v6093_v5  ;;  %v6243_v47 = vadd.s32 1, %v15591_v13  ;;  %v6089_v58 = vor.u32 8388608, %v15555_v4 }
 0x594   : > { %v5124_v48 = vmul.f32 %v5123_v45, %v5121_v46  ;;  %v15613_v41 = vadd.f32 %v15437_v56, %v15532_v49  ;;  %v6240_v40 = vmul.u32 %v15551_v11, %v6224_v60  ;;  %vm6242_vm4 = vc.u32 %v15598_v55, %v15590_v44 }
 0x595   : > { %v15620_v17 = vadd.f32 %v15439_v8, %v15532_v49  ;;  %v15622_v38 = vand.u32 3, %v5134_v7  ;;  %v6244_v31 = vsel %vm6242_vm4, %v6243_v47, %v15591_v13  ;;  %v15625_v1 = vshrl.u32 %v6093_v5, 5 }
 0x596   : > { %v5125_v42 = vxor.u32 2147483648, %v5124_v48  ;;  %v6096_v4 = vsub.s32 32, %v6095_v36  ;;  %vm4097_vm5 = vcmp.eq.s32.totalorder %v15607_v30, 0  ;;  %vm4100_vm7 = vcmp.eq.s32.totalorder %v15607_v30, 2 }
 0x597   : > { %v6245_v11 = vadd.s32 %v6244_v31, %v6240_v40  ;;  %v6098_v22 = vshll.u32 %v16976_v15, %v6095_v36  ;;  %v6101_v8 = vshll.u32 %v16972_v23, %v6095_v36  ;;  %v6104_v61 = vshll.u32 %v16973_v34, %v6095_v36 }
 0x598   : > { %v5126_v56 = vsel %vm5043_vm10, %v5125_v42, %v5124_v48  ;;  %v6099_v18 = vshrl.u32 %v16972_v23, %v6096_v4  ;;  %v6102_v25 = vshrl.u32 %v16973_v34, %v6096_v4  ;;  %v6105_v7 = vshrl.u32 %v16974_v39, %v6096_v4 }
 0x599   : > { %v5129_v43 = vsel %vm15527_vm12, %v15287_v54, %v5126_v56  ;;  %v6246_v19 = vadd.s32 536870912, %v6245_v11  ;;  %v6107_v27 = vshll.u32 %v16974_v39, %v6095_v36  ;;  %vm4096_vm8 = vcmp.lt.s32.totalorder %v15607_v30, 2 }
 0x59a   : > { %10614 = vcosq.f32 %v5129_v43  ;;  %v6100_v13 = vor.u32 %v6099_v18, %v6098_v22  ;;  %v6103_v46 = vor.u32 %v6102_v25, %v6101_v8  ;;  %v6108_v29 = vshrl.u32 %v16975_v24, %v6096_v4 }
 0x59b   : > { %10616 = vsinq.f32 %v5129_v43  ;;  %v15643_v45 = vshrl.u32 %v6246_v19, 30  ;;  %v6106_v23 = vor.u32 %v6105_v7, %v6104_v61  ;;  %v6110_v2 = vshll.u32 %v16975_v24, %v6095_v36 }
 0x59c   : > { %v6111_v34 = vshrl.u32 %v16977_v52, %v6096_v4  ;;  %v4098_v60 = vxor.u32 2147483648, %v10613_v37  ;;  %v4101_v5 = vxor.u32 2147483648, %v15594_v53  ;;  %v6109_v48 = vor.u32 %v6108_v29, %v6107_v27 }
 0x59d   : > { %v15648_v47 = vshll.u32 %v6089_v58, 8  ;;  %v6248_v39 = vshll.u32 %v15643_v45, 30  ;;  %vm6113_vm6 = vcmp.lt.s32.totalorder %v15625_v1, 1  ;;  %vm6116_vm10 = vcmp.lt.s32.totalorder %v15625_v1, 4 }
 0x59e   : > { %v6112_v42 = vor.u32 %v6111_v34, %v6110_v2  ;;  %vm4093_vm12 = vweird.f32 %v15246_v50  ;;  %vm5137_vm11 = vcmp.eq.s32.totalorder %v15622_v38, 0  ;;  %vm6115_vm13 = vcmp.lt.s32.totalorder %v15625_v1, 3 }
 0x59f   : > { %v6118_v24 = vsel %vm6116_vm10, %v6106_v23, 2102212464  ;;  %v6121_v52 = vsel %vm6113_vm6, %v6100_v13, %v6103_v46  ;;  %v6122_v36 = vsel %vm6116_vm10, %v6109_v48, 920167782  ;;  %vm5136_vm14 = vcmp.lt.s32.totalorder %v15622_v38, 2  ;;  %v15669_v56 = vpop.f32.mrb[8].mxu0 }
 0x5a0   : > { %v15663_v58 = vsub.s32 %v6245_v11, %v6248_v39  ;;  %v6097_v40 = vshrl.u32 %v16976_v15, %v6096_v4  ;;  %vm6114_vm1 = vcmp.lt.s32.totalorder %v15625_v1, 2  ;;  %v6123_v31 = vsel %vm6115_vm13, %v6106_v23, %v6122_v36  ;;  %v15681_v4 = vpop.f32.mrb[9].mxu0 }
 0x5a1   : > { %v4099_v22 = vsel %vm4097_vm5, %v15594_v53, %v4098_v60  ;;  %v4102_v8 = vsel %vm4100_vm7, %v4101_v5, %v10613_v37  ;;  %vm5133_vm15 = vweird.f32 %v15287_v54  ;;  %v6124_v11 = vsel %vm6114_vm1, %v6121_v52, %v6123_v31  ;;  %v15690_v25 = vpop.f32.mrb[10].mxu0  ;;  %v15727_v31 = vpop.permute.xlu1 %6339 }
 0x5a2   : > { %v6125_v15 = vsel %vm6113_vm6, %v6103_v46, %v6106_v23  ;;  %v6251_v43 = vsub.s32 0, %v15663_v58  ;;  %v6117_v18 = vsel %vm6113_vm6, %v6097_v40, %v6100_v13  ;;  %v6119_v53 = vsel %vm6115_vm13, %v6103_v46, %v6118_v24  ;;  %v15701_v13 = vpop.f32.mrb[11].mxu0 }
 0x5a3   : > { %v6126_v37 = vsel %vm6116_vm10, %v6112_v42, 1326507024  ;;  %v15695_v19 = vmul.u32.u64.low %v15648_v47, %v6124_v11  ;;  %v15696_v7 = vmul.u32.u64.high %v15648_v47, %v6124_v11, %v15695_v19  ;;  %v6436_v27 = vadd.f32 %v15457_v12, %v15557_v28 }
 0x5a4   : > { %v6127_v61 = vsel %vm6115_vm13, %v6109_v48, %v6126_v37  ;;  %v10615_v29 = vpop.eup %10614  ;;  %v4103_v46 = vsel %vm4096_vm8, %v4099_v22, %v4102_v8  ;;  %v9978_v23 = vmin.u32 %v6251_v43, %v15663_v58  ;;  %v15710_v34 = vadd.f32 %v15459_v3, %v15557_v28 }
 0x5a5   : > { %v6128_v2 = vsel %vm6114_vm1, %v6125_v15, %v6127_v61  ;;  %v10617_v60 = vpop.eup %10616  ;;  %v5141_v5 = vxor.u32 2147483648, %v10615_v29  ;;  %v6661_v39 = vpack.c.bf16 %v6436_v27, %v15613_v41  ;;  %vm5140_vm2 = vcmp.eq.s32.totalorder %v15622_v38, 2  ;;  %v15744_v15 = vpop.permute.xlu0 %6344 }
 0x5a6   : > { %v15713_v48 = vmul.u32.u64.low %v15648_v47, %v6128_v2  ;;  %v15714_v12 = vmul.u32.u64.high %v15648_v47, %v6128_v2, %v15713_v48  ;;  %v5138_v42 = vxor.u32 2147483648, %v10617_v60  ;;  %v6253_v30 = vclz %v9978_v23 }
 0x5a7   : > { %v6120_v24 = vsel %vm6114_vm1, %v6117_v18, %v6119_v53  ;;  %v5142_v52 = vsel %vm5140_vm2, %v5141_v5, %v10617_v60  ;;  %v6139_v36 = vadd.s32 1, %v15696_v7  ;;  %v6680_v3 = vmax.bf16 %v17109_v35, %v6660_v51  ;;  %v6545_v11 = vpop.f32.mrb[12].mxu0 }
 0x5a8   : > { %v6663_v40 = vpack.c.bf16 %v15710_v34, %v15620_v17  ;;  %v4104_v41 = vsel %vm4093_vm12, nan, %v4103_v46  ;;  %v5139_v1 = vsel %vm5137_vm11, %v10615_v29, %v5138_v42  ;;  %v6241_v22 = vadd.s32 %v15590_v44, %v15598_v55  ;;  %v15742_v51 = vpop.f32.mrb[13].mxu0  ;;  %v10652_v17 = vld [vmem:[%s17050_s6] sm:$0xff]  }
 0x5a9   : > { %v9979_v8 = vadd.s32 4294967294, %v6253_v30  ;;  %v5143_v32 = vsel %vm5136_vm14, %v5139_v1, %v5142_v52  ;;  %v6136_v9 = vmul.u32 %v15648_v47, %v6120_v24  ;;  %vm6138_vm3 = vc.u32 %v15714_v12, %v15695_v19  ;;  %v6549_v47 = vpop.f32.mrb[14].mxu0 }
 0x5aa   : > { %v6440_v50 = vadd.f32 %v15465_v16, %v15727_v31  ;;  %v5144_v44 = vsel %vm5133_vm15, nan, %v5143_v32  ;;  %v6140_v55 = vsel %vm6138_vm3, %v6139_v36, %v15696_v7  ;;  %v15751_v38 = vadd.f32 %v15467_v26, %v15727_v31  ;;  %v6551_v37 = vpop.f32.mrb[15].mxu0 }
 0x5ab   : > { %vm9980_vm4 = vcmp.lt.s32.totalorder %v9979_v8, 0  ;;  %v15753_v43 = vpack.c.bf16 %v5144_v44, %v4104_v41  ;;  %v6141_v53 = vadd.s32 %v6140_v55, %v6136_v9  ;;  %v6444_v16 = vadd.f32 %v15481_v14, %v15744_v15 }
 0x5ac   : > { %v6256_v18 = vsel %vm9980_vm4, 0, %v9979_v8  ;;  %v6442_v54 = vadd.f32 %v15474_v63, %v15727_v31  ;;  %v15761_v7 = vadd.f32 %v15483_v59, %v15744_v15  ;;  %v6681_v23 = vmax.bf16 %v17109_v35, %v6661_v39 }
 0x5ad   : > { %v6257_v61 = vsub.s32 32, %v6256_v18  ;;  %v6261_v27 = vsub.s32 4294967266, %v6256_v18  ;;  %6610 = vmatpush1.bf16.msra.mxu0 %v15753_v43  ;;  %v6258_v26 = vshll.u32 %v15663_v58, %v6256_v18  ;;  %v6142_v29 = vadd.s32 536870912, %v6141_v53 }
 0x5ae   : > { %v6670_v46 = vpack.c.bf16 %v6444_v16, %v6440_v50  ;;  %v6672_v60 = vpack.c.bf16 %v15761_v7, %v15751_v38  ;;  %v6446_v63 = vadd.f32 %v15489_v33, %v15744_v15  ;;  %v15774_v59 = vadd.f32 %v15476_v21, %v15727_v31  ;;  %6745 = vmatprep.subr.bf16.mxu1 %v6681_v23 }
 0x5af   : > { %v6259_v2 = vshrl.u32 %v6241_v22, %v6257_v61  ;;  %v6262_v14 = vadd.s32 127, %v6261_v27  ;;  %v15770_v5 = vshrl.u32 %v6142_v29, 30  ;;  %v15778_v58 = vadd.f32 %v15491_v10, %v15744_v15  ;;  %6746 = vmatpush1.bf16.msra.mxu1 %v6680_v3 }
 0x5b0   : > { %v6671_v42 = vpack.c.bf16 %v6446_v63, %v6442_v54  ;;  %v6536_v52 = vadd.f32 %v15669_v56, %v15532_v49  ;;  %v6540_v21 = vadd.f32 %v15690_v25, %v15557_v28  ;;  %v6690_v41 = vmax.bf16 %v17109_v35, %v6670_v46  ;;  %v15798_v56 = vld [vmem:[%s17163_s26] sm:$0xff]  }
 0x5b1   : > { %v6260_v48 = vor.u32 %v6259_v2, %v6258_v26  ;;  %v6263_v39 = vshll.u32 %v6262_v14, 23  ;;  %v6144_v30 = vshll.u32 %v15770_v5, 30  ;;  %v6673_v33 = vpack.c.bf16 %v15778_v58, %v15774_v59  ;;  %v15965_v58 = vpop.permute.xlu1 %6710 }
 0x5b2   : > { %v6691_v36 = vmax.bf16 %v17109_v35, %v6671_v42  ;;  %v6538_v3 = vadd.f32 %v15681_v4, %v15532_v49  ;;  %v6542_v1 = vadd.f32 %v15701_v13, %v15557_v28  ;;  %v6664_v32 = vpack.c.bf16 %v6540_v21, %v6536_v52  ;;  %v15853_v52 = vld [vmem:[%s17163_s26 + $0x8] sm:$0xff]  }
 0x5b3   : > { %v6264_v24 = vor.u32 4788187, %v6263_v39  ;;  %v15788_v10 = vsub.s32 %v6141_v53, %v6144_v30  ;;  %v6267_v8 = vcvt.s32.f32 %v6260_v48  ;;  %v6271_v25 = vsub.s32 4, %v15643_v45 }
 0x5b4   : > { %6747 = vmatprep.subr.bf16.mxu1 %v6691_v36  ;;  %v6665_v50 = vpack.c.bf16 %v6542_v1, %v6538_v3  ;;  %vm6738_vm5 = vcmask 261120   ;;  %v15803_v44 = vadd.f32 %v6545_v11, %v15727_v31  ;;  %v15806_v13 = vadd.f32 %v6549_v47, %v15744_v15 }
 0x5b5   : > { %v6265_v22 = vand.u32 2147483647, %v6264_v24  ;;  %v6147_v9 = vsub.s32 0, %v15788_v10  ;;  %6748 = vmatpush1.bf16.msra.mxu1 %v6690_v41  ;;  %v15811_v16 = vadd.f32 %v6551_v37, %v15744_v15  ;;  %vm6187_vm7 = vcmp.lt.s32.totalorder %v15472_v0, 0 }
 0x5b6   : > { %v6588_v18 = vpop.f32.mrb[8].mxu1  ;;  %v6685_v53 = vmax.bf16 %v17109_v35, %v6665_v50  ;;  %v6684_v54 = vmax.bf16 %v17109_v35, %v6664_v32  ;;  %v6674_v11 = vpack.c.bf16 %v15806_v13, %v15803_v44  ;;  %v17164_v47 = vand.u32 2147483647, %v15472_v0  ;;  %v15967_v44 = vpop.permute.xlu0 %6715 }
 0x5b7   : > { %v6268_v4 = vmul.f32 %v6267_v8, %v6265_v22  ;;  %v9974_v55 = vmin.u32 %v6147_v9, %v15788_v10  ;;  %v6590_v27 = vpop.f32.mrb[9].mxu1  ;;  %v6272_v37 = vsel %vm6187_vm7, %v6271_v25, %v15643_v45  ;;  %v15828_v23 = vadd.f32 %v15742_v51, %v15727_v31 }
 0x5b8   : > { %10000 = vmatmul.mubr.msk.bf16.vlgmr.msra.gmra.mrb[16].mxu1 %vm6738_vm5, %v15798_v56  ;;  %vm15821_vm8 = vcmp.le.f32.partialorder %v17164_v47, 0.7853982  ;;  %v6592_v46 = vpop.f32.mrb[10].mxu1  ;;  %6851 = vmatprep.subr.bf16.mxu1 %v6685_v53  ;;  %v15832_v14 = vadd.f32 %v6588_v18, %v15532_v49  ;;  %v15835_v63 = vadd.f32 %v6590_v27, %v15532_v49  ;;  %v6137_v3 = vadd.s32 %v15695_v19, %v15714_v12 }
 0x5b9   : > { %v6269_v61 = vxor.u32 2147483648, %v6268_v4  ;;  %v6149_v29 = vclz %v9974_v55  ;;  %6787 = vmatprep.mubr.bf16.mxu1 %v17109_v35  ;;  %v15838_v48 = vadd.f32 %v6592_v46, %v15557_v28  ;;  %v6594_v45 = vpop.f32.mrb[11].mxu1  ;;  %6852 = vmatpush1.bf16.msra.mxu1 %v6684_v54  ;;  %v6675_v30 = vpack.c.bf16 %v15811_v16, %v15828_v23 }
 0x5ba   : > { %v15844_v42 = vadd.f32 %v6594_v45, %v15557_v28  ;;  %v6274_v21 = vsel %vm15821_vm8, 0, %v6272_v37  ;;  %vm6277_vm13 = vweird.f32 %v15472_v0  ;;  %vm6083_vm14 = vcmp.lt.s32.totalorder %v15496_v57, 0 }
 0x5bb   : > { %v6270_v2 = vsel %vm6187_vm7, %v6269_v61, %v6268_v4  ;;  %v9975_v39 = vadd.s32 4294967294, %v6149_v29  ;;  %v6666_v24 = vpack.c.bf16 %v15838_v48, %v15832_v14  ;;  %v6278_v32 = vadd.s32 3, %v6274_v21 }
 0x5bc   : > { %v6273_v51 = vsel %vm15821_vm8, %v15472_v0, %v6270_v2  ;;  %v6667_v36 = vpack.c.bf16 %v15844_v42, %v15835_v63  ;;  %vm6173_vm4 = vweird.f32 %v15496_v57  ;;  %v6692_v6 = vmax.bf16 %v17109_v35, %v6672_v60 }
 0x5bd   : > { %10618 = vcosq.f32 %v6273_v51  ;;  %vm9976_vm6 = vcmp.lt.s32.totalorder %v9975_v39, 0  ;;  %v6694_v7 = vmax.bf16 %v17109_v35, %v6674_v11 }
 0x5be   : > { %10620 = vsinq.f32 %v6273_v51  ;;  %v6152_v41 = vsel %vm9976_vm6, 0, %v9975_v39  ;;  %v6598_v8 = vpop.f32.mrb[12].mxu1  ;;  %v6687_v34 = vmax.bf16 %v17109_v35, %v6667_v36  ;;  %v15974_v36 = vpop.permute.xlu1 %6720 }
 0x5bf   : > { %v6153_v1 = vsub.s32 32, %v6152_v41  ;;  %v6157_v22 = vsub.s32 4294967266, %v6152_v41  ;;  %v6600_v25 = vpop.f32.mrb[13].mxu1  ;;  %v6154_v9 = vshll.u32 %v15788_v10, %v6152_v41  ;;  %v15866_v18 = vadd.f32 %v6598_v8, %v15727_v31 }
 0x5c0   : > { %10001 = vmatmul.mubr.msk.bf16.gmra.mrb[20].mxu1 %vm6738_vm5, %v15853_v52  ;;  %v6602_v55 = vpop.f32.mrb[14].mxu1  ;;  %v15872_v27 = vadd.f32 %v6600_v25, %v15727_v31  ;;  %v6279_v10 = vand.u32 3, %v6278_v32 }
 0x5c1   : > { %v6155_v50 = vshrl.u32 %v6137_v3, %v6153_v1  ;;  %v6158_v4 = vadd.s32 127, %v6157_v22  ;;  %6883 = vmatprep.mubr.bf16.mxu1 %v17109_v35  ;;  %v15869_v19 = vadd.f32 %v6602_v55, %v15744_v15  ;;  %v6604_v12 = vpop.f32.mrb[15].mxu1  ;;  %v6167_v3 = vsub.s32 4, %v15770_v5 }
 0x5c2   : > { %v15875_v54 = vadd.f32 %v6604_v12, %v15744_v15  ;;  %vm6284_vm10 = vcmp.eq.s32.totalorder %v6279_v10, 2  ;;  %vm6281_vm12 = vcmp.eq.s32.totalorder %v6279_v10, 0  ;;  %vm6280_vm11 = vcmp.lt.s32.totalorder %v6279_v10, 2 }
 0x5c3   : > { %v6156_v53 = vor.u32 %v6155_v50, %v6154_v9  ;;  %v6159_v61 = vshll.u32 %v6158_v4, 23  ;;  %v6676_v47 = vpack.c.bf16 %v15869_v19, %v15866_v18  ;;  %v17167_v9 = vand.u32 2147483647, %v15496_v57 }
 0x5c4   : > { %v6677_v37 = vpack.c.bf16 %v15875_v54, %v15872_v27  ;;  %v6168_v4 = vsel %vm6083_vm14, %v6167_v3, %v15770_v5  ;;  %v15977_v27 = vpop.permute.xlu0 %6725 }
 0x5c5   : > { %v6160_v26 = vor.u32 4788187, %v6159_v61  ;;  %v6163_v51 = vcvt.s32.f32 %v6156_v53  ;;  %vm6082_vm1 = vcmp.le.f32.partialorder %v17167_v9, 0.7853982  ;;  %v6696_v60 = vmax.bf16 %v17109_v35, %v6676_v47 }
 0x5c6   : > { %v6170_v0 = vsel %vm6082_vm1, 0, %v6168_v4  ;;  %v6697_v38 = vmax.bf16 %v17109_v35, %v6677_v37  ;;  %v15988_v4 = vld [vmem:[%s16793_s8] sm:$0xff]  }
 0x5c7   : > { %v10619_v29 = vpop.eup %10618  ;;  %v6161_v45 = vand.u32 2147483647, %v6160_v26  ;;  %v6174_v12 = vadd.s32 3, %v6170_v0 }
 0x5c8   : > { %v10621_v46 = vpop.eup %10620  ;;  %v6285_v2 = vxor.u32 2147483648, %v10619_v29 }
 0x5c9   : > { %v6282_v39 = vxor.u32 2147483648, %v10621_v46  ;;  %v6164_v41 = vmul.f32 %v6163_v51, %v6161_v45  ;;  %v6175_v53 = vand.u32 3, %v6174_v12 }
 0x5ca   : > { %v6286_v21 = vsel %vm6284_vm10, %v6285_v2, %v10621_v46 }
 0x5cb   : > { %v6283_v1 = vsel %vm6281_vm12, %v10619_v29, %v6282_v39  ;;  %v6165_v8 = vxor.u32 2147483648, %v6164_v41  ;;  %vm6180_vm15 = vcmp.eq.s32.totalorder %v6175_v53, 2  ;;  %vm6177_vm2 = vcmp.eq.s32.totalorder %v6175_v53, 0 }
 0x5cc   : > { %v6287_v22 = vsel %vm6280_vm11, %v6283_v1, %v6286_v21  ;;  %vm6176_vm3 = vcmp.lt.s32.totalorder %v6175_v53, 2  ;;  %v6683_v39 = vmax.bf16 %v17109_v35, %v6663_v40  ;;  %v6695_v40 = vmax.bf16 %v17109_v35, %v6675_v30 }
 0x5cd   : > { %v6288_v32 = vsel %vm6277_vm13, nan, %v6287_v22  ;;  %v6166_v50 = vsel %vm6083_vm14, %v6165_v8, %v6164_v41  ;;  %v6693_v41 = vmax.bf16 %v17109_v35, %v6673_v33 }
 0x5ce   : > { %v15884_v25 = vpack.c.bf16 %v6288_v32, %v6288_v32  ;;  %v6169_v55 = vsel %vm6082_vm1, %v15496_v57, %v6166_v50  ;;  %v6682_v57 = vmax.bf16 %v17109_v35, %v6662_v62  ;;  %v6686_v62 = vmax.bf16 %v17109_v35, %v6666_v24  ;;  %6853 = vmatprep.subr.bf16.mxu1 %v6695_v40 }
 0x5cf   : > { %10622 = vcosq.f32 %v6169_v55  ;;  %6854 = vmatpush1.bf16.msra.mxu1 %v6694_v7 }
 0x5d0   : > { %9995 = vmatprep.subr.msk.bf16.mxu0 %vm6364_vm9, %v15884_v25  ;;  %10624 = vsinq.f32 %v6169_v55  ;;  %v15996_v55 = vld [vmem:[%s16793_s8 + $0x8] sm:$0xff]  }
 0x5d2   : > { %10004 = vmatmul.mubr.msk.bf16.vlgmr.msra.gmra.mrb[24].mxu1 %vm6738_vm5, %v15798_v56 }
 0x5d3   : > { %6893 = vmatprep.mubr.bf16.mxu1 %v17109_v35 }
 0x5d9   : > { %v10623_v61 = vpop.eup %10622 }
 0x5da   : > { %v10625_v10 = vpop.eup %10624  ;;  %v6181_v26 = vxor.u32 2147483648, %v10623_v61  ;;  %10005 = vmatmul.mubr.msk.bf16.gmra.mrb[28].mxu1 %vm6738_vm5, %v15853_v52 }
 0x5db   : > { %v6178_v29 = vxor.u32 2147483648, %v10625_v10  ;;  %6989 = vmatprep.mubr.bf16.mxu1 %v17109_v35 }
 0x5dc   : > { %v6182_v46 = vsel %vm6180_vm15, %v6181_v26, %v10625_v10 }
 0x5dd   : > { %v6179_v2 = vsel %vm6177_vm2, %v10623_v61, %v6178_v29 }
 0x5de   : > { %v6183_v5 = vsel %vm6176_vm3, %v6179_v2, %v6182_v46 }
 0x5df   : > { %v6184_v45 = vsel %vm6173_vm4, nan, %v6183_v5 }
 0x5e0   : > { %v6317_v51 = vpack.c.bf16 %v6184_v45, %v6184_v45 }
 0x5e2   : > { %v15898_v21 = vsel %vm6364_vm9, %v6317_v51, 0 }
 0x5e3   : > { %6612 = vmatpush1.bf16.msra.mxu0 %v15898_v21 }
 0x5e4   : > { %6798 = vmatprep.subr.bf16.mxu0 %v6683_v39 }
 0x5e6   : > { %9996 = vmatmul.mubr.msk.bf16.vlgmr.msra.gmra.mrb[16].mxu0 %vm6357_vm0, %v10652_v17 }
 0x5e7   : > { %6649 = vmatprep.mubr.bf16.mxu0 %v17109_v35  ;;  %6799 = vmatpush1.bf16.msra.mxu0 %v6682_v57 }
 0x5e8   : > { %6800 = vmatprep.subr.bf16.mxu0 %v6693_v41 }
 0x5eb   : > { %6801 = vmatpush1.bf16.msra.mxu0 %v6692_v6 }
 0x5ec   : > { %6904 = vmatprep.subr.bf16.mxu0 %v6687_v34 }
 0x5ee   : > { %9997 = vmatmul.mubr.msk.bf16.gmra.mrb[20].mxu0 %vm6357_vm0, %v10653_v20 }
 0x5ef   : > { %6830 = vmatprep.mubr.bf16.mxu0 %v17109_v35 }
 0x5f6   : > { %10002 = vmatmul.mubr.msk.bf16.vlgmr.msra.gmra.mrb[24].mxu0 %vm6738_vm5, %v15798_v56 }
 0x5f7   : > { %6905 = vmatpush1.bf16.msra.mxu0 %v6686_v62  ;;  %6840 = vmatprep.mubr.bf16.mxu0 %v17109_v35 }
 0x5f8   : > { %6906 = vmatprep.subr.bf16.mxu0 %v6697_v38 }
 0x5fb   : > { %6907 = vmatpush1.bf16.msra.mxu0 %v6696_v60 }
 0x5fe   : > { %10003 = vmatmul.mubr.msk.bf16.gmra.mrb[28].mxu0 %vm6738_vm5, %v15853_v52 }
 0x5ff   : > { %6936 = vmatprep.mubr.bf16.mxu0 %v17109_v35 }
 0x606   : > { %10006 = vmatmul.mubr.msk.bf16.vlgmr.msra.gmra.mrb[32].mxu0 %vm6738_vm5, %v15798_v56 }
 0x607   : > { %6946 = vmatprep.mubr.bf16.mxu0 %v17109_v35 }
 0x60e   : > { %10007 = vmatmul.mubr.msk.bf16.gmra.mrb[36].mxu0 %vm6738_vm5, %v15853_v52 }
 0x60f   : > { %7126 = vmatprep.mubr.bf16.mxu0 %v17109_v35 }
 0x68b   : > { %v6779_v59 = vpop.f32.mrb[16].mxu1 }
 0x68c   : > { %v6781_v33 = vpop.f32.mrb[17].mxu1  ;;  %v6780_v16 = vadd.f32 %v6779_v59, %v15965_v58 }
 0x68d   : > { %v6783_v13 = vpop.f32.mrb[18].mxu1  ;;  %v6782_v14 = vadd.f32 %v6781_v33, %v15965_v58 }
 0x68e   : > { %v6784_v11 = vadd.f32 %v6783_v13, %v15967_v44  ;;  %v6785_v23 = vpop.f32.mrb[19].mxu1 }
 0x68f   : > { %v6786_v63 = vadd.f32 %v6785_v23, %v15967_v44 }
 0x690   : > { %v7010_v48 = vpack.c.bf16 %v6784_v11, %v6780_v16 }
 0x691   : > { %v7011_v42 = vpack.c.bf16 %v6786_v63, %v6782_v14 }
 0x692   : > { %v7030_v18 = vmax.bf16 %v17109_v35, %v7010_v48 }
 0x693   : > { %v6789_v30 = vpop.f32.mrb[20].mxu1  ;;  %v7031_v24 = vmax.bf16 %v17109_v35, %v7011_v42 }
 0x694   : > { %v6791_v19 = vpop.f32.mrb[21].mxu1  ;;  %v6790_v47 = vadd.f32 %v6789_v30, %v15974_v36 }
 0x695   : > { %v6793_v54 = vpop.f32.mrb[22].mxu1  ;;  %7094 = vmatprep.subr.bf16.mxu0 %v7031_v24  ;;  %v6792_v1 = vadd.f32 %v6791_v19, %v15974_v36 }
 0x696   : > { %v6794_v37 = vadd.f32 %v6793_v54, %v15977_v27  ;;  %v6795_v3 = vpop.f32.mrb[23].mxu1  ;;  %7095 = vmatpush1.bf16.msra.mxu0 %v7030_v18 }
 0x697   : > { %v6796_v22 = vadd.f32 %v6795_v3, %v15977_v27 }
 0x698   : > { %v7020_v8 = vpack.c.bf16 %v6794_v37, %v6790_v47 }
 0x699   : > { %v7021_v32 = vpack.c.bf16 %v6796_v22, %v6792_v1 }
 0x69a   : > { %v7040_v50 = vmax.bf16 %v17109_v35, %v7020_v8 }
 0x69b   : > { %v7041_v9 = vmax.bf16 %v17109_v35, %v7021_v32 }
 0x69d   : > { %7096 = vmatprep.subr.bf16.mxu0 %v7041_v9 }
 0x69e   : > { %7097 = vmatpush1.bf16.msra.mxu0 %v7040_v50 }
 0x6a1   : > { %10012 = vmatmul.mubr.msk.bf16.vlgmr.msra.gmra.mrb[40].mxu0 %vm6738_vm5, %v15988_v4 }
 0x6a2   : > { %7136 = vmatprep.mubr.bf16.mxu0 %v17109_v35 }
 0x6a9   : > { %10013 = vmatmul.mubr.msk.bf16.gmra.mrb[44].mxu0 %vm6738_vm5, %v15996_v55 }
 0x6aa   : > { %7232 = vmatprep.mubr.bf16.mxu0 %v17109_v35 }
 0x6b9   : > { %v6641_v0 = vpop.f32.mrb[16].mxu0 }
 0x6ba   : > { %v6643_v12 = vpop.f32.mrb[17].mxu0  ;;  %v6642_v61 = vadd.f32 %v6641_v0, %v15532_v49 }
 0x6bb   : > { %v6645_v53 = vpop.f32.mrb[18].mxu0  ;;  %v6644_v29 = vadd.f32 %v6643_v12, %v15532_v49 }
 0x6bc   : > { %v6646_v10 = vadd.f32 %v6645_v53, %v15557_v28  ;;  %v6647_v26 = vpop.f32.mrb[19].mxu0 }
 0x6bd   : > { %v6648_v46 = vadd.f32 %v6647_v26, %v15557_v28 }
 0x6be   : > { %v6668_v2 = vpack.c.bf16 %v6646_v10, %v6642_v61 }
 0x6bf   : > { %v6669_v5 = vpack.c.bf16 %v6648_v46, %v6644_v29 }
 0x6c0   : > { %v6688_v39 = vmax.bf16 %v17109_v35, %v6668_v2 }
 0x6c1   : > { %v6651_v45 = vpop.f32.mrb[20].mxu0  ;;  %v6689_v51 = vmax.bf16 %v17109_v35, %v6669_v5 }
 0x6c2   : > { %v6653_v41 = vpop.f32.mrb[21].mxu0  ;;  %v6652_v17 = vadd.f32 %v6651_v45, %v15727_v31 }
 0x6c3   : > { %v6655_v57 = vpop.f32.mrb[22].mxu0  ;;  %6957 = vmatprep.subr.bf16.mxu1 %v6689_v51  ;;  %v6654_v49 = vadd.f32 %v6653_v41, %v15727_v31 }
 0x6c4   : > { %v6656_v34 = vadd.f32 %v6655_v57, %v15744_v15  ;;  %v6657_v6 = vpop.f32.mrb[23].mxu0  ;;  %6958 = vmatpush1.bf16.msra.mxu1 %v6688_v39 }
 0x6c5   : > { %v6658_v28 = vadd.f32 %v6657_v6, %v15744_v15 }
 0x6c6   : > { %v6678_v20 = vpack.c.bf16 %v6656_v34, %v6652_v17 }
 0x6c7   : > { %v6679_v62 = vpack.c.bf16 %v6658_v28, %v6654_v49 }
 0x6c8   : > { %v6698_v7 = vmax.bf16 %v17109_v35, %v6678_v20 }
 0x6c9   : > { %v6699_v40 = vmax.bf16 %v17109_v35, %v6679_v62  ;;  %v6832_v38 = vpop.f32.mrb[24].mxu0 }
 0x6ca   : > { %v6834_v60 = vpop.f32.mrb[25].mxu0  ;;  %v6833_v33 = vadd.f32 %v6832_v38, %v15965_v58 }
 0x6cb   : > { %6959 = vmatprep.subr.bf16.mxu1 %v6699_v40  ;;  %v6836_v59 = vpop.f32.mrb[26].mxu0  ;;  %v6835_v31 = vadd.f32 %v6834_v60, %v15965_v58 }
 0x6cc   : > { %6960 = vmatpush1.bf16.msra.mxu1 %v6698_v7  ;;  %v6837_v13 = vadd.f32 %v6836_v59, %v15967_v44  ;;  %v6838_v16 = vpop.f32.mrb[27].mxu0 }
 0x6cd   : > { %v6839_v15 = vadd.f32 %v6838_v16, %v15967_v44 }
 0x6ce   : > { %v7012_v11 = vpack.c.bf16 %v6837_v13, %v6833_v33 }
 0x6cf   : > { %10008 = vmatmul.mubr.msk.bf16.vlgmr.msra.gmra.mrb[32].mxu1 %vm6738_vm5, %v15798_v56  ;;  %v7013_v23 = vpack.c.bf16 %v6839_v15, %v6835_v31 }
 0x6d0   : > { %6999 = vmatprep.mubr.bf16.mxu1 %v17109_v35  ;;  %v7032_v48 = vmax.bf16 %v17109_v35, %v7012_v11 }
 0x6d1   : > { %v6842_v14 = vpop.f32.mrb[28].mxu0  ;;  %v7033_v63 = vmax.bf16 %v17109_v35, %v7013_v23 }
 0x6d2   : > { %v6844_v42 = vpop.f32.mrb[29].mxu0  ;;  %v6843_v24 = vadd.f32 %v6842_v14, %v15974_v36 }
 0x6d3   : > { %v6846_v30 = vpop.f32.mrb[30].mxu0  ;;  %7147 = vmatprep.subr.bf16.mxu1 %v7033_v63  ;;  %v6845_v54 = vadd.f32 %v6844_v42, %v15974_v36 }
 0x6d4   : > { %v6847_v18 = vadd.f32 %v6846_v30, %v15977_v27  ;;  %v6848_v19 = vpop.f32.mrb[31].mxu0  ;;  %7148 = vmatpush1.bf16.msra.mxu1 %v7032_v48 }
 0x6d5   : > { %v6849_v56 = vadd.f32 %v6848_v19, %v15977_v27 }
 0x6d6   : > { %v7022_v47 = vpack.c.bf16 %v6847_v18, %v6843_v24 }
 0x6d7   : > { %10009 = vmatmul.mubr.msk.bf16.gmra.mrb[36].mxu1 %vm6738_vm5, %v15853_v52  ;;  %v7023_v37 = vpack.c.bf16 %v6849_v56, %v6845_v54  ;;  %v6885_v52 = vpop.f32.mrb[24].mxu1  ;;  %v16073_v56 = vpop.permute.xlu1 %7060 }
 0x6d8   : > { %7179 = vmatprep.mubr.bf16.mxu1 %v17109_v35  ;;  %v7042_v1 = vmax.bf16 %v17109_v35, %v7022_v47  ;;  %v6887_v8 = vpop.f32.mrb[25].mxu1  ;;  %v6886_v0 = vadd.f32 %v6885_v52, %v15965_v58 }
 0x6d9   : > { %v7043_v3 = vmax.bf16 %v17109_v35, %v7023_v37  ;;  %v6938_v22 = vpop.f32.mrb[32].mxu0  ;;  %v6889_v9 = vpop.f32.mrb[26].mxu1  ;;  %v6888_v29 = vadd.f32 %v6887_v8, %v15965_v58 }
 0x6da   : > { %v6940_v32 = vpop.f32.mrb[33].mxu0  ;;  %v6939_v12 = vadd.f32 %v6938_v22, %v15965_v58  ;;  %v6890_v53 = vadd.f32 %v6889_v9, %v15967_v44  ;;  %v6891_v10 = vpop.f32.mrb[27].mxu1 }
 0x6db   : > { %7149 = vmatprep.subr.bf16.mxu1 %v7043_v3  ;;  %v6942_v50 = vpop.f32.mrb[34].mxu0  ;;  %v6941_v46 = vadd.f32 %v6940_v32, %v15965_v58  ;;  %v6892_v2 = vadd.f32 %v6891_v10, %v15967_v44  ;;  %v6895_v57 = vpop.f32.mrb[28].mxu1 }
 0x6dc   : > { %7150 = vmatpush1.bf16.msra.mxu1 %v7042_v1  ;;  %v6943_v61 = vadd.f32 %v6942_v50, %v15967_v44  ;;  %v6944_v26 = vpop.f32.mrb[35].mxu0  ;;  %v7014_v45 = vpack.c.bf16 %v6890_v53, %v6886_v0  ;;  %v6897_v20 = vpop.f32.mrb[29].mxu1  ;;  %v6896_v40 = vadd.f32 %v6895_v57, %v15974_v36 }
 0x6dd   : > { %v6945_v5 = vadd.f32 %v6944_v26, %v15967_v44  ;;  %v7015_v39 = vpack.c.bf16 %v6892_v2, %v6888_v29  ;;  %v6899_v38 = vpop.f32.mrb[30].mxu1  ;;  %v6898_v31 = vadd.f32 %v6897_v20, %v15974_v36  ;;  %v16075_v37 = vpop.permute.xlu0 %7065 }
 0x6de   : > { %v7016_v51 = vpack.c.bf16 %v6943_v61, %v6939_v12  ;;  %v7034_v49 = vmax.bf16 %v17109_v35, %v7014_v45  ;;  %v6900_v59 = vadd.f32 %v6899_v38, %v15977_v27  ;;  %v6901_v13 = vpop.f32.mrb[31].mxu1  ;;  %v16082_v53 = vpop.permute.xlu1 %7070 }
 0x6df   : > { %10014 = vmatmul.mubr.msk.bf16.vlgmr.msra.gmra.mrb[40].mxu1 %vm6738_vm5, %v15988_v4  ;;  %v7017_v41 = vpack.c.bf16 %v6945_v5, %v6941_v46  ;;  %v7035_v34 = vmax.bf16 %v17109_v35, %v7015_v39  ;;  %v6902_v11 = vadd.f32 %v6901_v13, %v15977_v27 }
 0x6e0   : > { %7189 = vmatprep.mubr.bf16.mxu1 %v17109_v35  ;;  %v7036_v28 = vmax.bf16 %v17109_v35, %v7016_v51  ;;  %v7024_v14 = vpack.c.bf16 %v6900_v59, %v6896_v40 }
 0x6e1   : > { %v6948_v17 = vpop.f32.mrb[36].mxu0  ;;  %v7037_v6 = vmax.bf16 %v17109_v35, %v7017_v41  ;;  %7200 = vmatprep.subr.bf16.mxu0 %v7035_v34  ;;  %v7025_v48 = vpack.c.bf16 %v6902_v11, %v6898_v31  ;;  %v16085_v26 = vpop.permute.xlu0 %7075  ;;  %v16096_v34 = vld [vmem:[%s16795_s10] sm:$0xff]  }
 0x6e2   : > { %v6950_v62 = vpop.f32.mrb[37].mxu0  ;;  %v6949_v60 = vadd.f32 %v6948_v17, %v15974_v36  ;;  %7201 = vmatpush1.bf16.msra.mxu0 %v7034_v49  ;;  %v7044_v18 = vmax.bf16 %v17109_v35, %v7024_v14 }
 0x6e3   : > { %v6952_v7 = vpop.f32.mrb[38].mxu0  ;;  %7253 = vmatprep.subr.bf16.mxu1 %v7037_v6  ;;  %v6951_v15 = vadd.f32 %v6950_v62, %v15974_v36  ;;  %v7045_v30 = vmax.bf16 %v17109_v35, %v7025_v48  ;;  %v16104_v6 = vld [vmem:[%s16795_s10 + $0x8] sm:$0xff]  }
 0x6e4   : > { %v6953_v33 = vadd.f32 %v6952_v7, %v15977_v27  ;;  %v6954_v16 = vpop.f32.mrb[39].mxu0  ;;  %7254 = vmatpush1.bf16.msra.mxu1 %v7036_v28 }
 0x6e5   : > { %v6955_v23 = vadd.f32 %v6954_v16, %v15977_v27  ;;  %7202 = vmatprep.subr.bf16.mxu0 %v7045_v30 }
 0x6e6   : > { %v7026_v63 = vpack.c.bf16 %v6953_v33, %v6949_v60  ;;  %7203 = vmatpush1.bf16.msra.mxu0 %v7044_v18 }
 0x6e7   : > { %10015 = vmatmul.mubr.msk.bf16.gmra.mrb[44].mxu1 %vm6738_vm5, %v15996_v55  ;;  %v7027_v42 = vpack.c.bf16 %v6955_v23, %v6951_v15 }
 0x6e8   : > { %7285 = vmatprep.mubr.bf16.mxu1 %v17109_v35  ;;  %v7046_v19 = vmax.bf16 %v17109_v35, %v7026_v63 }
 0x6e9   : > { %v7047_v24 = vmax.bf16 %v17109_v35, %v7027_v42  ;;  %10016 = vmatmul.mubr.msk.bf16.vlgmr.msra.gmra.mrb[48].mxu0 %vm6738_vm5, %v15988_v4 }
 0x6ea   : > { %7242 = vmatprep.mubr.bf16.mxu0 %v17109_v35 }
 0x6eb   : > { %7255 = vmatprep.subr.bf16.mxu1 %v7047_v24 }
 0x6ec   : > { %7256 = vmatpush1.bf16.msra.mxu1 %v7046_v19 }
 0x6ef   : > { %10018 = vmatmul.mubr.msk.bf16.vlgmr.msra.gmra.mrb[48].mxu1 %vm6738_vm5, %v15988_v4 }
 0x6f0   : > { %7295 = vmatprep.mubr.bf16.mxu1 %v17109_v35 }
 0x6f1   : > { %10017 = vmatmul.mubr.msk.bf16.gmra.mrb[52].mxu0 %vm6738_vm5, %v15996_v55 }
 0x6f2   : > { %7338 = vmatprep.mubr.bf16.mxu0 %v17109_v35 }
 0x6f7   : > { %10019 = vmatmul.mubr.msk.bf16.gmra.mrb[52].mxu1 %vm6738_vm5, %v15996_v55 }
 0x6f8   : > { %7475 = vmatprep.mubr.bf16.mxu1 %v17109_v35 }
 0x774   : > { %v7128_v54 = vpop.f32.mrb[40].mxu0 }
 0x775   : > { %v7130_v47 = vpop.f32.mrb[41].mxu0  ;;  %v7129_v1 = vadd.f32 %v7128_v54, %v16073_v56 }
 0x776   : > { %v7132_v3 = vpop.f32.mrb[42].mxu0  ;;  %v7131_v8 = vadd.f32 %v7130_v47, %v16073_v56 }
 0x777   : > { %v7133_v52 = vadd.f32 %v7132_v3, %v16075_v37  ;;  %v7134_v22 = vpop.f32.mrb[43].mxu0 }
 0x778   : > { %v7135_v32 = vadd.f32 %v7134_v22, %v16075_v37 }
 0x779   : > { %v7359_v9 = vpack.c.bf16 %v7133_v52, %v7129_v1 }
 0x77a   : > { %v7360_v50 = vpack.c.bf16 %v7135_v32, %v7131_v8 }
 0x77b   : > { %v7379_v61 = vmax.bf16 %v17109_v35, %v7359_v9 }
 0x77c   : > { %v7138_v0 = vpop.f32.mrb[44].mxu0  ;;  %v7380_v12 = vmax.bf16 %v17109_v35, %v7360_v50 }
 0x77d   : > { %v7140_v10 = vpop.f32.mrb[45].mxu0  ;;  %v7139_v46 = vadd.f32 %v7138_v0, %v16082_v53 }
 0x77e   : > { %v7142_v29 = vpop.f32.mrb[46].mxu0  ;;  %7443 = vmatprep.subr.bf16.mxu1 %v7380_v12  ;;  %v7141_v45 = vadd.f32 %v7140_v10, %v16082_v53 }
 0x77f   : > { %v7143_v2 = vadd.f32 %v7142_v29, %v16085_v26  ;;  %v7144_v5 = vpop.f32.mrb[47].mxu0  ;;  %7444 = vmatpush1.bf16.msra.mxu1 %v7379_v61 }
 0x780   : > { %v7145_v51 = vadd.f32 %v7144_v5, %v16085_v26 }
 0x781   : > { %v7369_v39 = vpack.c.bf16 %v7143_v2, %v7139_v46 }
 0x782   : > { %v7370_v41 = vpack.c.bf16 %v7145_v51, %v7141_v45 }
 0x783   : > { %v7389_v17 = vmax.bf16 %v17109_v35, %v7369_v39 }
 0x784   : > { %v7390_v57 = vmax.bf16 %v17109_v35, %v7370_v41 }
 0x786   : > { %7445 = vmatprep.subr.bf16.mxu1 %v7390_v57 }
 0x787   : > { %7446 = vmatpush1.bf16.msra.mxu1 %v7389_v17 }
 0x78a   : > { %10024 = vmatmul.mubr.msk.bf16.vlgmr.msra.gmra.mrb[56].mxu1 %vm6738_vm5, %v16096_v34 }
 0x78b   : > { %7485 = vmatprep.mubr.bf16.mxu1 %v17109_v35 }
 0x792   : > { %10025 = vmatmul.mubr.msk.bf16.gmra.mrb[60].mxu1 %vm6738_vm5, %v16104_v6 }
 0x793   : > { %7581 = vmatprep.mubr.bf16.mxu1 %v17109_v35 }
 0x7a2   : > { %v6991_v49 = vpop.f32.mrb[32].mxu1 }
 0x7a3   : > { %v6993_v28 = vpop.f32.mrb[33].mxu1  ;;  %v6992_v62 = vadd.f32 %v6991_v49, %v15965_v58 }
 0x7a4   : > { %v6995_v20 = vpop.f32.mrb[34].mxu1  ;;  %v6994_v7 = vadd.f32 %v6993_v28, %v15965_v58 }
 0x7a5   : > { %v6996_v40 = vadd.f32 %v6995_v20, %v15967_v44  ;;  %v6997_v38 = vpop.f32.mrb[35].mxu1 }
 0x7a6   : > { %v6998_v60 = vadd.f32 %v6997_v38, %v15967_v44 }
 0x7a7   : > { %v7018_v59 = vpack.c.bf16 %v6996_v40, %v6992_v62 }
 0x7a8   : > { %v7019_v33 = vpack.c.bf16 %v6998_v60, %v6994_v7 }
 0x7a9   : > { %v7038_v31 = vmax.bf16 %v17109_v35, %v7018_v59 }
 0x7aa   : > { %v7001_v13 = vpop.f32.mrb[36].mxu1  ;;  %v7039_v16 = vmax.bf16 %v17109_v35, %v7019_v33 }
 0x7ab   : > { %v7003_v15 = vpop.f32.mrb[37].mxu1  ;;  %v7002_v23 = vadd.f32 %v7001_v13, %v15974_v36 }
 0x7ac   : > { %v7005_v11 = vpop.f32.mrb[38].mxu1  ;;  %7306 = vmatprep.subr.bf16.mxu0 %v7039_v16  ;;  %v7004_v58 = vadd.f32 %v7003_v15, %v15974_v36 }
 0x7ad   : > { %v7006_v14 = vadd.f32 %v7005_v11, %v15977_v27  ;;  %v7007_v63 = vpop.f32.mrb[39].mxu1  ;;  %7307 = vmatpush1.bf16.msra.mxu0 %v7038_v31 }
 0x7ae   : > { %v7008_v44 = vadd.f32 %v7007_v63, %v15977_v27 }
 0x7af   : > { %v7028_v48 = vpack.c.bf16 %v7006_v14, %v7002_v23 }
 0x7b0   : > { %v7029_v42 = vpack.c.bf16 %v7008_v44, %v7004_v58 }
 0x7b1   : > { %v7048_v18 = vmax.bf16 %v17109_v35, %v7028_v48 }
 0x7b2   : > { %v7049_v30 = vmax.bf16 %v17109_v35, %v7029_v42  ;;  %v7181_v24 = vpop.f32.mrb[40].mxu1 }
 0x7b3   : > { %v7183_v19 = vpop.f32.mrb[41].mxu1  ;;  %v7182_v47 = vadd.f32 %v7181_v24, %v16073_v56 }
 0x7b4   : > { %7308 = vmatprep.subr.bf16.mxu0 %v7049_v30  ;;  %v7185_v54 = vpop.f32.mrb[42].mxu1  ;;  %v7184_v36 = vadd.f32 %v7183_v19, %v16073_v56 }
 0x7b5   : > { %7309 = vmatpush1.bf16.msra.mxu0 %v7048_v18  ;;  %v7186_v3 = vadd.f32 %v7185_v54, %v16075_v37  ;;  %v7187_v1 = vpop.f32.mrb[43].mxu1 }
 0x7b6   : > { %v7188_v27 = vadd.f32 %v7187_v1, %v16075_v37 }
 0x7b7   : > { %v7361_v52 = vpack.c.bf16 %v7186_v3, %v7182_v47 }
 0x7b8   : > { %10020 = vmatmul.mubr.msk.bf16.vlgmr.msra.gmra.mrb[56].mxu0 %vm6738_vm5, %v15988_v4  ;;  %v7362_v22 = vpack.c.bf16 %v7188_v27, %v7184_v36 }
 0x7b9   : > { %7348 = vmatprep.mubr.bf16.mxu0 %v17109_v35  ;;  %v7381_v9 = vmax.bf16 %v17109_v35, %v7361_v52 }
 0x7ba   : > { %v7191_v8 = vpop.f32.mrb[44].mxu1  ;;  %v7382_v32 = vmax.bf16 %v17109_v35, %v7362_v22 }
 0x7bb   : > { %v7193_v50 = vpop.f32.mrb[45].mxu1  ;;  %v7192_v12 = vadd.f32 %v7191_v8, %v16082_v53 }
 0x7bc   : > { %v7195_v0 = vpop.f32.mrb[46].mxu1  ;;  %7496 = vmatprep.subr.bf16.mxu0 %v7382_v32  ;;  %v7194_v29 = vadd.f32 %v7193_v50, %v16082_v53 }
 0x7bd   : > { %v7196_v61 = vadd.f32 %v7195_v0, %v16085_v26  ;;  %v7197_v10 = vpop.f32.mrb[47].mxu1  ;;  %7497 = vmatpush1.bf16.msra.mxu0 %v7381_v9 }
 0x7be   : > { %v7198_v4 = vadd.f32 %v7197_v10, %v16085_v26 }
 0x7bf   : > { %v7371_v46 = vpack.c.bf16 %v7196_v61, %v7192_v12 }
 0x7c0   : > { %10021 = vmatmul.mubr.msk.bf16.gmra.mrb[60].mxu0 %vm6738_vm5, %v15996_v55  ;;  %v7372_v2 = vpack.c.bf16 %v7198_v4, %v7194_v29  ;;  %v7234_v55 = vpop.f32.mrb[48].mxu0  ;;  %v17168_v29 = vld [vmem:[#allocation15_spill] sm:$0xff]  ;;  %v17169_v4 = vld [vmem:[#allocation17_spill] sm:$0xff] }
 0x7c1   : > { %7528 = vmatprep.mubr.bf16.mxu0 %v17109_v35  ;;  %v7391_v45 = vmax.bf16 %v17109_v35, %v7371_v46  ;;  %v7236_v39 = vpop.f32.mrb[49].mxu0  ;;  %v7235_v49 = vadd.f32 %v7234_v55, %v16073_v56  ;;  %v17170_v46 = vld [vmem:[#allocation19_spill] sm:$0xff]  ;;  %v17174_v55 = vld [vmem:[#allocation25_spill] sm:$0xff] }
 0x7c2   : > { %v7392_v5 = vmax.bf16 %v17109_v35, %v7372_v2  ;;  %v7287_v51 = vpop.f32.mrb[48].mxu1  ;;  %v7238_v57 = vpop.f32.mrb[50].mxu0  ;;  %v7237_v7 = vadd.f32 %v7236_v39, %v16073_v56  ;;  %v17171_v2 = vld [vmem:[#allocation20_spill] sm:$0xff] }
 0x7c3   : > { %v7289_v41 = vpop.f32.mrb[49].mxu1  ;;  %v7288_v28 = vadd.f32 %v7287_v51, %v16073_v56  ;;  %v7239_v20 = vadd.f32 %v7238_v57, %v16075_v37  ;;  %v7240_v40 = vpop.f32.mrb[51].mxu0  ;;  %v16192_v51 = vld [vmem:[%s16798_s13] sm:$0xff]   ;;  %v17175_v39 = vld [vmem:[#allocation8_spill] sm:$0xff]  ;;  %v16202_v57 = vld [vmem:[%s16798_s13 + $0x8] sm:$0xff]  }
 0x7c4   : > { %7498 = vmatprep.subr.bf16.mxu0 %v7392_v5  ;;  %v7291_v17 = vpop.f32.mrb[50].mxu1  ;;  %v7290_v60 = vadd.f32 %v7289_v41, %v16073_v56  ;;  %v7241_v59 = vadd.f32 %v7240_v40, %v16075_v37  ;;  %v7244_v11 = vpop.f32.mrb[52].mxu0  ;;  %v17172_v5 = vld [vmem:[#allocation2_spill] sm:$0xff]  ;;  %v17176_v41 = vld [vmem:[#allocation28_spill] sm:$0xff] }
 0x7c5   : > { %7499 = vmatpush1.bf16.msra.mxu0 %v7391_v45  ;;  %v7292_v62 = vadd.f32 %v7291_v17, %v16075_v37  ;;  %v7293_v38 = vpop.f32.mrb[51].mxu1  ;;  %v7363_v13 = vpack.c.bf16 %v7239_v20, %v7235_v49  ;;  %v7246_v48 = vpop.f32.mrb[53].mxu0  ;;  %v7245_v30 = vadd.f32 %v7244_v11, %v16082_v53  ;;  %v17173_v45 = vld [vmem:[#allocation23_spill] sm:$0xff]  ;;  %v17177_v17 = vld [vmem:[#allocation14_spill] sm:$0xff]  ;;  %v17178_v49 = vld [vmem:[#allocation5_spill] sm:$0xff] }
 0x7c6   : > { %v7294_v33 = vadd.f32 %v7293_v38, %v16075_v37  ;;  %v7364_v31 = vpack.c.bf16 %v7241_v59, %v7237_v7  ;;  %v7248_v24 = vpop.f32.mrb[54].mxu0  ;;  %v7247_v36 = vadd.f32 %v7246_v48, %v16082_v53  ;;  %v17180_v20 = vld [vmem:[#allocation6_spill] sm:$0xff]  ;;  %v16230_v7 = vpop.permute.xlu1 %7409 }
 0x7c7   : > { %v7365_v16 = vpack.c.bf16 %v7292_v62, %v7288_v28  ;;  %v7383_v58 = vmax.bf16 %v17109_v35, %v7363_v13  ;;  %v7249_v54 = vadd.f32 %v7248_v24, %v16085_v26  ;;  %v7250_v3 = vpop.f32.mrb[55].mxu0  ;;  %v17179_v28 = vld [vmem:[#allocation3_spill] sm:$0xff]  ;;  %v17182_v40 = vld [vmem:[#allocation10_spill] sm:$0xff]  ;;  %v16232_v59 = vpop.permute.xlu0 %7414 }
 0x7c8   : > { %10026 = vmatmul.mubr.msk.bf16.vlgmr.msra.gmra.mrb[64].mxu0 %vm6738_vm5, %v16096_v34  ;;  %v7366_v15 = vpack.c.bf16 %v7294_v33, %v7290_v60  ;;  %v7384_v14 = vmax.bf16 %v17109_v35, %v7364_v31  ;;  %v7251_v52 = vadd.f32 %v7250_v3, %v16085_v26  ;;  %v17181_v62 = vld [vmem:[#allocation11_spill] sm:$0xff] }
 0x7c9   : > { %7538 = vmatprep.mubr.bf16.mxu0 %v17109_v35  ;;  %v7385_v44 = vmax.bf16 %v17109_v35, %v7365_v16  ;;  %v7373_v8 = vpack.c.bf16 %v7249_v54, %v7245_v30 }
 0x7ca   : > { %v7297_v23 = vpop.f32.mrb[52].mxu1  ;;  %v7386_v63 = vmax.bf16 %v17109_v35, %v7366_v15  ;;  %7549 = vmatprep.subr.bf16.mxu1 %v7384_v14  ;;  %v7374_v9 = vpack.c.bf16 %v7251_v52, %v7247_v36 }
 0x7cb   : > { %v7299_v42 = vpop.f32.mrb[53].mxu1  ;;  %v7298_v19 = vadd.f32 %v7297_v23, %v16082_v53  ;;  %7550 = vmatpush1.bf16.msra.mxu1 %v7383_v58  ;;  %v7393_v61 = vmax.bf16 %v17109_v35, %v7373_v8  ;;  %v16242_v30 = vpop.permute.xlu0 %7424  ;;  %v16261_v8 = vld [vmem:[%s16797_s12 + $0x8] sm:$0xff]  }
 0x7cc   : > { %v7301_v18 = vpop.f32.mrb[54].mxu1  ;;  %7602 = vmatprep.subr.bf16.mxu0 %v7386_v63  ;;  %v7300_v27 = vadd.f32 %v7299_v42, %v16082_v53  ;;  %v7394_v0 = vmax.bf16 %v17109_v35, %v7374_v9 }
 0x7cd   : > { %v7302_v47 = vadd.f32 %v7301_v18, %v16085_v26  ;;  %v7303_v1 = vpop.f32.mrb[55].mxu1  ;;  %7603 = vmatpush1.bf16.msra.mxu0 %v7385_v44  ;;  %v16239_v44 = vpop.permute.xlu1 %7419 }
 0x7ce   : > { %v7304_v22 = vadd.f32 %v7303_v1, %v16085_v26  ;;  %7551 = vmatprep.subr.bf16.mxu1 %v7394_v0 }
 0x7cf   : > { %v7375_v32 = vpack.c.bf16 %v7302_v47, %v7298_v19  ;;  %7552 = vmatpush1.bf16.msra.mxu1 %v7393_v61 }
 0x7d0   : > { %10027 = vmatmul.mubr.msk.bf16.gmra.mrb[68].mxu0 %vm6738_vm5, %v16104_v6  ;;  %v7376_v50 = vpack.c.bf16 %v7304_v22, %v7300_v27  ;;  %v16253_v22 = vld [vmem:[%s16797_s12] sm:$0xff]  }
 0x7d1   : > { %7634 = vmatprep.mubr.bf16.mxu0 %v17109_v35  ;;  %v7395_v10 = vmax.bf16 %v17109_v35, %v7375_v32 }
 0x7d2   : > { %v7396_v12 = vmax.bf16 %v17109_v35, %v7376_v50  ;;  %10028 = vmatmul.mubr.msk.bf16.vlgmr.msra.gmra.mrb[64].mxu1 %vm6738_vm5, %v16096_v34 }
 0x7d3   : > { %7591 = vmatprep.mubr.bf16.mxu1 %v17109_v35 }
 0x7d4   : > { %7604 = vmatprep.subr.bf16.mxu0 %v7396_v12 }
 0x7d5   : > { %7605 = vmatpush1.bf16.msra.mxu0 %v7395_v10 }
 0x7d6   : > { %7776 = vmatprep.subr.bf16.mxu0 %v17168_v29 }
 0x7d8   : > { %10030 = vmatmul.mubr.msk.bf16.vlgmr.msra.gmra.mrb[72].mxu0 %vm6738_vm5, %v16096_v34 }
 0x7d9   : > { %7777 = vmatpush1.bf16.msra.mxu0 %v17169_v4  ;;  %7644 = vmatprep.mubr.bf16.mxu0 %v17109_v35 }
 0x7da   : > { %7778 = vmatprep.subr.bf16.mxu0 %v17170_v46  ;;  %10029 = vmatmul.mubr.msk.bf16.gmra.mrb[68].mxu1 %vm6738_vm5, %v16104_v6 }
 0x7db   : > { %7687 = vmatprep.mubr.bf16.mxu1 %v17109_v35 }
 0x7dd   : > { %7779 = vmatpush1.bf16.msra.mxu0 %v17171_v2 }
 0x7de   : > { %10036 = vmatprep.subr.msk.bf16.mxu0 %vm6364_vm9, %v17172_v5 }
 0x7e0   : > { %10031 = vmatmul.mubr.msk.bf16.gmra.mrb[76].mxu0 %vm6738_vm5, %v16104_v6 }
 0x7e1   : > { %7781 = vmatpush1.bf16.msra.mxu0 %v17173_v45  ;;  %7808 = vmatprep.mubr.bf16.mxu0 %v17109_v35 }
 0x7e2   : > { %7882 = vmatprep.subr.bf16.mxu0 %v17174_v55 }
 0x7e8   : > { %10037 = vmatmul.mubr.msk.bf16.vlgmr.msra.gmra.mrb[80].mxu0 %vm6357_vm0, %v16192_v51 }
 0x7e9   : > { %7883 = vmatpush1.bf16.msra.mxu0 %v17175_v39  ;;  %7818 = vmatprep.mubr.bf16.mxu0 %v17109_v35 }
 0x7ea   : > { %7884 = vmatprep.subr.bf16.mxu0 %v17176_v41 }
 0x7ed   : > { %7885 = vmatpush1.bf16.msra.mxu0 %v17177_v17 }
 0x7ee   : > { %10042 = vmatprep.subr.msk.bf16.mxu0 %vm6364_vm9, %v17178_v49 }
 0x7f0   : > { %10038 = vmatmul.mubr.msk.bf16.gmra.mrb[84].mxu0 %vm6357_vm0, %v16202_v57 }
 0x7f1   : > { %7887 = vmatpush1.bf16.msra.mxu0 %v17179_v28  ;;  %7914 = vmatprep.mubr.bf16.mxu0 %v17109_v35 }
 0x7f2   : > { %7988 = vmatprep.subr.bf16.mxu0 %v17180_v20 }
 0x7f8   : > { %10043 = vmatmul.mubr.msk.bf16.vlgmr.msra.gmra.mrb[88].mxu0 %vm6357_vm0, %v16192_v51 }
 0x7f9   : > { %7989 = vmatpush1.bf16.msra.mxu0 %v17181_v62  ;;  %7924 = vmatprep.mubr.bf16.mxu0 %v17109_v35 }
 0x7fa   : > { %7990 = vmatprep.subr.bf16.mxu0 %v17182_v40 }
 0x7fd   : > { %7991 = vmatpush1.bf16.msra.mxu0 %v15753_v43 }
 0x7fe   : > { %10048 = vmatprep.subr.msk.bf16.mxu0 %vm6364_vm9, %v15884_v25 }
 0x800   : > { %10044 = vmatmul.mubr.msk.bf16.gmra.mrb[92].mxu0 %vm6357_vm0, %v16202_v57 }
 0x801   : > { %7993 = vmatpush1.bf16.msra.mxu0 %v15898_v21  ;;  %8020 = vmatprep.mubr.bf16.mxu0 %v17109_v35 }
 0x808   : > { %10049 = vmatmul.mubr.msk.bf16.vlgmr.msra.gmra.mrb[96].mxu0 %vm6357_vm0, %v16192_v51 }
 0x809   : > { %8030 = vmatprep.mubr.bf16.mxu0 %v17109_v35 }
 0x810   : > { %10050 = vmatmul.mubr.msk.bf16.gmra.mrb[100].mxu0 %vm6357_vm0, %v16202_v57 }
 0x811   : > { %8089 = vmatprep.mubr.bf16.mxu0 %v17109_v35 }
 0x85d   : > { %v7477_v38 = vpop.f32.mrb[56].mxu1 }
 0x85e   : > { %v7479_v60 = vpop.f32.mrb[57].mxu1  ;;  %v7478_v13 = vadd.f32 %v7477_v38, %v16230_v7 }
 0x85f   : > { %v7481_v33 = vpop.f32.mrb[58].mxu1  ;;  %v7480_v15 = vadd.f32 %v7479_v60, %v16230_v7 }
 0x860   : > { %v7482_v16 = vadd.f32 %v7481_v33, %v16232_v59  ;;  %v7483_v31 = vpop.f32.mrb[59].mxu1 }
 0x861   : > { %v7484_v11 = vadd.f32 %v7483_v31, %v16232_v59 }
 0x862   : > { %v7708_v23 = vpack.c.bf16 %v7482_v16, %v7478_v13 }
 0x863   : > { %v7709_v14 = vpack.c.bf16 %v7484_v11, %v7480_v15 }
 0x864   : > { %v7728_v48 = vmax.bf16 %v17109_v35, %v7708_v23 }
 0x865   : > { %v7487_v63 = vpop.f32.mrb[60].mxu1  ;;  %v7729_v58 = vmax.bf16 %v17109_v35, %v7709_v14 }
 0x866   : > { %v7489_v42 = vpop.f32.mrb[61].mxu1  ;;  %v7488_v18 = vadd.f32 %v7487_v63, %v16239_v44 }
 0x867   : > { %v7491_v24 = vpop.f32.mrb[62].mxu1  ;;  %8057 = vmatprep.subr.bf16.mxu0 %v7729_v58  ;;  %v7490_v47 = vadd.f32 %v7489_v42, %v16239_v44 }
 0x868   : > { %v7492_v19 = vadd.f32 %v7491_v24, %v16242_v30  ;;  %v7493_v54 = vpop.f32.mrb[63].mxu1  ;;  %8058 = vmatpush1.bf16.msra.mxu0 %v7728_v48 }
 0x869   : > { %v7494_v3 = vadd.f32 %v7493_v54, %v16242_v30 }
 0x86a   : > { %v7718_v1 = vpack.c.bf16 %v7492_v19, %v7488_v18 }
 0x86b   : > { %v7719_v36 = vpack.c.bf16 %v7494_v3, %v7490_v47 }
 0x86c   : > { %v7738_v52 = vmax.bf16 %v17109_v35, %v7718_v1 }
 0x86d   : > { %v7739_v27 = vmax.bf16 %v17109_v35, %v7719_v36  ;;  %v17183_v36 = vld [vmem:[#allocation16_spill] sm:$0xff] }
 0x86f   : > { %8059 = vmatprep.subr.bf16.mxu0 %v7739_v27 }
 0x870   : > { %8060 = vmatpush1.bf16.msra.mxu0 %v7738_v52 }
 0x873   : > { %10053 = vmatmul.mubr.msk.bf16.vlgmr.msra.gmra.mrb[80].mxu0 %vm6738_vm5, %v16253_v22 }
 0x874   : > { %8099 = vmatprep.mubr.bf16.mxu0 %v17109_v35 }
 0x87b   : > { %10054 = vmatmul.mubr.msk.bf16.gmra.mrb[84].mxu0 %vm6738_vm5, %v16261_v8 }
 0x87c   : > { %8195 = vmatprep.mubr.bf16.mxu0 %v17109_v35 }
 0x88b   : > { %v7340_v32 = vpop.f32.mrb[56].mxu0 }
 0x88c   : > { %v7342_v9 = vpop.f32.mrb[57].mxu0  ;;  %v7341_v0 = vadd.f32 %v7340_v32, %v16073_v56  ;;  %v17184_v32 = vld [vmem:[#allocation18_spill] sm:$0xff] }
 0x88d   : > { %v7344_v50 = vpop.f32.mrb[58].mxu0  ;;  %v7343_v10 = vadd.f32 %v7342_v9, %v16073_v56  ;;  %v17185_v9 = vld [vmem:[#allocation13_spill] sm:$0xff] }
 0x88e   : > { %v7345_v12 = vadd.f32 %v7344_v50, %v16075_v37  ;;  %v7346_v61 = vpop.f32.mrb[59].mxu0 }
 0x88f   : > { %v7347_v38 = vadd.f32 %v7346_v61, %v16075_v37  ;;  %v17186_v61 = vld [vmem:[#allocation21_spill] sm:$0xff] }
 0x890   : > { %v7367_v60 = vpack.c.bf16 %v7345_v12, %v7341_v0 }
 0x891   : > { %v7368_v33 = vpack.c.bf16 %v7347_v38, %v7343_v10 }
 0x892   : > { %v7387_v31 = vmax.bf16 %v17109_v35, %v7367_v60 }
 0x893   : > { %v7350_v13 = vpop.f32.mrb[60].mxu0  ;;  %v7388_v16 = vmax.bf16 %v17109_v35, %v7368_v33  ;;  %v17187_v33 = vld [vmem:[#allocation22_spill] sm:$0xff] }
 0x894   : > { %v7352_v15 = vpop.f32.mrb[61].mxu0  ;;  %v7351_v23 = vadd.f32 %v7350_v13, %v16082_v53 }
 0x895   : > { %v7354_v11 = vpop.f32.mrb[62].mxu0  ;;  %7655 = vmatprep.subr.bf16.mxu1 %v7388_v16  ;;  %v7353_v56 = vadd.f32 %v7352_v15, %v16082_v53  ;;  %v17188_v15 = vld [vmem:[#allocation24_spill] sm:$0xff] }
 0x896   : > { %v7355_v14 = vadd.f32 %v7354_v11, %v16085_v26  ;;  %v7356_v63 = vpop.f32.mrb[63].mxu0  ;;  %7656 = vmatpush1.bf16.msra.mxu1 %v7387_v31  ;;  %v17189_v11 = vld [vmem:[#allocation26_spill] sm:$0xff] }
 0x897   : > { %v7357_v37 = vadd.f32 %v7356_v63, %v16085_v26  ;;  %v17192_v63 = vld [vmem:[#allocation30_spill] sm:$0xff] }
 0x898   : > { %v7377_v58 = vpack.c.bf16 %v7355_v14, %v7351_v23  ;;  %v17190_v23 = vld [vmem:[#allocation27_spill] sm:$0xff]  ;;  %v17191_v14 = vld [vmem:[#allocation29_spill] sm:$0xff] }
 0x899   : > { %v7378_v48 = vpack.c.bf16 %v7357_v37, %v7353_v56  ;;  %v17193_v56 = vld [vmem:[#allocation4_spill] sm:$0xff]  ;;  %v17194_v37 = vld [vmem:[#allocation7_spill] sm:$0xff] }
 0x89a   : > { %v7397_v18 = vmax.bf16 %v17109_v35, %v7377_v58 }
 0x89b   : > { %v7398_v42 = vmax.bf16 %v17109_v35, %v7378_v48  ;;  %v7530_v24 = vpop.f32.mrb[64].mxu0 }
 0x89c   : > { %v7532_v19 = vpop.f32.mrb[65].mxu0  ;;  %v7531_v47 = vadd.f32 %v7530_v24, %v16230_v7 }
 0x89d   : > { %7657 = vmatprep.subr.bf16.mxu1 %v7398_v42  ;;  %v7534_v54 = vpop.f32.mrb[66].mxu0  ;;  %v7533_v53 = vadd.f32 %v7532_v19, %v16230_v7 }
 0x89e   : > { %7658 = vmatpush1.bf16.msra.mxu1 %v7397_v18  ;;  %v7535_v3 = vadd.f32 %v7534_v54, %v16232_v59  ;;  %v7536_v1 = vpop.f32.mrb[67].mxu0 }
 0x89f   : > { %7829 = vmatprep.subr.bf16.mxu1 %v17183_v36  ;;  %v7537_v26 = vadd.f32 %v7536_v1, %v16232_v59 }
 0x8a0   : > { %v7710_v27 = vpack.c.bf16 %v7535_v3, %v7531_v47 }
 0x8a1   : > { %10032 = vmatmul.mubr.msk.bf16.vlgmr.msra.gmra.mrb[72].mxu1 %vm6738_vm5, %v16096_v34  ;;  %v7711_v52 = vpack.c.bf16 %v7537_v26, %v7533_v53 }
 0x8a2   : > { %7830 = vmatpush1.bf16.msra.mxu1 %v17184_v32  ;;  %7697 = vmatprep.mubr.bf16.mxu1 %v17109_v35  ;;  %v7730_v48 = vmax.bf16 %v17109_v35, %v7710_v27 }
 0x8a3   : > { %7831 = vmatprep.subr.bf16.mxu1 %v17185_v9  ;;  %v7540_v50 = vpop.f32.mrb[68].mxu0 }
 0x8a4   : > { %v7542_v0 = vpop.f32.mrb[69].mxu0  ;;  %v7541_v10 = vadd.f32 %v7540_v50, %v16239_v44 }
 0x8a5   : > { %v7544_v12 = vpop.f32.mrb[70].mxu0  ;;  %v7543_v34 = vadd.f32 %v7542_v0, %v16239_v44 }
 0x8a6   : > { %7832 = vmatpush1.bf16.msra.mxu1 %v17186_v61  ;;  %v7545_v38 = vadd.f32 %v7544_v12, %v16242_v30  ;;  %v7546_v60 = vpop.f32.mrb[71].mxu0 }
 0x8a7   : > { %10039 = vmatprep.subr.msk.bf16.mxu1 %vm6364_vm9, %v17187_v33  ;;  %v7547_v13 = vadd.f32 %v7546_v60, %v16242_v30 }
 0x8a8   : > { %v7720_v16 = vpack.c.bf16 %v7545_v38, %v7541_v10 }
 0x8a9   : > { %10033 = vmatmul.mubr.msk.bf16.gmra.mrb[76].mxu1 %vm6738_vm5, %v16104_v6  ;;  %v7721_v31 = vpack.c.bf16 %v7547_v13, %v7543_v34  ;;  %v7731_v6 = vmax.bf16 %v17109_v35, %v7711_v52 }
 0x8aa   : > { %7834 = vmatpush1.bf16.msra.mxu1 %v17188_v15  ;;  %7861 = vmatprep.mubr.bf16.mxu1 %v17109_v35  ;;  %v7740_v42 = vmax.bf16 %v17109_v35, %v7720_v16 }
 0x8ab   : > { %7935 = vmatprep.subr.bf16.mxu1 %v17189_v11  ;;  %v7741_v58 = vmax.bf16 %v17109_v35, %v7721_v31  ;;  %v7636_v24 = vpop.f32.mrb[72].mxu0 }
 0x8ac   : > { %v7638_v19 = vpop.f32.mrb[73].mxu0  ;;  %v7637_v3 = vadd.f32 %v7636_v24, %v16230_v7 }
 0x8ad   : > { %v7640_v47 = vpop.f32.mrb[74].mxu0  ;;  %v7639_v50 = vadd.f32 %v7638_v19, %v16230_v7 }
 0x8ae   : > { %v7641_v53 = vadd.f32 %v7640_v47, %v16232_v59  ;;  %v7642_v27 = vpop.f32.mrb[75].mxu0 }
 0x8af   : > { %v7643_v12 = vadd.f32 %v7642_v27, %v16232_v59 }
 0x8b0   : > { %v7714_v38 = vpack.c.bf16 %v7641_v53, %v7637_v3 }
 0x8b1   : > { %10040 = vmatmul.mubr.msk.bf16.vlgmr.msra.gmra.mrb[80].mxu1 %vm6357_vm0, %v16192_v51  ;;  %v7715_v34 = vpack.c.bf16 %v7643_v12, %v7639_v50 }
 0x8b2   : > { %7936 = vmatpush1.bf16.msra.mxu1 %v17190_v23  ;;  %7871 = vmatprep.mubr.bf16.mxu1 %v17109_v35 }
 0x8b3   : > { %7937 = vmatprep.subr.bf16.mxu1 %v17191_v14  ;;  %v7646_v16 = vpop.f32.mrb[76].mxu0 }
 0x8b6   : > { %7938 = vmatpush1.bf16.msra.mxu1 %v17192_v63 }
 0x8b7   : > { %10045 = vmatprep.subr.msk.bf16.mxu1 %vm6364_vm9, %v17193_v56 }
 0x8b9   : > { %10041 = vmatmul.mubr.msk.bf16.gmra.mrb[84].mxu1 %vm6357_vm0, %v16202_v57 }
 0x8ba   : > { %7940 = vmatpush1.bf16.msra.mxu1 %v17194_v37  ;;  %7967 = vmatprep.mubr.bf16.mxu1 %v17109_v35 }
 0x8bb   : > { %8110 = vmatprep.subr.bf16.mxu1 %v7731_v6  ;;  %v7735_v6 = vmax.bf16 %v17109_v35, %v7715_v34 }
 0x8c1   : > { %10046 = vmatmul.mubr.msk.bf16.vlgmr.msra.gmra.mrb[88].mxu1 %vm6357_vm0, %v16192_v51  ;;  %v7583_v51 = vpop.f32.mrb[64].mxu1 }
 0x8c2   : > { %8111 = vmatpush1.bf16.msra.mxu1 %v7730_v48  ;;  %7977 = vmatprep.mubr.bf16.mxu1 %v17109_v35  ;;  %v7585_v18 = vpop.f32.mrb[65].mxu1  ;;  %v7734_v48 = vmax.bf16 %v17109_v35, %v7714_v38 }
 0x8c3   : > { %8112 = vmatprep.subr.bf16.mxu1 %v7741_v58  ;;  %v7587_v54 = vpop.f32.mrb[66].mxu1  ;;  %v7586_v52 = vadd.f32 %v7585_v18, %v16230_v7 }
 0x8c4   : > { %v7588_v1 = vadd.f32 %v7587_v54, %v16232_v59  ;;  %v7589_v26 = vpop.f32.mrb[67].mxu1  ;;  %v7647_v54 = vadd.f32 %v7646_v16, %v16239_v44 }
 0x8c5   : > { %v7590_v0 = vadd.f32 %v7589_v26, %v16232_v59  ;;  %v7593_v13 = vpop.f32.mrb[68].mxu1 }
 0x8c6   : > { %8113 = vmatpush1.bf16.msra.mxu1 %v7740_v42  ;;  %v7595_v42 = vpop.f32.mrb[69].mxu1  ;;  %v7594_v24 = vadd.f32 %v7593_v13, %v16239_v44 }
 0x8c7   : > { %v7713_v60 = vpack.c.bf16 %v7590_v0, %v7586_v52  ;;  %v7597_v18 = vpop.f32.mrb[70].mxu1  ;;  %8216 = vmatprep.subr.bf16.mxu1 %v7735_v6  ;;  %v7596_v53 = vadd.f32 %v7595_v42, %v16239_v44 }
 0x8c8   : > { %v7598_v47 = vadd.f32 %v7597_v18, %v16242_v30  ;;  %v7599_v3 = vpop.f32.mrb[71].mxu1 }
 0x8c9   : > { %10047 = vmatmul.mubr.msk.bf16.gmra.mrb[92].mxu1 %vm6357_vm0, %v16202_v57  ;;  %v7584_v57 = vadd.f32 %v7583_v51, %v16230_v7  ;;  %v7733_v31 = vmax.bf16 %v17109_v35, %v7713_v60  ;;  %v7648_v51 = vpop.f32.mrb[77].mxu0  ;;  %v7600_v27 = vadd.f32 %v7599_v3, %v16242_v30 }
 0x8ca   : > { %8142 = vmatprep.mubr.bf16.mxu1 %v17109_v35  ;;  %v7650_v19 = vpop.f32.mrb[78].mxu0  ;;  %v7649_v26 = vadd.f32 %v7648_v51, %v16239_v44  ;;  %v7722_v50 = vpack.c.bf16 %v7598_v47, %v7594_v24 }
 0x8cb   : > { %v7712_v10 = vpack.c.bf16 %v7588_v1, %v7584_v57  ;;  %8163 = vmatprep.subr.bf16.mxu0 %v7733_v31  ;;  %v7651_v57 = vadd.f32 %v7650_v19, %v16242_v30  ;;  %v7652_v1 = vpop.f32.mrb[79].mxu0  ;;  %v7723_v12 = vpack.c.bf16 %v7600_v27, %v7596_v53  ;;  %v16364_v31 = vpop.permute.xlu1 %8324 }
 0x8cc   : > { %v7653_v52 = vadd.f32 %v7652_v1, %v16242_v30  ;;  %v7742_v34 = vmax.bf16 %v17109_v35, %v7722_v50 }
 0x8cd   : > { %v7732_v58 = vmax.bf16 %v17109_v35, %v7712_v10  ;;  %v7724_v0 = vpack.c.bf16 %v7651_v57, %v7647_v54  ;;  %v7743_v38 = vmax.bf16 %v17109_v35, %v7723_v12 }
 0x8ce   : > { %v7725_v10 = vpack.c.bf16 %v7653_v52, %v7649_v26 }
 0x8cf   : > { %8164 = vmatpush1.bf16.msra.mxu0 %v7732_v58  ;;  %v7744_v13 = vmax.bf16 %v17109_v35, %v7724_v0  ;;  %v16366_v58 = vpop.permute.xlu0 %8329  ;;  %v16373_v1 = vpop.permute.xlu1 %8334 }
 0x8d0   : > { %v7745_v60 = vmax.bf16 %v17109_v35, %v7725_v10  ;;  %8165 = vmatprep.subr.bf16.mxu0 %v7743_v38 }
 0x8d1   : > { %10055 = vmatmul.mubr.msk.bf16.vlgmr.msra.gmra.mrb[80].mxu1 %vm6738_vm5, %v16253_v22 }
 0x8d2   : > { %8152 = vmatprep.mubr.bf16.mxu1 %v17109_v35  ;;  %8217 = vmatpush1.bf16.msra.mxu1 %v7734_v48 }
 0x8d3   : > { %8218 = vmatprep.subr.bf16.mxu1 %v7745_v60  ;;  %8166 = vmatpush1.bf16.msra.mxu0 %v7742_v34  ;;  %v16376_v27 = vpop.permute.xlu0 %8339 }
 0x8d6   : > { %8219 = vmatpush1.bf16.msra.mxu1 %v7744_v13  ;;  %10057 = vmatmul.mubr.msk.bf16.vlgmr.msra.gmra.mrb[88].mxu0 %vm6738_vm5, %v16253_v22 }
 0x8d7   : > { %8205 = vmatprep.mubr.bf16.mxu0 %v17109_v35 }
 0x8d9   : > { %10056 = vmatmul.mubr.msk.bf16.gmra.mrb[84].mxu1 %vm6738_vm5, %v16261_v8 }
 0x8da   : > { %8248 = vmatprep.mubr.bf16.mxu1 %v17109_v35 }
 0x8de   : > { %10058 = vmatmul.mubr.msk.bf16.gmra.mrb[92].mxu0 %vm6738_vm5, %v16261_v8 }
 0x8df   : > { %8301 = vmatprep.mubr.bf16.mxu0 %v17109_v35 }
 0x8e1   : > { %10059 = vmatmul.mubr.msk.bf16.vlgmr.msra.gmra.mrb[88].mxu1 %vm6738_vm5, %v16253_v22 }
 0x8e2   : > { %8258 = vmatprep.mubr.bf16.mxu1 %v17109_v35 }
 0x8e9   : > { %10060 = vmatmul.mubr.msk.bf16.gmra.mrb[92].mxu1 %vm6738_vm5, %v16261_v8 }
 0x8ea   : > { %8498 = vmatprep.mubr.bf16.mxu1 %v17109_v35 }
 0x946   : > { %v8091_v16 = vpop.f32.mrb[80].mxu0 }
 0x947   : > { %v8093_v6 = vpop.f32.mrb[81].mxu0  ;;  %v8342_v42 = vadd.f32 %v16364_v31, %v8091_v16 }
 0x948   : > { %v8095_v48 = vpop.f32.mrb[82].mxu0  ;;  %v8343_v18 = vadd.f32 %v16364_v31, %v8093_v6  ;;  %v16387_v6 = vld [vmem:[%s16800_s15] sm:$0xff]  }
 0x949   : > { %v8352_v51 = vadd.f32 %v16366_v58, %v8095_v48  ;;  %v8097_v24 = vpop.f32.mrb[83].mxu0  ;;  %v16395_v48 = vld [vmem:[%s16800_s15 + $0x8] sm:$0xff]  }
 0x94a   : > { %v8353_v19 = vadd.f32 %v16366_v58, %v8097_v24 }
 0x94b   : > { %v8382_v54 = vpack.c.bf16 %v8352_v51, %v8342_v42 }
 0x94c   : > { %v8383_v47 = vpack.c.bf16 %v8353_v19, %v8343_v18 }
 0x94d   : > { %v8402_v53 = vmax.bf16 %v17109_v35, %v8382_v54 }
 0x94e   : > { %v8101_v57 = vpop.f32.mrb[84].mxu0  ;;  %v8403_v3 = vmax.bf16 %v17109_v35, %v8383_v47 }
 0x94f   : > { %v8103_v26 = vpop.f32.mrb[85].mxu0  ;;  %v8362_v50 = vadd.f32 %v16373_v1, %v8101_v57 }
 0x950   : > { %v8105_v52 = vpop.f32.mrb[86].mxu0  ;;  %8466 = vmatprep.subr.bf16.mxu1 %v8403_v3  ;;  %v8363_v10 = vadd.f32 %v16373_v1, %v8103_v26 }
 0x951   : > { %v8372_v0 = vadd.f32 %v16376_v27, %v8105_v52  ;;  %v8107_v12 = vpop.f32.mrb[87].mxu0  ;;  %8467 = vmatpush1.bf16.msra.mxu1 %v8402_v53 }
 0x952   : > { %v8373_v38 = vadd.f32 %v16376_v27, %v8107_v12 }
 0x953   : > { %v8392_v60 = vpack.c.bf16 %v8372_v0, %v8362_v50 }
 0x954   : > { %v8393_v34 = vpack.c.bf16 %v8373_v38, %v8363_v10 }
 0x955   : > { %v8412_v16 = vmax.bf16 %v17109_v35, %v8392_v60 }
 0x956   : > { %v8413_v13 = vmax.bf16 %v17109_v35, %v8393_v34 }
 0x958   : > { %8468 = vmatprep.subr.bf16.mxu1 %v8413_v13 }
 0x959   : > { %8469 = vmatpush1.bf16.msra.mxu1 %v8412_v16 }
 0x95c   : > { %10065 = vmatmul.mubr.msk.bf16.vlgmr.msra.gmra.mrb[96].mxu1 %vm6738_vm5, %v16387_v6 }
 0x95d   : > { %8508 = vmatprep.mubr.bf16.mxu1 %v17109_v35 }
 0x964   : > { %10066 = vmatmul.mubr.msk.bf16.gmra.mrb[100].mxu1 %vm6738_vm5, %v16395_v48 }
 0x965   : > { %8551 = vmatprep.mubr.bf16.mxu1 %v17109_v35 }
 0x974   : > { %v7689_v42 = vpop.f32.mrb[72].mxu1 }
 0x975   : > { %v7691_v51 = vpop.f32.mrb[73].mxu1  ;;  %v7690_v18 = vadd.f32 %v7689_v42, %v16230_v7 }
 0x976   : > { %v7693_v24 = vpop.f32.mrb[74].mxu1  ;;  %v7692_v47 = vadd.f32 %v7691_v51, %v16230_v7 }
 0x977   : > { %v7694_v19 = vadd.f32 %v7693_v24, %v16232_v59  ;;  %v7695_v54 = vpop.f32.mrb[75].mxu1 }
 0x978   : > { %v7696_v57 = vadd.f32 %v7695_v54, %v16232_v59 }
 0x979   : > { %v7716_v3 = vpack.c.bf16 %v7694_v19, %v7690_v18 }
 0x97a   : > { %v7717_v53 = vpack.c.bf16 %v7696_v57, %v7692_v47 }
 0x97b   : > { %v7736_v50 = vmax.bf16 %v17109_v35, %v7716_v3 }
 0x97c   : > { %v7699_v26 = vpop.f32.mrb[76].mxu1  ;;  %v7737_v52 = vmax.bf16 %v17109_v35, %v7717_v53 }
 0x97d   : > { %v7701_v0 = vpop.f32.mrb[77].mxu1  ;;  %v7700_v10 = vadd.f32 %v7699_v26, %v16239_v44 }
 0x97e   : > { %v7703_v12 = vpop.f32.mrb[78].mxu1  ;;  %8269 = vmatprep.subr.bf16.mxu0 %v7737_v52  ;;  %v7702_v7 = vadd.f32 %v7701_v0, %v16239_v44 }
 0x97f   : > { %v7704_v38 = vadd.f32 %v7703_v12, %v16242_v30  ;;  %v7705_v60 = vpop.f32.mrb[79].mxu1  ;;  %8270 = vmatpush1.bf16.msra.mxu0 %v7736_v50 }
 0x980   : > { %v7706_v59 = vadd.f32 %v7705_v60, %v16242_v30 }
 0x981   : > { %v7726_v34 = vpack.c.bf16 %v7704_v38, %v7700_v10 }
 0x982   : > { %v7727_v13 = vpack.c.bf16 %v7706_v59, %v7702_v7 }
 0x983   : > { %v7746_v42 = vmax.bf16 %v17109_v35, %v7726_v34 }
 0x984   : > { %v7747_v16 = vmax.bf16 %v17109_v35, %v7727_v13 }
 0x986   : > { %8271 = vmatprep.subr.bf16.mxu0 %v7747_v16 }
 0x987   : > { %8272 = vmatpush1.bf16.msra.mxu0 %v7746_v42 }
 0x98a   : > { %10061 = vmatmul.mubr.msk.bf16.vlgmr.msra.gmra.mrb[96].mxu0 %vm6738_vm5, %v16253_v22 }
 0x98b   : > { %8311 = vmatprep.mubr.bf16.mxu0 %v17109_v35 }
 0x992   : > { %10062 = vmatmul.mubr.msk.bf16.gmra.mrb[100].mxu0 %vm6738_vm5, %v16261_v8 }
 0x993   : > { %8604 = vmatprep.mubr.bf16.mxu0 %v17109_v35 }
 0x9a4   : > { %v8144_v44 = vpop.f32.mrb[80].mxu1 }
 0x9a5   : > { %v8146_v30 = vpop.f32.mrb[81].mxu1  ;;  %v8344_v24 = vadd.f32 %v16364_v31, %v8144_v44 }
 0x9a6   : > { %v8148_v51 = vpop.f32.mrb[82].mxu1  ;;  %v8345_v54 = vadd.f32 %v16364_v31, %v8146_v30 }
 0x9a7   : > { %v8354_v18 = vadd.f32 %v16366_v58, %v8148_v51  ;;  %v8150_v19 = vpop.f32.mrb[83].mxu1 }
 0x9a8   : > { %v8355_v47 = vadd.f32 %v16366_v58, %v8150_v19 }
 0x9a9   : > { %v8384_v22 = vpack.c.bf16 %v8354_v18, %v8344_v24  ;;  %v8197_v13 = vpop.f32.mrb[88].mxu0 }
 0x9aa   : > { %v8385_v57 = vpack.c.bf16 %v8355_v47, %v8345_v54  ;;  %v8199_v42 = vpop.f32.mrb[89].mxu0  ;;  %v8346_v24 = vadd.f32 %v16364_v31, %v8197_v13 }
 0x9ab   : > { %v8404_v8 = vmax.bf16 %v17109_v35, %v8384_v22  ;;  %v8201_v30 = vpop.f32.mrb[90].mxu0 }
 0x9ac   : > { %v8154_v3 = vpop.f32.mrb[84].mxu1  ;;  %v8405_v53 = vmax.bf16 %v17109_v35, %v8385_v57  ;;  %v8356_v19 = vadd.f32 %v16366_v58, %v8201_v30  ;;  %v8203_v47 = vpop.f32.mrb[91].mxu0  ;;  %v8347_v57 = vadd.f32 %v16364_v31, %v8199_v42 }
 0x9ad   : > { %v8156_v26 = vpop.f32.mrb[85].mxu1  ;;  %v8364_v50 = vadd.f32 %v16373_v1, %v8154_v3 }
 0x9ae   : > { %v8158_v52 = vpop.f32.mrb[86].mxu1  ;;  %8519 = vmatprep.subr.bf16.mxu1 %v8405_v53  ;;  %v8365_v10 = vadd.f32 %v16373_v1, %v8156_v26  ;;  %v8357_v53 = vadd.f32 %v16366_v58, %v8203_v47  ;;  %v8386_v26 = vpack.c.bf16 %v8356_v19, %v8346_v24 }
 0x9af   : > { %v8374_v0 = vadd.f32 %v16376_v27, %v8158_v52  ;;  %v8160_v12 = vpop.f32.mrb[87].mxu1  ;;  %8520 = vmatpush1.bf16.msra.mxu1 %v8404_v8 }
 0x9b0   : > { %v8375_v38 = vadd.f32 %v16376_v27, %v8160_v12 }
 0x9b1   : > { %v8394_v60 = vpack.c.bf16 %v8374_v0, %v8364_v50  ;;  %v8387_v50 = vpack.c.bf16 %v8357_v53, %v8347_v57  ;;  %v8207_v12 = vpop.f32.mrb[92].mxu0 }
 0x9b2   : > { %v8395_v7 = vpack.c.bf16 %v8375_v38, %v8365_v10 }
 0x9b3   : > { %v8414_v34 = vmax.bf16 %v17109_v35, %v8394_v60  ;;  %v8407_v38 = vmax.bf16 %v17109_v35, %v8387_v50 }
 0x9b4   : > { %v8415_v59 = vmax.bf16 %v17109_v35, %v8395_v7  ;;  %v8250_v16 = vpop.f32.mrb[88].mxu1  ;;  %v8406_v7 = vmax.bf16 %v17109_v35, %v8386_v26 }
 0x9b5   : > { %v8252_v44 = vpop.f32.mrb[89].mxu1  ;;  %v8348_v18 = vadd.f32 %v16364_v31, %v8250_v16  ;;  %v8366_v16 = vadd.f32 %v16373_v1, %v8207_v12  ;;  %8572 = vmatprep.subr.bf16.mxu0 %v8407_v38 }
 0x9b6   : > { %8521 = vmatprep.subr.bf16.mxu1 %v8415_v59  ;;  %v8254_v51 = vpop.f32.mrb[90].mxu1  ;;  %v8349_v3 = vadd.f32 %v16364_v31, %v8252_v44  ;;  %8573 = vmatpush1.bf16.msra.mxu0 %v8406_v7 }
 0x9b7   : > { %8522 = vmatpush1.bf16.msra.mxu1 %v8414_v34  ;;  %v8358_v54 = vadd.f32 %v16366_v58, %v8254_v51  ;;  %v8256_v22 = vpop.f32.mrb[91].mxu1  ;;  %v8209_v34 = vpop.f32.mrb[93].mxu0 }
 0x9b8   : > { %v8359_v8 = vadd.f32 %v16366_v58, %v8256_v22  ;;  %v8211_v42 = vpop.f32.mrb[94].mxu0 }
 0x9b9   : > { %v8388_v52 = vpack.c.bf16 %v8358_v54, %v8348_v18  ;;  %v8376_v51 = vadd.f32 %v16376_v27, %v8211_v42  ;;  %v8213_v18 = vpop.f32.mrb[95].mxu0  ;;  %v8367_v54 = vadd.f32 %v16373_v1, %v8209_v34 }
 0x9ba   : > { %10067 = vmatmul.mubr.msk.bf16.vlgmr.msra.gmra.mrb[104].mxu1 %vm6738_vm5, %v16387_v6  ;;  %v8389_v0 = vpack.c.bf16 %v8359_v8, %v8349_v3  ;;  %v8377_v22 = vadd.f32 %v16376_v27, %v8213_v18  ;;  %v16552_v18 = vld [vmem:[%s16802_s17 + $0x8] sm:$0xff]  }
 0x9bb   : > { %8561 = vmatprep.mubr.bf16.mxu1 %v17109_v35  ;;  %v8408_v59 = vmax.bf16 %v17109_v35, %v8388_v52  ;;  %v8396_v3 = vpack.c.bf16 %v8376_v51, %v8366_v16 }
 0x9bc   : > { %v8260_v10 = vpop.f32.mrb[92].mxu1  ;;  %v8409_v60 = vmax.bf16 %v17109_v35, %v8389_v0  ;;  %v8397_v8 = vpack.c.bf16 %v8377_v22, %v8367_v54 }
 0x9bd   : > { %v8262_v13 = vpop.f32.mrb[93].mxu1  ;;  %v8368_v30 = vadd.f32 %v16373_v1, %v8260_v10  ;;  %v8416_v0 = vmax.bf16 %v17109_v35, %v8396_v3 }
 0x9be   : > { %v8264_v44 = vpop.f32.mrb[94].mxu1  ;;  %8625 = vmatprep.subr.bf16.mxu1 %v8409_v60  ;;  %v8369_v47 = vadd.f32 %v16373_v1, %v8262_v13  ;;  %v8417_v52 = vmax.bf16 %v17109_v35, %v8397_v8 }
 0x9bf   : > { %v8378_v24 = vadd.f32 %v16376_v27, %v8264_v44  ;;  %v8266_v19 = vpop.f32.mrb[95].mxu1  ;;  %8626 = vmatpush1.bf16.msra.mxu1 %v8408_v59 }
 0x9c0   : > { %v8379_v57 = vadd.f32 %v16376_v27, %v8266_v19  ;;  %8574 = vmatprep.subr.bf16.mxu0 %v8417_v52 }
 0x9c1   : > { %v8398_v53 = vpack.c.bf16 %v8378_v24, %v8368_v30  ;;  %8575 = vmatpush1.bf16.msra.mxu0 %v8416_v0  ;;  %v16544_v24 = vld [vmem:[%s16802_s17] sm:$0xff]  }
 0x9c2   : > { %10068 = vmatmul.mubr.msk.bf16.gmra.mrb[108].mxu1 %vm6738_vm5, %v16395_v48  ;;  %v8399_v26 = vpack.c.bf16 %v8379_v57, %v8369_v47 }
 0x9c3   : > { %8657 = vmatprep.mubr.bf16.mxu1 %v17109_v35  ;;  %v8418_v12 = vmax.bf16 %v17109_v35, %v8398_v53 }
 0x9c4   : > { %v8419_v50 = vmax.bf16 %v17109_v35, %v8399_v26  ;;  %10069 = vmatmul.mubr.msk.bf16.vlgmr.msra.gmra.mrb[104].mxu0 %vm6738_vm5, %v16387_v6 }
 0x9c5   : > { %8614 = vmatprep.mubr.bf16.mxu0 %v17109_v35 }
 0x9c6   : > { %8627 = vmatprep.subr.bf16.mxu1 %v8419_v50 }
 0x9c7   : > { %8628 = vmatpush1.bf16.msra.mxu1 %v8418_v12 }
 0x9c8   : > { %8799 = vmatprep.subr.bf16.mxu1 %v17168_v29  ;;  %v16483_v29 = vld [vmem:[%s16803_s18] sm:$0xff]  }
 0x9ca   : > { %10071 = vmatmul.mubr.msk.bf16.vlgmr.msra.gmra.mrb[112].mxu1 %vm6738_vm5, %v16387_v6 }
 0x9cb   : > { %8800 = vmatpush1.bf16.msra.mxu1 %v17169_v4  ;;  %8667 = vmatprep.mubr.bf16.mxu1 %v17109_v35  ;;  %v16497_v4 = vld [vmem:[%s16803_s18 + $0x8] sm:$0xff]  }
 0x9cc   : > { %8801 = vmatprep.subr.bf16.mxu1 %v17170_v46  ;;  %10070 = vmatmul.mubr.msk.bf16.gmra.mrb[108].mxu0 %vm6738_vm5, %v16395_v48  ;;  %v16521_v46 = vpop.permute.xlu1 %8432 }
 0x9cd   : > { %8710 = vmatprep.mubr.bf16.mxu0 %v17109_v35 }
 0x9cf   : > { %8802 = vmatpush1.bf16.msra.mxu1 %v17171_v2  ;;  %v16523_v2 = vpop.permute.xlu0 %8437 }
 0x9d0   : > { %10077 = vmatprep.subr.msk.bf16.mxu1 %vm6364_vm9, %v17172_v5 }
 0x9d2   : > { %10072 = vmatmul.mubr.msk.bf16.gmra.mrb[116].mxu1 %vm6738_vm5, %v16395_v48 }
 0x9d3   : > { %8804 = vmatpush1.bf16.msra.mxu1 %v17173_v45  ;;  %8831 = vmatprep.mubr.bf16.mxu1 %v17109_v35  ;;  %v16533_v38 = vpop.permute.xlu0 %8447 }
 0x9d4   : > { %8905 = vmatprep.subr.bf16.mxu1 %v17174_v55 }
 0x9da   : > { %10078 = vmatmul.mubr.msk.bf16.vlgmr.msra.gmra.mrb[120].mxu1 %vm6357_vm0, %v16483_v29 }
 0x9db   : > { %8906 = vmatpush1.bf16.msra.mxu1 %v17175_v39  ;;  %8841 = vmatprep.mubr.bf16.mxu1 %v17109_v35 }
 0x9dc   : > { %8907 = vmatprep.subr.bf16.mxu1 %v17176_v41 }
 0x9df   : > { %8908 = vmatpush1.bf16.msra.mxu1 %v17177_v17 }
 0x9e0   : > { %10083 = vmatprep.subr.msk.bf16.mxu1 %vm6364_vm9, %v17178_v49 }
 0x9e2   : > { %10079 = vmatmul.mubr.msk.bf16.gmra.mrb[124].mxu1 %vm6357_vm0, %v16497_v4 }
 0x9e3   : > { %8910 = vmatpush1.bf16.msra.mxu1 %v17179_v28  ;;  %8937 = vmatprep.mubr.bf16.mxu1 %v17109_v35 }
 0x9e4   : > { %9011 = vmatprep.subr.bf16.mxu1 %v17180_v20 }
 0x9ea   : > { %10084 = vmatmul.mubr.msk.bf16.vlgmr.msra.gmra.mrb[128].mxu1 %vm6357_vm0, %v16483_v29 }
 0x9eb   : > { %9012 = vmatpush1.bf16.msra.mxu1 %v17181_v62  ;;  %8947 = vmatprep.mubr.bf16.mxu1 %v17109_v35  ;;  %v16530_v62 = vpop.permute.xlu1 %8442 }
 0x9ec   : > { %9013 = vmatprep.subr.bf16.mxu1 %v17182_v40 }
 0x9ef   : > { %9014 = vmatpush1.bf16.msra.mxu1 %v15753_v43 }
 0x9f0   : > { %10089 = vmatprep.subr.msk.bf16.mxu1 %vm6364_vm9, %v15884_v25 }
 0x9f2   : > { %10085 = vmatmul.mubr.msk.bf16.gmra.mrb[132].mxu1 %vm6357_vm0, %v16497_v4 }
 0x9f3   : > { %9016 = vmatpush1.bf16.msra.mxu1 %v15898_v21  ;;  %9043 = vmatprep.mubr.bf16.mxu1 %v17109_v35 }
 0x9fa   : > { %10090 = vmatmul.mubr.msk.bf16.vlgmr.msra.gmra.mrb[136].mxu1 %vm6357_vm0, %v16483_v29 }
 0x9fb   : > { %9053 = vmatprep.mubr.bf16.mxu1 %v17109_v35 }
 0xa02   : > { %10091 = vmatmul.mubr.msk.bf16.gmra.mrb[140].mxu1 %vm6357_vm0, %v16497_v4 }
 0xa03   : > { %9112 = vmatprep.mubr.bf16.mxu1 %v17109_v35 }
 0xa2f   : > { %v8500_v43 = vpop.f32.mrb[96].mxu1 }
 0xa30   : > { %v8502_v25 = vpop.f32.mrb[97].mxu1  ;;  %v8501_v21 = vadd.f32 %v8500_v43, %v16521_v46 }
 0xa31   : > { %v8504_v5 = vpop.f32.mrb[98].mxu1  ;;  %v8503_v39 = vadd.f32 %v8502_v25, %v16521_v46 }
 0xa32   : > { %v8505_v45 = vadd.f32 %v8504_v5, %v16523_v2  ;;  %v8506_v55 = vpop.f32.mrb[99].mxu1 }
 0xa33   : > { %v8507_v41 = vadd.f32 %v8506_v55, %v16523_v2 }
 0xa34   : > { %v8731_v17 = vpack.c.bf16 %v8505_v45, %v8501_v21 }
 0xa35   : > { %v8732_v49 = vpack.c.bf16 %v8507_v41, %v8503_v39 }
 0xa36   : > { %v8751_v40 = vmax.bf16 %v17109_v35, %v8731_v17 }
 0xa37   : > { %v8510_v28 = vpop.f32.mrb[100].mxu1  ;;  %v8752_v20 = vmax.bf16 %v17109_v35, %v8732_v49 }
 0xa38   : > { %v8512_v10 = vpop.f32.mrb[101].mxu1  ;;  %v8511_v7 = vadd.f32 %v8510_v28, %v16530_v62 }
 0xa39   : > { %v8514_v60 = vpop.f32.mrb[102].mxu1  ;;  %9080 = vmatprep.subr.bf16.mxu1 %v8752_v20  ;;  %v8513_v13 = vadd.f32 %v8512_v10, %v16530_v62 }
 0xa3a   : > { %v8515_v59 = vadd.f32 %v8514_v60, %v16533_v38  ;;  %v8516_v34 = vpop.f32.mrb[103].mxu1  ;;  %9081 = vmatpush1.bf16.msra.mxu1 %v8751_v40 }
 0xa3b   : > { %v8517_v16 = vadd.f32 %v8516_v34, %v16533_v38 }
 0xa3c   : > { %v8741_v42 = vpack.c.bf16 %v8515_v59, %v8511_v7 }
 0xa3d   : > { %v8742_v44 = vpack.c.bf16 %v8517_v16, %v8513_v13 }
 0xa3e   : > { %v8761_v51 = vmax.bf16 %v17109_v35, %v8741_v42 }
 0xa3f   : > { %v8762_v30 = vmax.bf16 %v17109_v35, %v8742_v44 }
 0xa41   : > { %9082 = vmatprep.subr.bf16.mxu1 %v8762_v30 }
 0xa42   : > { %9083 = vmatpush1.bf16.msra.mxu1 %v8761_v51 }
 0xa45   : > { %10094 = vmatmul.mubr.msk.bf16.vlgmr.msra.gmra.mrb[120].mxu1 %vm6738_vm5, %v16544_v24 }
 0xa46   : > { %9122 = vmatprep.mubr.bf16.mxu1 %v17109_v35 }
 0xa4d   : > { %10095 = vmatmul.mubr.msk.bf16.gmra.mrb[124].mxu1 %vm6738_vm5, %v16552_v18 }
 0xa4e   : > { %9218 = vmatprep.mubr.bf16.mxu1 %v17109_v35 }
 0xa5d   : > { %v8303_v19 = vpop.f32.mrb[96].mxu0 }
 0xa5e   : > { %v8305_v54 = vpop.f32.mrb[97].mxu0  ;;  %v8350_v22 = vadd.f32 %v16364_v31, %v8303_v19 }
 0xa5f   : > { %v8307_v47 = vpop.f32.mrb[98].mxu0  ;;  %v8351_v53 = vadd.f32 %v16364_v31, %v8305_v54 }
 0xa60   : > { %v8360_v57 = vadd.f32 %v16366_v58, %v8307_v47  ;;  %v8309_v3 = vpop.f32.mrb[99].mxu0 }
 0xa61   : > { %v8361_v8 = vadd.f32 %v16366_v58, %v8309_v3 }
 0xa62   : > { %v8390_v26 = vpack.c.bf16 %v8360_v57, %v8350_v22 }
 0xa63   : > { %v8391_v52 = vpack.c.bf16 %v8361_v8, %v8351_v53 }
 0xa64   : > { %v8410_v12 = vmax.bf16 %v17109_v35, %v8390_v26 }
 0xa65   : > { %v8313_v50 = vpop.f32.mrb[100].mxu0  ;;  %v8411_v0 = vmax.bf16 %v17109_v35, %v8391_v52 }
 0xa66   : > { %v8315_v43 = vpop.f32.mrb[101].mxu0  ;;  %v8370_v5 = vadd.f32 %v16373_v1, %v8313_v50 }
 0xa67   : > { %v8317_v25 = vpop.f32.mrb[102].mxu0  ;;  %8678 = vmatprep.subr.bf16.mxu0 %v8411_v0  ;;  %v8371_v31 = vadd.f32 %v16373_v1, %v8315_v43 }
 0xa68   : > { %v8380_v21 = vadd.f32 %v16376_v27, %v8317_v25  ;;  %v8319_v45 = vpop.f32.mrb[103].mxu0  ;;  %8679 = vmatpush1.bf16.msra.mxu0 %v8410_v12 }
 0xa69   : > { %v8381_v58 = vadd.f32 %v16376_v27, %v8319_v45 }
 0xa6a   : > { %v8400_v55 = vpack.c.bf16 %v8380_v21, %v8370_v5 }
 0xa6b   : > { %v8401_v39 = vpack.c.bf16 %v8381_v58, %v8371_v31 }
 0xa6c   : > { %v8420_v17 = vmax.bf16 %v17109_v35, %v8400_v55 }
 0xa6d   : > { %v8421_v41 = vmax.bf16 %v17109_v35, %v8401_v39 }
 0xa6f   : > { %8680 = vmatprep.subr.bf16.mxu0 %v8421_v41 }
 0xa70   : > { %8681 = vmatpush1.bf16.msra.mxu0 %v8420_v17 }
 0xa71   : > { %8852 = vmatprep.subr.bf16.mxu0 %v17183_v36 }
 0xa73   : > { %10073 = vmatmul.mubr.msk.bf16.vlgmr.msra.gmra.mrb[112].mxu0 %vm6738_vm5, %v16387_v6 }
 0xa74   : > { %8853 = vmatpush1.bf16.msra.mxu0 %v17184_v32  ;;  %8720 = vmatprep.mubr.bf16.mxu0 %v17109_v35 }
 0xa75   : > { %8854 = vmatprep.subr.bf16.mxu0 %v17185_v9 }
 0xa78   : > { %8855 = vmatpush1.bf16.msra.mxu0 %v17186_v61 }
 0xa79   : > { %10080 = vmatprep.subr.msk.bf16.mxu0 %vm6364_vm9, %v17187_v33 }
 0xa7b   : > { %10074 = vmatmul.mubr.msk.bf16.gmra.mrb[116].mxu0 %vm6738_vm5, %v16395_v48 }
 0xa7c   : > { %8857 = vmatpush1.bf16.msra.mxu0 %v17188_v15  ;;  %8884 = vmatprep.mubr.bf16.mxu0 %v17109_v35 }
 0xa7d   : > { %8958 = vmatprep.subr.bf16.mxu0 %v17189_v11 }
 0xa83   : > { %10081 = vmatmul.mubr.msk.bf16.vlgmr.msra.gmra.mrb[120].mxu0 %vm6357_vm0, %v16483_v29 }
 0xa84   : > { %8959 = vmatpush1.bf16.msra.mxu0 %v17190_v23  ;;  %8894 = vmatprep.mubr.bf16.mxu0 %v17109_v35 }
 0xa85   : > { %8960 = vmatprep.subr.bf16.mxu0 %v17191_v14 }
 0xa88   : > { %8961 = vmatpush1.bf16.msra.mxu0 %v17192_v63 }
 0xa89   : > { %10086 = vmatprep.subr.msk.bf16.mxu0 %vm6364_vm9, %v17193_v56 }
 0xa8b   : > { %10082 = vmatmul.mubr.msk.bf16.gmra.mrb[124].mxu0 %vm6357_vm0, %v16497_v4 }
 0xa8c   : > { %8963 = vmatpush1.bf16.msra.mxu0 %v17194_v37  ;;  %8990 = vmatprep.mubr.bf16.mxu0 %v17109_v35 }
 0xa8d   : > { %v8553_v36 = vpop.f32.mrb[104].mxu1 }
 0xa8e   : > { %v8555_v32 = vpop.f32.mrb[105].mxu1  ;;  %v8554_v61 = vadd.f32 %v8553_v36, %v16521_v46 }
 0xa8f   : > { %v8557_v9 = vpop.f32.mrb[106].mxu1  ;;  %v8556_v11 = vadd.f32 %v8555_v32, %v16521_v46 }
 0xa90   : > { %v8558_v33 = vadd.f32 %v8557_v9, %v16523_v2  ;;  %v8559_v15 = vpop.f32.mrb[107].mxu1 }
 0xa91   : > { %v8560_v23 = vadd.f32 %v8559_v15, %v16523_v2 }
 0xa92   : > { %v8733_v14 = vpack.c.bf16 %v8558_v33, %v8554_v61 }
 0xa93   : > { %v8734_v63 = vpack.c.bf16 %v8560_v23, %v8556_v11  ;;  %10087 = vmatmul.mubr.msk.bf16.vlgmr.msra.gmra.mrb[128].mxu0 %vm6357_vm0, %v16483_v29 }
 0xa94   : > { %9000 = vmatprep.mubr.bf16.mxu0 %v17109_v35  ;;  %v8753_v1 = vmax.bf16 %v17109_v35, %v8733_v14 }
 0xa95   : > { %v8563_v56 = vpop.f32.mrb[108].mxu1  ;;  %v8754_v37 = vmax.bf16 %v17109_v35, %v8734_v63 }
 0xa96   : > { %v8565_v27 = vpop.f32.mrb[109].mxu1  ;;  %v8564_v48 = vadd.f32 %v8563_v56, %v16530_v62 }
 0xa97   : > { %v8567_v6 = vpop.f32.mrb[110].mxu1  ;;  %9133 = vmatprep.subr.bf16.mxu0 %v8754_v37  ;;  %v8566_v20 = vadd.f32 %v8565_v27, %v16530_v62  ;;  %v8606_v60 = vpop.f32.mrb[104].mxu0 }
 0xa98   : > { %v8568_v49 = vadd.f32 %v8567_v6, %v16533_v38  ;;  %v8569_v28 = vpop.f32.mrb[111].mxu1  ;;  %9134 = vmatpush1.bf16.msra.mxu0 %v8753_v1  ;;  %v8608_v59 = vpop.f32.mrb[105].mxu0  ;;  %v8607_v13 = vadd.f32 %v8606_v60, %v16521_v46 }
 0xa99   : > { %v8570_v29 = vadd.f32 %v8569_v28, %v16533_v38  ;;  %v8610_v34 = vpop.f32.mrb[106].mxu0  ;;  %v8609_v44 = vadd.f32 %v8608_v59, %v16521_v46 }
 0xa9a   : > { %v8743_v40 = vpack.c.bf16 %v8568_v49, %v8564_v48  ;;  %v8611_v16 = vadd.f32 %v8610_v34, %v16523_v2  ;;  %v8612_v42 = vpop.f32.mrb[107].mxu0  ;;  %v16655_v49 = vpop.permute.xlu1 %9347 }
 0xa9b   : > { %v8744_v10 = vpack.c.bf16 %v8570_v29, %v8566_v20  ;;  %10088 = vmatmul.mubr.msk.bf16.gmra.mrb[132].mxu0 %vm6357_vm0, %v16497_v4  ;;  %v8613_v30 = vadd.f32 %v8612_v42, %v16523_v2  ;;  %v16657_v20 = vpop.permute.xlu0 %9352 }
 0xa9c   : > { %9165 = vmatprep.mubr.bf16.mxu0 %v17109_v35  ;;  %v8735_v51 = vpack.c.bf16 %v8611_v16, %v8607_v13  ;;  %v8763_v55 = vmax.bf16 %v17109_v35, %v8743_v40 }
 0xa9d   : > { %v8659_v7 = vpop.f32.mrb[112].mxu1  ;;  %v8736_v19 = vpack.c.bf16 %v8613_v30, %v8609_v44  ;;  %v8764_v45 = vmax.bf16 %v17109_v35, %v8744_v10 }
 0xa9e   : > { %v8755_v47 = vmax.bf16 %v17109_v35, %v8735_v51  ;;  %v8661_v3 = vpop.f32.mrb[113].mxu1  ;;  %v8660_v12 = vadd.f32 %v8659_v7, %v16521_v46  ;;  %v16664_v44 = vpop.permute.xlu1 %9357 }
 0xa9f   : > { %v8616_v54 = vpop.f32.mrb[108].mxu0  ;;  %v8756_v4 = vmax.bf16 %v17109_v35, %v8736_v19  ;;  %v8663_v52 = vpop.f32.mrb[114].mxu1  ;;  %v8662_v41 = vadd.f32 %v8661_v3, %v16521_v46  ;;  %9135 = vmatprep.subr.bf16.mxu0 %v8764_v45 }
 0xaa0   : > { %v8618_v22 = vpop.f32.mrb[109].mxu0  ;;  %v8617_v53 = vadd.f32 %v8616_v54, %v16530_v62  ;;  %v8664_v43 = vadd.f32 %v8663_v52, %v16523_v2  ;;  %v8665_v58 = vpop.f32.mrb[115].mxu1  ;;  %9136 = vmatpush1.bf16.msra.mxu0 %v8763_v55 }
 0xaa1   : > { %v8620_v57 = vpop.f32.mrb[110].mxu0  ;;  %9186 = vmatprep.subr.bf16.mxu1 %v8756_v4  ;;  %v8619_v50 = vadd.f32 %v8618_v22, %v16530_v62  ;;  %v8666_v17 = vadd.f32 %v8665_v58, %v16523_v2  ;;  %v16667_v19 = vpop.permute.xlu0 %9362 }
 0xaa2   : > { %v8621_v8 = vadd.f32 %v8620_v57, %v16533_v38  ;;  %v8622_v26 = vpop.f32.mrb[111].mxu0  ;;  %9187 = vmatpush1.bf16.msra.mxu1 %v8755_v47  ;;  %v8737_v21 = vpack.c.bf16 %v8664_v43, %v8660_v12 }
 0xaa3   : > { %v8623_v0 = vadd.f32 %v8622_v26, %v16533_v38  ;;  %v8738_v9 = vpack.c.bf16 %v8666_v17, %v8662_v41  ;;  %10096 = vmatmul.mubr.msk.bf16.vlgmr.msra.gmra.mrb[120].mxu0 %vm6738_vm5, %v16544_v24 }
 0xaa4   : > { %v8745_v25 = vpack.c.bf16 %v8621_v8, %v8617_v53  ;;  %9175 = vmatprep.mubr.bf16.mxu0 %v17109_v35  ;;  %v8757_v63 = vmax.bf16 %v17109_v35, %v8737_v21 }
 0xaa5   : > { %v8746_v5 = vpack.c.bf16 %v8623_v0, %v8619_v50  ;;  %v8669_v36 = vpop.f32.mrb[116].mxu1  ;;  %v8758_v23 = vmax.bf16 %v17109_v35, %v8738_v9  ;;  %v16678_v50 = vld [vmem:[%s16805_s20] sm:$0xf] }
 0xaa6   : > { %v8765_v39 = vmax.bf16 %v17109_v35, %v8745_v25  ;;  %v8671_v32 = vpop.f32.mrb[117].mxu1  ;;  %v8670_v33 = vadd.f32 %v8669_v36, %v16530_v62 }
 0xaa7   : > { %v8766_v31 = vmax.bf16 %v17109_v35, %v8746_v5  ;;  %v8673_v61 = vpop.f32.mrb[118].mxu1  ;;  %v8672_v56 = vadd.f32 %v8671_v32, %v16530_v62  ;;  %9239 = vmatprep.subr.bf16.mxu0 %v8758_v23 }
 0xaa8   : > { %v8674_v15 = vadd.f32 %v8673_v61, %v16533_v38  ;;  %v8675_v14 = vpop.f32.mrb[119].mxu1  ;;  %9240 = vmatpush1.bf16.msra.mxu0 %v8757_v63 }
 0xaa9   : > { %9188 = vmatprep.subr.bf16.mxu1 %v8766_v31  ;;  %v8676_v37 = vadd.f32 %v8675_v14, %v16533_v38 }
 0xaaa   : > { %9189 = vmatpush1.bf16.msra.mxu1 %v8765_v39  ;;  %v8747_v11 = vpack.c.bf16 %v8674_v15, %v8670_v33 }
 0xaab   : > { %v8748_v1 = vpack.c.bf16 %v8676_v37, %v8672_v56  ;;  %10097 = vmatmul.mubr.msk.bf16.gmra.mrb[124].mxu0 %vm6738_vm5, %v16552_v18 }
 0xaac   : > { %v8767_v6 = vmax.bf16 %v17109_v35, %v8747_v11  ;;  %9271 = vmatprep.mubr.bf16.mxu0 %v17109_v35 }
 0xaad   : > { %10098 = vmatmul.mubr.msk.bf16.vlgmr.msra.gmra.mrb[128].mxu1 %vm6738_vm5, %v16544_v24  ;;  %v8768_v27 = vmax.bf16 %v17109_v35, %v8748_v1 }
 0xaae   : > { %9228 = vmatprep.mubr.bf16.mxu1 %v17109_v35 }
 0xaaf   : > { %9241 = vmatprep.subr.bf16.mxu0 %v8768_v27 }
 0xab0   : > { %9242 = vmatpush1.bf16.msra.mxu0 %v8767_v6 }
 0xab3   : > { %10100 = vmatmul.mubr.msk.bf16.vlgmr.msra.gmra.mrb[128].mxu0 %vm6738_vm5, %v16544_v24 }
 0xab4   : > { %9281 = vmatprep.mubr.bf16.mxu0 %v17109_v35 }
 0xab5   : > { %10099 = vmatmul.mubr.msk.bf16.gmra.mrb[132].mxu1 %vm6738_vm5, %v16552_v18 }
 0xab6   : > { %9324 = vmatprep.mubr.bf16.mxu1 %v17109_v35 }
 0xabb   : > { %10101 = vmatmul.mubr.msk.bf16.gmra.mrb[132].mxu0 %vm6738_vm5, %v16552_v18 }
 0xabc   : > { %9487 = vmatprep.mubr.bf16.mxu0 %v17109_v35 }
 0xb18   : > { %v9114_v48 = vpop.f32.mrb[120].mxu1 }
 0xb19   : > { %v9116_v28 = vpop.f32.mrb[121].mxu1  ;;  %v9365_v40 = vadd.f32 %v16655_v49, %v9114_v48 }
 0xb1a   : > { %v9118_v29 = vpop.f32.mrb[122].mxu1  ;;  %v9366_v7 = vadd.f32 %v16655_v49, %v9116_v28 }
 0xb1b   : > { %v9375_v10 = vadd.f32 %v16657_v20, %v9118_v29  ;;  %v9120_v60 = vpop.f32.mrb[123].mxu1 }
 0xb1c   : > { %v9376_v59 = vadd.f32 %v16657_v20, %v9120_v60 }
 0xb1d   : > { %v9405_v34 = vpack.c.bf16 %v9375_v10, %v9365_v40 }
 0xb1e   : > { %v9406_v13 = vpack.c.bf16 %v9376_v59, %v9366_v7 }
 0xb1f   : > { %v9425_v30 = vmax.bf16 %v17109_v35, %v9405_v34 }
 0xb20   : > { %v9124_v16 = vpop.f32.mrb[124].mxu1  ;;  %v9426_v42 = vmax.bf16 %v17109_v35, %v9406_v13 }
 0xb21   : > { %v9126_v51 = vpop.f32.mrb[125].mxu1  ;;  %v9385_v4 = vadd.f32 %v16664_v44, %v9124_v16 }
 0xb22   : > { %v9128_v54 = vpop.f32.mrb[126].mxu1  ;;  %9455 = vmatprep.subr.bf16.mxu0 %v9426_v42  ;;  %v9386_v57 = vadd.f32 %v16664_v44, %v9126_v51 }
 0xb23   : > { %v9395_v47 = vadd.f32 %v16667_v19, %v9128_v54  ;;  %v9130_v22 = vpop.f32.mrb[127].mxu1  ;;  %9456 = vmatpush1.bf16.msra.mxu0 %v9425_v30 }
 0xb24   : > { %v9396_v3 = vadd.f32 %v16667_v19, %v9130_v22 }
 0xb25   : > { %v9415_v53 = vpack.c.bf16 %v9395_v47, %v9385_v4 }
 0xb26   : > { %v9416_v8 = vpack.c.bf16 %v9396_v3, %v9386_v57 }
 0xb27   : > { %v9435_v52 = vmax.bf16 %v17109_v35, %v9415_v53 }
 0xb28   : > { %v9436_v26 = vmax.bf16 %v17109_v35, %v9416_v8 }
 0xb2a   : > { %9457 = vmatprep.subr.bf16.mxu0 %v9436_v26 }
 0xb2b   : > { %9458 = vmatpush1.bf16.msra.mxu0 %v9435_v52 }
 0xb2e   : > { %10104 = vmatmul.mubr.msk.bf16.vlgmr.msra.gmra.mrb[136].mxu0 %vm6738_vm5, %v16678_v50 }
 0xb2f   : > { %9528 = vmatprep.mubr.bf16.mxu0 %v17109_v35 }
 0xb46   : > { %v8712_v0 = vpop.f32.mrb[112].mxu0 }
 0xb47   : > { %v8714_v12 = vpop.f32.mrb[113].mxu0  ;;  %v8713_v25 = vadd.f32 %v8712_v0, %v16521_v46 }
 0xb48   : > { %v8716_v43 = vpop.f32.mrb[114].mxu0  ;;  %v8715_v45 = vadd.f32 %v8714_v12, %v16521_v46 }
 0xb49   : > { %v8717_v5 = vadd.f32 %v8716_v43, %v16523_v2  ;;  %v8718_v21 = vpop.f32.mrb[115].mxu0 }
 0xb4a   : > { %v8719_v31 = vadd.f32 %v8718_v21, %v16523_v2 }
 0xb4b   : > { %v8739_v58 = vpack.c.bf16 %v8717_v5, %v8713_v25 }
 0xb4c   : > { %v8740_v55 = vpack.c.bf16 %v8719_v31, %v8715_v45 }
 0xb4d   : > { %v8759_v17 = vmax.bf16 %v17109_v35, %v8739_v58 }
 0xb4e   : > { %v8722_v39 = vpop.f32.mrb[116].mxu0  ;;  %v8760_v41 = vmax.bf16 %v17109_v35, %v8740_v55 }
 0xb4f   : > { %v8724_v36 = vpop.f32.mrb[117].mxu0  ;;  %v8723_v9 = vadd.f32 %v8722_v39, %v16530_v62 }
 0xb50   : > { %v8726_v32 = vpop.f32.mrb[118].mxu0  ;;  %9292 = vmatprep.subr.bf16.mxu1 %v8760_v41  ;;  %v8725_v46 = vadd.f32 %v8724_v36, %v16530_v62 }
 0xb51   : > { %v8727_v61 = vadd.f32 %v8726_v32, %v16533_v38  ;;  %v8728_v33 = vpop.f32.mrb[119].mxu0  ;;  %9293 = vmatpush1.bf16.msra.mxu1 %v8759_v17 }
 0xb52   : > { %v8729_v2 = vadd.f32 %v8728_v33, %v16533_v38 }
 0xb53   : > { %v8749_v15 = vpack.c.bf16 %v8727_v61, %v8723_v9 }
 0xb54   : > { %v8750_v11 = vpack.c.bf16 %v8729_v2, %v8725_v46 }
 0xb55   : > { %v8769_v14 = vmax.bf16 %v17109_v35, %v8749_v15 }
 0xb56   : > { %v8770_v23 = vmax.bf16 %v17109_v35, %v8750_v11 }
 0xb58   : > { %9294 = vmatprep.subr.bf16.mxu1 %v8770_v23 }
 0xb59   : > { %9295 = vmatpush1.bf16.msra.mxu1 %v8769_v14 }
 0xb5c   : > { %10102 = vmatmul.mubr.msk.bf16.vlgmr.msra.gmra.mrb[136].mxu1 %vm6738_vm5, %v16544_v24 }
 0xb5d   : > { %9334 = vmatprep.mubr.bf16.mxu1 %v17109_v35 }
 0xb64   : > { %10103 = vmatmul.mubr.msk.bf16.gmra.mrb[140].mxu1 %vm6738_vm5, %v16552_v18 }
 0xb65   : > { %9610 = vmatprep.mubr.bf16.mxu1 %v17109_v35 }
 0xb76   : > { %v9167_v62 = vpop.f32.mrb[120].mxu0 }
 0xb77   : > { %v9169_v63 = vpop.f32.mrb[121].mxu0  ;;  %v9367_v27 = vadd.f32 %v16655_v49, %v9167_v62 }
 0xb78   : > { %v9171_v37 = vpop.f32.mrb[122].mxu0  ;;  %v9368_v18 = vadd.f32 %v16655_v49, %v9169_v63 }
 0xb79   : > { %v9377_v48 = vadd.f32 %v16657_v20, %v9171_v37  ;;  %v9173_v28 = vpop.f32.mrb[123].mxu0 }
 0xb7a   : > { %v9378_v10 = vadd.f32 %v16657_v20, %v9173_v28 }
 0xb7b   : > { %v9407_v7 = vpack.c.bf16 %v9377_v48, %v9367_v27 }
 0xb7c   : > { %v9408_v34 = vpack.c.bf16 %v9378_v10, %v9368_v18  ;;  %v16745_v10 = vpop.permute.xlu1 %9449 }
 0xb7d   : > { %v9427_v51 = vmax.bf16 %v17109_v35, %v9407_v7 }
 0xb7e   : > { %v9177_v16 = vpop.f32.mrb[124].mxu0  ;;  %v9428_v30 = vmax.bf16 %v17109_v35, %v9408_v34 }
 0xb7f   : > { %v9179_v54 = vpop.f32.mrb[125].mxu0  ;;  %v9387_v57 = vadd.f32 %v16664_v44, %v9177_v16 }
 0xb80   : > { %v9220_v38 = vpop.f32.mrb[128].mxu1  ;;  %v9181_v47 = vpop.f32.mrb[126].mxu0  ;;  %9496 = vmatprep.subr.bf16.mxu0 %v9428_v30  ;;  %v9388_v0 = vadd.f32 %v16664_v44, %v9179_v54 }
 0xb81   : > { %v9222_v56 = vpop.f32.mrb[129].mxu1  ;;  %v9369_v6 = vadd.f32 %v16655_v49, %v9220_v38  ;;  %v9397_v53 = vadd.f32 %v16667_v19, %v9181_v47  ;;  %v9183_v26 = vpop.f32.mrb[127].mxu0  ;;  %9497 = vmatpush1.bf16.msra.mxu0 %v9427_v51 }
 0xb82   : > { %v9224_v1 = vpop.f32.mrb[130].mxu1  ;;  %v9370_v40 = vadd.f32 %v16655_v49, %v9222_v56  ;;  %v9398_v43 = vadd.f32 %v16667_v19, %v9183_v26 }
 0xb83   : > { %v9379_v24 = vadd.f32 %v16657_v20, %v9224_v1  ;;  %v9226_v29 = vpop.f32.mrb[131].mxu1  ;;  %v9417_v5 = vpack.c.bf16 %v9397_v53, %v9387_v57 }
 0xb84   : > { %v9380_v60 = vadd.f32 %v16657_v20, %v9226_v29  ;;  %v9418_v45 = vpack.c.bf16 %v9398_v43, %v9388_v0 }
 0xb85   : > { %v9409_v59 = vpack.c.bf16 %v9379_v24, %v9369_v6  ;;  %v9437_v39 = vmax.bf16 %v17109_v35, %v9417_v5 }
 0xb86   : > { %v9410_v13 = vpack.c.bf16 %v9380_v60, %v9370_v40  ;;  %v9273_v58 = vpop.f32.mrb[128].mxu0  ;;  %v9438_v55 = vmax.bf16 %v17109_v35, %v9418_v45 }
 0xb87   : > { %v9275_v41 = vpop.f32.mrb[129].mxu0  ;;  %v9371_v32 = vadd.f32 %v16655_v49, %v9273_v58  ;;  %v9429_v2 = vmax.bf16 %v17109_v35, %v9409_v59 }
 0xb88   : > { %v9230_v42 = vpop.f32.mrb[132].mxu1  ;;  %v9277_v17 = vpop.f32.mrb[130].mxu0  ;;  %9498 = vmatprep.subr.bf16.mxu0 %v9438_v55  ;;  %v9430_v36 = vmax.bf16 %v17109_v35, %v9410_v13  ;;  %v9372_v33 = vadd.f32 %v16655_v49, %v9275_v41 }
 0xb89   : > { %v9232_v4 = vpop.f32.mrb[133].mxu1  ;;  %v9389_v3 = vadd.f32 %v16664_v44, %v9230_v42  ;;  %v9381_v9 = vadd.f32 %v16657_v20, %v9277_v17  ;;  %v9279_v61 = vpop.f32.mrb[131].mxu0  ;;  %9499 = vmatpush1.bf16.msra.mxu0 %v9437_v39 }
 0xb8a   : > { %v9234_v22 = vpop.f32.mrb[134].mxu1  ;;  %v9390_v12 = vadd.f32 %v16664_v44, %v9232_v4  ;;  %v9382_v46 = vadd.f32 %v16657_v20, %v9279_v61  ;;  %9537 = vmatprep.subr.bf16.mxu0 %v9430_v36 }
 0xb8b   : > { %v9399_v8 = vadd.f32 %v16667_v19, %v9234_v22  ;;  %v9236_v52 = vpop.f32.mrb[135].mxu1  ;;  %v9411_v15 = vpack.c.bf16 %v9381_v9, %v9371_v32 }
 0xb8c   : > { %v9400_v25 = vadd.f32 %v16667_v19, %v9236_v52  ;;  %v9412_v11 = vpack.c.bf16 %v9382_v46, %v9372_v33  ;;  %10105 = vmatmul.mubr.msk.bf16.vlgmr.msra.gmra.mrb[140].mxu0 %vm6738_vm5, %v16678_v50 }
 0xb8d   : > { %v9419_v21 = vpack.c.bf16 %v9399_v8, %v9389_v3  ;;  %9538 = vmatpush1.bf16.msra.mxu0 %v9429_v2  ;;  %9569 = vmatprep.mubr.bf16.mxu0 %v17109_v35  ;;  %v9431_v63 = vmax.bf16 %v17109_v35, %v9411_v15 }
 0xb8e   : > { %v9420_v31 = vpack.c.bf16 %v9400_v25, %v9390_v12  ;;  %v9283_v14 = vpop.f32.mrb[132].mxu0  ;;  %v9432_v62 = vmax.bf16 %v17109_v35, %v9412_v11 }
 0xb8f   : > { %v9439_v38 = vmax.bf16 %v17109_v35, %v9419_v21  ;;  %v9285_v56 = vpop.f32.mrb[133].mxu0  ;;  %v9391_v1 = vadd.f32 %v16664_v44, %v9283_v14 }
 0xb90   : > { %v9440_v23 = vmax.bf16 %v17109_v35, %v9420_v31  ;;  %v9287_v37 = vpop.f32.mrb[134].mxu0  ;;  %9578 = vmatprep.subr.bf16.mxu1 %v9432_v62  ;;  %v9392_v48 = vadd.f32 %v16664_v44, %v9285_v56 }
 0xb91   : > { %v9401_v27 = vadd.f32 %v16667_v19, %v9287_v37  ;;  %v9289_v6 = vpop.f32.mrb[135].mxu0  ;;  %9579 = vmatpush1.bf16.msra.mxu1 %v9431_v63 }
 0xb92   : > { %9539 = vmatprep.subr.bf16.mxu0 %v9440_v23  ;;  %v9402_v24 = vadd.f32 %v16667_v19, %v9289_v6 }
 0xb93   : > { %9540 = vmatpush1.bf16.msra.mxu0 %v9439_v38  ;;  %v9421_v28 = vpack.c.bf16 %v9401_v27, %v9391_v1 }
 0xb94   : > { %v9422_v29 = vpack.c.bf16 %v9402_v24, %v9392_v48 }
 0xb95   : > { %v9441_v40 = vmax.bf16 %v17109_v35, %v9421_v28 }
 0xb96   : > { %10106 = vmatmul.mubr.msk.bf16.vlgmr.msra.gmra.mrb[144].mxu0 %vm6738_vm5, %v16678_v50  ;;  %v9442_v18 = vmax.bf16 %v17109_v35, %v9422_v29 }
 0xb97   : > { %9651 = vmatprep.mubr.bf16.mxu0 %v17109_v35 }
 0xb98   : > { %9580 = vmatprep.subr.bf16.mxu1 %v9442_v18 }
 0xb99   : > { %9581 = vmatpush1.bf16.msra.mxu1 %v9441_v40 }
 0xb9c   : > { %10107 = vmatmul.mubr.msk.bf16.vlgmr.msra.gmra.mrb[144].mxu1 %vm6738_vm5, %v16678_v50 }
 0xc01   : > { %v9489_v60 = vpop.f32.mrb[136].mxu0 }
 0xc02   : > { %v9490_v7 = vadd.f32 %v9489_v60, %v16745_v10  ;;  %v9491_v59 = vpop.f32.mrb[137].mxu0 }
 0xc03   : > { %v9492_v34 = vadd.f32 %v9491_v59, %v16745_v10  ;;  %v9493_v13 = vpop.f32.mrb[138].mxu0 }
 0xc04   : > { %v9660_v16 = vpack.c.bf16 %v9490_v7, %v9490_v7  ;;  %v9494_v42 = vpop.f32.mrb[139].mxu0 }
 0xc05   : > { %v9661_v30 = vpack.c.bf16 %v9492_v34, %v9492_v34 }
 0xc06   : > { %10626 = vtanh.bf16 %v9660_v16 }
 0xc07   : > { %10628 = vtanh.bf16 %v9661_v30 }
 0xc11   : > { %v10627_v51 = vpop.eup %10626 }
 0xc12   : > { %v10629_v54 = vpop.eup %10628  ;;  %v9680_v4 = vunpack.c.l.bf16 %v10627_v51 }
 0xc13   : > { %v9681_v47 = vunpack.c.l.bf16 %v10629_v54 }
 0xc15   : > { %v9700_v22 = vcombine.low %v9680_v4, %v9681_v47 }
 0xc17   : > { %9710 = vst [vmem:[%s16753_s5] sm:$0x77] %v9700_v22 }
 0xc2f   : > { %v9326_v57 = vpop.f32.mrb[136].mxu1 }
 0xc30   : > { %v9328_v3 = vpop.f32.mrb[137].mxu1  ;;  %v9373_v8 = vadd.f32 %v16655_v49, %v9326_v57 }
 0xc31   : > { %v9330_v53 = vpop.f32.mrb[138].mxu1  ;;  %v9374_v0 = vadd.f32 %v16655_v49, %v9328_v3 }
 0xc32   : > { %v9383_v26 = vadd.f32 %v16657_v20, %v9330_v53  ;;  %v9332_v52 = vpop.f32.mrb[139].mxu1 }
 0xc33   : > { %v9384_v12 = vadd.f32 %v16657_v20, %v9332_v52 }
 0xc34   : > { %v9413_v43 = vpack.c.bf16 %v9383_v26, %v9373_v8 }
 0xc35   : > { %v9414_v25 = vpack.c.bf16 %v9384_v12, %v9374_v0 }
 0xc36   : > { %v9433_v45 = vmax.bf16 %v17109_v35, %v9413_v43 }
 0xc37   : > { %v9336_v5 = vpop.f32.mrb[140].mxu1  ;;  %v9434_v21 = vmax.bf16 %v17109_v35, %v9414_v25 }
 0xc38   : > { %v9338_v31 = vpop.f32.mrb[141].mxu1  ;;  %v9393_v55 = vadd.f32 %v16664_v44, %v9336_v5 }
 0xc39   : > { %v9340_v58 = vpop.f32.mrb[142].mxu1  ;;  %9619 = vmatprep.subr.bf16.mxu0 %v9434_v21  ;;  %v9394_v49 = vadd.f32 %v16664_v44, %v9338_v31 }
 0xc3a   : > { %v9403_v39 = vadd.f32 %v16667_v19, %v9340_v58  ;;  %v9342_v41 = vpop.f32.mrb[143].mxu1  ;;  %9620 = vmatpush1.bf16.msra.mxu0 %v9433_v45 }
 0xc3b   : > { %v9404_v20 = vadd.f32 %v16667_v19, %v9342_v41 }
 0xc3c   : > { %v9423_v17 = vpack.c.bf16 %v9403_v39, %v9393_v55 }
 0xc3d   : > { %v9424_v36 = vpack.c.bf16 %v9404_v20, %v9394_v49 }
 0xc3e   : > { %v9443_v9 = vmax.bf16 %v17109_v35, %v9423_v17 }
 0xc3f   : > { %v9444_v32 = vmax.bf16 %v17109_v35, %v9424_v36 }
 0xc41   : > { %9621 = vmatprep.subr.bf16.mxu0 %v9444_v32 }
 0xc42   : > { %9622 = vmatpush1.bf16.msra.mxu0 %v9443_v9 }
 0xc45   : > { %10108 = vmatmul.mubr.msk.bf16.vlgmr.msra.gmra.mrb[148].mxu0 %vm6738_vm5, %v16678_v50 }
 0xc5f   : > { %v9530_v61 = vpop.f32.mrb[140].mxu0 }
 0xc60   : > { %v9531_v33 = vadd.f32 %v9530_v61, %v16745_v10  ;;  %v9532_v46 = vpop.f32.mrb[141].mxu0 }
 0xc61   : > { %v9533_v2 = vadd.f32 %v9532_v46, %v16745_v10  ;;  %v9534_v44 = vpop.f32.mrb[142].mxu0 }
 0xc62   : > { %v9662_v15 = vpack.c.bf16 %v9531_v33, %v9531_v33  ;;  %v9535_v19 = vpop.f32.mrb[143].mxu0 }
 0xc63   : > { %v9663_v11 = vpack.c.bf16 %v9533_v2, %v9533_v2 }
 0xc64   : > { %10630 = vtanh.bf16 %v9662_v15 }
 0xc65   : > { %10632 = vtanh.bf16 %v9663_v11 }
 0xc69   : > { %v9571_v23 = vpop.f32.mrb[144].mxu0 }
 0xc6a   : > { %v9572_v35 = vadd.f32 %v9571_v23, %v16745_v10  ;;  %v9573_v14 = vpop.f32.mrb[145].mxu0 }
 0xc6b   : > { %v9574_v62 = vadd.f32 %v9573_v14, %v16745_v10  ;;  %v9575_v50 = vpop.f32.mrb[146].mxu0 }
 0xc6c   : > { %v9664_v38 = vpack.c.bf16 %v9572_v35, %v9572_v35  ;;  %v9576_v63 = vpop.f32.mrb[147].mxu0 }
 0xc6d   : > { %v9665_v56 = vpack.c.bf16 %v9574_v62, %v9574_v62 }
 0xc6e   : > { %10634 = vtanh.bf16 %v9664_v38 }
 0xc6f   : > { %10636 = vtanh.bf16 %v9665_v56  ;;  %v10631_v37 = vpop.eup %10630  ;;  %v9612_v1 = vpop.f32.mrb[144].mxu1 }
 0xc70   : > { %v10633_v27 = vpop.eup %10632  ;;  %v9682_v6 = vunpack.c.l.bf16 %v10631_v37  ;;  %v9613_v24 = vadd.f32 %v9612_v1, %v16745_v10  ;;  %v9614_v59 = vpop.f32.mrb[145].mxu1 }
 0xc71   : > { %v9683_v48 = vunpack.c.l.bf16 %v10633_v27  ;;  %v9615_v34 = vadd.f32 %v9614_v59, %v16745_v10  ;;  %v9616_v13 = vpop.f32.mrb[146].mxu1 }
 0xc72   : > { %v9666_v29 = vpack.c.bf16 %v9613_v24, %v9613_v24  ;;  %v9617_v42 = vpop.f32.mrb[147].mxu1 }
 0xc73   : > { %v9701_v28 = vcombine.low %v9682_v6, %v9683_v48  ;;  %v9667_v30 = vpack.c.bf16 %v9615_v34, %v9615_v34 }
 0xc74   : > { %10638 = vtanh.bf16 %v9666_v29 }
 0xc75   : > { %9711 = vst [vmem:[%s16753_s5 + $0x8] sm:$0x77] %v9701_v28  ;;  %10640 = vtanh.bf16 %v9667_v30 }
 0xc79   : > { %v10635_v18 = vpop.eup %10634 }
 0xc7a   : > { %v10637_v40 = vpop.eup %10636  ;;  %v9684_v60 = vunpack.c.l.bf16 %v10635_v18 }
 0xc7b   : > { %v9685_v7 = vunpack.c.l.bf16 %v10637_v40 }
 0xc7d   : > { %v9702_v16 = vcombine.low %v9684_v60, %v9685_v7 }
 0xc7f   : > { %9712 = vst [vmem:[%s16753_s5 + $0x10] sm:$0x77] %v9702_v16  ;;  %v10639_v51 = vpop.eup %10638 }
 0xc80   : > { %v9686_v54 = vunpack.c.l.bf16 %v10639_v51  ;;  %v10641_v4 = vpop.eup %10640 }
 0xc81   : > { %v9687_v47 = vunpack.c.l.bf16 %v10641_v4 }
 0xc83   : > { %v9703_v22 = vcombine.low %v9686_v54, %v9687_v47 }
 0xc85   : > { %9713 = vst [vmem:[%s16753_s5 + $0x18] sm:$0x77] %v9703_v22 }
 0xd18   : > { %v9653_v57 = vpop.f32.mrb[148].mxu0 }
 0xd19   : > { %v9654_v3 = vadd.f32 %v9653_v57, %v16745_v10  ;;  %v9655_v53 = vpop.f32.mrb[149].mxu0 }
 0xd1a   : > { %v9656_v8 = vadd.f32 %v9655_v53, %v16745_v10  ;;  %v9657_v26 = vpop.f32.mrb[150].mxu0 }
 0xd1b   : > { %v9668_v52 = vpack.c.bf16 %v9654_v3, %v9654_v3  ;;  %v9658_v0 = vpop.f32.mrb[151].mxu0 }
 0xd1c   : > { %v9669_v12 = vpack.c.bf16 %v9656_v8, %v9656_v8 }
 0xd1d   : > { %10642 = vtanh.bf16 %v9668_v52 }
 0xd1e   : > { %10644 = vtanh.bf16 %v9669_v12 }
 0xd28   : > { %v10643_v43 = vpop.eup %10642 }
 0xd29   : > { %v10645_v25 = vpop.eup %10644  ;;  %v9688_v5 = vunpack.c.l.bf16 %v10643_v43 }
 0xd2a   : > { %v9689_v21 = vunpack.c.l.bf16 %v10645_v25 }
 0xd2c   : > { %v9704_v45 = vcombine.low %v9688_v5, %v9689_v21 }
 0xd2e   : > { %9714 = vst [vmem:[%s16753_s5 + $0x20] sm:$0x77] %v9704_v45 }
 0xd2f PF: > { %s32_s3 = sadd.s32 1, %s10660_s3  }
 0xd30   : > { %p29_p4 = scmp.ge.s32.totalorder %s32_s3, 6  }
 0xd32   :  { %31 = sbr.rel (!%p29_p4) target bundleno = 8 (0x8), region = 141 }

</bundles_post_ra>
